<compile_context>
chip_gen: v6e
topology: v6e:2x2x1
jax: 0.10.0
libtpu: 0.0.40
codegen_flags: <defaults>
</compile_context>

<pallas_src>
import functools
import math

import jax
import jax.numpy as jnp
from jax.experimental import pallas as pl
from jax.experimental.pallas import tpu as pltpu


# Scoped-VMEM cap for the fused layer kernels.  Tune per generation at
# production sizes (v5e default is only 16 MiB; v7x physical VMEM is 64 MiB).
_VMEM_LIMIT_BYTES = 64 * 1024 * 1024


# ----------------------------------------------------------------------------
# In-kernel helpers (traced inside the kernel bodies)
# ----------------------------------------------------------------------------

def _mm(a, b):
    """bf16 MXU matmul (M,K)@(K,N) -> f32 (M,N); f32 accumulation.

    astype is a trace-time no-op when the operand is already bf16, so callers
    that pre-cast (hoisted casts) pay nothing here.
    """
    return jax.lax.dot_general(
        a.astype(jnp.bfloat16), b.astype(jnp.bfloat16),
        dimension_numbers=(((1,), (0,)), ((), ())),
        preferred_element_type=jnp.float32)


def _mm_nt(a, b):
    """bf16 MXU matmul contracting last dims of both: (M,K),(N,K) -> f32 (M,N)."""
    return jax.lax.dot_general(
        a.astype(jnp.bfloat16), b.astype(jnp.bfloat16),
        dimension_numbers=(((1,), (1,)), ((), ())),
        preferred_element_type=jnp.float32)


def _layernorm(x, g, b, eps):
    # visdialch MCAN LayerNorm: a * (x - mean) / (std + eps) + b,
    # std is the unbiased estimator (torch .std default).  f32 math.
    d = x.shape[-1]
    mean = jnp.mean(x, axis=-1, keepdims=True)
    var = jnp.sum((x - mean) ** 2, axis=-1, keepdims=True) / (d - 1)
    return g * (x - mean) / (jnp.sqrt(var) + eps) + b


def _softmax_lastdim(s):
    s = s - jnp.max(s, axis=-1, keepdims=True)
    e = jnp.exp(s)
    return e * pl.reciprocal(jnp.sum(e, axis=-1, keepdims=True), approx=True)


def _mha_core(q, k, v, neg_bias, mg_w, mg_b, num_heads):
    """Multi-head scaled-dot attention + single merge projection.

    q: (Sq, D), k/v: (Sk, D), already projected, bf16, with the 1/sqrt(Dh)
    scale folded into the Q projection weights.  neg_bias: (1, Sk) f32
    additive key bias (-1e9 at masked keys, 0 otherwise).

    Heads are static lane slices; the H per-head (Sq, Dh) outputs are written
    lane-adjacent via one concatenate and merged with ONE full-K (Sq,D)@(D,D)
    matmul (no per-head merge matmuls, no VPU accumulator chain).
    """
    sq, d = q.shape
    sk = k.shape[0]
    dh = d // num_heads
    # Hoisted: a single broadcast of the additive mask (JAX does not CSE
    # broadcast_in_dim, so doing this inside the head loop re-emits it H times).
    neg = jnp.broadcast_to(neg_bias, (sq, sk))
    outs = []
    for h in range(num_heads):
        sl = slice(h * dh, (h + 1) * dh)
        s = _mm_nt(q[:, sl], k[:, sl]) + neg      # (Sq, Sk); scale pre-folded
        p = _softmax_lastdim(s)
        outs.append(_mm(p, v[:, sl]))             # (Sq, Dh) f32
    att = jnp.concatenate(outs, axis=-1)          # (Sq, D) contiguous head slots
    return _mm(att, mg_w) + mg_b                  # single K=D merge matmul


# ----------------------------------------------------------------------------
# Fused per-layer kernels
# ----------------------------------------------------------------------------

def _sa_kernel(x_ref, negb_ref,
               qkv_w, qkv_b, mg_w, mg_b, ln1_g, ln1_b,
               fc_w, fc_b, out_w, out_b, ln2_g, ln2_b,
               o_ref, *, num_heads, eps):
    """Self-attention encoder block: MHA + res/LN + FFN + res/LN, one batch."""
    b = pl.program_id(0)
    x = x_ref[0]                                  # (S, D) bf16/f32
    xf = x.astype(jnp.float32)
    neg = negb_ref[b]                             # (1, S) additive key bias, resident
    d = xf.shape[-1]

    qkv = (_mm(x, qkv_w[...]) + qkv_b[...]).astype(jnp.bfloat16)   # fused QKV
    att = _mha_core(qkv[:, :d], qkv[:, d:2 * d], qkv[:, 2 * d:],
                    neg, mg_w[...], mg_b[...], num_heads)
    x1 = _layernorm(att + xf, ln1_g[...], ln1_b[...], eps)         # fused res+LN

    h = jnp.maximum(_mm(x1, fc_w[...]) + fc_b[...], 0.0).astype(jnp.bfloat16)
    ff = _mm(h, out_w[...]) + out_b[...]
    x2 = _layernorm(ff + x1, ln2_g[...], ln2_b[...], eps)
    o_ref[0] = x2.astype(o_ref.dtype)


def _sga_kernel(x_ref, y_ref, xnb_ref, ynb_ref,
                qkv1_w, qkv1_b, mg1_w, mg1_b, ln1_g, ln1_b,
                q2_w, q2_b, kv2_w, kv2_b, mg2_w, mg2_b, ln2_g, ln2_b,
                fc_w, fc_b, out_w, out_b, ln3_g, ln3_b,
                o_ref, *, num_heads, eps):
    """Guided-attention decoder block (self-att, cross-att, FFN), one batch."""
    b = pl.program_id(0)
    x = x_ref[0]                                  # (NB, D) image stream
    y = y_ref[0]                                  # (S, D) language stream
    xf = x.astype(jnp.float32)
    xneg = xnb_ref[b]                             # (1, NB)
    yneg = ynb_ref[b]                             # (1, S)
    d = xf.shape[-1]

    qkv = (_mm(x, qkv1_w[...]) + qkv1_b[...]).astype(jnp.bfloat16)
    att1 = _mha_core(qkv[:, :d], qkv[:, d:2 * d], qkv[:, 2 * d:],
                     xneg, mg1_w[...], mg1_b[...], num_heads)
    x1 = _layernorm(att1 + xf, ln1_g[...], ln1_b[...], eps)

    q = (_mm(x1, q2_w[...]) + q2_b[...]).astype(jnp.bfloat16)      # query (image)
    kv = (_mm(y, kv2_w[...]) + kv2_b[...]).astype(jnp.bfloat16)    # fused K/V (lang)
    att2 = _mha_core(q, kv[:, :d], kv[:, d:],
                     yneg, mg2_w[...], mg2_b[...], num_heads)
    x2 = _layernorm(att2 + x1, ln2_g[...], ln2_b[...], eps)

    h = jnp.maximum(_mm(x2, fc_w[...]) + fc_b[...], 0.0).astype(jnp.bfloat16)
    ff = _mm(h, out_w[...]) + out_b[...]
    x3 = _layernorm(ff + x2, ln3_g[...], ln3_b[...], eps)
    o_ref[0] = x3.astype(o_ref.dtype)


def _attflat_kernel(x_ref, m_ref, fc_w, fc_b, out_w, out_b, mg_w, mg_b,
                    o_ref, *, glimpses):
    """AttFlat: MLP attention logits, masked softmax over seq, pool, merge."""
    x = x_ref[0]                                  # (S, D)
    m = m_ref[0].astype(jnp.float32)              # (S, 1), 1.0 = masked position
    h = jnp.maximum(_mm(x, fc_w[...]) + fc_b[...], 0.0).astype(jnp.bfloat16)
    a = _mm(h, out_w[...]) + out_b[...]           # (S, G)
    a = a + m * jnp.float32(-1e9)                 # additive mask
    a = a - jnp.max(a, axis=0, keepdims=True)     # softmax over seq
    e = jnp.exp(a)
    p = e * pl.reciprocal(jnp.sum(e, axis=0, keepdims=True), approx=True)
    pooled = jax.lax.dot_general(                 # p^T @ x -> (G, D)
        p.astype(jnp.bfloat16), x.astype(jnp.bfloat16),
        dimension_numbers=(((0,), (0,)), ((), ())),
        preferred_element_type=jnp.float32)
    flat = pooled.reshape(1, glimpses * x.shape[-1])     # glimpse-major concat
    o_ref[0] = (_mm(flat, mg_w[...]) + mg_b[...]).astype(o_ref.dtype)


def _head_kernel(lang_ref, img_ref, g_ref, b_ref, w_ref, pb_ref, o_ref, *, eps):
    """proj_norm(lang + img) followed by the (lane-padded) answer projection."""
    z = lang_ref[...].astype(jnp.float32) + img_ref[...].astype(jnp.float32)
    z = _layernorm(z, g_ref[...], b_ref[...], eps)
    o_ref[...] = (_mm(z, w_ref[...]) + pb_ref[...]).astype(o_ref.dtype)


# ----------------------------------------------------------------------------
# pallas_call wrappers
# ----------------------------------------------------------------------------

_SA_KEYS = ("qkv_w", "qkv_b", "mg_w", "mg_b", "ln1_g", "ln1_b",
            "fc_w", "fc_b", "out_w", "out_b", "ln2_g", "ln2_b")
_SGA_KEYS = ("qkv1_w", "qkv1_b", "mg1_w", "mg1_b", "ln1_g", "ln1_b",
             "q2_w", "q2_b", "kv2_w", "kv2_b", "mg2_w", "mg2_b", "ln2_g", "ln2_b",
             "fc_w", "fc_b", "out_w", "out_b", "ln3_g", "ln3_b")
_ATTFLAT_KEYS = ("fc_w", "fc_b", "out_w", "out_b", "mg_w", "mg_b")


def _pinned_spec(w):
    # Full-array block, same block index for every grid step -> VMEM-resident
    # across the batch grid (weights are bf16, halving the pinned footprint).
    # TODO(synk): at production sizes add pipeline_mode=pl.Buffered(1) here to
    # avoid double-buffered allocation of the revisited weight blocks.
    assert w.ndim == 2
    return pl.BlockSpec(w.shape, lambda i: (0, 0))


def _compiler_params():
    return pltpu.CompilerParams(
        dimension_semantics=("parallel",),        # megacore-shard the batch grid
        vmem_limit_bytes=_VMEM_LIMIT_BYTES)


def sa_block(x, lang_negb, p, num_heads, eps=1e-6):
    B, S, D = x.shape
    weights = [p[k] for k in _SA_KEYS]
    in_specs = ([pl.BlockSpec((1, S, D), lambda i: (i, 0, 0)),
                 pl.BlockSpec((B, 1, S), lambda i: (0, 0, 0))]    # resident mask bias
                + [_pinned_spec(w) for w in weights])
    return pl.pallas_call(
        functools.partial(_sa_kernel, num_heads=num_heads, eps=eps),
        grid=(B,),
        in_specs=in_specs,
        out_specs=pl.BlockSpec((1, S, D), lambda i: (i, 0, 0)),
        out_shape=jax.ShapeDtypeStruct((B, S, D), jnp.bfloat16),  # bf16 inter-layer
        compiler_params=_compiler_params(),
    )(x, lang_negb, *weights)


def sga_block(x, y, x_negb, y_negb, p, num_heads, eps=1e-6):
    B, NB, D = x.shape
    S = y.shape[1]
    weights = [p[k] for k in _SGA_KEYS]
    in_specs = ([pl.BlockSpec((1, NB, D), lambda i: (i, 0, 0)),
                 pl.BlockSpec((1, S, D), lambda i: (i, 0, 0)),
                 pl.BlockSpec((B, 1, NB), lambda i: (0, 0, 0)),
                 pl.BlockSpec((B, 1, S), lambda i: (0, 0, 0))]
                + [_pinned_spec(w) for w in weights])
    return pl.pallas_call(
        functools.partial(_sga_kernel, num_heads=num_heads, eps=eps),
        grid=(B,),
        in_specs=in_specs,
        out_specs=pl.BlockSpec((1, NB, D), lambda i: (i, 0, 0)),
        out_shape=jax.ShapeDtypeStruct((B, NB, D), jnp.bfloat16),
        compiler_params=_compiler_params(),
    )(x, y, x_negb, y_negb, *weights)


def attflat(x, seq_mask, p, glimpses):
    B, S, D = x.shape
    fout = p["mg_w"].shape[1]
    weights = [p[k] for k in _ATTFLAT_KEYS]
    in_specs = ([pl.BlockSpec((1, S, D), lambda i: (i, 0, 0)),
                 pl.BlockSpec((1, S, 1), lambda i: (i, 0, 0))]
                + [_pinned_spec(w) for w in weights])
    out = pl.pallas_call(
        functools.partial(_attflat_kernel, glimpses=glimpses),
        grid=(B,),
        in_specs=in_specs,
        out_specs=pl.BlockSpec((1, 1, fout), lambda i: (i, 0, 0)),
        out_shape=jax.ShapeDtypeStruct((B, 1, fout), jnp.float32),
        compiler_params=_compiler_params(),
    )(x, seq_mask, *weights)
    return out.reshape(B, fout)


def head(lang, img, g, b, w, pb, answer_size, eps=1e-6):
    B = lang.shape[0]
    a_pad = w.shape[1]                            # lane-dense (multiple of 128)
    vmem = pl.BlockSpec(memory_space=pltpu.MemorySpace.VMEM)
    out = pl.pallas_call(
        functools.partial(_head_kernel, eps=eps),
        in_specs=[vmem] * 6,
        out_specs=vmem,
        out_shape=jax.ShapeDtypeStruct((B, a_pad), jnp.float32),
        compiler_params=pltpu.CompilerParams(vmem_limit_bytes=_VMEM_LIMIT_BYTES),
    )(lang, img, g, b, w, pb)
    return out[:, :answer_size]                   # strip lane padding outside


# ----------------------------------------------------------------------------
# Model forward (only mask construction and layer stacking outside kernels)
# ----------------------------------------------------------------------------

def mcan_net_forward(params, C, img_feat, lang_feat, lang_feat_mask, answer_size):
    B, NB, D = img_feat.shape
    S = lang_feat.shape[1]
    H = C["MULTI_HEAD"]
    G = C["FLAT_GLIMPSES"]

    # make_mask: positions whose feature vector is all-zero are masked (1.0)
    img_mask = (jnp.sum(jnp.abs(img_feat), axis=-1) == 0).astype(jnp.float32)  # (B, NB)
    lang_mask = lang_feat_mask.reshape(B, S).astype(jnp.float32)               # (B, S)

    # Additive key biases computed ONCE per forward (hoisted out of every
    # layer / head): -1e9 at masked key positions, 0 elsewhere.
    lang_negb = lang_mask.reshape(B, 1, S) * jnp.float32(-1e9)
    img_negb = img_mask.reshape(B, 1, NB) * jnp.float32(-1e9)

    x = lang_feat                               # x = language stream
    for p in params["enc"]:                     # MCA_ED encoder (SA on lang)
        x = sa_block(x, lang_negb, p, H)
    y = img_feat                                # y = image stream
    for p in params["dec"]:                     # MCA_ED decoder (SGA, lang-guided)
        y = sga_block(y, x, img_negb, lang_negb, p, H)

    lang = attflat(x, lang_mask.reshape(B, S, 1), params["attflat_lang"], G)
    img = attflat(y, img_mask.reshape(B, NB, 1), params["attflat_img"], G)

    return head(lang, img, params["proj_norm_g"], params["proj_norm_b"],
                params["proj_w"], params["proj_b"], answer_size)


# ----------------------------------------------------------------------------
# Deterministic parameter init (bf16 weights, fused QKV/KV, folded attn scale,
# lane-padded answer head)
# ----------------------------------------------------------------------------

def init_params(key, C, answer_size):
    D = C["HIDDEN_SIZE"]
    FF = C["FF_SIZE"]
    H = C["MULTI_HEAD"]
    dh = D // H
    scale = 1.0 / math.sqrt(dh)
    keys = iter(jax.random.split(key, 256))

    def wf(din, dout):
        return 0.02 * jax.random.normal(next(keys), (din, dout), jnp.float32)

    def bw(x):                      # matmul weights stored bf16 in HBM
        return x.astype(jnp.bfloat16)

    def b(dout):                    # biases stay f32 (added to f32 accumulators)
        return jnp.zeros((1, dout), jnp.float32)

    def ln(d):
        return jnp.ones((1, d), jnp.float32), jnp.zeros((1, d), jnp.float32)

    def fold_q_scale(w_, b_, q_cols):
        # fold 1/sqrt(dh) attention scale into the Q projection (zero runtime cost)
        return w_.at[:, q_cols].multiply(scale), b_.at[:, q_cols].multiply(scale)

    def sa():
        qkv_w, qkv_b = fold_q_scale(wf(D, 3 * D), b(3 * D), slice(0, D))
        ln1_g, ln1_b = ln(D)
        ln2_g, ln2_b = ln(D)
        return {"qkv_w": bw(qkv_w), "qkv_b": qkv_b,
                "mg_w": bw(wf(D, D)), "mg_b": b(D),
                "ln1_g": ln1_g, "ln1_b": ln1_b,
                "fc_w": bw(wf(D, FF)), "fc_b": b(FF),
                "out_w": bw(wf(FF, D)), "out_b": b(D),
                "ln2_g": ln2_g, "ln2_b": ln2_b}

    def sga():
        qkv1_w, qkv1_b = fold_q_scale(wf(D, 3 * D), b(3 * D), slice(0, D))
        q2_w = wf(D, D) * scale
        q2_b = b(D) * scale
        ln1_g, ln1_b = ln(D)
        ln2_g, ln2_b = ln(D)
        ln3_g, ln3_b = ln(D)
        return {"qkv1_w": bw(qkv1_w), "qkv1_b": qkv1_b,
                "mg1_w": bw(wf(D, D)), "mg1_b": b(D),
                "ln1_g": ln1_g, "ln1_b": ln1_b,
                "q2_w": bw(q2_w), "q2_b": q2_b,
                "kv2_w": bw(wf(D, 2 * D)), "kv2_b": b(2 * D),
                "mg2_w": bw(wf(D, D)), "mg2_b": b(D),
                "ln2_g": ln2_g, "ln2_b": ln2_b,
                "fc_w": bw(wf(D, FF)), "fc_b": b(FF),
                "out_w": bw(wf(FF, D)), "out_b": b(D),
                "ln3_g": ln3_g, "ln3_b": ln3_b}

    def attflat_p():
        return {"fc_w": bw(wf(D, C["FLAT_MLP_SIZE"])), "fc_b": b(C["FLAT_MLP_SIZE"]),
                "out_w": bw(wf(C["FLAT_MLP_SIZE"], C["FLAT_GLIMPSES"])),
                "out_b": b(C["FLAT_GLIMPSES"]),
                "mg_w": bw(wf(D * C["FLAT_GLIMPSES"], C["FLAT_OUT_SIZE"])),
                "mg_b": b(C["FLAT_OUT_SIZE"])}

    # Answer head padded to a lane-dense multiple of 128; head() slices the
    # real answer_size back out.
    a_pad = max(128, ((answer_size + 127) // 128) * 128)
    proj_w = jnp.zeros((C["FLAT_OUT_SIZE"], a_pad), jnp.float32)
    proj_w = proj_w.at[:, :answer_size].set(wf(C["FLAT_OUT_SIZE"], answer_size))
    proj_b = jnp.zeros((1, a_pad), jnp.float32)

    pn_g, pn_b = ln(C["FLAT_OUT_SIZE"])
    return {"enc": [sa() for _ in range(C["LAYER"])],
            "dec": [sga() for _ in range(C["LAYER"])],
            "attflat_lang": attflat_p(),
            "attflat_img": attflat_p(),
            "proj_norm_g": pn_g, "proj_norm_b": pn_b,
            "proj_w": bw(proj_w), "proj_b": proj_b}


# ----------------------------------------------------------------------------
# Main
# ----------------------------------------------------------------------------

if __name__ == "__main__":
    C = dict(
        HIDDEN_SIZE=32,
        MULTI_HEAD=4,
        HIDDEN_SIZE_HEAD=8,
        FF_SIZE=64,
        FLAT_MLP_SIZE=32,
        FLAT_GLIMPSES=1,
        FLAT_OUT_SIZE=128,   # multiple of 128 -> lane-dense AttFlat / head
        LAYER=2,
        DROPOUT_R=0.1,       # identity at inference
    )
    answer_size = 16
    B, NB, S, D = 2, 8, 8, C["HIDDEN_SIZE"]

    key = jax.random.PRNGKey(0)
    k_img, k_lang, k_params = jax.random.split(key, 3)

    img_feat = jax.random.normal(k_img, (B, NB, D), jnp.float32)
    lang_feat = jax.random.normal(k_lang, (B, S, D), jnp.float32)
    # zero-pad some positions so make_mask / lang mask are non-trivial
    img_feat = img_feat.at[0, 6:].set(0.0)
    lang_feat = lang_feat.at[1, 5:].set(0.0)
    lang_feat_mask = (jnp.sum(jnp.abs(lang_feat), axis=-1) == 0).reshape(B, 1, 1, S)

    params = init_params(k_params, C, answer_size)

    fwd = jax.jit(lambda p, i, l, m: mcan_net_forward(p, C, i, l, m, answer_size))
    out = fwd(params, img_feat, lang_feat, lang_feat_mask)
    out = jax.block_until_ready(out)

    assert out.shape == (B, answer_size), out.shape
    assert bool(jnp.all(jnp.isfinite(out)))
    print("KERNEL_OK")
</pallas_src>

<mosaic_0001>
module attributes {stable_mosaic.version = 11 : i64} {
  func.func @_sa_kernel(%arg0: i32, %arg1: memref<1x8x32xf32, #tpu.memory_space<vmem>>, %arg2: memref<2x1x8xf32, #tpu.memory_space<vmem>>, %arg3: memref<32x96xbf16, #tpu.memory_space<vmem>>, %arg4: memref<1x96xf32, #tpu.memory_space<vmem>>, %arg5: memref<32x32xbf16, #tpu.memory_space<vmem>>, %arg6: memref<1x32xf32, #tpu.memory_space<vmem>>, %arg7: memref<1x32xf32, #tpu.memory_space<vmem>>, %arg8: memref<1x32xf32, #tpu.memory_space<vmem>>, %arg9: memref<32x64xbf16, #tpu.memory_space<vmem>>, %arg10: memref<1x64xf32, #tpu.memory_space<vmem>>, %arg11: memref<64x32xbf16, #tpu.memory_space<vmem>>, %arg12: memref<1x32xf32, #tpu.memory_space<vmem>>, %arg13: memref<1x32xf32, #tpu.memory_space<vmem>>, %arg14: memref<1x32xf32, #tpu.memory_space<vmem>>, %arg15: memref<1x8x32xbf16, #tpu.memory_space<vmem>>) attributes {dimension_semantics = [#tpu.dimension_semantics<parallel>], iteration_bounds = array<i64: 2>, scalar_prefetch = 0 : i64, scratch_operands = 0 : i64, tpu.core_type = #tpu.core_type<tc>, window_params = [{transform_indices = @transform_0, window_bounds = array<i64: 1, 8, 32>}, {pipeline_mode = #tpu.pipeline_mode<synchronous>, transform_indices = @transform_1, window_bounds = array<i64: 2, 1, 8>}, {pipeline_mode = #tpu.pipeline_mode<synchronous>, transform_indices = @transform_2, window_bounds = array<i64: 32, 96>}, {pipeline_mode = #tpu.pipeline_mode<synchronous>, transform_indices = @transform_3, window_bounds = array<i64: 1, 96>}, {pipeline_mode = #tpu.pipeline_mode<synchronous>, transform_indices = @transform_4, window_bounds = array<i64: 32, 32>}, {pipeline_mode = #tpu.pipeline_mode<synchronous>, transform_indices = @transform_5, window_bounds = array<i64: 1, 32>}, {pipeline_mode = #tpu.pipeline_mode<synchronous>, transform_indices = @transform_6, window_bounds = array<i64: 1, 32>}, {pipeline_mode = #tpu.pipeline_mode<synchronous>, transform_indices = @transform_7, window_bounds = array<i64: 1, 32>}, {pipeline_mode = #tpu.pipeline_mode<synchronous>, transform_indices = @transform_8, window_bounds = array<i64: 32, 64>}, {pipeline_mode = #tpu.pipeline_mode<synchronous>, transform_indices = @transform_9, window_bounds = array<i64: 1, 64>}, {pipeline_mode = #tpu.pipeline_mode<synchronous>, transform_indices = @transform_10, window_bounds = array<i64: 64, 32>}, {pipeline_mode = #tpu.pipeline_mode<synchronous>, transform_indices = @transform_11, window_bounds = array<i64: 1, 32>}, {pipeline_mode = #tpu.pipeline_mode<synchronous>, transform_indices = @transform_12, window_bounds = array<i64: 1, 32>}, {pipeline_mode = #tpu.pipeline_mode<synchronous>, transform_indices = @transform_13, window_bounds = array<i64: 1, 32>}, {transform_indices = @transform_14, window_bounds = array<i64: 1, 8, 32>}]} {
    %c0 = arith.constant 0 : index
    %c0_0 = arith.constant 0 : index
    %c0_1 = arith.constant 0 : index
    %0 = vector.load %arg1[%c0, %c0_0, %c0_1] : memref<1x8x32xf32, #tpu.memory_space<vmem>>, vector<1x8x32xf32>
    %1 = vector.shape_cast %0 : vector<1x8x32xf32> to vector<8x32xf32>
    %2 = arith.index_cast %arg0 : i32 to index
    %c0_2 = arith.constant 0 : index
    %c0_3 = arith.constant 0 : index
    %3 = vector.load %arg2[%2, %c0_2, %c0_3] : memref<2x1x8xf32, #tpu.memory_space<vmem>>, vector<1x1x8xf32>
    %4 = vector.shape_cast %3 : vector<1x1x8xf32> to vector<1x8xf32>
    %c0_4 = arith.constant 0 : index
    %c0_5 = arith.constant 0 : index
    %5 = vector.load %arg3[%c0_4, %c0_5] : memref<32x96xbf16, #tpu.memory_space<vmem>>, vector<32x96xbf16>
    %6 = arith.truncf %1 : vector<8x32xf32> to vector<8x32xbf16>
    %cst = arith.constant dense<0.000000e+00> : vector<8x96xf32>
    %7 = tpu.matmul %6, %5, %cst {dimension_numbers = #tpu.dot_dimension_numbers<[1], [0], [0], [1], [0, 0, 1, 1], [], []>} : vector<8x32xbf16>, vector<32x96xbf16>, vector<8x96xf32> -> vector<8x96xf32>
    %c0_6 = arith.constant 0 : index
    %c0_7 = arith.constant 0 : index
    %8 = vector.load %arg4[%c0_6, %c0_7] : memref<1x96xf32, #tpu.memory_space<vmem>>, vector<1x96xf32>
    %9 = vector.broadcast %8 : vector<1x96xf32> to vector<8x96xf32>
    %10 = arith.addf %7, %9 : vector<8x96xf32>
    %11 = arith.truncf %10 : vector<8x96xf32> to vector<8x96xbf16>
    %12 = vector.extract_strided_slice %11 {offsets = [0, 0], sizes = [8, 32], strides = [1, 1]} : vector<8x96xbf16> to vector<8x32xbf16>
    %13 = vector.extract_strided_slice %11 {offsets = [0, 32], sizes = [8, 32], strides = [1, 1]} : vector<8x96xbf16> to vector<8x32xbf16>
    %14 = vector.extract_strided_slice %11 {offsets = [0, 64], sizes = [8, 32], strides = [1, 1]} : vector<8x96xbf16> to vector<8x32xbf16>
    %c0_8 = arith.constant 0 : index
    %c0_9 = arith.constant 0 : index
    %15 = vector.load %arg5[%c0_8, %c0_9] : memref<32x32xbf16, #tpu.memory_space<vmem>>, vector<32x32xbf16>
    %c0_10 = arith.constant 0 : index
    %c0_11 = arith.constant 0 : index
    %16 = vector.load %arg6[%c0_10, %c0_11] : memref<1x32xf32, #tpu.memory_space<vmem>>, vector<1x32xf32>
    %17 = vector.shape_cast %4 : vector<1x8xf32> to vector<1x8xf32>
    %18 = vector.broadcast %17 : vector<1x8xf32> to vector<8x8xf32>
    %19 = vector.extract_strided_slice %12 {offsets = [0, 0], sizes = [8, 8], strides = [1, 1]} : vector<8x32xbf16> to vector<8x8xbf16>
    %20 = vector.extract_strided_slice %13 {offsets = [0, 0], sizes = [8, 8], strides = [1, 1]} : vector<8x32xbf16> to vector<8x8xbf16>
    %cst_12 = arith.constant dense<0.000000e+00> : vector<8x8xf32>
    %21 = tpu.matmul %19, %20, %cst_12 {dimension_numbers = #tpu.dot_dimension_numbers<[1], [1], [0], [0], [0, 0, 1, 0], [], []>} : vector<8x8xbf16>, vector<8x8xbf16>, vector<8x8xf32> -> vector<8x8xf32>
    %22 = arith.addf %21, %18 : vector<8x8xf32>
    %cst_13 = arith.constant dense<0xFF800000> : vector<8xf32>
    %23 = vector.multi_reduction <maximumf>, %22, %cst_13 [1] : vector<8x8xf32> to vector<8xf32>
    %24 = vector.shape_cast %23 : vector<8xf32> to vector<8x1xf32>
    %25 = vector.broadcast %24 : vector<8x1xf32> to vector<8x8xf32>
    %26 = arith.subf %22, %25 : vector<8x8xf32>
    %27 = math.exp %26 : vector<8x8xf32>
    %cst_14 = arith.constant dense<0.000000e+00> : vector<8xf32>
    %28 = vector.multi_reduction <add>, %27, %cst_14 [1] : vector<8x8xf32> to vector<8xf32>
    %29 = vector.shape_cast %28 : vector<8xf32> to vector<8x1xf32>
    %30 = tpu.reciprocal %29 {approx = true} : vector<8x1xf32> -> vector<8x1xf32>
    %31 = vector.broadcast %30 : vector<8x1xf32> to vector<8x8xf32>
    %32 = arith.mulf %27, %31 : vector<8x8xf32>
    %33 = vector.extract_strided_slice %14 {offsets = [0, 0], sizes = [8, 8], strides = [1, 1]} : vector<8x32xbf16> to vector<8x8xbf16>
    %34 = arith.truncf %32 : vector<8x8xf32> to vector<8x8xbf16>
    %cst_15 = arith.constant dense<0.000000e+00> : vector<8x8xf32>
    %35 = tpu.matmul %34, %33, %cst_15 {dimension_numbers = #tpu.dot_dimension_numbers<[1], [0], [0], [1], [0, 0, 1, 1], [], []>} : vector<8x8xbf16>, vector<8x8xbf16>, vector<8x8xf32> -> vector<8x8xf32>
    %36 = vector.extract_strided_slice %12 {offsets = [0, 8], sizes = [8, 8], strides = [1, 1]} : vector<8x32xbf16> to vector<8x8xbf16>
    %37 = vector.extract_strided_slice %13 {offsets = [0, 8], sizes = [8, 8], strides = [1, 1]} : vector<8x32xbf16> to vector<8x8xbf16>
    %cst_16 = arith.constant dense<0.000000e+00> : vector<8x8xf32>
    %38 = tpu.matmul %36, %37, %cst_16 {dimension_numbers = #tpu.dot_dimension_numbers<[1], [1], [0], [0], [0, 0, 1, 0], [], []>} : vector<8x8xbf16>, vector<8x8xbf16>, vector<8x8xf32> -> vector<8x8xf32>
    %39 = arith.addf %38, %18 : vector<8x8xf32>
    %cst_17 = arith.constant dense<0xFF800000> : vector<8xf32>
    %40 = vector.multi_reduction <maximumf>, %39, %cst_17 [1] : vector<8x8xf32> to vector<8xf32>
    %41 = vector.shape_cast %40 : vector<8xf32> to vector<8x1xf32>
    %42 = vector.broadcast %41 : vector<8x1xf32> to vector<8x8xf32>
    %43 = arith.subf %39, %42 : vector<8x8xf32>
    %44 = math.exp %43 : vector<8x8xf32>
    %cst_18 = arith.constant dense<0.000000e+00> : vector<8xf32>
    %45 = vector.multi_reduction <add>, %44, %cst_18 [1] : vector<8x8xf32> to vector<8xf32>
    %46 = vector.shape_cast %45 : vector<8xf32> to vector<8x1xf32>
    %47 = tpu.reciprocal %46 {approx = true} : vector<8x1xf32> -> vector<8x1xf32>
    %48 = vector.broadcast %47 : vector<8x1xf32> to vector<8x8xf32>
    %49 = arith.mulf %44, %48 : vector<8x8xf32>
    %50 = vector.extract_strided_slice %14 {offsets = [0, 8], sizes = [8, 8], strides = [1, 1]} : vector<8x32xbf16> to vector<8x8xbf16>
    %51 = arith.truncf %49 : vector<8x8xf32> to vector<8x8xbf16>
    %cst_19 = arith.constant dense<0.000000e+00> : vector<8x8xf32>
    %52 = tpu.matmul %51, %50, %cst_19 {dimension_numbers = #tpu.dot_dimension_numbers<[1], [0], [0], [1], [0, 0, 1, 1], [], []>} : vector<8x8xbf16>, vector<8x8xbf16>, vector<8x8xf32> -> vector<8x8xf32>
    %53 = vector.extract_strided_slice %12 {offsets = [0, 16], sizes = [8, 8], strides = [1, 1]} : vector<8x32xbf16> to vector<8x8xbf16>
    %54 = vector.extract_strided_slice %13 {offsets = [0, 16], sizes = [8, 8], strides = [1, 1]} : vector<8x32xbf16> to vector<8x8xbf16>
    %cst_20 = arith.constant dense<0.000000e+00> : vector<8x8xf32>
    %55 = tpu.matmul %53, %54, %cst_20 {dimension_numbers = #tpu.dot_dimension_numbers<[1], [1], [0], [0], [0, 0, 1, 0], [], []>} : vector<8x8xbf16>, vector<8x8xbf16>, vector<8x8xf32> -> vector<8x8xf32>
    %56 = arith.addf %55, %18 : vector<8x8xf32>
    %cst_21 = arith.constant dense<0xFF800000> : vector<8xf32>
    %57 = vector.multi_reduction <maximumf>, %56, %cst_21 [1] : vector<8x8xf32> to vector<8xf32>
    %58 = vector.shape_cast %57 : vector<8xf32> to vector<8x1xf32>
    %59 = vector.broadcast %58 : vector<8x1xf32> to vector<8x8xf32>
    %60 = arith.subf %56, %59 : vector<8x8xf32>
    %61 = math.exp %60 : vector<8x8xf32>
    %cst_22 = arith.constant dense<0.000000e+00> : vector<8xf32>
    %62 = vector.multi_reduction <add>, %61, %cst_22 [1] : vector<8x8xf32> to vector<8xf32>
    %63 = vector.shape_cast %62 : vector<8xf32> to vector<8x1xf32>
    %64 = tpu.reciprocal %63 {approx = true} : vector<8x1xf32> -> vector<8x1xf32>
    %65 = vector.broadcast %64 : vector<8x1xf32> to vector<8x8xf32>
    %66 = arith.mulf %61, %65 : vector<8x8xf32>
    %67 = vector.extract_strided_slice %14 {offsets = [0, 16], sizes = [8, 8], strides = [1, 1]} : vector<8x32xbf16> to vector<8x8xbf16>
    %68 = arith.truncf %66 : vector<8x8xf32> to vector<8x8xbf16>
    %cst_23 = arith.constant dense<0.000000e+00> : vector<8x8xf32>
    %69 = tpu.matmul %68, %67, %cst_23 {dimension_numbers = #tpu.dot_dimension_numbers<[1], [0], [0], [1], [0, 0, 1, 1], [], []>} : vector<8x8xbf16>, vector<8x8xbf16>, vector<8x8xf32> -> vector<8x8xf32>
    %70 = vector.extract_strided_slice %12 {offsets = [0, 24], sizes = [8, 8], strides = [1, 1]} : vector<8x32xbf16> to vector<8x8xbf16>
    %71 = vector.extract_strided_slice %13 {offsets = [0, 24], sizes = [8, 8], strides = [1, 1]} : vector<8x32xbf16> to vector<8x8xbf16>
    %cst_24 = arith.constant dense<0.000000e+00> : vector<8x8xf32>
    %72 = tpu.matmul %70, %71, %cst_24 {dimension_numbers = #tpu.dot_dimension_numbers<[1], [1], [0], [0], [0, 0, 1, 0], [], []>} : vector<8x8xbf16>, vector<8x8xbf16>, vector<8x8xf32> -> vector<8x8xf32>
    %73 = arith.addf %72, %18 : vector<8x8xf32>
    %cst_25 = arith.constant dense<0xFF800000> : vector<8xf32>
    %74 = vector.multi_reduction <maximumf>, %73, %cst_25 [1] : vector<8x8xf32> to vector<8xf32>
    %75 = vector.shape_cast %74 : vector<8xf32> to vector<8x1xf32>
    %76 = vector.broadcast %75 : vector<8x1xf32> to vector<8x8xf32>
    %77 = arith.subf %73, %76 : vector<8x8xf32>
    %78 = math.exp %77 : vector<8x8xf32>
    %cst_26 = arith.constant dense<0.000000e+00> : vector<8xf32>
    %79 = vector.multi_reduction <add>, %78, %cst_26 [1] : vector<8x8xf32> to vector<8xf32>
    %80 = vector.shape_cast %79 : vector<8xf32> to vector<8x1xf32>
    %81 = tpu.reciprocal %80 {approx = true} : vector<8x1xf32> -> vector<8x1xf32>
    %82 = vector.broadcast %81 : vector<8x1xf32> to vector<8x8xf32>
    %83 = arith.mulf %78, %82 : vector<8x8xf32>
    %84 = vector.extract_strided_slice %14 {offsets = [0, 24], sizes = [8, 8], strides = [1, 1]} : vector<8x32xbf16> to vector<8x8xbf16>
    %85 = arith.truncf %83 : vector<8x8xf32> to vector<8x8xbf16>
    %cst_27 = arith.constant dense<0.000000e+00> : vector<8x8xf32>
    %86 = tpu.matmul %85, %84, %cst_27 {dimension_numbers = #tpu.dot_dimension_numbers<[1], [0], [0], [1], [0, 0, 1, 1], [], []>} : vector<8x8xbf16>, vector<8x8xbf16>, vector<8x8xf32> -> vector<8x8xf32>
    %87 = tpu.concatenate %35, %52, %69, %86 in 1 : vector<8x8xf32>, vector<8x8xf32>, vector<8x8xf32>, vector<8x8xf32> -> vector<8x32xf32>
    %88 = arith.truncf %87 : vector<8x32xf32> to vector<8x32xbf16>
    %cst_28 = arith.constant dense<0.000000e+00> : vector<8x32xf32>
    %89 = tpu.matmul %88, %15, %cst_28 {dimension_numbers = #tpu.dot_dimension_numbers<[1], [0], [0], [1], [0, 0, 1, 1], [], []>} : vector<8x32xbf16>, vector<32x32xbf16>, vector<8x32xf32> -> vector<8x32xf32>
    %90 = vector.broadcast %16 : vector<1x32xf32> to vector<8x32xf32>
    %91 = arith.addf %89, %90 : vector<8x32xf32>
    %92 = arith.addf %91, %1 : vector<8x32xf32>
    %c0_29 = arith.constant 0 : index
    %c0_30 = arith.constant 0 : index
    %93 = vector.load %arg7[%c0_29, %c0_30] : memref<1x32xf32, #tpu.memory_space<vmem>>, vector<1x32xf32>
    %c0_31 = arith.constant 0 : index
    %c0_32 = arith.constant 0 : index
    %94 = vector.load %arg8[%c0_31, %c0_32] : memref<1x32xf32, #tpu.memory_space<vmem>>, vector<1x32xf32>
    %cst_33 = arith.constant dense<0.000000e+00> : vector<8xf32>
    %95 = vector.multi_reduction <add>, %92, %cst_33 [1] : vector<8x32xf32> to vector<8xf32>
    %96 = vector.shape_cast %95 : vector<8xf32> to vector<8x1xf32>
    %cst_34 = arith.constant 3.200000e+01 : f32
    %97 = vector.broadcast %cst_34 : f32 to vector<8x1xf32>
    %98 = arith.divf %96, %97 : vector<8x1xf32>
    %99 = vector.broadcast %98 : vector<8x1xf32> to vector<8x32xf32>
    %100 = arith.subf %92, %99 : vector<8x32xf32>
    %101 = arith.mulf %100, %100 : vector<8x32xf32>
    %cst_35 = arith.constant dense<0.000000e+00> : vector<8xf32>
    %102 = vector.multi_reduction <add>, %101, %cst_35 [1] : vector<8x32xf32> to vector<8xf32>
    %103 = vector.shape_cast %102 : vector<8xf32> to vector<8x1xf32>
    %cst_36 = arith.constant 3.100000e+01 : f32
    %104 = vector.broadcast %cst_36 : f32 to vector<8x1xf32>
    %105 = arith.divf %103, %104 : vector<8x1xf32>
    %106 = vector.broadcast %98 : vector<8x1xf32> to vector<8x32xf32>
    %107 = arith.subf %92, %106 : vector<8x32xf32>
    %108 = vector.broadcast %93 : vector<1x32xf32> to vector<8x32xf32>
    %109 = arith.mulf %108, %107 : vector<8x32xf32>
    %110 = math.sqrt %105 : vector<8x1xf32>
    %cst_37 = arith.constant 9.99999997E-7 : f32
    %111 = vector.broadcast %cst_37 : f32 to vector<8x1xf32>
    %112 = arith.addf %110, %111 : vector<8x1xf32>
    %113 = vector.broadcast %112 : vector<8x1xf32> to vector<8x32xf32>
    %114 = arith.divf %109, %113 : vector<8x32xf32>
    %115 = vector.broadcast %94 : vector<1x32xf32> to vector<8x32xf32>
    %116 = arith.addf %114, %115 : vector<8x32xf32>
    %c0_38 = arith.constant 0 : index
    %c0_39 = arith.constant 0 : index
    %117 = vector.load %arg9[%c0_38, %c0_39] : memref<32x64xbf16, #tpu.memory_space<vmem>>, vector<32x64xbf16>
    %118 = arith.truncf %116 : vector<8x32xf32> to vector<8x32xbf16>
    %cst_40 = arith.constant dense<0.000000e+00> : vector<8x64xf32>
    %119 = tpu.matmul %118, %117, %cst_40 {dimension_numbers = #tpu.dot_dimension_numbers<[1], [0], [0], [1], [0, 0, 1, 1], [], []>} : vector<8x32xbf16>, vector<32x64xbf16>, vector<8x64xf32> -> vector<8x64xf32>
    %c0_41 = arith.constant 0 : index
    %c0_42 = arith.constant 0 : index
    %120 = vector.load %arg10[%c0_41, %c0_42] : memref<1x64xf32, #tpu.memory_space<vmem>>, vector<1x64xf32>
    %121 = vector.broadcast %120 : vector<1x64xf32> to vector<8x64xf32>
    %122 = arith.addf %119, %121 : vector<8x64xf32>
    %cst_43 = arith.constant 0.000000e+00 : f32
    %123 = vector.broadcast %cst_43 : f32 to vector<8x64xf32>
    %124 = arith.maximumf %122, %123 : vector<8x64xf32>
    %125 = arith.truncf %124 : vector<8x64xf32> to vector<8x64xbf16>
    %c0_44 = arith.constant 0 : index
    %c0_45 = arith.constant 0 : index
    %126 = vector.load %arg11[%c0_44, %c0_45] : memref<64x32xbf16, #tpu.memory_space<vmem>>, vector<64x32xbf16>
    %cst_46 = arith.constant dense<0.000000e+00> : vector<8x32xf32>
    %127 = tpu.matmul %125, %126, %cst_46 {dimension_numbers = #tpu.dot_dimension_numbers<[1], [0], [0], [1], [0, 0, 1, 1], [], []>} : vector<8x64xbf16>, vector<64x32xbf16>, vector<8x32xf32> -> vector<8x32xf32>
    %c0_47 = arith.constant 0 : index
    %c0_48 = arith.constant 0 : index
    %128 = vector.load %arg12[%c0_47, %c0_48] : memref<1x32xf32, #tpu.memory_space<vmem>>, vector<1x32xf32>
    %129 = vector.broadcast %128 : vector<1x32xf32> to vector<8x32xf32>
    %130 = arith.addf %127, %129 : vector<8x32xf32>
    %131 = arith.addf %130, %116 : vector<8x32xf32>
    %c0_49 = arith.constant 0 : index
    %c0_50 = arith.constant 0 : index
    %132 = vector.load %arg13[%c0_49, %c0_50] : memref<1x32xf32, #tpu.memory_space<vmem>>, vector<1x32xf32>
    %c0_51 = arith.constant 0 : index
    %c0_52 = arith.constant 0 : index
    %133 = vector.load %arg14[%c0_51, %c0_52] : memref<1x32xf32, #tpu.memory_space<vmem>>, vector<1x32xf32>
    %cst_53 = arith.constant dense<0.000000e+00> : vector<8xf32>
    %134 = vector.multi_reduction <add>, %131, %cst_53 [1] : vector<8x32xf32> to vector<8xf32>
    %135 = vector.shape_cast %134 : vector<8xf32> to vector<8x1xf32>
    %cst_54 = arith.constant 3.200000e+01 : f32
    %136 = vector.broadcast %cst_54 : f32 to vector<8x1xf32>
    %137 = arith.divf %135, %136 : vector<8x1xf32>
    %138 = vector.broadcast %137 : vector<8x1xf32> to vector<8x32xf32>
    %139 = arith.subf %131, %138 : vector<8x32xf32>
    %140 = arith.mulf %139, %139 : vector<8x32xf32>
    %cst_55 = arith.constant dense<0.000000e+00> : vector<8xf32>
    %141 = vector.multi_reduction <add>, %140, %cst_55 [1] : vector<8x32xf32> to vector<8xf32>
    %142 = vector.shape_cast %141 : vector<8xf32> to vector<8x1xf32>
    %cst_56 = arith.constant 3.100000e+01 : f32
    %143 = vector.broadcast %cst_56 : f32 to vector<8x1xf32>
    %144 = arith.divf %142, %143 : vector<8x1xf32>
    %145 = vector.broadcast %137 : vector<8x1xf32> to vector<8x32xf32>
    %146 = arith.subf %131, %145 : vector<8x32xf32>
    %147 = vector.broadcast %132 : vector<1x32xf32> to vector<8x32xf32>
    %148 = arith.mulf %147, %146 : vector<8x32xf32>
    %149 = math.sqrt %144 : vector<8x1xf32>
    %cst_57 = arith.constant 9.99999997E-7 : f32
    %150 = vector.broadcast %cst_57 : f32 to vector<8x1xf32>
    %151 = arith.addf %149, %150 : vector<8x1xf32>
    %152 = vector.broadcast %151 : vector<8x1xf32> to vector<8x32xf32>
    %153 = arith.divf %148, %152 : vector<8x32xf32>
    %154 = vector.broadcast %133 : vector<1x32xf32> to vector<8x32xf32>
    %155 = arith.addf %153, %154 : vector<8x32xf32>
    %156 = arith.truncf %155 : vector<8x32xf32> to vector<8x32xbf16>
    %c0_58 = arith.constant 0 : index
    %c0_59 = arith.constant 0 : index
    %c0_60 = arith.constant 0 : index
    %157 = vector.load %arg15[%c0_58, %c0_59, %c0_60] : memref<1x8x32xbf16, #tpu.memory_space<vmem>>, vector<1x8x32xbf16>
    %158 = vector.shape_cast %157 : vector<1x8x32xbf16> to vector<8x32xbf16>
    %159 = vector.shape_cast %156 : vector<8x32xbf16> to vector<1x8x32xbf16>
    tpu.vector_store %arg15[%c0_58, %c0_59, %c0_60], %159 {strides = array<i32>} : memref<1x8x32xbf16, #tpu.memory_space<vmem>>, vector<1x8x32xbf16>,
    return
  }
  func.func @transform_0(%arg0: i32) -> (i32, i32, i32) {
    %c0_i32 = arith.constant 0 : i32
    %c0_i32_0 = arith.constant 0 : i32
    %c0_i32_1 = arith.constant 0 : i32
    return %arg0, %c0_i32, %c0_i32_0 : i32, i32, i32
  }
  func.func @transform_1(%arg0: i32) -> (i32, i32, i32) {
    %c0_i32 = arith.constant 0 : i32
    %c0_i32_0 = arith.constant 0 : i32
    %c0_i32_1 = arith.constant 0 : i32
    %c0_i32_2 = arith.constant 0 : i32
    return %c0_i32, %c0_i32_0, %c0_i32_1 : i32, i32, i32
  }
  func.func @transform_2(%arg0: i32) -> (i32, i32) {
    %c0_i32 = arith.constant 0 : i32
    %c0_i32_0 = arith.constant 0 : i32
    %c0_i32_1 = arith.constant 0 : i32
    return %c0_i32, %c0_i32_0 : i32, i32
  }
  func.func @transform_3(%arg0: i32) -> (i32, i32) {
    %c0_i32 = arith.constant 0 : i32
    %c0_i32_0 = arith.constant 0 : i32
    %c0_i32_1 = arith.constant 0 : i32
    return %c0_i32, %c0_i32_0 : i32, i32
  }
  func.func @transform_4(%arg0: i32) -> (i32, i32) {
    %c0_i32 = arith.constant 0 : i32
    %c0_i32_0 = arith.constant 0 : i32
    %c0_i32_1 = arith.constant 0 : i32
    return %c0_i32, %c0_i32_0 : i32, i32
  }
  func.func @transform_5(%arg0: i32) -> (i32, i32) {
    %c0_i32 = arith.constant 0 : i32
    %c0_i32_0 = arith.constant 0 : i32
    %c0_i32_1 = arith.constant 0 : i32
    return %c0_i32, %c0_i32_0 : i32, i32
  }
  func.func @transform_6(%arg0: i32) -> (i32, i32) {
    %c0_i32 = arith.constant 0 : i32
    %c0_i32_0 = arith.constant 0 : i32
    %c0_i32_1 = arith.constant 0 : i32
    return %c0_i32, %c0_i32_0 : i32, i32
  }
  func.func @transform_7(%arg0: i32) -> (i32, i32) {
    %c0_i32 = arith.constant 0 : i32
    %c0_i32_0 = arith.constant 0 : i32
    %c0_i32_1 = arith.constant 0 : i32
    return %c0_i32, %c0_i32_0 : i32, i32
  }
  func.func @transform_8(%arg0: i32) -> (i32, i32) {
    %c0_i32 = arith.constant 0 : i32
    %c0_i32_0 = arith.constant 0 : i32
    %c0_i32_1 = arith.constant 0 : i32
    return %c0_i32, %c0_i32_0 : i32, i32
  }
  func.func @transform_9(%arg0: i32) -> (i32, i32) {
    %c0_i32 = arith.constant 0 : i32
    %c0_i32_0 = arith.constant 0 : i32
    %c0_i32_1 = arith.constant 0 : i32
    return %c0_i32, %c0_i32_0 : i32, i32
  }
  func.func @transform_10(%arg0: i32) -> (i32, i32) {
    %c0_i32 = arith.constant 0 : i32
    %c0_i32_0 = arith.constant 0 : i32
    %c0_i32_1 = arith.constant 0 : i32
    return %c0_i32, %c0_i32_0 : i32, i32
  }
  func.func @transform_11(%arg0: i32) -> (i32, i32) {
    %c0_i32 = arith.constant 0 : i32
    %c0_i32_0 = arith.constant 0 : i32
    %c0_i32_1 = arith.constant 0 : i32
    return %c0_i32, %c0_i32_0 : i32, i32
  }
  func.func @transform_12(%arg0: i32) -> (i32, i32) {
    %c0_i32 = arith.constant 0 : i32
    %c0_i32_0 = arith.constant 0 : i32
    %c0_i32_1 = arith.constant 0 : i32
    return %c0_i32, %c0_i32_0 : i32, i32
  }
  func.func @transform_13(%arg0: i32) -> (i32, i32) {
    %c0_i32 = arith.constant 0 : i32
    %c0_i32_0 = arith.constant 0 : i32
    %c0_i32_1 = arith.constant 0 : i32
    return %c0_i32, %c0_i32_0 : i32, i32
  }
  func.func @transform_14(%arg0: i32) -> (i32, i32, i32) {
    %c0_i32 = arith.constant 0 : i32
    %c0_i32_0 = arith.constant 0 : i32
    %c0_i32_1 = arith.constant 0 : i32
    return %arg0, %c0_i32, %c0_i32_0 : i32, i32, i32
  }
}

module attributes {stable_mosaic.version = 11 : i64} {
  func.func @_sa_kernel(%arg0: i32, %arg1: memref<1x8x32xbf16, #tpu.memory_space<vmem>>, %arg2: memref<2x1x8xf32, #tpu.memory_space<vmem>>, %arg3: memref<32x96xbf16, #tpu.memory_space<vmem>>, %arg4: memref<1x96xf32, #tpu.memory_space<vmem>>, %arg5: memref<32x32xbf16, #tpu.memory_space<vmem>>, %arg6: memref<1x32xf32, #tpu.memory_space<vmem>>, %arg7: memref<1x32xf32, #tpu.memory_space<vmem>>, %arg8: memref<1x32xf32, #tpu.memory_space<vmem>>, %arg9: memref<32x64xbf16, #tpu.memory_space<vmem>>, %arg10: memref<1x64xf32, #tpu.memory_space<vmem>>, %arg11: memref<64x32xbf16, #tpu.memory_space<vmem>>, %arg12: memref<1x32xf32, #tpu.memory_space<vmem>>, %arg13: memref<1x32xf32, #tpu.memory_space<vmem>>, %arg14: memref<1x32xf32, #tpu.memory_space<vmem>>, %arg15: memref<1x8x32xbf16, #tpu.memory_space<vmem>>) attributes {dimension_semantics = [#tpu.dimension_semantics<parallel>], iteration_bounds = array<i64: 2>, scalar_prefetch = 0 : i64, scratch_operands = 0 : i64, tpu.core_type = #tpu.core_type<tc>, window_params = [{transform_indices = @transform_0, window_bounds = array<i64: 1, 8, 32>}, {pipeline_mode = #tpu.pipeline_mode<synchronous>, transform_indices = @transform_1, window_bounds = array<i64: 2, 1, 8>}, {pipeline_mode = #tpu.pipeline_mode<synchronous>, transform_indices = @transform_2, window_bounds = array<i64: 32, 96>}, {pipeline_mode = #tpu.pipeline_mode<synchronous>, transform_indices = @transform_3, window_bounds = array<i64: 1, 96>}, {pipeline_mode = #tpu.pipeline_mode<synchronous>, transform_indices = @transform_4, window_bounds = array<i64: 32, 32>}, {pipeline_mode = #tpu.pipeline_mode<synchronous>, transform_indices = @transform_5, window_bounds = array<i64: 1, 32>}, {pipeline_mode = #tpu.pipeline_mode<synchronous>, transform_indices = @transform_6, window_bounds = array<i64: 1, 32>}, {pipeline_mode = #tpu.pipeline_mode<synchronous>, transform_indices = @transform_7, window_bounds = array<i64: 1, 32>}, {pipeline_mode = #tpu.pipeline_mode<synchronous>, transform_indices = @transform_8, window_bounds = array<i64: 32, 64>}, {pipeline_mode = #tpu.pipeline_mode<synchronous>, transform_indices = @transform_9, window_bounds = array<i64: 1, 64>}, {pipeline_mode = #tpu.pipeline_mode<synchronous>, transform_indices = @transform_10, window_bounds = array<i64: 64, 32>}, {pipeline_mode = #tpu.pipeline_mode<synchronous>, transform_indices = @transform_11, window_bounds = array<i64: 1, 32>}, {pipeline_mode = #tpu.pipeline_mode<synchronous>, transform_indices = @transform_12, window_bounds = array<i64: 1, 32>}, {pipeline_mode = #tpu.pipeline_mode<synchronous>, transform_indices = @transform_13, window_bounds = array<i64: 1, 32>}, {transform_indices = @transform_14, window_bounds = array<i64: 1, 8, 32>}]} {
    %c0 = arith.constant 0 : index
    %c0_0 = arith.constant 0 : index
    %c0_1 = arith.constant 0 : index
    %0 = vector.load %arg1[%c0, %c0_0, %c0_1] : memref<1x8x32xbf16, #tpu.memory_space<vmem>>, vector<1x8x32xbf16>
    %1 = vector.shape_cast %0 : vector<1x8x32xbf16> to vector<8x32xbf16>
    %2 = arith.extf %1 : vector<8x32xbf16> to vector<8x32xf32>
    %3 = arith.index_cast %arg0 : i32 to index
    %c0_2 = arith.constant 0 : index
    %c0_3 = arith.constant 0 : index
    %4 = vector.load %arg2[%3, %c0_2, %c0_3] : memref<2x1x8xf32, #tpu.memory_space<vmem>>, vector<1x1x8xf32>
    %5 = vector.shape_cast %4 : vector<1x1x8xf32> to vector<1x8xf32>
    %c0_4 = arith.constant 0 : index
    %c0_5 = arith.constant 0 : index
    %6 = vector.load %arg3[%c0_4, %c0_5] : memref<32x96xbf16, #tpu.memory_space<vmem>>, vector<32x96xbf16>
    %cst = arith.constant dense<0.000000e+00> : vector<8x96xf32>
    %7 = tpu.matmul %1, %6, %cst {dimension_numbers = #tpu.dot_dimension_numbers<[1], [0], [0], [1], [0, 0, 1, 1], [], []>} : vector<8x32xbf16>, vector<32x96xbf16>, vector<8x96xf32> -> vector<8x96xf32>
    %c0_6 = arith.constant 0 : index
    %c0_7 = arith.constant 0 : index
    %8 = vector.load %arg4[%c0_6, %c0_7] : memref<1x96xf32, #tpu.memory_space<vmem>>, vector<1x96xf32>
    %9 = vector.broadcast %8 : vector<1x96xf32> to vector<8x96xf32>
    %10 = arith.addf %7, %9 : vector<8x96xf32>
    %11 = arith.truncf %10 : vector<8x96xf32> to vector<8x96xbf16>
    %12 = vector.extract_strided_slice %11 {offsets = [0, 0], sizes = [8, 32], strides = [1, 1]} : vector<8x96xbf16> to vector<8x32xbf16>
    %13 = vector.extract_strided_slice %11 {offsets = [0, 32], sizes = [8, 32], strides = [1, 1]} : vector<8x96xbf16> to vector<8x32xbf16>
    %14 = vector.extract_strided_slice %11 {offsets = [0, 64], sizes = [8, 32], strides = [1, 1]} : vector<8x96xbf16> to vector<8x32xbf16>
    %c0_8 = arith.constant 0 : index
    %c0_9 = arith.constant 0 : index
    %15 = vector.load %arg5[%c0_8, %c0_9] : memref<32x32xbf16, #tpu.memory_space<vmem>>, vector<32x32xbf16>
    %c0_10 = arith.constant 0 : index
    %c0_11 = arith.constant 0 : index
    %16 = vector.load %arg6[%c0_10, %c0_11] : memref<1x32xf32, #tpu.memory_space<vmem>>, vector<1x32xf32>
    %17 = vector.shape_cast %5 : vector<1x8xf32> to vector<1x8xf32>
    %18 = vector.broadcast %17 : vector<1x8xf32> to vector<8x8xf32>
    %19 = vector.extract_strided_slice %12 {offsets = [0, 0], sizes = [8, 8], strides = [1, 1]} : vector<8x32xbf16> to vector<8x8xbf16>
    %20 = vector.extract_strided_slice %13 {offsets = [0, 0], sizes = [8, 8], strides = [1, 1]} : vector<8x32xbf16> to vector<8x8xbf16>
    %cst_12 = arith.constant dense<0.000000e+00> : vector<8x8xf32>
    %21 = tpu.matmul %19, %20, %cst_12 {dimension_numbers = #tpu.dot_dimension_numbers<[1], [1], [0], [0], [0, 0, 1, 0], [], []>} : vector<8x8xbf16>, vector<8x8xbf16>, vector<8x8xf32> -> vector<8x8xf32>
    %22 = arith.addf %21, %18 : vector<8x8xf32>
    %cst_13 = arith.constant dense<0xFF800000> : vector<8xf32>
    %23 = vector.multi_reduction <maximumf>, %22, %cst_13 [1] : vector<8x8xf32> to vector<8xf32>
    %24 = vector.shape_cast %23 : vector<8xf32> to vector<8x1xf32>
    %25 = vector.broadcast %24 : vector<8x1xf32> to vector<8x8xf32>
    %26 = arith.subf %22, %25 : vector<8x8xf32>
    %27 = math.exp %26 : vector<8x8xf32>
    %cst_14 = arith.constant dense<0.000000e+00> : vector<8xf32>
    %28 = vector.multi_reduction <add>, %27, %cst_14 [1] : vector<8x8xf32> to vector<8xf32>
    %29 = vector.shape_cast %28 : vector<8xf32> to vector<8x1xf32>
    %30 = tpu.reciprocal %29 {approx = true} : vector<8x1xf32> -> vector<8x1xf32>
    %31 = vector.broadcast %30 : vector<8x1xf32> to vector<8x8xf32>
    %32 = arith.mulf %27, %31 : vector<8x8xf32>
    %33 = vector.extract_strided_slice %14 {offsets = [0, 0], sizes = [8, 8], strides = [1, 1]} : vector<8x32xbf16> to vector<8x8xbf16>
    %34 = arith.truncf %32 : vector<8x8xf32> to vector<8x8xbf16>
    %cst_15 = arith.constant dense<0.000000e+00> : vector<8x8xf32>
    %35 = tpu.matmul %34, %33, %cst_15 {dimension_numbers = #tpu.dot_dimension_numbers<[1], [0], [0], [1], [0, 0, 1, 1], [], []>} : vector<8x8xbf16>, vector<8x8xbf16>, vector<8x8xf32> -> vector<8x8xf32>
    %36 = vector.extract_strided_slice %12 {offsets = [0, 8], sizes = [8, 8], strides = [1, 1]} : vector<8x32xbf16> to vector<8x8xbf16>
    %37 = vector.extract_strided_slice %13 {offsets = [0, 8], sizes = [8, 8], strides = [1, 1]} : vector<8x32xbf16> to vector<8x8xbf16>
    %cst_16 = arith.constant dense<0.000000e+00> : vector<8x8xf32>
    %38 = tpu.matmul %36, %37, %cst_16 {dimension_numbers = #tpu.dot_dimension_numbers<[1], [1], [0], [0], [0, 0, 1, 0], [], []>} : vector<8x8xbf16>, vector<8x8xbf16>, vector<8x8xf32> -> vector<8x8xf32>
    %39 = arith.addf %38, %18 : vector<8x8xf32>
    %cst_17 = arith.constant dense<0xFF800000> : vector<8xf32>
    %40 = vector.multi_reduction <maximumf>, %39, %cst_17 [1] : vector<8x8xf32> to vector<8xf32>
    %41 = vector.shape_cast %40 : vector<8xf32> to vector<8x1xf32>
    %42 = vector.broadcast %41 : vector<8x1xf32> to vector<8x8xf32>
    %43 = arith.subf %39, %42 : vector<8x8xf32>
    %44 = math.exp %43 : vector<8x8xf32>
    %cst_18 = arith.constant dense<0.000000e+00> : vector<8xf32>
    %45 = vector.multi_reduction <add>, %44, %cst_18 [1] : vector<8x8xf32> to vector<8xf32>
    %46 = vector.shape_cast %45 : vector<8xf32> to vector<8x1xf32>
    %47 = tpu.reciprocal %46 {approx = true} : vector<8x1xf32> -> vector<8x1xf32>
    %48 = vector.broadcast %47 : vector<8x1xf32> to vector<8x8xf32>
    %49 = arith.mulf %44, %48 : vector<8x8xf32>
    %50 = vector.extract_strided_slice %14 {offsets = [0, 8], sizes = [8, 8], strides = [1, 1]} : vector<8x32xbf16> to vector<8x8xbf16>
    %51 = arith.truncf %49 : vector<8x8xf32> to vector<8x8xbf16>
    %cst_19 = arith.constant dense<0.000000e+00> : vector<8x8xf32>
    %52 = tpu.matmul %51, %50, %cst_19 {dimension_numbers = #tpu.dot_dimension_numbers<[1], [0], [0], [1], [0, 0, 1, 1], [], []>} : vector<8x8xbf16>, vector<8x8xbf16>, vector<8x8xf32> -> vector<8x8xf32>
    %53 = vector.extract_strided_slice %12 {offsets = [0, 16], sizes = [8, 8], strides = [1, 1]} : vector<8x32xbf16> to vector<8x8xbf16>
    %54 = vector.extract_strided_slice %13 {offsets = [0, 16], sizes = [8, 8], strides = [1, 1]} : vector<8x32xbf16> to vector<8x8xbf16>
    %cst_20 = arith.constant dense<0.000000e+00> : vector<8x8xf32>
    %55 = tpu.matmul %53, %54, %cst_20 {dimension_numbers = #tpu.dot_dimension_numbers<[1], [1], [0], [0], [0, 0, 1, 0], [], []>} : vector<8x8xbf16>, vector<8x8xbf16>, vector<8x8xf32> -> vector<8x8xf32>
    %56 = arith.addf %55, %18 : vector<8x8xf32>
    %cst_21 = arith.constant dense<0xFF800000> : vector<8xf32>
    %57 = vector.multi_reduction <maximumf>, %56, %cst_21 [1] : vector<8x8xf32> to vector<8xf32>
    %58 = vector.shape_cast %57 : vector<8xf32> to vector<8x1xf32>
    %59 = vector.broadcast %58 : vector<8x1xf32> to vector<8x8xf32>
    %60 = arith.subf %56, %59 : vector<8x8xf32>
    %61 = math.exp %60 : vector<8x8xf32>
    %cst_22 = arith.constant dense<0.000000e+00> : vector<8xf32>
    %62 = vector.multi_reduction <add>, %61, %cst_22 [1] : vector<8x8xf32> to vector<8xf32>
    %63 = vector.shape_cast %62 : vector<8xf32> to vector<8x1xf32>
    %64 = tpu.reciprocal %63 {approx = true} : vector<8x1xf32> -> vector<8x1xf32>
    %65 = vector.broadcast %64 : vector<8x1xf32> to vector<8x8xf32>
    %66 = arith.mulf %61, %65 : vector<8x8xf32>
    %67 = vector.extract_strided_slice %14 {offsets = [0, 16], sizes = [8, 8], strides = [1, 1]} : vector<8x32xbf16> to vector<8x8xbf16>
    %68 = arith.truncf %66 : vector<8x8xf32> to vector<8x8xbf16>
    %cst_23 = arith.constant dense<0.000000e+00> : vector<8x8xf32>
    %69 = tpu.matmul %68, %67, %cst_23 {dimension_numbers = #tpu.dot_dimension_numbers<[1], [0], [0], [1], [0, 0, 1, 1], [], []>} : vector<8x8xbf16>, vector<8x8xbf16>, vector<8x8xf32> -> vector<8x8xf32>
    %70 = vector.extract_strided_slice %12 {offsets = [0, 24], sizes = [8, 8], strides = [1, 1]} : vector<8x32xbf16> to vector<8x8xbf16>
    %71 = vector.extract_strided_slice %13 {offsets = [0, 24], sizes = [8, 8], strides = [1, 1]} : vector<8x32xbf16> to vector<8x8xbf16>
    %cst_24 = arith.constant dense<0.000000e+00> : vector<8x8xf32>
    %72 = tpu.matmul %70, %71, %cst_24 {dimension_numbers = #tpu.dot_dimension_numbers<[1], [1], [0], [0], [0, 0, 1, 0], [], []>} : vector<8x8xbf16>, vector<8x8xbf16>, vector<8x8xf32> -> vector<8x8xf32>
    %73 = arith.addf %72, %18 : vector<8x8xf32>
    %cst_25 = arith.constant dense<0xFF800000> : vector<8xf32>
    %74 = vector.multi_reduction <maximumf>, %73, %cst_25 [1] : vector<8x8xf32> to vector<8xf32>
    %75 = vector.shape_cast %74 : vector<8xf32> to vector<8x1xf32>
    %76 = vector.broadcast %75 : vector<8x1xf32> to vector<8x8xf32>
    %77 = arith.subf %73, %76 : vector<8x8xf32>
    %78 = math.exp %77 : vector<8x8xf32>
    %cst_26 = arith.constant dense<0.000000e+00> : vector<8xf32>
    %79 = vector.multi_reduction <add>, %78, %cst_26 [1] : vector<8x8xf32> to vector<8xf32>
    %80 = vector.shape_cast %79 : vector<8xf32> to vector<8x1xf32>
    %81 = tpu.reciprocal %80 {approx = true} : vector<8x1xf32> -> vector<8x1xf32>
    %82 = vector.broadcast %81 : vector<8x1xf32> to vector<8x8xf32>
    %83 = arith.mulf %78, %82 : vector<8x8xf32>
    %84 = vector.extract_strided_slice %14 {offsets = [0, 24], sizes = [8, 8], strides = [1, 1]} : vector<8x32xbf16> to vector<8x8xbf16>
    %85 = arith.truncf %83 : vector<8x8xf32> to vector<8x8xbf16>
    %cst_27 = arith.constant dense<0.000000e+00> : vector<8x8xf32>
    %86 = tpu.matmul %85, %84, %cst_27 {dimension_numbers = #tpu.dot_dimension_numbers<[1], [0], [0], [1], [0, 0, 1, 1], [], []>} : vector<8x8xbf16>, vector<8x8xbf16>, vector<8x8xf32> -> vector<8x8xf32>
    %87 = tpu.concatenate %35, %52, %69, %86 in 1 : vector<8x8xf32>, vector<8x8xf32>, vector<8x8xf32>, vector<8x8xf32> -> vector<8x32xf32>
    %88 = arith.truncf %87 : vector<8x32xf32> to vector<8x32xbf16>
    %cst_28 = arith.constant dense<0.000000e+00> : vector<8x32xf32>
    %89 = tpu.matmul %88, %15, %cst_28 {dimension_numbers = #tpu.dot_dimension_numbers<[1], [0], [0], [1], [0, 0, 1, 1], [], []>} : vector<8x32xbf16>, vector<32x32xbf16>, vector<8x32xf32> -> vector<8x32xf32>
    %90 = vector.broadcast %16 : vector<1x32xf32> to vector<8x32xf32>
    %91 = arith.addf %89, %90 : vector<8x32xf32>
    %92 = arith.addf %91, %2 : vector<8x32xf32>
    %c0_29 = arith.constant 0 : index
    %c0_30 = arith.constant 0 : index
    %93 = vector.load %arg7[%c0_29, %c0_30] : memref<1x32xf32, #tpu.memory_space<vmem>>, vector<1x32xf32>
    %c0_31 = arith.constant 0 : index
    %c0_32 = arith.constant 0 : index
    %94 = vector.load %arg8[%c0_31, %c0_32] : memref<1x32xf32, #tpu.memory_space<vmem>>, vector<1x32xf32>
    %cst_33 = arith.constant dense<0.000000e+00> : vector<8xf32>
    %95 = vector.multi_reduction <add>, %92, %cst_33 [1] : vector<8x32xf32> to vector<8xf32>
    %96 = vector.shape_cast %95 : vector<8xf32> to vector<8x1xf32>
    %cst_34 = arith.constant 3.200000e+01 : f32
    %97 = vector.broadcast %cst_34 : f32 to vector<8x1xf32>
    %98 = arith.divf %96, %97 : vector<8x1xf32>
    %99 = vector.broadcast %98 : vector<8x1xf32> to vector<8x32xf32>
    %100 = arith.subf %92, %99 : vector<8x32xf32>
    %101 = arith.mulf %100, %100 : vector<8x32xf32>
    %cst_35 = arith.constant dense<0.000000e+00> : vector<8xf32>
    %102 = vector.multi_reduction <add>, %101, %cst_35 [1] : vector<8x32xf32> to vector<8xf32>
    %103 = vector.shape_cast %102 : vector<8xf32> to vector<8x1xf32>
    %cst_36 = arith.constant 3.100000e+01 : f32
    %104 = vector.broadcast %cst_36 : f32 to vector<8x1xf32>
    %105 = arith.divf %103, %104 : vector<8x1xf32>
    %106 = vector.broadcast %98 : vector<8x1xf32> to vector<8x32xf32>
    %107 = arith.subf %92, %106 : vector<8x32xf32>
    %108 = vector.broadcast %93 : vector<1x32xf32> to vector<8x32xf32>
    %109 = arith.mulf %108, %107 : vector<8x32xf32>
    %110 = math.sqrt %105 : vector<8x1xf32>
    %cst_37 = arith.constant 9.99999997E-7 : f32
    %111 = vector.broadcast %cst_37 : f32 to vector<8x1xf32>
    %112 = arith.addf %110, %111 : vector<8x1xf32>
    %113 = vector.broadcast %112 : vector<8x1xf32> to vector<8x32xf32>
    %114 = arith.divf %109, %113 : vector<8x32xf32>
    %115 = vector.broadcast %94 : vector<1x32xf32> to vector<8x32xf32>
    %116 = arith.addf %114, %115 : vector<8x32xf32>
    %c0_38 = arith.constant 0 : index
    %c0_39 = arith.constant 0 : index
    %117 = vector.load %arg9[%c0_38, %c0_39] : memref<32x64xbf16, #tpu.memory_space<vmem>>, vector<32x64xbf16>
    %118 = arith.truncf %116 : vector<8x32xf32> to vector<8x32xbf16>
    %cst_40 = arith.constant dense<0.000000e+00> : vector<8x64xf32>
    %119 = tpu.matmul %118, %117, %cst_40 {dimension_numbers = #tpu.dot_dimension_numbers<[1], [0], [0], [1], [0, 0, 1, 1], [], []>} : vector<8x32xbf16>, vector<32x64xbf16>, vector<8x64xf32> -> vector<8x64xf32>
    %c0_41 = arith.constant 0 : index
    %c0_42 = arith.constant 0 : index
    %120 = vector.load %arg10[%c0_41, %c0_42] : memref<1x64xf32, #tpu.memory_space<vmem>>, vector<1x64xf32>
    %121 = vector.broadcast %120 : vector<1x64xf32> to vector<8x64xf32>
    %122 = arith.addf %119, %121 : vector<8x64xf32>
    %cst_43 = arith.constant 0.000000e+00 : f32
    %123 = vector.broadcast %cst_43 : f32 to vector<8x64xf32>
    %124 = arith.maximumf %122, %123 : vector<8x64xf32>
    %125 = arith.truncf %124 : vector<8x64xf32> to vector<8x64xbf16>
    %c0_44 = arith.constant 0 : index
    %c0_45 = arith.constant 0 : index
    %126 = vector.load %arg11[%c0_44, %c0_45] : memref<64x32xbf16, #tpu.memory_space<vmem>>, vector<64x32xbf16>
    %cst_46 = arith.constant dense<0.000000e+00> : vector<8x32xf32>
    %127 = tpu.matmul %125, %126, %cst_46 {dimension_numbers = #tpu.dot_dimension_numbers<[1], [0], [0], [1], [0, 0, 1, 1], [], []>} : vector<8x64xbf16>, vector<64x32xbf16>, vector<8x32xf32> -> vector<8x32xf32>
    %c0_47 = arith.constant 0 : index
    %c0_48 = arith.constant 0 : index
    %128 = vector.load %arg12[%c0_47, %c0_48] : memref<1x32xf32, #tpu.memory_space<vmem>>, vector<1x32xf32>
    %129 = vector.broadcast %128 : vector<1x32xf32> to vector<8x32xf32>
    %130 = arith.addf %127, %129 : vector<8x32xf32>
    %131 = arith.addf %130, %116 : vector<8x32xf32>
    %c0_49 = arith.constant 0 : index
    %c0_50 = arith.constant 0 : index
    %132 = vector.load %arg13[%c0_49, %c0_50] : memref<1x32xf32, #tpu.memory_space<vmem>>, vector<1x32xf32>
    %c0_51 = arith.constant 0 : index
    %c0_52 = arith.constant 0 : index
    %133 = vector.load %arg14[%c0_51, %c0_52] : memref<1x32xf32, #tpu.memory_space<vmem>>, vector<1x32xf32>
    %cst_53 = arith.constant dense<0.000000e+00> : vector<8xf32>
    %134 = vector.multi_reduction <add>, %131, %cst_53 [1] : vector<8x32xf32> to vector<8xf32>
    %135 = vector.shape_cast %134 : vector<8xf32> to vector<8x1xf32>
    %cst_54 = arith.constant 3.200000e+01 : f32
    %136 = vector.broadcast %cst_54 : f32 to vector<8x1xf32>
    %137 = arith.divf %135, %136 : vector<8x1xf32>
    %138 = vector.broadcast %137 : vector<8x1xf32> to vector<8x32xf32>
    %139 = arith.subf %131, %138 : vector<8x32xf32>
    %140 = arith.mulf %139, %139 : vector<8x32xf32>
    %cst_55 = arith.constant dense<0.000000e+00> : vector<8xf32>
    %141 = vector.multi_reduction <add>, %140, %cst_55 [1] : vector<8x32xf32> to vector<8xf32>
    %142 = vector.shape_cast %141 : vector<8xf32> to vector<8x1xf32>
    %cst_56 = arith.constant 3.100000e+01 : f32
    %143 = vector.broadcast %cst_56 : f32 to vector<8x1xf32>
    %144 = arith.divf %142, %143 : vector<8x1xf32>
    %145 = vector.broadcast %137 : vector<8x1xf32> to vector<8x32xf32>
    %146 = arith.subf %131, %145 : vector<8x32xf32>
    %147 = vector.broadcast %132 : vector<1x32xf32> to vector<8x32xf32>
    %148 = arith.mulf %147, %146 : vector<8x32xf32>
    %149 = math.sqrt %144 : vector<8x1xf32>
    %cst_57 = arith.constant 9.99999997E-7 : f32
    %150 = vector.broadcast %cst_57 : f32 to vector<8x1xf32>
    %151 = arith.addf %149, %150 : vector<8x1xf32>
    %152 = vector.broadcast %151 : vector<8x1xf32> to vector<8x32xf32>
    %153 = arith.divf %148, %152 : vector<8x32xf32>
    %154 = vector.broadcast %133 : vector<1x32xf32> to vector<8x32xf32>
    %155 = arith.addf %153, %154 : vector<8x32xf32>
    %156 = arith.truncf %155 : vector<8x32xf32> to vector<8x32xbf16>
    %c0_58 = arith.constant 0 : index
    %c0_59 = arith.constant 0 : index
    %c0_60 = arith.constant 0 : index
    %157 = vector.load %arg15[%c0_58, %c0_59, %c0_60] : memref<1x8x32xbf16, #tpu.memory_space<vmem>>, vector<1x8x32xbf16>
    %158 = vector.shape_cast %157 : vector<1x8x32xbf16> to vector<8x32xbf16>
    %159 = vector.shape_cast %156 : vector<8x32xbf16> to vector<1x8x32xbf16>
    tpu.vector_store %arg15[%c0_58, %c0_59, %c0_60], %159 {strides = array<i32>} : memref<1x8x32xbf16, #tpu.memory_space<vmem>>, vector<1x8x32xbf16>,
    return
  }
  func.func @transform_0(%arg0: i32) -> (i32, i32, i32) {
    %c0_i32 = arith.constant 0 : i32
    %c0_i32_0 = arith.constant 0 : i32
    %c0_i32_1 = arith.constant 0 : i32
    return %arg0, %c0_i32, %c0_i32_0 : i32, i32, i32
  }
  func.func @transform_1(%arg0: i32) -> (i32, i32, i32) {
    %c0_i32 = arith.constant 0 : i32
    %c0_i32_0 = arith.constant 0 : i32
    %c0_i32_1 = arith.constant 0 : i32
    %c0_i32_2 = arith.constant 0 : i32
    return %c0_i32, %c0_i32_0, %c0_i32_1 : i32, i32, i32
  }
  func.func @transform_2(%arg0: i32) -> (i32, i32) {
    %c0_i32 = arith.constant 0 : i32
    %c0_i32_0 = arith.constant 0 : i32
    %c0_i32_1 = arith.constant 0 : i32
    return %c0_i32, %c0_i32_0 : i32, i32
  }
  func.func @transform_3(%arg0: i32) -> (i32, i32) {
    %c0_i32 = arith.constant 0 : i32
    %c0_i32_0 = arith.constant 0 : i32
    %c0_i32_1 = arith.constant 0 : i32
    return %c0_i32, %c0_i32_0 : i32, i32
  }
  func.func @transform_4(%arg0: i32) -> (i32, i32) {
    %c0_i32 = arith.constant 0 : i32
    %c0_i32_0 = arith.constant 0 : i32
    %c0_i32_1 = arith.constant 0 : i32
    return %c0_i32, %c0_i32_0 : i32, i32
  }
  func.func @transform_5(%arg0: i32) -> (i32, i32) {
    %c0_i32 = arith.constant 0 : i32
    %c0_i32_0 = arith.constant 0 : i32
    %c0_i32_1 = arith.constant 0 : i32
    return %c0_i32, %c0_i32_0 : i32, i32
  }
  func.func @transform_6(%arg0: i32) -> (i32, i32) {
    %c0_i32 = arith.constant 0 : i32
    %c0_i32_0 = arith.constant 0 : i32
    %c0_i32_1 = arith.constant 0 : i32
    return %c0_i32, %c0_i32_0 : i32, i32
  }
  func.func @transform_7(%arg0: i32) -> (i32, i32) {
    %c0_i32 = arith.constant 0 : i32
    %c0_i32_0 = arith.constant 0 : i32
    %c0_i32_1 = arith.constant 0 : i32
    return %c0_i32, %c0_i32_0 : i32, i32
  }
  func.func @transform_8(%arg0: i32) -> (i32, i32) {
    %c0_i32 = arith.constant 0 : i32
    %c0_i32_0 = arith.constant 0 : i32
    %c0_i32_1 = arith.constant 0 : i32
    return %c0_i32, %c0_i32_0 : i32, i32
  }
  func.func @transform_9(%arg0: i32) -> (i32, i32) {
    %c0_i32 = arith.constant 0 : i32
    %c0_i32_0 = arith.constant 0 : i32
    %c0_i32_1 = arith.constant 0 : i32
    return %c0_i32, %c0_i32_0 : i32, i32
  }
  func.func @transform_10(%arg0: i32) -> (i32, i32) {
    %c0_i32 = arith.constant 0 : i32
    %c0_i32_0 = arith.constant 0 : i32
    %c0_i32_1 = arith.constant 0 : i32
    return %c0_i32, %c0_i32_0 : i32, i32
  }
  func.func @transform_11(%arg0: i32) -> (i32, i32) {
    %c0_i32 = arith.constant 0 : i32
    %c0_i32_0 = arith.constant 0 : i32
    %c0_i32_1 = arith.constant 0 : i32
    return %c0_i32, %c0_i32_0 : i32, i32
  }
  func.func @transform_12(%arg0: i32) -> (i32, i32) {
    %c0_i32 = arith.constant 0 : i32
    %c0_i32_0 = arith.constant 0 : i32
    %c0_i32_1 = arith.constant 0 : i32
    return %c0_i32, %c0_i32_0 : i32, i32
  }
  func.func @transform_13(%arg0: i32) -> (i32, i32) {
    %c0_i32 = arith.constant 0 : i32
    %c0_i32_0 = arith.constant 0 : i32
    %c0_i32_1 = arith.constant 0 : i32
    return %c0_i32, %c0_i32_0 : i32, i32
  }
  func.func @transform_14(%arg0: i32) -> (i32, i32, i32) {
    %c0_i32 = arith.constant 0 : i32
    %c0_i32_0 = arith.constant 0 : i32
    %c0_i32_1 = arith.constant 0 : i32
    return %arg0, %c0_i32, %c0_i32_0 : i32, i32, i32
  }
}

module attributes {stable_mosaic.version = 11 : i64} {
  func.func @_sga_kernel(%arg0: i32, %arg1: memref<1x8x32xbf16, #tpu.memory_space<vmem>>, %arg2: memref<1x8x32xbf16, #tpu.memory_space<vmem>>, %arg3: memref<2x1x8xf32, #tpu.memory_space<vmem>>, %arg4: memref<2x1x8xf32, #tpu.memory_space<vmem>>, %arg5: memref<32x96xbf16, #tpu.memory_space<vmem>>, %arg6: memref<1x96xf32, #tpu.memory_space<vmem>>, %arg7: memref<32x32xbf16, #tpu.memory_space<vmem>>, %arg8: memref<1x32xf32, #tpu.memory_space<vmem>>, %arg9: memref<1x32xf32, #tpu.memory_space<vmem>>, %arg10: memref<1x32xf32, #tpu.memory_space<vmem>>, %arg11: memref<32x32xbf16, #tpu.memory_space<vmem>>, %arg12: memref<1x32xf32, #tpu.memory_space<vmem>>, %arg13: memref<32x64xbf16, #tpu.memory_space<vmem>>, %arg14: memref<1x64xf32, #tpu.memory_space<vmem>>, %arg15: memref<32x32xbf16, #tpu.memory_space<vmem>>, %arg16: memref<1x32xf32, #tpu.memory_space<vmem>>, %arg17: memref<1x32xf32, #tpu.memory_space<vmem>>, %arg18: memref<1x32xf32, #tpu.memory_space<vmem>>, %arg19: memref<32x64xbf16, #tpu.memory_space<vmem>>, %arg20: memref<1x64xf32, #tpu.memory_space<vmem>>, %arg21: memref<64x32xbf16, #tpu.memory_space<vmem>>, %arg22: memref<1x32xf32, #tpu.memory_space<vmem>>, %arg23: memref<1x32xf32, #tpu.memory_space<vmem>>, %arg24: memref<1x32xf32, #tpu.memory_space<vmem>>, %arg25: memref<1x8x32xbf16, #tpu.memory_space<vmem>>) attributes {dimension_semantics = [#tpu.dimension_semantics<parallel>], iteration_bounds = array<i64: 2>, scalar_prefetch = 0 : i64, scratch_operands = 0 : i64, tpu.core_type = #tpu.core_type<tc>, window_params = [{transform_indices = @transform_0, window_bounds = array<i64: 1, 8, 32>}, {transform_indices = @transform_1, window_bounds = array<i64: 1, 8, 32>}, {pipeline_mode = #tpu.pipeline_mode<synchronous>, transform_indices = @transform_2, window_bounds = array<i64: 2, 1, 8>}, {pipeline_mode = #tpu.pipeline_mode<synchronous>, transform_indices = @transform_3, window_bounds = array<i64: 2, 1, 8>}, {pipeline_mode = #tpu.pipeline_mode<synchronous>, transform_indices = @transform_4, window_bounds = array<i64: 32, 96>}, {pipeline_mode = #tpu.pipeline_mode<synchronous>, transform_indices = @transform_5, window_bounds = array<i64: 1, 96>}, {pipeline_mode = #tpu.pipeline_mode<synchronous>, transform_indices = @transform_6, window_bounds = array<i64: 32, 32>}, {pipeline_mode = #tpu.pipeline_mode<synchronous>, transform_indices = @transform_7, window_bounds = array<i64: 1, 32>}, {pipeline_mode = #tpu.pipeline_mode<synchronous>, transform_indices = @transform_8, window_bounds = array<i64: 1, 32>}, {pipeline_mode = #tpu.pipeline_mode<synchronous>, transform_indices = @transform_9, window_bounds = array<i64: 1, 32>}, {pipeline_mode = #tpu.pipeline_mode<synchronous>, transform_indices = @transform_10, window_bounds = array<i64: 32, 32>}, {pipeline_mode = #tpu.pipeline_mode<synchronous>, transform_indices = @transform_11, window_bounds = array<i64: 1, 32>}, {pipeline_mode = #tpu.pipeline_mode<synchronous>, transform_indices = @transform_12, window_bounds = array<i64: 32, 64>}, {pipeline_mode = #tpu.pipeline_mode<synchronous>, transform_indices = @transform_13, window_bounds = array<i64: 1, 64>}, {pipeline_mode = #tpu.pipeline_mode<synchronous>, transform_indices = @transform_14, window_bounds = array<i64: 32, 32>}, {pipeline_mode = #tpu.pipeline_mode<synchronous>, transform_indices = @transform_15, window_bounds = array<i64: 1, 32>}, {pipeline_mode = #tpu.pipeline_mode<synchronous>, transform_indices = @transform_16, window_bounds = array<i64: 1, 32>}, {pipeline_mode = #tpu.pipeline_mode<synchronous>, transform_indices = @transform_17, window_bounds = array<i64: 1, 32>}, {pipeline_mode = #tpu.pipeline_mode<synchronous>, transform_indices = @transform_18, window_bounds = array<i64: 32, 64>}, {pipeline_mode = #tpu.pipeline_mode<synchronous>, transform_indices = @transform_19, window_bounds = array<i64: 1, 64>}, {pipeline_mode = #tpu.pipeline_mode<synchronous>, transform_indices = @transform_20, window_bounds = array<i64: 64, 32>}, {pipeline_mode = #tpu.pipeline_mode<synchronous>, transform_indices = @transform_21, window_bounds = array<i64: 1, 32>}, {pipeline_mode = #tpu.pipeline_mode<synchronous>, transform_indices = @transform_22, window_bounds = array<i64: 1, 32>}, {pipeline_mode = #tpu.pipeline_mode<synchronous>, transform_indices = @transform_23, window_bounds = array<i64: 1, 32>}, {transform_indices = @transform_24, window_bounds = array<i64: 1, 8, 32>}]} {
    %c0 = arith.constant 0 : index
    %c0_0 = arith.constant 0 : index
    %c0_1 = arith.constant 0 : index
    %0 = vector.load %arg1[%c0, %c0_0, %c0_1] : memref<1x8x32xbf16, #tpu.memory_space<vmem>>, vector<1x8x32xbf16>
    %1 = vector.shape_cast %0 : vector<1x8x32xbf16> to vector<8x32xbf16>
    %c0_2 = arith.constant 0 : index
    %c0_3 = arith.constant 0 : index
    %c0_4 = arith.constant 0 : index
    %2 = vector.load %arg2[%c0_2, %c0_3, %c0_4] : memref<1x8x32xbf16, #tpu.memory_space<vmem>>, vector<1x8x32xbf16>
    %3 = vector.shape_cast %2 : vector<1x8x32xbf16> to vector<8x32xbf16>
    %4 = arith.extf %1 : vector<8x32xbf16> to vector<8x32xf32>
    %5 = arith.index_cast %arg0 : i32 to index
    %c0_5 = arith.constant 0 : index
    %c0_6 = arith.constant 0 : index
    %6 = vector.load %arg3[%5, %c0_5, %c0_6] : memref<2x1x8xf32, #tpu.memory_space<vmem>>, vector<1x1x8xf32>
    %7 = vector.shape_cast %6 : vector<1x1x8xf32> to vector<1x8xf32>
    %8 = arith.index_cast %arg0 : i32 to index
    %c0_7 = arith.constant 0 : index
    %c0_8 = arith.constant 0 : index
    %9 = vector.load %arg4[%8, %c0_7, %c0_8] : memref<2x1x8xf32, #tpu.memory_space<vmem>>, vector<1x1x8xf32>
    %10 = vector.shape_cast %9 : vector<1x1x8xf32> to vector<1x8xf32>
    %c0_9 = arith.constant 0 : index
    %c0_10 = arith.constant 0 : index
    %11 = vector.load %arg5[%c0_9, %c0_10] : memref<32x96xbf16, #tpu.memory_space<vmem>>, vector<32x96xbf16>
    %cst = arith.constant dense<0.000000e+00> : vector<8x96xf32>
    %12 = tpu.matmul %1, %11, %cst {dimension_numbers = #tpu.dot_dimension_numbers<[1], [0], [0], [1], [0, 0, 1, 1], [], []>} : vector<8x32xbf16>, vector<32x96xbf16>, vector<8x96xf32> -> vector<8x96xf32>
    %c0_11 = arith.constant 0 : index
    %c0_12 = arith.constant 0 : index
    %13 = vector.load %arg6[%c0_11, %c0_12] : memref<1x96xf32, #tpu.memory_space<vmem>>, vector<1x96xf32>
    %14 = vector.broadcast %13 : vector<1x96xf32> to vector<8x96xf32>
    %15 = arith.addf %12, %14 : vector<8x96xf32>
    %16 = arith.truncf %15 : vector<8x96xf32> to vector<8x96xbf16>
    %17 = vector.extract_strided_slice %16 {offsets = [0, 0], sizes = [8, 32], strides = [1, 1]} : vector<8x96xbf16> to vector<8x32xbf16>
    %18 = vector.extract_strided_slice %16 {offsets = [0, 32], sizes = [8, 32], strides = [1, 1]} : vector<8x96xbf16> to vector<8x32xbf16>
    %19 = vector.extract_strided_slice %16 {offsets = [0, 64], sizes = [8, 32], strides = [1, 1]} : vector<8x96xbf16> to vector<8x32xbf16>
    %c0_13 = arith.constant 0 : index
    %c0_14 = arith.constant 0 : index
    %20 = vector.load %arg7[%c0_13, %c0_14] : memref<32x32xbf16, #tpu.memory_space<vmem>>, vector<32x32xbf16>
    %c0_15 = arith.constant 0 : index
    %c0_16 = arith.constant 0 : index
    %21 = vector.load %arg8[%c0_15, %c0_16] : memref<1x32xf32, #tpu.memory_space<vmem>>, vector<1x32xf32>
    %22 = vector.shape_cast %7 : vector<1x8xf32> to vector<1x8xf32>
    %23 = vector.broadcast %22 : vector<1x8xf32> to vector<8x8xf32>
    %24 = vector.extract_strided_slice %17 {offsets = [0, 0], sizes = [8, 8], strides = [1, 1]} : vector<8x32xbf16> to vector<8x8xbf16>
    %25 = vector.extract_strided_slice %18 {offsets = [0, 0], sizes = [8, 8], strides = [1, 1]} : vector<8x32xbf16> to vector<8x8xbf16>
    %cst_17 = arith.constant dense<0.000000e+00> : vector<8x8xf32>
    %26 = tpu.matmul %24, %25, %cst_17 {dimension_numbers = #tpu.dot_dimension_numbers<[1], [1], [0], [0], [0, 0, 1, 0], [], []>} : vector<8x8xbf16>, vector<8x8xbf16>, vector<8x8xf32> -> vector<8x8xf32>
    %27 = arith.addf %26, %23 : vector<8x8xf32>
    %cst_18 = arith.constant dense<0xFF800000> : vector<8xf32>
    %28 = vector.multi_reduction <maximumf>, %27, %cst_18 [1] : vector<8x8xf32> to vector<8xf32>
    %29 = vector.shape_cast %28 : vector<8xf32> to vector<8x1xf32>
    %30 = vector.broadcast %29 : vector<8x1xf32> to vector<8x8xf32>
    %31 = arith.subf %27, %30 : vector<8x8xf32>
    %32 = math.exp %31 : vector<8x8xf32>
    %cst_19 = arith.constant dense<0.000000e+00> : vector<8xf32>
    %33 = vector.multi_reduction <add>, %32, %cst_19 [1] : vector<8x8xf32> to vector<8xf32>
    %34 = vector.shape_cast %33 : vector<8xf32> to vector<8x1xf32>
    %35 = tpu.reciprocal %34 {approx = true} : vector<8x1xf32> -> vector<8x1xf32>
    %36 = vector.broadcast %35 : vector<8x1xf32> to vector<8x8xf32>
    %37 = arith.mulf %32, %36 : vector<8x8xf32>
    %38 = vector.extract_strided_slice %19 {offsets = [0, 0], sizes = [8, 8], strides = [1, 1]} : vector<8x32xbf16> to vector<8x8xbf16>
    %39 = arith.truncf %37 : vector<8x8xf32> to vector<8x8xbf16>
    %cst_20 = arith.constant dense<0.000000e+00> : vector<8x8xf32>
    %40 = tpu.matmul %39, %38, %cst_20 {dimension_numbers = #tpu.dot_dimension_numbers<[1], [0], [0], [1], [0, 0, 1, 1], [], []>} : vector<8x8xbf16>, vector<8x8xbf16>, vector<8x8xf32> -> vector<8x8xf32>
    %41 = vector.extract_strided_slice %17 {offsets = [0, 8], sizes = [8, 8], strides = [1, 1]} : vector<8x32xbf16> to vector<8x8xbf16>
    %42 = vector.extract_strided_slice %18 {offsets = [0, 8], sizes = [8, 8], strides = [1, 1]} : vector<8x32xbf16> to vector<8x8xbf16>
    %cst_21 = arith.constant dense<0.000000e+00> : vector<8x8xf32>
    %43 = tpu.matmul %41, %42, %cst_21 {dimension_numbers = #tpu.dot_dimension_numbers<[1], [1], [0], [0], [0, 0, 1, 0], [], []>} : vector<8x8xbf16>, vector<8x8xbf16>, vector<8x8xf32> -> vector<8x8xf32>
    %44 = arith.addf %43, %23 : vector<8x8xf32>
    %cst_22 = arith.constant dense<0xFF800000> : vector<8xf32>
    %45 = vector.multi_reduction <maximumf>, %44, %cst_22 [1] : vector<8x8xf32> to vector<8xf32>
    %46 = vector.shape_cast %45 : vector<8xf32> to vector<8x1xf32>
    %47 = vector.broadcast %46 : vector<8x1xf32> to vector<8x8xf32>
    %48 = arith.subf %44, %47 : vector<8x8xf32>
    %49 = math.exp %48 : vector<8x8xf32>
    %cst_23 = arith.constant dense<0.000000e+00> : vector<8xf32>
    %50 = vector.multi_reduction <add>, %49, %cst_23 [1] : vector<8x8xf32> to vector<8xf32>
    %51 = vector.shape_cast %50 : vector<8xf32> to vector<8x1xf32>
    %52 = tpu.reciprocal %51 {approx = true} : vector<8x1xf32> -> vector<8x1xf32>
    %53 = vector.broadcast %52 : vector<8x1xf32> to vector<8x8xf32>
    %54 = arith.mulf %49, %53 : vector<8x8xf32>
    %55 = vector.extract_strided_slice %19 {offsets = [0, 8], sizes = [8, 8], strides = [1, 1]} : vector<8x32xbf16> to vector<8x8xbf16>
    %56 = arith.truncf %54 : vector<8x8xf32> to vector<8x8xbf16>
    %cst_24 = arith.constant dense<0.000000e+00> : vector<8x8xf32>
    %57 = tpu.matmul %56, %55, %cst_24 {dimension_numbers = #tpu.dot_dimension_numbers<[1], [0], [0], [1], [0, 0, 1, 1], [], []>} : vector<8x8xbf16>, vector<8x8xbf16>, vector<8x8xf32> -> vector<8x8xf32>
    %58 = vector.extract_strided_slice %17 {offsets = [0, 16], sizes = [8, 8], strides = [1, 1]} : vector<8x32xbf16> to vector<8x8xbf16>
    %59 = vector.extract_strided_slice %18 {offsets = [0, 16], sizes = [8, 8], strides = [1, 1]} : vector<8x32xbf16> to vector<8x8xbf16>
    %cst_25 = arith.constant dense<0.000000e+00> : vector<8x8xf32>
    %60 = tpu.matmul %58, %59, %cst_25 {dimension_numbers = #tpu.dot_dimension_numbers<[1], [1], [0], [0], [0, 0, 1, 0], [], []>} : vector<8x8xbf16>, vector<8x8xbf16>, vector<8x8xf32> -> vector<8x8xf32>
    %61 = arith.addf %60, %23 : vector<8x8xf32>
    %cst_26 = arith.constant dense<0xFF800000> : vector<8xf32>
    %62 = vector.multi_reduction <maximumf>, %61, %cst_26 [1] : vector<8x8xf32> to vector<8xf32>
    %63 = vector.shape_cast %62 : vector<8xf32> to vector<8x1xf32>
    %64 = vector.broadcast %63 : vector<8x1xf32> to vector<8x8xf32>
    %65 = arith.subf %61, %64 : vector<8x8xf32>
    %66 = math.exp %65 : vector<8x8xf32>
    %cst_27 = arith.constant dense<0.000000e+00> : vector<8xf32>
    %67 = vector.multi_reduction <add>, %66, %cst_27 [1] : vector<8x8xf32> to vector<8xf32>
    %68 = vector.shape_cast %67 : vector<8xf32> to vector<8x1xf32>
    %69 = tpu.reciprocal %68 {approx = true} : vector<8x1xf32> -> vector<8x1xf32>
    %70 = vector.broadcast %69 : vector<8x1xf32> to vector<8x8xf32>
    %71 = arith.mulf %66, %70 : vector<8x8xf32>
    %72 = vector.extract_strided_slice %19 {offsets = [0, 16], sizes = [8, 8], strides = [1, 1]} : vector<8x32xbf16> to vector<8x8xbf16>
    %73 = arith.truncf %71 : vector<8x8xf32> to vector<8x8xbf16>
    %cst_28 = arith.constant dense<0.000000e+00> : vector<8x8xf32>
    %74 = tpu.matmul %73, %72, %cst_28 {dimension_numbers = #tpu.dot_dimension_numbers<[1], [0], [0], [1], [0, 0, 1, 1], [], []>} : vector<8x8xbf16>, vector<8x8xbf16>, vector<8x8xf32> -> vector<8x8xf32>
    %75 = vector.extract_strided_slice %17 {offsets = [0, 24], sizes = [8, 8], strides = [1, 1]} : vector<8x32xbf16> to vector<8x8xbf16>
    %76 = vector.extract_strided_slice %18 {offsets = [0, 24], sizes = [8, 8], strides = [1, 1]} : vector<8x32xbf16> to vector<8x8xbf16>
    %cst_29 = arith.constant dense<0.000000e+00> : vector<8x8xf32>
    %77 = tpu.matmul %75, %76, %cst_29 {dimension_numbers = #tpu.dot_dimension_numbers<[1], [1], [0], [0], [0, 0, 1, 0], [], []>} : vector<8x8xbf16>, vector<8x8xbf16>, vector<8x8xf32> -> vector<8x8xf32>
    %78 = arith.addf %77, %23 : vector<8x8xf32>
    %cst_30 = arith.constant dense<0xFF800000> : vector<8xf32>
    %79 = vector.multi_reduction <maximumf>, %78, %cst_30 [1] : vector<8x8xf32> to vector<8xf32>
    %80 = vector.shape_cast %79 : vector<8xf32> to vector<8x1xf32>
    %81 = vector.broadcast %80 : vector<8x1xf32> to vector<8x8xf32>
    %82 = arith.subf %78, %81 : vector<8x8xf32>
    %83 = math.exp %82 : vector<8x8xf32>
    %cst_31 = arith.constant dense<0.000000e+00> : vector<8xf32>
    %84 = vector.multi_reduction <add>, %83, %cst_31 [1] : vector<8x8xf32> to vector<8xf32>
    %85 = vector.shape_cast %84 : vector<8xf32> to vector<8x1xf32>
    %86 = tpu.reciprocal %85 {approx = true} : vector<8x1xf32> -> vector<8x1xf32>
    %87 = vector.broadcast %86 : vector<8x1xf32> to vector<8x8xf32>
    %88 = arith.mulf %83, %87 : vector<8x8xf32>
    %89 = vector.extract_strided_slice %19 {offsets = [0, 24], sizes = [8, 8], strides = [1, 1]} : vector<8x32xbf16> to vector<8x8xbf16>
    %90 = arith.truncf %88 : vector<8x8xf32> to vector<8x8xbf16>
    %cst_32 = arith.constant dense<0.000000e+00> : vector<8x8xf32>
    %91 = tpu.matmul %90, %89, %cst_32 {dimension_numbers = #tpu.dot_dimension_numbers<[1], [0], [0], [1], [0, 0, 1, 1], [], []>} : vector<8x8xbf16>, vector<8x8xbf16>, vector<8x8xf32> -> vector<8x8xf32>
    %92 = tpu.concatenate %40, %57, %74, %91 in 1 : vector<8x8xf32>, vector<8x8xf32>, vector<8x8xf32>, vector<8x8xf32> -> vector<8x32xf32>
    %93 = arith.truncf %92 : vector<8x32xf32> to vector<8x32xbf16>
    %cst_33 = arith.constant dense<0.000000e+00> : vector<8x32xf32>
    %94 = tpu.matmul %93, %20, %cst_33 {dimension_numbers = #tpu.dot_dimension_numbers<[1], [0], [0], [1], [0, 0, 1, 1], [], []>} : vector<8x32xbf16>, vector<32x32xbf16>, vector<8x32xf32> -> vector<8x32xf32>
    %95 = vector.broadcast %21 : vector<1x32xf32> to vector<8x32xf32>
    %96 = arith.addf %94, %95 : vector<8x32xf32>
    %97 = arith.addf %96, %4 : vector<8x32xf32>
    %c0_34 = arith.constant 0 : index
    %c0_35 = arith.constant 0 : index
    %98 = vector.load %arg9[%c0_34, %c0_35] : memref<1x32xf32, #tpu.memory_space<vmem>>, vector<1x32xf32>
    %c0_36 = arith.constant 0 : index
    %c0_37 = arith.constant 0 : index
    %99 = vector.load %arg10[%c0_36, %c0_37] : memref<1x32xf32, #tpu.memory_space<vmem>>, vector<1x32xf32>
    %cst_38 = arith.constant dense<0.000000e+00> : vector<8xf32>
    %100 = vector.multi_reduction <add>, %97, %cst_38 [1] : vector<8x32xf32> to vector<8xf32>
    %101 = vector.shape_cast %100 : vector<8xf32> to vector<8x1xf32>
    %cst_39 = arith.constant 3.200000e+01 : f32
    %102 = vector.broadcast %cst_39 : f32 to vector<8x1xf32>
    %103 = arith.divf %101, %102 : vector<8x1xf32>
    %104 = vector.broadcast %103 : vector<8x1xf32> to vector<8x32xf32>
    %105 = arith.subf %97, %104 : vector<8x32xf32>
    %106 = arith.mulf %105, %105 : vector<8x32xf32>
    %cst_40 = arith.constant dense<0.000000e+00> : vector<8xf32>
    %107 = vector.multi_reduction <add>, %106, %cst_40 [1] : vector<8x32xf32> to vector<8xf32>
    %108 = vector.shape_cast %107 : vector<8xf32> to vector<8x1xf32>
    %cst_41 = arith.constant 3.100000e+01 : f32
    %109 = vector.broadcast %cst_41 : f32 to vector<8x1xf32>
    %110 = arith.divf %108, %109 : vector<8x1xf32>
    %111 = vector.broadcast %103 : vector<8x1xf32> to vector<8x32xf32>
    %112 = arith.subf %97, %111 : vector<8x32xf32>
    %113 = vector.broadcast %98 : vector<1x32xf32> to vector<8x32xf32>
    %114 = arith.mulf %113, %112 : vector<8x32xf32>
    %115 = math.sqrt %110 : vector<8x1xf32>
    %cst_42 = arith.constant 9.99999997E-7 : f32
    %116 = vector.broadcast %cst_42 : f32 to vector<8x1xf32>
    %117 = arith.addf %115, %116 : vector<8x1xf32>
    %118 = vector.broadcast %117 : vector<8x1xf32> to vector<8x32xf32>
    %119 = arith.divf %114, %118 : vector<8x32xf32>
    %120 = vector.broadcast %99 : vector<1x32xf32> to vector<8x32xf32>
    %121 = arith.addf %119, %120 : vector<8x32xf32>
    %c0_43 = arith.constant 0 : index
    %c0_44 = arith.constant 0 : index
    %122 = vector.load %arg11[%c0_43, %c0_44] : memref<32x32xbf16, #tpu.memory_space<vmem>>, vector<32x32xbf16>
    %123 = arith.truncf %121 : vector<8x32xf32> to vector<8x32xbf16>
    %cst_45 = arith.constant dense<0.000000e+00> : vector<8x32xf32>
    %124 = tpu.matmul %123, %122, %cst_45 {dimension_numbers = #tpu.dot_dimension_numbers<[1], [0], [0], [1], [0, 0, 1, 1], [], []>} : vector<8x32xbf16>, vector<32x32xbf16>, vector<8x32xf32> -> vector<8x32xf32>
    %c0_46 = arith.constant 0 : index
    %c0_47 = arith.constant 0 : index
    %125 = vector.load %arg12[%c0_46, %c0_47] : memref<1x32xf32, #tpu.memory_space<vmem>>, vector<1x32xf32>
    %126 = vector.broadcast %125 : vector<1x32xf32> to vector<8x32xf32>
    %127 = arith.addf %124, %126 : vector<8x32xf32>
    %128 = arith.truncf %127 : vector<8x32xf32> to vector<8x32xbf16>
    %c0_48 = arith.constant 0 : index
    %c0_49 = arith.constant 0 : index
    %129 = vector.load %arg13[%c0_48, %c0_49] : memref<32x64xbf16, #tpu.memory_space<vmem>>, vector<32x64xbf16>
    %cst_50 = arith.constant dense<0.000000e+00> : vector<8x64xf32>
    %130 = tpu.matmul %3, %129, %cst_50 {dimension_numbers = #tpu.dot_dimension_numbers<[1], [0], [0], [1], [0, 0, 1, 1], [], []>} : vector<8x32xbf16>, vector<32x64xbf16>, vector<8x64xf32> -> vector<8x64xf32>
    %c0_51 = arith.constant 0 : index
    %c0_52 = arith.constant 0 : index
    %131 = vector.load %arg14[%c0_51, %c0_52] : memref<1x64xf32, #tpu.memory_space<vmem>>, vector<1x64xf32>
    %132 = vector.broadcast %131 : vector<1x64xf32> to vector<8x64xf32>
    %133 = arith.addf %130, %132 : vector<8x64xf32>
    %134 = arith.truncf %133 : vector<8x64xf32> to vector<8x64xbf16>
    %135 = vector.extract_strided_slice %134 {offsets = [0, 0], sizes = [8, 32], strides = [1, 1]} : vector<8x64xbf16> to vector<8x32xbf16>
    %136 = vector.extract_strided_slice %134 {offsets = [0, 32], sizes = [8, 32], strides = [1, 1]} : vector<8x64xbf16> to vector<8x32xbf16>
    %c0_53 = arith.constant 0 : index
    %c0_54 = arith.constant 0 : index
    %137 = vector.load %arg15[%c0_53, %c0_54] : memref<32x32xbf16, #tpu.memory_space<vmem>>, vector<32x32xbf16>
    %c0_55 = arith.constant 0 : index
    %c0_56 = arith.constant 0 : index
    %138 = vector.load %arg16[%c0_55, %c0_56] : memref<1x32xf32, #tpu.memory_space<vmem>>, vector<1x32xf32>
    %139 = vector.shape_cast %10 : vector<1x8xf32> to vector<1x8xf32>
    %140 = vector.broadcast %139 : vector<1x8xf32> to vector<8x8xf32>
    %141 = vector.extract_strided_slice %128 {offsets = [0, 0], sizes = [8, 8], strides = [1, 1]} : vector<8x32xbf16> to vector<8x8xbf16>
    %142 = vector.extract_strided_slice %135 {offsets = [0, 0], sizes = [8, 8], strides = [1, 1]} : vector<8x32xbf16> to vector<8x8xbf16>
    %cst_57 = arith.constant dense<0.000000e+00> : vector<8x8xf32>
    %143 = tpu.matmul %141, %142, %cst_57 {dimension_numbers = #tpu.dot_dimension_numbers<[1], [1], [0], [0], [0, 0, 1, 0], [], []>} : vector<8x8xbf16>, vector<8x8xbf16>, vector<8x8xf32> -> vector<8x8xf32>
    %144 = arith.addf %143, %140 : vector<8x8xf32>
    %cst_58 = arith.constant dense<0xFF800000> : vector<8xf32>
    %145 = vector.multi_reduction <maximumf>, %144, %cst_58 [1] : vector<8x8xf32> to vector<8xf32>
    %146 = vector.shape_cast %145 : vector<8xf32> to vector<8x1xf32>
    %147 = vector.broadcast %146 : vector<8x1xf32> to vector<8x8xf32>
    %148 = arith.subf %144, %147 : vector<8x8xf32>
    %149 = math.exp %148 : vector<8x8xf32>
    %cst_59 = arith.constant dense<0.000000e+00> : vector<8xf32>
    %150 = vector.multi_reduction <add>, %149, %cst_59 [1] : vector<8x8xf32> to vector<8xf32>
    %151 = vector.shape_cast %150 : vector<8xf32> to vector<8x1xf32>
    %152 = tpu.reciprocal %151 {approx = true} : vector<8x1xf32> -> vector<8x1xf32>
    %153 = vector.broadcast %152 : vector<8x1xf32> to vector<8x8xf32>
    %154 = arith.mulf %149, %153 : vector<8x8xf32>
    %155 = vector.extract_strided_slice %136 {offsets = [0, 0], sizes = [8, 8], strides = [1, 1]} : vector<8x32xbf16> to vector<8x8xbf16>
    %156 = arith.truncf %154 : vector<8x8xf32> to vector<8x8xbf16>
    %cst_60 = arith.constant dense<0.000000e+00> : vector<8x8xf32>
    %157 = tpu.matmul %156, %155, %cst_60 {dimension_numbers = #tpu.dot_dimension_numbers<[1], [0], [0], [1], [0, 0, 1, 1], [], []>} : vector<8x8xbf16>, vector<8x8xbf16>, vector<8x8xf32> -> vector<8x8xf32>
    %158 = vector.extract_strided_slice %128 {offsets = [0, 8], sizes = [8, 8], strides = [1, 1]} : vector<8x32xbf16> to vector<8x8xbf16>
    %159 = vector.extract_strided_slice %135 {offsets = [0, 8], sizes = [8, 8], strides = [1, 1]} : vector<8x32xbf16> to vector<8x8xbf16>
    %cst_61 = arith.constant dense<0.000000e+00> : vector<8x8xf32>
    %160 = tpu.matmul %158, %159, %cst_61 {dimension_numbers = #tpu.dot_dimension_numbers<[1], [1], [0], [0], [0, 0, 1, 0], [], []>} : vector<8x8xbf16>, vector<8x8xbf16>, vector<8x8xf32> -> vector<8x8xf32>
    %161 = arith.addf %160, %140 : vector<8x8xf32>
    %cst_62 = arith.constant dense<0xFF800000> : vector<8xf32>
    %162 = vector.multi_reduction <maximumf>, %161, %cst_62 [1] : vector<8x8xf32> to vector<8xf32>
    %163 = vector.shape_cast %162 : vector<8xf32> to vector<8x1xf32>
    %164 = vector.broadcast %163 : vector<8x1xf32> to vector<8x8xf32>
    %165 = arith.subf %161, %164 : vector<8x8xf32>
    %166 = math.exp %165 : vector<8x8xf32>
    %cst_63 = arith.constant dense<0.000000e+00> : vector<8xf32>
    %167 = vector.multi_reduction <add>, %166, %cst_63 [1] : vector<8x8xf32> to vector<8xf32>
    %168 = vector.shape_cast %167 : vector<8xf32> to vector<8x1xf32>
    %169 = tpu.reciprocal %168 {approx = true} : vector<8x1xf32> -> vector<8x1xf32>
    %170 = vector.broadcast %169 : vector<8x1xf32> to vector<8x8xf32>
    %171 = arith.mulf %166, %170 : vector<8x8xf32>
    %172 = vector.extract_strided_slice %136 {offsets = [0, 8], sizes = [8, 8], strides = [1, 1]} : vector<8x32xbf16> to vector<8x8xbf16>
    %173 = arith.truncf %171 : vector<8x8xf32> to vector<8x8xbf16>
    %cst_64 = arith.constant dense<0.000000e+00> : vector<8x8xf32>
    %174 = tpu.matmul %173, %172, %cst_64 {dimension_numbers = #tpu.dot_dimension_numbers<[1], [0], [0], [1], [0, 0, 1, 1], [], []>} : vector<8x8xbf16>, vector<8x8xbf16>, vector<8x8xf32> -> vector<8x8xf32>
    %175 = vector.extract_strided_slice %128 {offsets = [0, 16], sizes = [8, 8], strides = [1, 1]} : vector<8x32xbf16> to vector<8x8xbf16>
    %176 = vector.extract_strided_slice %135 {offsets = [0, 16], sizes = [8, 8], strides = [1, 1]} : vector<8x32xbf16> to vector<8x8xbf16>
    %cst_65 = arith.constant dense<0.000000e+00> : vector<8x8xf32>
    %177 = tpu.matmul %175, %176, %cst_65 {dimension_numbers = #tpu.dot_dimension_numbers<[1], [1], [0], [0], [0, 0, 1, 0], [], []>} : vector<8x8xbf16>, vector<8x8xbf16>, vector<8x8xf32> -> vector<8x8xf32>
    %178 = arith.addf %177, %140 : vector<8x8xf32>
    %cst_66 = arith.constant dense<0xFF800000> : vector<8xf32>
    %179 = vector.multi_reduction <maximumf>, %178, %cst_66 [1] : vector<8x8xf32> to vector<8xf32>
    %180 = vector.shape_cast %179 : vector<8xf32> to vector<8x1xf32>
    %181 = vector.broadcast %180 : vector<8x1xf32> to vector<8x8xf32>
    %182 = arith.subf %178, %181 : vector<8x8xf32>
    %183 = math.exp %182 : vector<8x8xf32>
    %cst_67 = arith.constant dense<0.000000e+00> : vector<8xf32>
    %184 = vector.multi_reduction <add>, %183, %cst_67 [1] : vector<8x8xf32> to vector<8xf32>
    %185 = vector.shape_cast %184 : vector<8xf32> to vector<8x1xf32>
    %186 = tpu.reciprocal %185 {approx = true} : vector<8x1xf32> -> vector<8x1xf32>
    %187 = vector.broadcast %186 : vector<8x1xf32> to vector<8x8xf32>
    %188 = arith.mulf %183, %187 : vector<8x8xf32>
    %189 = vector.extract_strided_slice %136 {offsets = [0, 16], sizes = [8, 8], strides = [1, 1]} : vector<8x32xbf16> to vector<8x8xbf16>
    %190 = arith.truncf %188 : vector<8x8xf32> to vector<8x8xbf16>
    %cst_68 = arith.constant dense<0.000000e+00> : vector<8x8xf32>
    %191 = tpu.matmul %190, %189, %cst_68 {dimension_numbers = #tpu.dot_dimension_numbers<[1], [0], [0], [1], [0, 0, 1, 1], [], []>} : vector<8x8xbf16>, vector<8x8xbf16>, vector<8x8xf32> -> vector<8x8xf32>
    %192 = vector.extract_strided_slice %128 {offsets = [0, 24], sizes = [8, 8], strides = [1, 1]} : vector<8x32xbf16> to vector<8x8xbf16>
    %193 = vector.extract_strided_slice %135 {offsets = [0, 24], sizes = [8, 8], strides = [1, 1]} : vector<8x32xbf16> to vector<8x8xbf16>
    %cst_69 = arith.constant dense<0.000000e+00> : vector<8x8xf32>
    %194 = tpu.matmul %192, %193, %cst_69 {dimension_numbers = #tpu.dot_dimension_numbers<[1], [1], [0], [0], [0, 0, 1, 0], [], []>} : vector<8x8xbf16>, vector<8x8xbf16>, vector<8x8xf32> -> vector<8x8xf32>
    %195 = arith.addf %194, %140 : vector<8x8xf32>
    %cst_70 = arith.constant dense<0xFF800000> : vector<8xf32>
    %196 = vector.multi_reduction <maximumf>, %195, %cst_70 [1] : vector<8x8xf32> to vector<8xf32>
    %197 = vector.shape_cast %196 : vector<8xf32> to vector<8x1xf32>
    %198 = vector.broadcast %197 : vector<8x1xf32> to vector<8x8xf32>
    %199 = arith.subf %195, %198 : vector<8x8xf32>
    %200 = math.exp %199 : vector<8x8xf32>
    %cst_71 = arith.constant dense<0.000000e+00> : vector<8xf32>
    %201 = vector.multi_reduction <add>, %200, %cst_71 [1] : vector<8x8xf32> to vector<8xf32>
    %202 = vector.shape_cast %201 : vector<8xf32> to vector<8x1xf32>
    %203 = tpu.reciprocal %202 {approx = true} : vector<8x1xf32> -> vector<8x1xf32>
    %204 = vector.broadcast %203 : vector<8x1xf32> to vector<8x8xf32>
    %205 = arith.mulf %200, %204 : vector<8x8xf32>
    %206 = vector.extract_strided_slice %136 {offsets = [0, 24], sizes = [8, 8], strides = [1, 1]} : vector<8x32xbf16> to vector<8x8xbf16>
    %207 = arith.truncf %205 : vector<8x8xf32> to vector<8x8xbf16>
    %cst_72 = arith.constant dense<0.000000e+00> : vector<8x8xf32>
    %208 = tpu.matmul %207, %206, %cst_72 {dimension_numbers = #tpu.dot_dimension_numbers<[1], [0], [0], [1], [0, 0, 1, 1], [], []>} : vector<8x8xbf16>, vector<8x8xbf16>, vector<8x8xf32> -> vector<8x8xf32>
    %209 = tpu.concatenate %157, %174, %191, %208 in 1 : vector<8x8xf32>, vector<8x8xf32>, vector<8x8xf32>, vector<8x8xf32> -> vector<8x32xf32>
    %210 = arith.truncf %209 : vector<8x32xf32> to vector<8x32xbf16>
    %cst_73 = arith.constant dense<0.000000e+00> : vector<8x32xf32>
    %211 = tpu.matmul %210, %137, %cst_73 {dimension_numbers = #tpu.dot_dimension_numbers<[1], [0], [0], [1], [0, 0, 1, 1], [], []>} : vector<8x32xbf16>, vector<32x32xbf16>, vector<8x32xf32> -> vector<8x32xf32>
    %212 = vector.broadcast %138 : vector<1x32xf32> to vector<8x32xf32>
    %213 = arith.addf %211, %212 : vector<8x32xf32>
    %214 = arith.addf %213, %121 : vector<8x32xf32>
    %c0_74 = arith.constant 0 : index
    %c0_75 = arith.constant 0 : index
    %215 = vector.load %arg17[%c0_74, %c0_75] : memref<1x32xf32, #tpu.memory_space<vmem>>, vector<1x32xf32>
    %c0_76 = arith.constant 0 : index
    %c0_77 = arith.constant 0 : index
    %216 = vector.load %arg18[%c0_76, %c0_77] : memref<1x32xf32, #tpu.memory_space<vmem>>, vector<1x32xf32>
    %cst_78 = arith.constant dense<0.000000e+00> : vector<8xf32>
    %217 = vector.multi_reduction <add>, %214, %cst_78 [1] : vector<8x32xf32> to vector<8xf32>
    %218 = vector.shape_cast %217 : vector<8xf32> to vector<8x1xf32>
    %cst_79 = arith.constant 3.200000e+01 : f32
    %219 = vector.broadcast %cst_79 : f32 to vector<8x1xf32>
    %220 = arith.divf %218, %219 : vector<8x1xf32>
    %221 = vector.broadcast %220 : vector<8x1xf32> to vector<8x32xf32>
    %222 = arith.subf %214, %221 : vector<8x32xf32>
    %223 = arith.mulf %222, %222 : vector<8x32xf32>
    %cst_80 = arith.constant dense<0.000000e+00> : vector<8xf32>
    %224 = vector.multi_reduction <add>, %223, %cst_80 [1] : vector<8x32xf32> to vector<8xf32>
    %225 = vector.shape_cast %224 : vector<8xf32> to vector<8x1xf32>
    %cst_81 = arith.constant 3.100000e+01 : f32
    %226 = vector.broadcast %cst_81 : f32 to vector<8x1xf32>
    %227 = arith.divf %225, %226 : vector<8x1xf32>
    %228 = vector.broadcast %220 : vector<8x1xf32> to vector<8x32xf32>
    %229 = arith.subf %214, %228 : vector<8x32xf32>
    %230 = vector.broadcast %215 : vector<1x32xf32> to vector<8x32xf32>
    %231 = arith.mulf %230, %229 : vector<8x32xf32>
    %232 = math.sqrt %227 : vector<8x1xf32>
    %cst_82 = arith.constant 9.99999997E-7 : f32
    %233 = vector.broadcast %cst_82 : f32 to vector<8x1xf32>
    %234 = arith.addf %232, %233 : vector<8x1xf32>
    %235 = vector.broadcast %234 : vector<8x1xf32> to vector<8x32xf32>
    %236 = arith.divf %231, %235 : vector<8x32xf32>
    %237 = vector.broadcast %216 : vector<1x32xf32> to vector<8x32xf32>
    %238 = arith.addf %236, %237 : vector<8x32xf32>
    %c0_83 = arith.constant 0 : index
    %c0_84 = arith.constant 0 : index
    %239 = vector.load %arg19[%c0_83, %c0_84] : memref<32x64xbf16, #tpu.memory_space<vmem>>, vector<32x64xbf16>
    %240 = arith.truncf %238 : vector<8x32xf32> to vector<8x32xbf16>
    %cst_85 = arith.constant dense<0.000000e+00> : vector<8x64xf32>
    %241 = tpu.matmul %240, %239, %cst_85 {dimension_numbers = #tpu.dot_dimension_numbers<[1], [0], [0], [1], [0, 0, 1, 1], [], []>} : vector<8x32xbf16>, vector<32x64xbf16>, vector<8x64xf32> -> vector<8x64xf32>
    %c0_86 = arith.constant 0 : index
    %c0_87 = arith.constant 0 : index
    %242 = vector.load %arg20[%c0_86, %c0_87] : memref<1x64xf32, #tpu.memory_space<vmem>>, vector<1x64xf32>
    %243 = vector.broadcast %242 : vector<1x64xf32> to vector<8x64xf32>
    %244 = arith.addf %241, %243 : vector<8x64xf32>
    %cst_88 = arith.constant 0.000000e+00 : f32
    %245 = vector.broadcast %cst_88 : f32 to vector<8x64xf32>
    %246 = arith.maximumf %244, %245 : vector<8x64xf32>
    %247 = arith.truncf %246 : vector<8x64xf32> to vector<8x64xbf16>
    %c0_89 = arith.constant 0 : index
    %c0_90 = arith.constant 0 : index
    %248 = vector.load %arg21[%c0_89, %c0_90] : memref<64x32xbf16, #tpu.memory_space<vmem>>, vector<64x32xbf16>
    %cst_91 = arith.constant dense<0.000000e+00> : vector<8x32xf32>
    %249 = tpu.matmul %247, %248, %cst_91 {dimension_numbers = #tpu.dot_dimension_numbers<[1], [0], [0], [1], [0, 0, 1, 1], [], []>} : vector<8x64xbf16>, vector<64x32xbf16>, vector<8x32xf32> -> vector<8x32xf32>
    %c0_92 = arith.constant 0 : index
    %c0_93 = arith.constant 0 : index
    %250 = vector.load %arg22[%c0_92, %c0_93] : memref<1x32xf32, #tpu.memory_space<vmem>>, vector<1x32xf32>
    %251 = vector.broadcast %250 : vector<1x32xf32> to vector<8x32xf32>
    %252 = arith.addf %249, %251 : vector<8x32xf32>
    %253 = arith.addf %252, %238 : vector<8x32xf32>
    %c0_94 = arith.constant 0 : index
    %c0_95 = arith.constant 0 : index
    %254 = vector.load %arg23[%c0_94, %c0_95] : memref<1x32xf32, #tpu.memory_space<vmem>>, vector<1x32xf32>
    %c0_96 = arith.constant 0 : index
    %c0_97 = arith.constant 0 : index
    %255 = vector.load %arg24[%c0_96, %c0_97] : memref<1x32xf32, #tpu.memory_space<vmem>>, vector<1x32xf32>
    %cst_98 = arith.constant dense<0.000000e+00> : vector<8xf32>
    %256 = vector.multi_reduction <add>, %253, %cst_98 [1] : vector<8x32xf32> to vector<8xf32>
    %257 = vector.shape_cast %256 : vector<8xf32> to vector<8x1xf32>
    %cst_99 = arith.constant 3.200000e+01 : f32
    %258 = vector.broadcast %cst_99 : f32 to vector<8x1xf32>
    %259 = arith.divf %257, %258 : vector<8x1xf32>
    %260 = vector.broadcast %259 : vector<8x1xf32> to vector<8x32xf32>
    %261 = arith.subf %253, %260 : vector<8x32xf32>
    %262 = arith.mulf %261, %261 : vector<8x32xf32>
    %cst_100 = arith.constant dense<0.000000e+00> : vector<8xf32>
    %263 = vector.multi_reduction <add>, %262, %cst_100 [1] : vector<8x32xf32> to vector<8xf32>
    %264 = vector.shape_cast %263 : vector<8xf32> to vector<8x1xf32>
    %cst_101 = arith.constant 3.100000e+01 : f32
    %265 = vector.broadcast %cst_101 : f32 to vector<8x1xf32>
    %266 = arith.divf %264, %265 : vector<8x1xf32>
    %267 = vector.broadcast %259 : vector<8x1xf32> to vector<8x32xf32>
    %268 = arith.subf %253, %267 : vector<8x32xf32>
    %269 = vector.broadcast %254 : vector<1x32xf32> to vector<8x32xf32>
    %270 = arith.mulf %269, %268 : vector<8x32xf32>
    %271 = math.sqrt %266 : vector<8x1xf32>
    %cst_102 = arith.constant 9.99999997E-7 : f32
    %272 = vector.broadcast %cst_102 : f32 to vector<8x1xf32>
    %273 = arith.addf %271, %272 : vector<8x1xf32>
    %274 = vector.broadcast %273 : vector<8x1xf32> to vector<8x32xf32>
    %275 = arith.divf %270, %274 : vector<8x32xf32>
    %276 = vector.broadcast %255 : vector<1x32xf32> to vector<8x32xf32>
    %277 = arith.addf %275, %276 : vector<8x32xf32>
    %278 = arith.truncf %277 : vector<8x32xf32> to vector<8x32xbf16>
    %c0_103 = arith.constant 0 : index
    %c0_104 = arith.constant 0 : index
    %c0_105 = arith.constant 0 : index
    %279 = vector.load %arg25[%c0_103, %c0_104, %c0_105] : memref<1x8x32xbf16, #tpu.memory_space<vmem>>, vector<1x8x32xbf16>
    %280 = vector.shape_cast %279 : vector<1x8x32xbf16> to vector<8x32xbf16>
    %281 = vector.shape_cast %278 : vector<8x32xbf16> to vector<1x8x32xbf16>
    tpu.vector_store %arg25[%c0_103, %c0_104, %c0_105], %281 {strides = array<i32>} : memref<1x8x32xbf16, #tpu.memory_space<vmem>>, vector<1x8x32xbf16>,
    return
  }
  func.func @transform_0(%arg0: i32) -> (i32, i32, i32) {
    %c0_i32 = arith.constant 0 : i32
    %c0_i32_0 = arith.constant 0 : i32
    %c0_i32_1 = arith.constant 0 : i32
    return %arg0, %c0_i32, %c0_i32_0 : i32, i32, i32
  }
  func.func @transform_1(%arg0: i32) -> (i32, i32, i32) {
    %c0_i32 = arith.constant 0 : i32
    %c0_i32_0 = arith.constant 0 : i32
    %c0_i32_1 = arith.constant 0 : i32
    return %arg0, %c0_i32, %c0_i32_0 : i32, i32, i32
  }
  func.func @transform_2(%arg0: i32) -> (i32, i32, i32) {
    %c0_i32 = arith.constant 0 : i32
    %c0_i32_0 = arith.constant 0 : i32
    %c0_i32_1 = arith.constant 0 : i32
    %c0_i32_2 = arith.constant 0 : i32
    return %c0_i32, %c0_i32_0, %c0_i32_1 : i32, i32, i32
  }
  func.func @transform_3(%arg0: i32) -> (i32, i32, i32) {
    %c0_i32 = arith.constant 0 : i32
    %c0_i32_0 = arith.constant 0 : i32
    %c0_i32_1 = arith.constant 0 : i32
    %c0_i32_2 = arith.constant 0 : i32
    return %c0_i32, %c0_i32_0, %c0_i32_1 : i32, i32, i32
  }
  func.func @transform_4(%arg0: i32) -> (i32, i32) {
    %c0_i32 = arith.constant 0 : i32
    %c0_i32_0 = arith.constant 0 : i32
    %c0_i32_1 = arith.constant 0 : i32
    return %c0_i32, %c0_i32_0 : i32, i32
  }
  func.func @transform_5(%arg0: i32) -> (i32, i32) {
    %c0_i32 = arith.constant 0 : i32
    %c0_i32_0 = arith.constant 0 : i32
    %c0_i32_1 = arith.constant 0 : i32
    return %c0_i32, %c0_i32_0 : i32, i32
  }
  func.func @transform_6(%arg0: i32) -> (i32, i32) {
    %c0_i32 = arith.constant 0 : i32
    %c0_i32_0 = arith.constant 0 : i32
    %c0_i32_1 = arith.constant 0 : i32
    return %c0_i32, %c0_i32_0 : i32, i32
  }
  func.func @transform_7(%arg0: i32) -> (i32, i32) {
    %c0_i32 = arith.constant 0 : i32
    %c0_i32_0 = arith.constant 0 : i32
    %c0_i32_1 = arith.constant 0 : i32
    return %c0_i32, %c0_i32_0 : i32, i32
  }
  func.func @transform_8(%arg0: i32) -> (i32, i32) {
    %c0_i32 = arith.constant 0 : i32
    %c0_i32_0 = arith.constant 0 : i32
    %c0_i32_1 = arith.constant 0 : i32
    return %c0_i32, %c0_i32_0 : i32, i32
  }
  func.func @transform_9(%arg0: i32) -> (i32, i32) {
    %c0_i32 = arith.constant 0 : i32
    %c0_i32_0 = arith.constant 0 : i32
    %c0_i32_1 = arith.constant 0 : i32
    return %c0_i32, %c0_i32_0 : i32, i32
  }
  func.func @transform_10(%arg0: i32) -> (i32, i32) {
    %c0_i32 = arith.constant 0 : i32
    %c0_i32_0 = arith.constant 0 : i32
    %c0_i32_1 = arith.constant 0 : i32
    return %c0_i32, %c0_i32_0 : i32, i32
  }
  func.func @transform_11(%arg0: i32) -> (i32, i32) {
    %c0_i32 = arith.constant 0 : i32
    %c0_i32_0 = arith.constant 0 : i32
    %c0_i32_1 = arith.constant 0 : i32
    return %c0_i32, %c0_i32_0 : i32, i32
  }
  func.func @transform_12(%arg0: i32) -> (i32, i32) {
    %c0_i32 = arith.constant 0 : i32
    %c0_i32_0 = arith.constant 0 : i32
    %c0_i32_1 = arith.constant 0 : i32
    return %c0_i32, %c0_i32_0 : i32, i32
  }
  func.func @transform_13(%arg0: i32) -> (i32, i32) {
    %c0_i32 = arith.constant 0 : i32
    %c0_i32_0 = arith.constant 0 : i32
    %c0_i32_1 = arith.constant 0 : i32
    return %c0_i32, %c0_i32_0 : i32, i32
  }
  func.func @transform_14(%arg0: i32) -> (i32, i32) {
    %c0_i32 = arith.constant 0 : i32
    %c0_i32_0 = arith.constant 0 : i32
    %c0_i32_1 = arith.constant 0 : i32
    return %c0_i32, %c0_i32_0 : i32, i32
  }
  func.func @transform_15(%arg0: i32) -> (i32, i32) {
    %c0_i32 = arith.constant 0 : i32
    %c0_i32_0 = arith.constant 0 : i32
    %c0_i32_1 = arith.constant 0 : i32
    return %c0_i32, %c0_i32_0 : i32, i32
  }
  func.func @transform_16(%arg0: i32) -> (i32, i32) {
    %c0_i32 = arith.constant 0 : i32
    %c0_i32_0 = arith.constant 0 : i32
    %c0_i32_1 = arith.constant 0 : i32
    return %c0_i32, %c0_i32_0 : i32, i32
  }
  func.func @transform_17(%arg0: i32) -> (i32, i32) {
    %c0_i32 = arith.constant 0 : i32
    %c0_i32_0 = arith.constant 0 : i32
    %c0_i32_1 = arith.constant 0 : i32
    return %c0_i32, %c0_i32_0 : i32, i32
  }
  func.func @transform_18(%arg0: i32) -> (i32, i32) {
    %c0_i32 = arith.constant 0 : i32
    %c0_i32_0 = arith.constant 0 : i32
    %c0_i32_1 = arith.constant 0 : i32
    return %c0_i32, %c0_i32_0 : i32, i32
  }
  func.func @transform_19(%arg0: i32) -> (i32, i32) {
    %c0_i32 = arith.constant 0 : i32
    %c0_i32_0 = arith.constant 0 : i32
    %c0_i32_1 = arith.constant 0 : i32
    return %c0_i32, %c0_i32_0 : i32, i32
  }
  func.func @transform_20(%arg0: i32) -> (i32, i32) {
    %c0_i32 = arith.constant 0 : i32
    %c0_i32_0 = arith.constant 0 : i32
    %c0_i32_1 = arith.constant 0 : i32
    return %c0_i32, %c0_i32_0 : i32, i32
  }
  func.func @transform_21(%arg0: i32) -> (i32, i32) {
    %c0_i32 = arith.constant 0 : i32
    %c0_i32_0 = arith.constant 0 : i32
    %c0_i32_1 = arith.constant 0 : i32
    return %c0_i32, %c0_i32_0 : i32, i32
  }
  func.func @transform_22(%arg0: i32) -> (i32, i32) {
    %c0_i32 = arith.constant 0 : i32
    %c0_i32_0 = arith.constant 0 : i32
    %c0_i32_1 = arith.constant 0 : i32
    return %c0_i32, %c0_i32_0 : i32, i32
  }
  func.func @transform_23(%arg0: i32) -> (i32, i32) {
    %c0_i32 = arith.constant 0 : i32
    %c0_i32_0 = arith.constant 0 : i32
    %c0_i32_1 = arith.constant 0 : i32
    return %c0_i32, %c0_i32_0 : i32, i32
  }
  func.func @transform_24(%arg0: i32) -> (i32, i32, i32) {
    %c0_i32 = arith.constant 0 : i32
    %c0_i32_0 = arith.constant 0 : i32
    %c0_i32_1 = arith.constant 0 : i32
    return %arg0, %c0_i32, %c0_i32_0 : i32, i32, i32
  }
}

module attributes {stable_mosaic.version = 11 : i64} {
  func.func @_sga_kernel(%arg0: i32, %arg1: memref<1x8x32xf32, #tpu.memory_space<vmem>>, %arg2: memref<1x8x32xbf16, #tpu.memory_space<vmem>>, %arg3: memref<2x1x8xf32, #tpu.memory_space<vmem>>, %arg4: memref<2x1x8xf32, #tpu.memory_space<vmem>>, %arg5: memref<32x96xbf16, #tpu.memory_space<vmem>>, %arg6: memref<1x96xf32, #tpu.memory_space<vmem>>, %arg7: memref<32x32xbf16, #tpu.memory_space<vmem>>, %arg8: memref<1x32xf32, #tpu.memory_space<vmem>>, %arg9: memref<1x32xf32, #tpu.memory_space<vmem>>, %arg10: memref<1x32xf32, #tpu.memory_space<vmem>>, %arg11: memref<32x32xbf16, #tpu.memory_space<vmem>>, %arg12: memref<1x32xf32, #tpu.memory_space<vmem>>, %arg13: memref<32x64xbf16, #tpu.memory_space<vmem>>, %arg14: memref<1x64xf32, #tpu.memory_space<vmem>>, %arg15: memref<32x32xbf16, #tpu.memory_space<vmem>>, %arg16: memref<1x32xf32, #tpu.memory_space<vmem>>, %arg17: memref<1x32xf32, #tpu.memory_space<vmem>>, %arg18: memref<1x32xf32, #tpu.memory_space<vmem>>, %arg19: memref<32x64xbf16, #tpu.memory_space<vmem>>, %arg20: memref<1x64xf32, #tpu.memory_space<vmem>>, %arg21: memref<64x32xbf16, #tpu.memory_space<vmem>>, %arg22: memref<1x32xf32, #tpu.memory_space<vmem>>, %arg23: memref<1x32xf32, #tpu.memory_space<vmem>>, %arg24: memref<1x32xf32, #tpu.memory_space<vmem>>, %arg25: memref<1x8x32xbf16, #tpu.memory_space<vmem>>) attributes {dimension_semantics = [#tpu.dimension_semantics<parallel>], iteration_bounds = array<i64: 2>, scalar_prefetch = 0 : i64, scratch_operands = 0 : i64, tpu.core_type = #tpu.core_type<tc>, window_params = [{transform_indices = @transform_0, window_bounds = array<i64: 1, 8, 32>}, {transform_indices = @transform_1, window_bounds = array<i64: 1, 8, 32>}, {pipeline_mode = #tpu.pipeline_mode<synchronous>, transform_indices = @transform_2, window_bounds = array<i64: 2, 1, 8>}, {pipeline_mode = #tpu.pipeline_mode<synchronous>, transform_indices = @transform_3, window_bounds = array<i64: 2, 1, 8>}, {pipeline_mode = #tpu.pipeline_mode<synchronous>, transform_indices = @transform_4, window_bounds = array<i64: 32, 96>}, {pipeline_mode = #tpu.pipeline_mode<synchronous>, transform_indices = @transform_5, window_bounds = array<i64: 1, 96>}, {pipeline_mode = #tpu.pipeline_mode<synchronous>, transform_indices = @transform_6, window_bounds = array<i64: 32, 32>}, {pipeline_mode = #tpu.pipeline_mode<synchronous>, transform_indices = @transform_7, window_bounds = array<i64: 1, 32>}, {pipeline_mode = #tpu.pipeline_mode<synchronous>, transform_indices = @transform_8, window_bounds = array<i64: 1, 32>}, {pipeline_mode = #tpu.pipeline_mode<synchronous>, transform_indices = @transform_9, window_bounds = array<i64: 1, 32>}, {pipeline_mode = #tpu.pipeline_mode<synchronous>, transform_indices = @transform_10, window_bounds = array<i64: 32, 32>}, {pipeline_mode = #tpu.pipeline_mode<synchronous>, transform_indices = @transform_11, window_bounds = array<i64: 1, 32>}, {pipeline_mode = #tpu.pipeline_mode<synchronous>, transform_indices = @transform_12, window_bounds = array<i64: 32, 64>}, {pipeline_mode = #tpu.pipeline_mode<synchronous>, transform_indices = @transform_13, window_bounds = array<i64: 1, 64>}, {pipeline_mode = #tpu.pipeline_mode<synchronous>, transform_indices = @transform_14, window_bounds = array<i64: 32, 32>}, {pipeline_mode = #tpu.pipeline_mode<synchronous>, transform_indices = @transform_15, window_bounds = array<i64: 1, 32>}, {pipeline_mode = #tpu.pipeline_mode<synchronous>, transform_indices = @transform_16, window_bounds = array<i64: 1, 32>}, {pipeline_mode = #tpu.pipeline_mode<synchronous>, transform_indices = @transform_17, window_bounds = array<i64: 1, 32>}, {pipeline_mode = #tpu.pipeline_mode<synchronous>, transform_indices = @transform_18, window_bounds = array<i64: 32, 64>}, {pipeline_mode = #tpu.pipeline_mode<synchronous>, transform_indices = @transform_19, window_bounds = array<i64: 1, 64>}, {pipeline_mode = #tpu.pipeline_mode<synchronous>, transform_indices = @transform_20, window_bounds = array<i64: 64, 32>}, {pipeline_mode = #tpu.pipeline_mode<synchronous>, transform_indices = @transform_21, window_bounds = array<i64: 1, 32>}, {pipeline_mode = #tpu.pipeline_mode<synchronous>, transform_indices = @transform_22, window_bounds = array<i64: 1, 32>}, {pipeline_mode = #tpu.pipeline_mode<synchronous>, transform_indices = @transform_23, window_bounds = array<i64: 1, 32>}, {transform_indices = @transform_24, window_bounds = array<i64: 1, 8, 32>}]} {
    %c0 = arith.constant 0 : index
    %c0_0 = arith.constant 0 : index
    %c0_1 = arith.constant 0 : index
    %0 = vector.load %arg1[%c0, %c0_0, %c0_1] : memref<1x8x32xf32, #tpu.memory_space<vmem>>, vector<1x8x32xf32>
    %1 = vector.shape_cast %0 : vector<1x8x32xf32> to vector<8x32xf32>
    %c0_2 = arith.constant 0 : index
    %c0_3 = arith.constant 0 : index
    %c0_4 = arith.constant 0 : index
    %2 = vector.load %arg2[%c0_2, %c0_3, %c0_4] : memref<1x8x32xbf16, #tpu.memory_space<vmem>>, vector<1x8x32xbf16>
    %3 = vector.shape_cast %2 : vector<1x8x32xbf16> to vector<8x32xbf16>
    %4 = arith.index_cast %arg0 : i32 to index
    %c0_5 = arith.constant 0 : index
    %c0_6 = arith.constant 0 : index
    %5 = vector.load %arg3[%4, %c0_5, %c0_6] : memref<2x1x8xf32, #tpu.memory_space<vmem>>, vector<1x1x8xf32>
    %6 = vector.shape_cast %5 : vector<1x1x8xf32> to vector<1x8xf32>
    %7 = arith.index_cast %arg0 : i32 to index
    %c0_7 = arith.constant 0 : index
    %c0_8 = arith.constant 0 : index
    %8 = vector.load %arg4[%7, %c0_7, %c0_8] : memref<2x1x8xf32, #tpu.memory_space<vmem>>, vector<1x1x8xf32>
    %9 = vector.shape_cast %8 : vector<1x1x8xf32> to vector<1x8xf32>
    %c0_9 = arith.constant 0 : index
    %c0_10 = arith.constant 0 : index
    %10 = vector.load %arg5[%c0_9, %c0_10] : memref<32x96xbf16, #tpu.memory_space<vmem>>, vector<32x96xbf16>
    %11 = arith.truncf %1 : vector<8x32xf32> to vector<8x32xbf16>
    %cst = arith.constant dense<0.000000e+00> : vector<8x96xf32>
    %12 = tpu.matmul %11, %10, %cst {dimension_numbers = #tpu.dot_dimension_numbers<[1], [0], [0], [1], [0, 0, 1, 1], [], []>} : vector<8x32xbf16>, vector<32x96xbf16>, vector<8x96xf32> -> vector<8x96xf32>
    %c0_11 = arith.constant 0 : index
    %c0_12 = arith.constant 0 : index
    %13 = vector.load %arg6[%c0_11, %c0_12] : memref<1x96xf32, #tpu.memory_space<vmem>>, vector<1x96xf32>
    %14 = vector.broadcast %13 : vector<1x96xf32> to vector<8x96xf32>
    %15 = arith.addf %12, %14 : vector<8x96xf32>
    %16 = arith.truncf %15 : vector<8x96xf32> to vector<8x96xbf16>
    %17 = vector.extract_strided_slice %16 {offsets = [0, 0], sizes = [8, 32], strides = [1, 1]} : vector<8x96xbf16> to vector<8x32xbf16>
    %18 = vector.extract_strided_slice %16 {offsets = [0, 32], sizes = [8, 32], strides = [1, 1]} : vector<8x96xbf16> to vector<8x32xbf16>
    %19 = vector.extract_strided_slice %16 {offsets = [0, 64], sizes = [8, 32], strides = [1, 1]} : vector<8x96xbf16> to vector<8x32xbf16>
    %c0_13 = arith.constant 0 : index
    %c0_14 = arith.constant 0 : index
    %20 = vector.load %arg7[%c0_13, %c0_14] : memref<32x32xbf16, #tpu.memory_space<vmem>>, vector<32x32xbf16>
    %c0_15 = arith.constant 0 : index
    %c0_16 = arith.constant 0 : index
    %21 = vector.load %arg8[%c0_15, %c0_16] : memref<1x32xf32, #tpu.memory_space<vmem>>, vector<1x32xf32>
    %22 = vector.shape_cast %6 : vector<1x8xf32> to vector<1x8xf32>
    %23 = vector.broadcast %22 : vector<1x8xf32> to vector<8x8xf32>
    %24 = vector.extract_strided_slice %17 {offsets = [0, 0], sizes = [8, 8], strides = [1, 1]} : vector<8x32xbf16> to vector<8x8xbf16>
    %25 = vector.extract_strided_slice %18 {offsets = [0, 0], sizes = [8, 8], strides = [1, 1]} : vector<8x32xbf16> to vector<8x8xbf16>
    %cst_17 = arith.constant dense<0.000000e+00> : vector<8x8xf32>
    %26 = tpu.matmul %24, %25, %cst_17 {dimension_numbers = #tpu.dot_dimension_numbers<[1], [1], [0], [0], [0, 0, 1, 0], [], []>} : vector<8x8xbf16>, vector<8x8xbf16>, vector<8x8xf32> -> vector<8x8xf32>
    %27 = arith.addf %26, %23 : vector<8x8xf32>
    %cst_18 = arith.constant dense<0xFF800000> : vector<8xf32>
    %28 = vector.multi_reduction <maximumf>, %27, %cst_18 [1] : vector<8x8xf32> to vector<8xf32>
    %29 = vector.shape_cast %28 : vector<8xf32> to vector<8x1xf32>
    %30 = vector.broadcast %29 : vector<8x1xf32> to vector<8x8xf32>
    %31 = arith.subf %27, %30 : vector<8x8xf32>
    %32 = math.exp %31 : vector<8x8xf32>
    %cst_19 = arith.constant dense<0.000000e+00> : vector<8xf32>
    %33 = vector.multi_reduction <add>, %32, %cst_19 [1] : vector<8x8xf32> to vector<8xf32>
    %34 = vector.shape_cast %33 : vector<8xf32> to vector<8x1xf32>
    %35 = tpu.reciprocal %34 {approx = true} : vector<8x1xf32> -> vector<8x1xf32>
    %36 = vector.broadcast %35 : vector<8x1xf32> to vector<8x8xf32>
    %37 = arith.mulf %32, %36 : vector<8x8xf32>
    %38 = vector.extract_strided_slice %19 {offsets = [0, 0], sizes = [8, 8], strides = [1, 1]} : vector<8x32xbf16> to vector<8x8xbf16>
    %39 = arith.truncf %37 : vector<8x8xf32> to vector<8x8xbf16>
    %cst_20 = arith.constant dense<0.000000e+00> : vector<8x8xf32>
    %40 = tpu.matmul %39, %38, %cst_20 {dimension_numbers = #tpu.dot_dimension_numbers<[1], [0], [0], [1], [0, 0, 1, 1], [], []>} : vector<8x8xbf16>, vector<8x8xbf16>, vector<8x8xf32> -> vector<8x8xf32>
    %41 = vector.extract_strided_slice %17 {offsets = [0, 8], sizes = [8, 8], strides = [1, 1]} : vector<8x32xbf16> to vector<8x8xbf16>
    %42 = vector.extract_strided_slice %18 {offsets = [0, 8], sizes = [8, 8], strides = [1, 1]} : vector<8x32xbf16> to vector<8x8xbf16>
    %cst_21 = arith.constant dense<0.000000e+00> : vector<8x8xf32>
    %43 = tpu.matmul %41, %42, %cst_21 {dimension_numbers = #tpu.dot_dimension_numbers<[1], [1], [0], [0], [0, 0, 1, 0], [], []>} : vector<8x8xbf16>, vector<8x8xbf16>, vector<8x8xf32> -> vector<8x8xf32>
    %44 = arith.addf %43, %23 : vector<8x8xf32>
    %cst_22 = arith.constant dense<0xFF800000> : vector<8xf32>
    %45 = vector.multi_reduction <maximumf>, %44, %cst_22 [1] : vector<8x8xf32> to vector<8xf32>
    %46 = vector.shape_cast %45 : vector<8xf32> to vector<8x1xf32>
    %47 = vector.broadcast %46 : vector<8x1xf32> to vector<8x8xf32>
    %48 = arith.subf %44, %47 : vector<8x8xf32>
    %49 = math.exp %48 : vector<8x8xf32>
    %cst_23 = arith.constant dense<0.000000e+00> : vector<8xf32>
    %50 = vector.multi_reduction <add>, %49, %cst_23 [1] : vector<8x8xf32> to vector<8xf32>
    %51 = vector.shape_cast %50 : vector<8xf32> to vector<8x1xf32>
    %52 = tpu.reciprocal %51 {approx = true} : vector<8x1xf32> -> vector<8x1xf32>
    %53 = vector.broadcast %52 : vector<8x1xf32> to vector<8x8xf32>
    %54 = arith.mulf %49, %53 : vector<8x8xf32>
    %55 = vector.extract_strided_slice %19 {offsets = [0, 8], sizes = [8, 8], strides = [1, 1]} : vector<8x32xbf16> to vector<8x8xbf16>
    %56 = arith.truncf %54 : vector<8x8xf32> to vector<8x8xbf16>
    %cst_24 = arith.constant dense<0.000000e+00> : vector<8x8xf32>
    %57 = tpu.matmul %56, %55, %cst_24 {dimension_numbers = #tpu.dot_dimension_numbers<[1], [0], [0], [1], [0, 0, 1, 1], [], []>} : vector<8x8xbf16>, vector<8x8xbf16>, vector<8x8xf32> -> vector<8x8xf32>
    %58 = vector.extract_strided_slice %17 {offsets = [0, 16], sizes = [8, 8], strides = [1, 1]} : vector<8x32xbf16> to vector<8x8xbf16>
    %59 = vector.extract_strided_slice %18 {offsets = [0, 16], sizes = [8, 8], strides = [1, 1]} : vector<8x32xbf16> to vector<8x8xbf16>
    %cst_25 = arith.constant dense<0.000000e+00> : vector<8x8xf32>
    %60 = tpu.matmul %58, %59, %cst_25 {dimension_numbers = #tpu.dot_dimension_numbers<[1], [1], [0], [0], [0, 0, 1, 0], [], []>} : vector<8x8xbf16>, vector<8x8xbf16>, vector<8x8xf32> -> vector<8x8xf32>
    %61 = arith.addf %60, %23 : vector<8x8xf32>
    %cst_26 = arith.constant dense<0xFF800000> : vector<8xf32>
    %62 = vector.multi_reduction <maximumf>, %61, %cst_26 [1] : vector<8x8xf32> to vector<8xf32>
    %63 = vector.shape_cast %62 : vector<8xf32> to vector<8x1xf32>
    %64 = vector.broadcast %63 : vector<8x1xf32> to vector<8x8xf32>
    %65 = arith.subf %61, %64 : vector<8x8xf32>
    %66 = math.exp %65 : vector<8x8xf32>
    %cst_27 = arith.constant dense<0.000000e+00> : vector<8xf32>
    %67 = vector.multi_reduction <add>, %66, %cst_27 [1] : vector<8x8xf32> to vector<8xf32>
    %68 = vector.shape_cast %67 : vector<8xf32> to vector<8x1xf32>
    %69 = tpu.reciprocal %68 {approx = true} : vector<8x1xf32> -> vector<8x1xf32>
    %70 = vector.broadcast %69 : vector<8x1xf32> to vector<8x8xf32>
    %71 = arith.mulf %66, %70 : vector<8x8xf32>
    %72 = vector.extract_strided_slice %19 {offsets = [0, 16], sizes = [8, 8], strides = [1, 1]} : vector<8x32xbf16> to vector<8x8xbf16>
    %73 = arith.truncf %71 : vector<8x8xf32> to vector<8x8xbf16>
    %cst_28 = arith.constant dense<0.000000e+00> : vector<8x8xf32>
    %74 = tpu.matmul %73, %72, %cst_28 {dimension_numbers = #tpu.dot_dimension_numbers<[1], [0], [0], [1], [0, 0, 1, 1], [], []>} : vector<8x8xbf16>, vector<8x8xbf16>, vector<8x8xf32> -> vector<8x8xf32>
    %75 = vector.extract_strided_slice %17 {offsets = [0, 24], sizes = [8, 8], strides = [1, 1]} : vector<8x32xbf16> to vector<8x8xbf16>
    %76 = vector.extract_strided_slice %18 {offsets = [0, 24], sizes = [8, 8], strides = [1, 1]} : vector<8x32xbf16> to vector<8x8xbf16>
    %cst_29 = arith.constant dense<0.000000e+00> : vector<8x8xf32>
    %77 = tpu.matmul %75, %76, %cst_29 {dimension_numbers = #tpu.dot_dimension_numbers<[1], [1], [0], [0], [0, 0, 1, 0], [], []>} : vector<8x8xbf16>, vector<8x8xbf16>, vector<8x8xf32> -> vector<8x8xf32>
    %78 = arith.addf %77, %23 : vector<8x8xf32>
    %cst_30 = arith.constant dense<0xFF800000> : vector<8xf32>
    %79 = vector.multi_reduction <maximumf>, %78, %cst_30 [1] : vector<8x8xf32> to vector<8xf32>
    %80 = vector.shape_cast %79 : vector<8xf32> to vector<8x1xf32>
    %81 = vector.broadcast %80 : vector<8x1xf32> to vector<8x8xf32>
    %82 = arith.subf %78, %81 : vector<8x8xf32>
    %83 = math.exp %82 : vector<8x8xf32>
    %cst_31 = arith.constant dense<0.000000e+00> : vector<8xf32>
    %84 = vector.multi_reduction <add>, %83, %cst_31 [1] : vector<8x8xf32> to vector<8xf32>
    %85 = vector.shape_cast %84 : vector<8xf32> to vector<8x1xf32>
    %86 = tpu.reciprocal %85 {approx = true} : vector<8x1xf32> -> vector<8x1xf32>
    %87 = vector.broadcast %86 : vector<8x1xf32> to vector<8x8xf32>
    %88 = arith.mulf %83, %87 : vector<8x8xf32>
    %89 = vector.extract_strided_slice %19 {offsets = [0, 24], sizes = [8, 8], strides = [1, 1]} : vector<8x32xbf16> to vector<8x8xbf16>
    %90 = arith.truncf %88 : vector<8x8xf32> to vector<8x8xbf16>
    %cst_32 = arith.constant dense<0.000000e+00> : vector<8x8xf32>
    %91 = tpu.matmul %90, %89, %cst_32 {dimension_numbers = #tpu.dot_dimension_numbers<[1], [0], [0], [1], [0, 0, 1, 1], [], []>} : vector<8x8xbf16>, vector<8x8xbf16>, vector<8x8xf32> -> vector<8x8xf32>
    %92 = tpu.concatenate %40, %57, %74, %91 in 1 : vector<8x8xf32>, vector<8x8xf32>, vector<8x8xf32>, vector<8x8xf32> -> vector<8x32xf32>
    %93 = arith.truncf %92 : vector<8x32xf32> to vector<8x32xbf16>
    %cst_33 = arith.constant dense<0.000000e+00> : vector<8x32xf32>
    %94 = tpu.matmul %93, %20, %cst_33 {dimension_numbers = #tpu.dot_dimension_numbers<[1], [0], [0], [1], [0, 0, 1, 1], [], []>} : vector<8x32xbf16>, vector<32x32xbf16>, vector<8x32xf32> -> vector<8x32xf32>
    %95 = vector.broadcast %21 : vector<1x32xf32> to vector<8x32xf32>
    %96 = arith.addf %94, %95 : vector<8x32xf32>
    %97 = arith.addf %96, %1 : vector<8x32xf32>
    %c0_34 = arith.constant 0 : index
    %c0_35 = arith.constant 0 : index
    %98 = vector.load %arg9[%c0_34, %c0_35] : memref<1x32xf32, #tpu.memory_space<vmem>>, vector<1x32xf32>
    %c0_36 = arith.constant 0 : index
    %c0_37 = arith.constant 0 : index
    %99 = vector.load %arg10[%c0_36, %c0_37] : memref<1x32xf32, #tpu.memory_space<vmem>>, vector<1x32xf32>
    %cst_38 = arith.constant dense<0.000000e+00> : vector<8xf32>
    %100 = vector.multi_reduction <add>, %97, %cst_38 [1] : vector<8x32xf32> to vector<8xf32>
    %101 = vector.shape_cast %100 : vector<8xf32> to vector<8x1xf32>
    %cst_39 = arith.constant 3.200000e+01 : f32
    %102 = vector.broadcast %cst_39 : f32 to vector<8x1xf32>
    %103 = arith.divf %101, %102 : vector<8x1xf32>
    %104 = vector.broadcast %103 : vector<8x1xf32> to vector<8x32xf32>
    %105 = arith.subf %97, %104 : vector<8x32xf32>
    %106 = arith.mulf %105, %105 : vector<8x32xf32>
    %cst_40 = arith.constant dense<0.000000e+00> : vector<8xf32>
    %107 = vector.multi_reduction <add>, %106, %cst_40 [1] : vector<8x32xf32> to vector<8xf32>
    %108 = vector.shape_cast %107 : vector<8xf32> to vector<8x1xf32>
    %cst_41 = arith.constant 3.100000e+01 : f32
    %109 = vector.broadcast %cst_41 : f32 to vector<8x1xf32>
    %110 = arith.divf %108, %109 : vector<8x1xf32>
    %111 = vector.broadcast %103 : vector<8x1xf32> to vector<8x32xf32>
    %112 = arith.subf %97, %111 : vector<8x32xf32>
    %113 = vector.broadcast %98 : vector<1x32xf32> to vector<8x32xf32>
    %114 = arith.mulf %113, %112 : vector<8x32xf32>
    %115 = math.sqrt %110 : vector<8x1xf32>
    %cst_42 = arith.constant 9.99999997E-7 : f32
    %116 = vector.broadcast %cst_42 : f32 to vector<8x1xf32>
    %117 = arith.addf %115, %116 : vector<8x1xf32>
    %118 = vector.broadcast %117 : vector<8x1xf32> to vector<8x32xf32>
    %119 = arith.divf %114, %118 : vector<8x32xf32>
    %120 = vector.broadcast %99 : vector<1x32xf32> to vector<8x32xf32>
    %121 = arith.addf %119, %120 : vector<8x32xf32>
    %c0_43 = arith.constant 0 : index
    %c0_44 = arith.constant 0 : index
    %122 = vector.load %arg11[%c0_43, %c0_44] : memref<32x32xbf16, #tpu.memory_space<vmem>>, vector<32x32xbf16>
    %123 = arith.truncf %121 : vector<8x32xf32> to vector<8x32xbf16>
    %cst_45 = arith.constant dense<0.000000e+00> : vector<8x32xf32>
    %124 = tpu.matmul %123, %122, %cst_45 {dimension_numbers = #tpu.dot_dimension_numbers<[1], [0], [0], [1], [0, 0, 1, 1], [], []>} : vector<8x32xbf16>, vector<32x32xbf16>, vector<8x32xf32> -> vector<8x32xf32>
    %c0_46 = arith.constant 0 : index
    %c0_47 = arith.constant 0 : index
    %125 = vector.load %arg12[%c0_46, %c0_47] : memref<1x32xf32, #tpu.memory_space<vmem>>, vector<1x32xf32>
    %126 = vector.broadcast %125 : vector<1x32xf32> to vector<8x32xf32>
    %127 = arith.addf %124, %126 : vector<8x32xf32>
    %128 = arith.truncf %127 : vector<8x32xf32> to vector<8x32xbf16>
    %c0_48 = arith.constant 0 : index
    %c0_49 = arith.constant 0 : index
    %129 = vector.load %arg13[%c0_48, %c0_49] : memref<32x64xbf16, #tpu.memory_space<vmem>>, vector<32x64xbf16>
    %cst_50 = arith.constant dense<0.000000e+00> : vector<8x64xf32>
    %130 = tpu.matmul %3, %129, %cst_50 {dimension_numbers = #tpu.dot_dimension_numbers<[1], [0], [0], [1], [0, 0, 1, 1], [], []>} : vector<8x32xbf16>, vector<32x64xbf16>, vector<8x64xf32> -> vector<8x64xf32>
    %c0_51 = arith.constant 0 : index
    %c0_52 = arith.constant 0 : index
    %131 = vector.load %arg14[%c0_51, %c0_52] : memref<1x64xf32, #tpu.memory_space<vmem>>, vector<1x64xf32>
    %132 = vector.broadcast %131 : vector<1x64xf32> to vector<8x64xf32>
    %133 = arith.addf %130, %132 : vector<8x64xf32>
    %134 = arith.truncf %133 : vector<8x64xf32> to vector<8x64xbf16>
    %135 = vector.extract_strided_slice %134 {offsets = [0, 0], sizes = [8, 32], strides = [1, 1]} : vector<8x64xbf16> to vector<8x32xbf16>
    %136 = vector.extract_strided_slice %134 {offsets = [0, 32], sizes = [8, 32], strides = [1, 1]} : vector<8x64xbf16> to vector<8x32xbf16>
    %c0_53 = arith.constant 0 : index
    %c0_54 = arith.constant 0 : index
    %137 = vector.load %arg15[%c0_53, %c0_54] : memref<32x32xbf16, #tpu.memory_space<vmem>>, vector<32x32xbf16>
    %c0_55 = arith.constant 0 : index
    %c0_56 = arith.constant 0 : index
    %138 = vector.load %arg16[%c0_55, %c0_56] : memref<1x32xf32, #tpu.memory_space<vmem>>, vector<1x32xf32>
    %139 = vector.shape_cast %9 : vector<1x8xf32> to vector<1x8xf32>
    %140 = vector.broadcast %139 : vector<1x8xf32> to vector<8x8xf32>
    %141 = vector.extract_strided_slice %128 {offsets = [0, 0], sizes = [8, 8], strides = [1, 1]} : vector<8x32xbf16> to vector<8x8xbf16>
    %142 = vector.extract_strided_slice %135 {offsets = [0, 0], sizes = [8, 8], strides = [1, 1]} : vector<8x32xbf16> to vector<8x8xbf16>
    %cst_57 = arith.constant dense<0.000000e+00> : vector<8x8xf32>
    %143 = tpu.matmul %141, %142, %cst_57 {dimension_numbers = #tpu.dot_dimension_numbers<[1], [1], [0], [0], [0, 0, 1, 0], [], []>} : vector<8x8xbf16>, vector<8x8xbf16>, vector<8x8xf32> -> vector<8x8xf32>
    %144 = arith.addf %143, %140 : vector<8x8xf32>
    %cst_58 = arith.constant dense<0xFF800000> : vector<8xf32>
    %145 = vector.multi_reduction <maximumf>, %144, %cst_58 [1] : vector<8x8xf32> to vector<8xf32>
    %146 = vector.shape_cast %145 : vector<8xf32> to vector<8x1xf32>
    %147 = vector.broadcast %146 : vector<8x1xf32> to vector<8x8xf32>
    %148 = arith.subf %144, %147 : vector<8x8xf32>
    %149 = math.exp %148 : vector<8x8xf32>
    %cst_59 = arith.constant dense<0.000000e+00> : vector<8xf32>
    %150 = vector.multi_reduction <add>, %149, %cst_59 [1] : vector<8x8xf32> to vector<8xf32>
    %151 = vector.shape_cast %150 : vector<8xf32> to vector<8x1xf32>
    %152 = tpu.reciprocal %151 {approx = true} : vector<8x1xf32> -> vector<8x1xf32>
    %153 = vector.broadcast %152 : vector<8x1xf32> to vector<8x8xf32>
    %154 = arith.mulf %149, %153 : vector<8x8xf32>
    %155 = vector.extract_strided_slice %136 {offsets = [0, 0], sizes = [8, 8], strides = [1, 1]} : vector<8x32xbf16> to vector<8x8xbf16>
    %156 = arith.truncf %154 : vector<8x8xf32> to vector<8x8xbf16>
    %cst_60 = arith.constant dense<0.000000e+00> : vector<8x8xf32>
    %157 = tpu.matmul %156, %155, %cst_60 {dimension_numbers = #tpu.dot_dimension_numbers<[1], [0], [0], [1], [0, 0, 1, 1], [], []>} : vector<8x8xbf16>, vector<8x8xbf16>, vector<8x8xf32> -> vector<8x8xf32>
    %158 = vector.extract_strided_slice %128 {offsets = [0, 8], sizes = [8, 8], strides = [1, 1]} : vector<8x32xbf16> to vector<8x8xbf16>
    %159 = vector.extract_strided_slice %135 {offsets = [0, 8], sizes = [8, 8], strides = [1, 1]} : vector<8x32xbf16> to vector<8x8xbf16>
    %cst_61 = arith.constant dense<0.000000e+00> : vector<8x8xf32>
    %160 = tpu.matmul %158, %159, %cst_61 {dimension_numbers = #tpu.dot_dimension_numbers<[1], [1], [0], [0], [0, 0, 1, 0], [], []>} : vector<8x8xbf16>, vector<8x8xbf16>, vector<8x8xf32> -> vector<8x8xf32>
    %161 = arith.addf %160, %140 : vector<8x8xf32>
    %cst_62 = arith.constant dense<0xFF800000> : vector<8xf32>
    %162 = vector.multi_reduction <maximumf>, %161, %cst_62 [1] : vector<8x8xf32> to vector<8xf32>
    %163 = vector.shape_cast %162 : vector<8xf32> to vector<8x1xf32>
    %164 = vector.broadcast %163 : vector<8x1xf32> to vector<8x8xf32>
    %165 = arith.subf %161, %164 : vector<8x8xf32>
    %166 = math.exp %165 : vector<8x8xf32>
    %cst_63 = arith.constant dense<0.000000e+00> : vector<8xf32>
    %167 = vector.multi_reduction <add>, %166, %cst_63 [1] : vector<8x8xf32> to vector<8xf32>
    %168 = vector.shape_cast %167 : vector<8xf32> to vector<8x1xf32>
    %169 = tpu.reciprocal %168 {approx = true} : vector<8x1xf32> -> vector<8x1xf32>
    %170 = vector.broadcast %169 : vector<8x1xf32> to vector<8x8xf32>
    %171 = arith.mulf %166, %170 : vector<8x8xf32>
    %172 = vector.extract_strided_slice %136 {offsets = [0, 8], sizes = [8, 8], strides = [1, 1]} : vector<8x32xbf16> to vector<8x8xbf16>
    %173 = arith.truncf %171 : vector<8x8xf32> to vector<8x8xbf16>
    %cst_64 = arith.constant dense<0.000000e+00> : vector<8x8xf32>
    %174 = tpu.matmul %173, %172, %cst_64 {dimension_numbers = #tpu.dot_dimension_numbers<[1], [0], [0], [1], [0, 0, 1, 1], [], []>} : vector<8x8xbf16>, vector<8x8xbf16>, vector<8x8xf32> -> vector<8x8xf32>
    %175 = vector.extract_strided_slice %128 {offsets = [0, 16], sizes = [8, 8], strides = [1, 1]} : vector<8x32xbf16> to vector<8x8xbf16>
    %176 = vector.extract_strided_slice %135 {offsets = [0, 16], sizes = [8, 8], strides = [1, 1]} : vector<8x32xbf16> to vector<8x8xbf16>
    %cst_65 = arith.constant dense<0.000000e+00> : vector<8x8xf32>
    %177 = tpu.matmul %175, %176, %cst_65 {dimension_numbers = #tpu.dot_dimension_numbers<[1], [1], [0], [0], [0, 0, 1, 0], [], []>} : vector<8x8xbf16>, vector<8x8xbf16>, vector<8x8xf32> -> vector<8x8xf32>
    %178 = arith.addf %177, %140 : vector<8x8xf32>
    %cst_66 = arith.constant dense<0xFF800000> : vector<8xf32>
    %179 = vector.multi_reduction <maximumf>, %178, %cst_66 [1] : vector<8x8xf32> to vector<8xf32>
    %180 = vector.shape_cast %179 : vector<8xf32> to vector<8x1xf32>
    %181 = vector.broadcast %180 : vector<8x1xf32> to vector<8x8xf32>
    %182 = arith.subf %178, %181 : vector<8x8xf32>
    %183 = math.exp %182 : vector<8x8xf32>
    %cst_67 = arith.constant dense<0.000000e+00> : vector<8xf32>
    %184 = vector.multi_reduction <add>, %183, %cst_67 [1] : vector<8x8xf32> to vector<8xf32>
    %185 = vector.shape_cast %184 : vector<8xf32> to vector<8x1xf32>
    %186 = tpu.reciprocal %185 {approx = true} : vector<8x1xf32> -> vector<8x1xf32>
    %187 = vector.broadcast %186 : vector<8x1xf32> to vector<8x8xf32>
    %188 = arith.mulf %183, %187 : vector<8x8xf32>
    %189 = vector.extract_strided_slice %136 {offsets = [0, 16], sizes = [8, 8], strides = [1, 1]} : vector<8x32xbf16> to vector<8x8xbf16>
    %190 = arith.truncf %188 : vector<8x8xf32> to vector<8x8xbf16>
    %cst_68 = arith.constant dense<0.000000e+00> : vector<8x8xf32>
    %191 = tpu.matmul %190, %189, %cst_68 {dimension_numbers = #tpu.dot_dimension_numbers<[1], [0], [0], [1], [0, 0, 1, 1], [], []>} : vector<8x8xbf16>, vector<8x8xbf16>, vector<8x8xf32> -> vector<8x8xf32>
    %192 = vector.extract_strided_slice %128 {offsets = [0, 24], sizes = [8, 8], strides = [1, 1]} : vector<8x32xbf16> to vector<8x8xbf16>
    %193 = vector.extract_strided_slice %135 {offsets = [0, 24], sizes = [8, 8], strides = [1, 1]} : vector<8x32xbf16> to vector<8x8xbf16>
    %cst_69 = arith.constant dense<0.000000e+00> : vector<8x8xf32>
    %194 = tpu.matmul %192, %193, %cst_69 {dimension_numbers = #tpu.dot_dimension_numbers<[1], [1], [0], [0], [0, 0, 1, 0], [], []>} : vector<8x8xbf16>, vector<8x8xbf16>, vector<8x8xf32> -> vector<8x8xf32>
    %195 = arith.addf %194, %140 : vector<8x8xf32>
    %cst_70 = arith.constant dense<0xFF800000> : vector<8xf32>
    %196 = vector.multi_reduction <maximumf>, %195, %cst_70 [1] : vector<8x8xf32> to vector<8xf32>
    %197 = vector.shape_cast %196 : vector<8xf32> to vector<8x1xf32>
    %198 = vector.broadcast %197 : vector<8x1xf32> to vector<8x8xf32>
    %199 = arith.subf %195, %198 : vector<8x8xf32>
    %200 = math.exp %199 : vector<8x8xf32>
    %cst_71 = arith.constant dense<0.000000e+00> : vector<8xf32>
    %201 = vector.multi_reduction <add>, %200, %cst_71 [1] : vector<8x8xf32> to vector<8xf32>
    %202 = vector.shape_cast %201 : vector<8xf32> to vector<8x1xf32>
    %203 = tpu.reciprocal %202 {approx = true} : vector<8x1xf32> -> vector<8x1xf32>
    %204 = vector.broadcast %203 : vector<8x1xf32> to vector<8x8xf32>
    %205 = arith.mulf %200, %204 : vector<8x8xf32>
    %206 = vector.extract_strided_slice %136 {offsets = [0, 24], sizes = [8, 8], strides = [1, 1]} : vector<8x32xbf16> to vector<8x8xbf16>
    %207 = arith.truncf %205 : vector<8x8xf32> to vector<8x8xbf16>
    %cst_72 = arith.constant dense<0.000000e+00> : vector<8x8xf32>
    %208 = tpu.matmul %207, %206, %cst_72 {dimension_numbers = #tpu.dot_dimension_numbers<[1], [0], [0], [1], [0, 0, 1, 1], [], []>} : vector<8x8xbf16>, vector<8x8xbf16>, vector<8x8xf32> -> vector<8x8xf32>
    %209 = tpu.concatenate %157, %174, %191, %208 in 1 : vector<8x8xf32>, vector<8x8xf32>, vector<8x8xf32>, vector<8x8xf32> -> vector<8x32xf32>
    %210 = arith.truncf %209 : vector<8x32xf32> to vector<8x32xbf16>
    %cst_73 = arith.constant dense<0.000000e+00> : vector<8x32xf32>
    %211 = tpu.matmul %210, %137, %cst_73 {dimension_numbers = #tpu.dot_dimension_numbers<[1], [0], [0], [1], [0, 0, 1, 1], [], []>} : vector<8x32xbf16>, vector<32x32xbf16>, vector<8x32xf32> -> vector<8x32xf32>
    %212 = vector.broadcast %138 : vector<1x32xf32> to vector<8x32xf32>
    %213 = arith.addf %211, %212 : vector<8x32xf32>
    %214 = arith.addf %213, %121 : vector<8x32xf32>
    %c0_74 = arith.constant 0 : index
    %c0_75 = arith.constant 0 : index
    %215 = vector.load %arg17[%c0_74, %c0_75] : memref<1x32xf32, #tpu.memory_space<vmem>>, vector<1x32xf32>
    %c0_76 = arith.constant 0 : index
    %c0_77 = arith.constant 0 : index
    %216 = vector.load %arg18[%c0_76, %c0_77] : memref<1x32xf32, #tpu.memory_space<vmem>>, vector<1x32xf32>
    %cst_78 = arith.constant dense<0.000000e+00> : vector<8xf32>
    %217 = vector.multi_reduction <add>, %214, %cst_78 [1] : vector<8x32xf32> to vector<8xf32>
    %218 = vector.shape_cast %217 : vector<8xf32> to vector<8x1xf32>
    %cst_79 = arith.constant 3.200000e+01 : f32
    %219 = vector.broadcast %cst_79 : f32 to vector<8x1xf32>
    %220 = arith.divf %218, %219 : vector<8x1xf32>
    %221 = vector.broadcast %220 : vector<8x1xf32> to vector<8x32xf32>
    %222 = arith.subf %214, %221 : vector<8x32xf32>
    %223 = arith.mulf %222, %222 : vector<8x32xf32>
    %cst_80 = arith.constant dense<0.000000e+00> : vector<8xf32>
    %224 = vector.multi_reduction <add>, %223, %cst_80 [1] : vector<8x32xf32> to vector<8xf32>
    %225 = vector.shape_cast %224 : vector<8xf32> to vector<8x1xf32>
    %cst_81 = arith.constant 3.100000e+01 : f32
    %226 = vector.broadcast %cst_81 : f32 to vector<8x1xf32>
    %227 = arith.divf %225, %226 : vector<8x1xf32>
    %228 = vector.broadcast %220 : vector<8x1xf32> to vector<8x32xf32>
    %229 = arith.subf %214, %228 : vector<8x32xf32>
    %230 = vector.broadcast %215 : vector<1x32xf32> to vector<8x32xf32>
    %231 = arith.mulf %230, %229 : vector<8x32xf32>
    %232 = math.sqrt %227 : vector<8x1xf32>
    %cst_82 = arith.constant 9.99999997E-7 : f32
    %233 = vector.broadcast %cst_82 : f32 to vector<8x1xf32>
    %234 = arith.addf %232, %233 : vector<8x1xf32>
    %235 = vector.broadcast %234 : vector<8x1xf32> to vector<8x32xf32>
    %236 = arith.divf %231, %235 : vector<8x32xf32>
    %237 = vector.broadcast %216 : vector<1x32xf32> to vector<8x32xf32>
    %238 = arith.addf %236, %237 : vector<8x32xf32>
    %c0_83 = arith.constant 0 : index
    %c0_84 = arith.constant 0 : index
    %239 = vector.load %arg19[%c0_83, %c0_84] : memref<32x64xbf16, #tpu.memory_space<vmem>>, vector<32x64xbf16>
    %240 = arith.truncf %238 : vector<8x32xf32> to vector<8x32xbf16>
    %cst_85 = arith.constant dense<0.000000e+00> : vector<8x64xf32>
    %241 = tpu.matmul %240, %239, %cst_85 {dimension_numbers = #tpu.dot_dimension_numbers<[1], [0], [0], [1], [0, 0, 1, 1], [], []>} : vector<8x32xbf16>, vector<32x64xbf16>, vector<8x64xf32> -> vector<8x64xf32>
    %c0_86 = arith.constant 0 : index
    %c0_87 = arith.constant 0 : index
    %242 = vector.load %arg20[%c0_86, %c0_87] : memref<1x64xf32, #tpu.memory_space<vmem>>, vector<1x64xf32>
    %243 = vector.broadcast %242 : vector<1x64xf32> to vector<8x64xf32>
    %244 = arith.addf %241, %243 : vector<8x64xf32>
    %cst_88 = arith.constant 0.000000e+00 : f32
    %245 = vector.broadcast %cst_88 : f32 to vector<8x64xf32>
    %246 = arith.maximumf %244, %245 : vector<8x64xf32>
    %247 = arith.truncf %246 : vector<8x64xf32> to vector<8x64xbf16>
    %c0_89 = arith.constant 0 : index
    %c0_90 = arith.constant 0 : index
    %248 = vector.load %arg21[%c0_89, %c0_90] : memref<64x32xbf16, #tpu.memory_space<vmem>>, vector<64x32xbf16>
    %cst_91 = arith.constant dense<0.000000e+00> : vector<8x32xf32>
    %249 = tpu.matmul %247, %248, %cst_91 {dimension_numbers = #tpu.dot_dimension_numbers<[1], [0], [0], [1], [0, 0, 1, 1], [], []>} : vector<8x64xbf16>, vector<64x32xbf16>, vector<8x32xf32> -> vector<8x32xf32>
    %c0_92 = arith.constant 0 : index
    %c0_93 = arith.constant 0 : index
    %250 = vector.load %arg22[%c0_92, %c0_93] : memref<1x32xf32, #tpu.memory_space<vmem>>, vector<1x32xf32>
    %251 = vector.broadcast %250 : vector<1x32xf32> to vector<8x32xf32>
    %252 = arith.addf %249, %251 : vector<8x32xf32>
    %253 = arith.addf %252, %238 : vector<8x32xf32>
    %c0_94 = arith.constant 0 : index
    %c0_95 = arith.constant 0 : index
    %254 = vector.load %arg23[%c0_94, %c0_95] : memref<1x32xf32, #tpu.memory_space<vmem>>, vector<1x32xf32>
    %c0_96 = arith.constant 0 : index
    %c0_97 = arith.constant 0 : index
    %255 = vector.load %arg24[%c0_96, %c0_97] : memref<1x32xf32, #tpu.memory_space<vmem>>, vector<1x32xf32>
    %cst_98 = arith.constant dense<0.000000e+00> : vector<8xf32>
    %256 = vector.multi_reduction <add>, %253, %cst_98 [1] : vector<8x32xf32> to vector<8xf32>
    %257 = vector.shape_cast %256 : vector<8xf32> to vector<8x1xf32>
    %cst_99 = arith.constant 3.200000e+01 : f32
    %258 = vector.broadcast %cst_99 : f32 to vector<8x1xf32>
    %259 = arith.divf %257, %258 : vector<8x1xf32>
    %260 = vector.broadcast %259 : vector<8x1xf32> to vector<8x32xf32>
    %261 = arith.subf %253, %260 : vector<8x32xf32>
    %262 = arith.mulf %261, %261 : vector<8x32xf32>
    %cst_100 = arith.constant dense<0.000000e+00> : vector<8xf32>
    %263 = vector.multi_reduction <add>, %262, %cst_100 [1] : vector<8x32xf32> to vector<8xf32>
    %264 = vector.shape_cast %263 : vector<8xf32> to vector<8x1xf32>
    %cst_101 = arith.constant 3.100000e+01 : f32
    %265 = vector.broadcast %cst_101 : f32 to vector<8x1xf32>
    %266 = arith.divf %264, %265 : vector<8x1xf32>
    %267 = vector.broadcast %259 : vector<8x1xf32> to vector<8x32xf32>
    %268 = arith.subf %253, %267 : vector<8x32xf32>
    %269 = vector.broadcast %254 : vector<1x32xf32> to vector<8x32xf32>
    %270 = arith.mulf %269, %268 : vector<8x32xf32>
    %271 = math.sqrt %266 : vector<8x1xf32>
    %cst_102 = arith.constant 9.99999997E-7 : f32
    %272 = vector.broadcast %cst_102 : f32 to vector<8x1xf32>
    %273 = arith.addf %271, %272 : vector<8x1xf32>
    %274 = vector.broadcast %273 : vector<8x1xf32> to vector<8x32xf32>
    %275 = arith.divf %270, %274 : vector<8x32xf32>
    %276 = vector.broadcast %255 : vector<1x32xf32> to vector<8x32xf32>
    %277 = arith.addf %275, %276 : vector<8x32xf32>
    %278 = arith.truncf %277 : vector<8x32xf32> to vector<8x32xbf16>
    %c0_103 = arith.constant 0 : index
    %c0_104 = arith.constant 0 : index
    %c0_105 = arith.constant 0 : index
    %279 = vector.load %arg25[%c0_103, %c0_104, %c0_105] : memref<1x8x32xbf16, #tpu.memory_space<vmem>>, vector<1x8x32xbf16>
    %280 = vector.shape_cast %279 : vector<1x8x32xbf16> to vector<8x32xbf16>
    %281 = vector.shape_cast %278 : vector<8x32xbf16> to vector<1x8x32xbf16>
    tpu.vector_store %arg25[%c0_103, %c0_104, %c0_105], %281 {strides = array<i32>} : memref<1x8x32xbf16, #tpu.memory_space<vmem>>, vector<1x8x32xbf16>,
    return
  }
  func.func @transform_0(%arg0: i32) -> (i32, i32, i32) {
    %c0_i32 = arith.constant 0 : i32
    %c0_i32_0 = arith.constant 0 : i32
    %c0_i32_1 = arith.constant 0 : i32
    return %arg0, %c0_i32, %c0_i32_0 : i32, i32, i32
  }
  func.func @transform_1(%arg0: i32) -> (i32, i32, i32) {
    %c0_i32 = arith.constant 0 : i32
    %c0_i32_0 = arith.constant 0 : i32
    %c0_i32_1 = arith.constant 0 : i32
    return %arg0, %c0_i32, %c0_i32_0 : i32, i32, i32
  }
  func.func @transform_2(%arg0: i32) -> (i32, i32, i32) {
    %c0_i32 = arith.constant 0 : i32
    %c0_i32_0 = arith.constant 0 : i32
    %c0_i32_1 = arith.constant 0 : i32
    %c0_i32_2 = arith.constant 0 : i32
    return %c0_i32, %c0_i32_0, %c0_i32_1 : i32, i32, i32
  }
  func.func @transform_3(%arg0: i32) -> (i32, i32, i32) {
    %c0_i32 = arith.constant 0 : i32
    %c0_i32_0 = arith.constant 0 : i32
    %c0_i32_1 = arith.constant 0 : i32
    %c0_i32_2 = arith.constant 0 : i32
    return %c0_i32, %c0_i32_0, %c0_i32_1 : i32, i32, i32
  }
  func.func @transform_4(%arg0: i32) -> (i32, i32) {
    %c0_i32 = arith.constant 0 : i32
    %c0_i32_0 = arith.constant 0 : i32
    %c0_i32_1 = arith.constant 0 : i32
    return %c0_i32, %c0_i32_0 : i32, i32
  }
  func.func @transform_5(%arg0: i32) -> (i32, i32) {
    %c0_i32 = arith.constant 0 : i32
    %c0_i32_0 = arith.constant 0 : i32
    %c0_i32_1 = arith.constant 0 : i32
    return %c0_i32, %c0_i32_0 : i32, i32
  }
  func.func @transform_6(%arg0: i32) -> (i32, i32) {
    %c0_i32 = arith.constant 0 : i32
    %c0_i32_0 = arith.constant 0 : i32
    %c0_i32_1 = arith.constant 0 : i32
    return %c0_i32, %c0_i32_0 : i32, i32
  }
  func.func @transform_7(%arg0: i32) -> (i32, i32) {
    %c0_i32 = arith.constant 0 : i32
    %c0_i32_0 = arith.constant 0 : i32
    %c0_i32_1 = arith.constant 0 : i32
    return %c0_i32, %c0_i32_0 : i32, i32
  }
  func.func @transform_8(%arg0: i32) -> (i32, i32) {
    %c0_i32 = arith.constant 0 : i32
    %c0_i32_0 = arith.constant 0 : i32
    %c0_i32_1 = arith.constant 0 : i32
    return %c0_i32, %c0_i32_0 : i32, i32
  }
  func.func @transform_9(%arg0: i32) -> (i32, i32) {
    %c0_i32 = arith.constant 0 : i32
    %c0_i32_0 = arith.constant 0 : i32
    %c0_i32_1 = arith.constant 0 : i32
    return %c0_i32, %c0_i32_0 : i32, i32
  }
  func.func @transform_10(%arg0: i32) -> (i32, i32) {
    %c0_i32 = arith.constant 0 : i32
    %c0_i32_0 = arith.constant 0 : i32
    %c0_i32_1 = arith.constant 0 : i32
    return %c0_i32, %c0_i32_0 : i32, i32
  }
  func.func @transform_11(%arg0: i32) -> (i32, i32) {
    %c0_i32 = arith.constant 0 : i32
    %c0_i32_0 = arith.constant 0 : i32
    %c0_i32_1 = arith.constant 0 : i32
    return %c0_i32, %c0_i32_0 : i32, i32
  }
  func.func @transform_12(%arg0: i32) -> (i32, i32) {
    %c0_i32 = arith.constant 0 : i32
    %c0_i32_0 = arith.constant 0 : i32
    %c0_i32_1 = arith.constant 0 : i32
    return %c0_i32, %c0_i32_0 : i32, i32
  }
  func.func @transform_13(%arg0: i32) -> (i32, i32) {
    %c0_i32 = arith.constant 0 : i32
    %c0_i32_0 = arith.constant 0 : i32
    %c0_i32_1 = arith.constant 0 : i32
    return %c0_i32, %c0_i32_0 : i32, i32
  }
  func.func @transform_14(%arg0: i32) -> (i32, i32) {
    %c0_i32 = arith.constant 0 : i32
    %c0_i32_0 = arith.constant 0 : i32
    %c0_i32_1 = arith.constant 0 : i32
    return %c0_i32, %c0_i32_0 : i32, i32
  }
  func.func @transform_15(%arg0: i32) -> (i32, i32) {
    %c0_i32 = arith.constant 0 : i32
    %c0_i32_0 = arith.constant 0 : i32
    %c0_i32_1 = arith.constant 0 : i32
    return %c0_i32, %c0_i32_0 : i32, i32
  }
  func.func @transform_16(%arg0: i32) -> (i32, i32) {
    %c0_i32 = arith.constant 0 : i32
    %c0_i32_0 = arith.constant 0 : i32
    %c0_i32_1 = arith.constant 0 : i32
    return %c0_i32, %c0_i32_0 : i32, i32
  }
  func.func @transform_17(%arg0: i32) -> (i32, i32) {
    %c0_i32 = arith.constant 0 : i32
    %c0_i32_0 = arith.constant 0 : i32
    %c0_i32_1 = arith.constant 0 : i32
    return %c0_i32, %c0_i32_0 : i32, i32
  }
  func.func @transform_18(%arg0: i32) -> (i32, i32) {
    %c0_i32 = arith.constant 0 : i32
    %c0_i32_0 = arith.constant 0 : i32
    %c0_i32_1 = arith.constant 0 : i32
    return %c0_i32, %c0_i32_0 : i32, i32
  }
  func.func @transform_19(%arg0: i32) -> (i32, i32) {
    %c0_i32 = arith.constant 0 : i32
    %c0_i32_0 = arith.constant 0 : i32
    %c0_i32_1 = arith.constant 0 : i32
    return %c0_i32, %c0_i32_0 : i32, i32
  }
  func.func @transform_20(%arg0: i32) -> (i32, i32) {
    %c0_i32 = arith.constant 0 : i32
    %c0_i32_0 = arith.constant 0 : i32
    %c0_i32_1 = arith.constant 0 : i32
    return %c0_i32, %c0_i32_0 : i32, i32
  }
  func.func @transform_21(%arg0: i32) -> (i32, i32) {
    %c0_i32 = arith.constant 0 : i32
    %c0_i32_0 = arith.constant 0 : i32
    %c0_i32_1 = arith.constant 0 : i32
    return %c0_i32, %c0_i32_0 : i32, i32
  }
  func.func @transform_22(%arg0: i32) -> (i32, i32) {
    %c0_i32 = arith.constant 0 : i32
    %c0_i32_0 = arith.constant 0 : i32
    %c0_i32_1 = arith.constant 0 : i32
    return %c0_i32, %c0_i32_0 : i32, i32
  }
  func.func @transform_23(%arg0: i32) -> (i32, i32) {
    %c0_i32 = arith.constant 0 : i32
    %c0_i32_0 = arith.constant 0 : i32
    %c0_i32_1 = arith.constant 0 : i32
    return %c0_i32, %c0_i32_0 : i32, i32
  }
  func.func @transform_24(%arg0: i32) -> (i32, i32, i32) {
    %c0_i32 = arith.constant 0 : i32
    %c0_i32_0 = arith.constant 0 : i32
    %c0_i32_1 = arith.constant 0 : i32
    return %arg0, %c0_i32, %c0_i32_0 : i32, i32, i32
  }
}

module attributes {stable_mosaic.version = 11 : i64} {
  func.func @_attflat_kernel(%arg0: i32, %arg1: memref<1x8x32xbf16, #tpu.memory_space<vmem>>, %arg2: memref<1x8x1xf32, #tpu.memory_space<vmem>>, %arg3: memref<32x32xbf16, #tpu.memory_space<vmem>>, %arg4: memref<1x32xf32, #tpu.memory_space<vmem>>, %arg5: memref<32x1xbf16, #tpu.memory_space<vmem>>, %arg6: memref<1x1xf32, #tpu.memory_space<vmem>>, %arg7: memref<32x128xbf16, #tpu.memory_space<vmem>>, %arg8: memref<1x128xf32, #tpu.memory_space<vmem>>, %arg9: memref<1x1x128xf32, #tpu.memory_space<vmem>>) attributes {dimension_semantics = [#tpu.dimension_semantics<parallel>], iteration_bounds = array<i64: 2>, scalar_prefetch = 0 : i64, scratch_operands = 0 : i64, tpu.core_type = #tpu.core_type<tc>, window_params = [{transform_indices = @transform_0, window_bounds = array<i64: 1, 8, 32>}, {transform_indices = @transform_1, window_bounds = array<i64: 1, 8, 1>}, {pipeline_mode = #tpu.pipeline_mode<synchronous>, transform_indices = @transform_2, window_bounds = array<i64: 32, 32>}, {pipeline_mode = #tpu.pipeline_mode<synchronous>, transform_indices = @transform_3, window_bounds = array<i64: 1, 32>}, {pipeline_mode = #tpu.pipeline_mode<synchronous>, transform_indices = @transform_4, window_bounds = array<i64: 32, 1>}, {pipeline_mode = #tpu.pipeline_mode<synchronous>, transform_indices = @transform_5, window_bounds = array<i64: 1, 1>}, {pipeline_mode = #tpu.pipeline_mode<synchronous>, transform_indices = @transform_6, window_bounds = array<i64: 32, 128>}, {pipeline_mode = #tpu.pipeline_mode<synchronous>, transform_indices = @transform_7, window_bounds = array<i64: 1, 128>}, {transform_indices = @transform_8, window_bounds = array<i64: 1, 1, 128>}]} {
    %c0 = arith.constant 0 : index
    %c0_0 = arith.constant 0 : index
    %c0_1 = arith.constant 0 : index
    %0 = vector.load %arg1[%c0, %c0_0, %c0_1] : memref<1x8x32xbf16, #tpu.memory_space<vmem>>, vector<1x8x32xbf16>
    %1 = vector.shape_cast %0 : vector<1x8x32xbf16> to vector<8x32xbf16>
    %c0_2 = arith.constant 0 : index
    %c0_3 = arith.constant 0 : index
    %c0_4 = arith.constant 0 : index
    %2 = vector.load %arg2[%c0_2, %c0_3, %c0_4] : memref<1x8x1xf32, #tpu.memory_space<vmem>>, vector<1x8x1xf32>
    %3 = vector.shape_cast %2 : vector<1x8x1xf32> to vector<8x1xf32>
    %c0_5 = arith.constant 0 : index
    %c0_6 = arith.constant 0 : index
    %4 = vector.load %arg3[%c0_5, %c0_6] : memref<32x32xbf16, #tpu.memory_space<vmem>>, vector<32x32xbf16>
    %cst = arith.constant dense<0.000000e+00> : vector<8x32xf32>
    %5 = tpu.matmul %1, %4, %cst {dimension_numbers = #tpu.dot_dimension_numbers<[1], [0], [0], [1], [0, 0, 1, 1], [], []>} : vector<8x32xbf16>, vector<32x32xbf16>, vector<8x32xf32> -> vector<8x32xf32>
    %c0_7 = arith.constant 0 : index
    %c0_8 = arith.constant 0 : index
    %6 = vector.load %arg4[%c0_7, %c0_8] : memref<1x32xf32, #tpu.memory_space<vmem>>, vector<1x32xf32>
    %7 = vector.broadcast %6 : vector<1x32xf32> to vector<8x32xf32>
    %8 = arith.addf %5, %7 : vector<8x32xf32>
    %cst_9 = arith.constant 0.000000e+00 : f32
    %9 = vector.broadcast %cst_9 : f32 to vector<8x32xf32>
    %10 = arith.maximumf %8, %9 : vector<8x32xf32>
    %11 = arith.truncf %10 : vector<8x32xf32> to vector<8x32xbf16>
    %c0_10 = arith.constant 0 : index
    %c0_11 = arith.constant 0 : index
    %12 = vector.load %arg5[%c0_10, %c0_11] : memref<32x1xbf16, #tpu.memory_space<vmem>>, vector<32x1xbf16>
    %cst_12 = arith.constant dense<0.000000e+00> : vector<8x1xf32>
    %13 = tpu.matmul %11, %12, %cst_12 {dimension_numbers = #tpu.dot_dimension_numbers<[1], [0], [0], [1], [0, 0, 1, 1], [], []>} : vector<8x32xbf16>, vector<32x1xbf16>, vector<8x1xf32> -> vector<8x1xf32>
    %c0_13 = arith.constant 0 : index
    %c0_14 = arith.constant 0 : index
    %14 = vector.load %arg6[%c0_13, %c0_14] : memref<1x1xf32, #tpu.memory_space<vmem>>, vector<1x1xf32>
    %15 = vector.broadcast %14 : vector<1x1xf32> to vector<8x1xf32>
    %16 = arith.addf %13, %15 : vector<8x1xf32>
    %cst_15 = arith.constant -1.000000e+09 : f32
    %17 = vector.broadcast %cst_15 : f32 to vector<8x1xf32>
    %18 = arith.mulf %3, %17 : vector<8x1xf32>
    %19 = arith.addf %16, %18 : vector<8x1xf32>
    %cst_16 = arith.constant dense<0xFF800000> : vector<1xf32>
    %20 = vector.multi_reduction <maximumf>, %19, %cst_16 [0] : vector<8x1xf32> to vector<1xf32>
    %21 = vector.shape_cast %20 : vector<1xf32> to vector<1x1xf32>
    %22 = vector.broadcast %21 : vector<1x1xf32> to vector<8x1xf32>
    %23 = arith.subf %19, %22 : vector<8x1xf32>
    %24 = math.exp %23 : vector<8x1xf32>
    %cst_17 = arith.constant dense<0.000000e+00> : vector<1xf32>
    %25 = vector.multi_reduction <add>, %24, %cst_17 [0] : vector<8x1xf32> to vector<1xf32>
    %26 = vector.shape_cast %25 : vector<1xf32> to vector<1x1xf32>
    %27 = tpu.reciprocal %26 {approx = true} : vector<1x1xf32> -> vector<1x1xf32>
    %28 = vector.broadcast %27 : vector<1x1xf32> to vector<8x1xf32>
    %29 = arith.mulf %24, %28 : vector<8x1xf32>
    %30 = arith.truncf %29 : vector<8x1xf32> to vector<8x1xbf16>
    %cst_18 = arith.constant dense<0.000000e+00> : vector<1x32xf32>
    %31 = tpu.matmul %30, %1, %cst_18 {dimension_numbers = #tpu.dot_dimension_numbers<[0], [0], [1], [1], [0, 1, 1, 1], [], []>} : vector<8x1xbf16>, vector<8x32xbf16>, vector<1x32xf32> -> vector<1x32xf32>
    %c0_19 = arith.constant 0 : index
    %c0_20 = arith.constant 0 : index
    %32 = vector.load %arg7[%c0_19, %c0_20] : memref<32x128xbf16, #tpu.memory_space<vmem>>, vector<32x128xbf16>
    %33 = arith.truncf %31 : vector<1x32xf32> to vector<1x32xbf16>
    %cst_21 = arith.constant dense<0.000000e+00> : vector<1x128xf32>
    %34 = tpu.matmul %33, %32, %cst_21 {dimension_numbers = #tpu.dot_dimension_numbers<[1], [0], [0], [1], [0, 0, 1, 1], [], []>} : vector<1x32xbf16>, vector<32x128xbf16>, vector<1x128xf32> -> vector<1x128xf32>
    %c0_22 = arith.constant 0 : index
    %c0_23 = arith.constant 0 : index
    %35 = vector.load %arg8[%c0_22, %c0_23] : memref<1x128xf32, #tpu.memory_space<vmem>>, vector<1x128xf32>
    %36 = arith.addf %34, %35 : vector<1x128xf32>
    %c0_24 = arith.constant 0 : index
    %c0_25 = arith.constant 0 : index
    %c0_26 = arith.constant 0 : index
    %37 = vector.load %arg9[%c0_24, %c0_25, %c0_26] : memref<1x1x128xf32, #tpu.memory_space<vmem>>, vector<1x1x128xf32>
    %38 = vector.shape_cast %37 : vector<1x1x128xf32> to vector<1x128xf32>
    %39 = vector.shape_cast %36 : vector<1x128xf32> to vector<1x1x128xf32>
    tpu.vector_store %arg9[%c0_24, %c0_25, %c0_26], %39 {strides = array<i32>} : memref<1x1x128xf32, #tpu.memory_space<vmem>>, vector<1x1x128xf32>,
    return
  }
  func.func @transform_0(%arg0: i32) -> (i32, i32, i32) {
    %c0_i32 = arith.constant 0 : i32
    %c0_i32_0 = arith.constant 0 : i32
    %c0_i32_1 = arith.constant 0 : i32
    return %arg0, %c0_i32, %c0_i32_0 : i32, i32, i32
  }
  func.func @transform_1(%arg0: i32) -> (i32, i32, i32) {
    %c0_i32 = arith.constant 0 : i32
    %c0_i32_0 = arith.constant 0 : i32
    %c0_i32_1 = arith.constant 0 : i32
    return %arg0, %c0_i32, %c0_i32_0 : i32, i32, i32
  }
  func.func @transform_2(%arg0: i32) -> (i32, i32) {
    %c0_i32 = arith.constant 0 : i32
    %c0_i32_0 = arith.constant 0 : i32
    %c0_i32_1 = arith.constant 0 : i32
    return %c0_i32, %c0_i32_0 : i32, i32
  }
  func.func @transform_3(%arg0: i32) -> (i32, i32) {
    %c0_i32 = arith.constant 0 : i32
    %c0_i32_0 = arith.constant 0 : i32
    %c0_i32_1 = arith.constant 0 : i32
    return %c0_i32, %c0_i32_0 : i32, i32
  }
  func.func @transform_4(%arg0: i32) -> (i32, i32) {
    %c0_i32 = arith.constant 0 : i32
    %c0_i32_0 = arith.constant 0 : i32
    %c0_i32_1 = arith.constant 0 : i32
    return %c0_i32, %c0_i32_0 : i32, i32
  }
  func.func @transform_5(%arg0: i32) -> (i32, i32) {
    %c0_i32 = arith.constant 0 : i32
    %c0_i32_0 = arith.constant 0 : i32
    %c0_i32_1 = arith.constant 0 : i32
    return %c0_i32, %c0_i32_0 : i32, i32
  }
  func.func @transform_6(%arg0: i32) -> (i32, i32) {
    %c0_i32 = arith.constant 0 : i32
    %c0_i32_0 = arith.constant 0 : i32
    %c0_i32_1 = arith.constant 0 : i32
    return %c0_i32, %c0_i32_0 : i32, i32
  }
  func.func @transform_7(%arg0: i32) -> (i32, i32) {
    %c0_i32 = arith.constant 0 : i32
    %c0_i32_0 = arith.constant 0 : i32
    %c0_i32_1 = arith.constant 0 : i32
    return %c0_i32, %c0_i32_0 : i32, i32
  }
  func.func @transform_8(%arg0: i32) -> (i32, i32, i32) {
    %c0_i32 = arith.constant 0 : i32
    %c0_i32_0 = arith.constant 0 : i32
    %c0_i32_1 = arith.constant 0 : i32
    return %arg0, %c0_i32, %c0_i32_0 : i32, i32, i32
  }
}

module attributes {stable_mosaic.version = 11 : i64} {
  func.func @_head_kernel(%arg0: memref<2x128xf32, #tpu.memory_space<vmem>>, %arg1: memref<2x128xf32, #tpu.memory_space<vmem>>, %arg2: memref<1x128xf32, #tpu.memory_space<vmem>>, %arg3: memref<1x128xf32, #tpu.memory_space<vmem>>, %arg4: memref<128x128xbf16, #tpu.memory_space<vmem>>, %arg5: memref<1x128xf32, #tpu.memory_space<vmem>>, %arg6: memref<2x128xf32, #tpu.memory_space<vmem>>) attributes {dimension_semantics = [], scalar_prefetch = 0 : i64, scratch_operands = 0 : i64, tpu.core_type = #tpu.core_type<tc>} {
    %c0 = arith.constant 0 : index
    %c0_0 = arith.constant 0 : index
    %0 = vector.load %arg0[%c0, %c0_0] : memref<2x128xf32, #tpu.memory_space<vmem>>, vector<2x128xf32>
    %c0_1 = arith.constant 0 : index
    %c0_2 = arith.constant 0 : index
    %1 = vector.load %arg1[%c0_1, %c0_2] : memref<2x128xf32, #tpu.memory_space<vmem>>, vector<2x128xf32>
    %2 = arith.addf %0, %1 : vector<2x128xf32>
    %c0_3 = arith.constant 0 : index
    %c0_4 = arith.constant 0 : index
    %3 = vector.load %arg2[%c0_3, %c0_4] : memref<1x128xf32, #tpu.memory_space<vmem>>, vector<1x128xf32>
    %c0_5 = arith.constant 0 : index
    %c0_6 = arith.constant 0 : index
    %4 = vector.load %arg3[%c0_5, %c0_6] : memref<1x128xf32, #tpu.memory_space<vmem>>, vector<1x128xf32>
    %cst = arith.constant dense<0.000000e+00> : vector<2xf32>
    %5 = vector.multi_reduction <add>, %2, %cst [1] : vector<2x128xf32> to vector<2xf32>
    %6 = vector.shape_cast %5 : vector<2xf32> to vector<2x1xf32>
    %cst_7 = arith.constant 1.280000e+02 : f32
    %7 = vector.broadcast %cst_7 : f32 to vector<2x1xf32>
    %8 = arith.divf %6, %7 : vector<2x1xf32>
    %9 = vector.broadcast %8 : vector<2x1xf32> to vector<2x128xf32>
    %10 = arith.subf %2, %9 : vector<2x128xf32>
    %11 = arith.mulf %10, %10 : vector<2x128xf32>
    %cst_8 = arith.constant dense<0.000000e+00> : vector<2xf32>
    %12 = vector.multi_reduction <add>, %11, %cst_8 [1] : vector<2x128xf32> to vector<2xf32>
    %13 = vector.shape_cast %12 : vector<2xf32> to vector<2x1xf32>
    %cst_9 = arith.constant 1.270000e+02 : f32
    %14 = vector.broadcast %cst_9 : f32 to vector<2x1xf32>
    %15 = arith.divf %13, %14 : vector<2x1xf32>
    %16 = vector.broadcast %8 : vector<2x1xf32> to vector<2x128xf32>
    %17 = arith.subf %2, %16 : vector<2x128xf32>
    %18 = vector.broadcast %3 : vector<1x128xf32> to vector<2x128xf32>
    %19 = arith.mulf %18, %17 : vector<2x128xf32>
    %20 = math.sqrt %15 : vector<2x1xf32>
    %cst_10 = arith.constant 9.99999997E-7 : f32
    %21 = vector.broadcast %cst_10 : f32 to vector<2x1xf32>
    %22 = arith.addf %20, %21 : vector<2x1xf32>
    %23 = vector.broadcast %22 : vector<2x1xf32> to vector<2x128xf32>
    %24 = arith.divf %19, %23 : vector<2x128xf32>
    %25 = vector.broadcast %4 : vector<1x128xf32> to vector<2x128xf32>
    %26 = arith.addf %24, %25 : vector<2x128xf32>
    %c0_11 = arith.constant 0 : index
    %c0_12 = arith.constant 0 : index
    %27 = vector.load %arg4[%c0_11, %c0_12] : memref<128x128xbf16, #tpu.memory_space<vmem>>, vector<128x128xbf16>
    %28 = arith.truncf %26 : vector<2x128xf32> to vector<2x128xbf16>
    %cst_13 = arith.constant dense<0.000000e+00> : vector<2x128xf32>
    %29 = tpu.matmul %28, %27, %cst_13 {dimension_numbers = #tpu.dot_dimension_numbers<[1], [0], [0], [1], [0, 0, 1, 1], [], []>} : vector<2x128xbf16>, vector<128x128xbf16>, vector<2x128xf32> -> vector<2x128xf32>
    %c0_14 = arith.constant 0 : index
    %c0_15 = arith.constant 0 : index
    %30 = vector.load %arg5[%c0_14, %c0_15] : memref<1x128xf32, #tpu.memory_space<vmem>>, vector<1x128xf32>
    %31 = vector.broadcast %30 : vector<1x128xf32> to vector<2x128xf32>
    %32 = arith.addf %29, %31 : vector<2x128xf32>
    %c0_16 = arith.constant 0 : index
    %c0_17 = arith.constant 0 : index
    %33 = vector.load %arg6[%c0_16, %c0_17] : memref<2x128xf32, #tpu.memory_space<vmem>>, vector<2x128xf32>
    tpu.vector_store %arg6[%c0_16, %c0_17], %32 {strides = array<i32>} : memref<2x128xf32, #tpu.memory_space<vmem>>, vector<2x128xf32>,
    return
  }
}

</mosaic_0001>

<bundles_post_ra>
// kernel: _lambda_.8
= control target key start
LH: loop header
LB: loop body
LE: loop exit
PB: predicated region body
PF: predicated region fallthrough
CT: control target
= control target key end

     0   :  { %s1663_s29 = smov 0   ;;  %s1841_s0 = inlined_call_operand.vmem [shape: bf16[2,8,32], index: 0, kind: input, shape index: {}]   ;;  %s1842_s1 = inlined_call_operand.vmem [shape: f32[2,1,8], index: 1, kind: input, shape index: {}]   ;;  %s1843_s2 = inlined_call_operand.vmem [shape: bf16[32,96], index: 2, kind: input, shape index: {}]   ;;  %s1844_s3 = inlined_call_operand.vmem [shape: f32[1,96], index: 3, kind: input, shape index: {}]   ;;  %s1845_s4 = inlined_call_operand.vmem [shape: bf16[32,32], index: 4, kind: input, shape index: {}]   ;;  %s1846_s5 = inlined_call_operand.vmem [shape: f32[1,32], index: 5, kind: input, shape index: {}]   ;;  %s1847_s6 = inlined_call_operand.vmem [shape: f32[1,32], index: 6, kind: input, shape index: {}]   ;;  %s1848_s7 = inlined_call_operand.vmem [shape: f32[1,32], index: 7, kind: input, shape index: {}]   ;;  %s1849_s8 = inlined_call_operand.vmem [shape: bf16[32,64], index: 8, kind: input, shape index: {}]   ;;  %s1850_s9 = inlined_call_operand.vmem [shape: f32[1,64], index: 9, kind: input, shape index: {}]   ;;  %s1851_s10 = inlined_call_operand.vmem [shape: bf16[64,32], index: 10, kind: input, shape index: {}]   ;;  %s1852_s11 = inlined_call_operand.vmem [shape: f32[1,32], index: 11, kind: input, shape index: {}]   ;;  %s1853_s12 = inlined_call_operand.vmem [shape: f32[1,32], index: 12, kind: input, shape index: {}]   ;;  %s1854_s13 = inlined_call_operand.vmem [shape: f32[1,32], index: 13, kind: input, shape index: {}]   ;;  %s1855_s14 = inlined_call_operand.vmem [shape: bf16[2,8,32], index: 14, kind: output, shape index: {}]  }
   0x1 LB: > { %s1669_s30 = sadd.s32 4294967295, %s1570_s29   ;;  %p1356_p0 = scmp.ge.s32.totalorder %s1570_s29, 1  ;;  %s1570_s29 = sphi %s1663_s29, %s24_s29  }
   0x2   : > { %p411_p1 = scmp.lt.s32.totalorder %s1570_s29, 3 }
   0x4   : > { %p412_p2 = pnand %p1356_p0, %p411_p1 }
   0x5   : > { %p455_p3 = scmp.lt.s32.totalorder (!%p412_p2), %s1669_s30, 1  ;;  %s1574_s26 = smov (!%p412_p2), 120  }
   0x6   : > { %415 = sbr.rel (%p412_p2) target bundleno = 2467 (0x9a3), region = 76  ;;  %s1575_s27 = smov (!%p412_p2), 96  }
   0x7   : > { %s1576_s28 = smov (!%p412_p2), 80   ;;  %s1577_s15 = smov (!%p412_p2), 88  }
   0x8   : > { %s1578_s16 = smov (!%p412_p2), 72   ;;  %s1579_s17 = smov (!%p412_p2), 112  }
   0x9   : > { %s1580_s18 = smov (!%p412_p2), 104   ;;  %s1582_s24 = smov (!%p412_p2), 64  }
   0xa   : > { %s1583_s25 = smov (!%p412_p2), 40   ;;  %s1587_s21 = smov (!%p412_p2), 24  }
   0xb   : > { %v1530_v0 = vld [vmem:[%s1843_s2 + $0x8] sm:$0xff]   ;;  %v1572_v1 = vmov 0.0   ;;  %v1531_v2 = vld [vmem:[%s1843_s2] sm:$0xff]   ;;  %vm1573_vm0 = vmmov 0   ;;  %s1688_s19 = scalar_select %p455_p3, %s1669_s30, 1  ;;  %vm491_vm1 = vcmask 261120  }
   0xc   : > { %1422 = vmatprep.subr.bf16.mxu0 %v1572_v1  ;;  %1430 = vmatprep.subr.bf16.mxu1 %v1572_v1  ;;  %v1359_v4 = vld [vmem:[%s1844_s3] ss:$0 sm:$0xff]  ;;  %vm550_vm2 = vcmask 64512   ;;  %vm614_vm3 = vcmask 1043456   ;;  %vm1001_vm4 = vcmask 130048   ;;  %vm1003_vm5 = vcmask 195584  }
   0xd   : > { %1423 = vmatpush3.bf16.msra.mxu0 %v1530_v0  ;;  %1426 = vmatprep.mubr.msk.bf16.mxu0 %vm1573_vm0, %v1572_v1  ;;  %s1357_s20 = sshll.u32 %s1688_s19, 2  ;;  %vm1214_vm8 = vcmask 523264   ;;  %vm1296_vm11 = vcmask 257024  }
   0xe   : > { %1424 = vmatprep.subr.bf16.mxu0 %v1572_v1  ;;  %1432 = vmatprep.mubr.msk.bf16.mxu1 %vm1573_vm0, %v1572_v1  ;;  %s458_s23 = scalar_lea.vmem %s1841_s0, %s1357_s20 }
   0xf   : > { %v1697_v3 = vld [vmem:[%s458_s23] sm:$0xf]  ;;  %s466_s23 = scalar_lea.vmem %s1842_s1, %s1669_s30  ;;  %s1581_s30 = smov 56  }
  0x10   : > { %v1363_v22 = vld [vmem:[%s466_s23] ss:$0 sm:$0xff] }
  0x11   : > { %1425 = vmatpush3.bf16.msra.mxu0 %v1531_v2 }
  0x12   : > { %1436 = vmatprep.subr.bf16.mxu0 %v1572_v1 }
  0x14   : > { %1427 = vmatmul.mubr.msk.bf16.vlgmr.msra.gmra.mxu0 %vm491_vm1, %v1697_v3 }
  0x15   : > { %1438 = vmatprep.mubr.msk.bf16.mxu0 %vm1573_vm0, %v1572_v1 }
  0xd4   : > { %v529_v5 = vpop.f32.mrf.mxu0 }
  0xd5   : > { %v530_v6 = vadd.f32 %v1359_v4, %v529_v5 }
  0xd6   : > { %v1428_v7 = vpop.f32.mrf.mxu0 }
  0xd7   : > { %v1706_v8 = vpack.c.bf16 %v530_v6, %v530_v6 }
  0xd8   : > { %v532_v9 = vpop.f32.mrf.mxu0 }
  0xd9   : > { %658 = vrot.lane.b32.xlu1 %v1706_v8, %s1574_s26  ;;  %548 = vrot.lane.b32.xlu0 %v1706_v8, %s1575_s27  ;;  %s1584_s26 = smov 48   ;;  %s1585_s27 = smov 8  }
  0xda   : > { %v1429_v10 = vpop.f32.mrf.mxu0 }
  0xdd   : > { %770 = vrot.lane.b32.xlu1 %v1706_v8, %s1576_s28  ;;  %660 = vrot.lane.b32.xlu0 %v1706_v8, %s1577_s15 }
  0xe1   : > { %880 = vrot.lane.b32.xlu1 %v1706_v8, %s1578_s16  ;;  %768 = vrot.lane.b32.xlu0 %v1706_v8, %s1579_s17 }
  0xe5   : > { %878 = vrot.lane.b32.xlu0 %v1706_v8, %s1580_s18  ;;  %s1586_s18 = smov 16  }
 0x14b   : > { %v549_v11 = vpop.permute.xlu0 %548  ;;  %v659_v14 = vpop.permute.xlu1 %658 }
 0x14c   : > { %v555_v12 = vsel %vm550_vm2, %v549_v11, 0 }
 0x14d   : > { %1431 = vmatpush3.bf16.xpose.msra.mxu1 %v555_v12 }
 0x14e   : > { %1442 = vmatprep.subr.bf16.mxu1 %v1572_v1 }
 0x14f   : > { %v661_v13 = vpop.permute.xlu0 %660  ;;  %v771_v16 = vpop.permute.xlu1 %770 }
 0x150   : > { %v666_v15 = vsel %vm550_vm2, %v661_v13, 0  ;;  %v776_v17 = vsel %vm550_vm2, %v771_v16, 0 }
 0x153   : > { %v881_v18 = vpop.permute.xlu1 %880  ;;  %v769_v19 = vpop.permute.xlu0 %768 }
 0x154   : > { %1433 = vmatmul.mubr.msk.bf16.vlgmr.msra.gmra.mxu1 %vm550_vm2, %v1706_v8  ;;  %v886_v20 = vsel %vm550_vm2, %v881_v18, 0 }
 0x155   : > { %1443 = vmatpush3.bf16.xpose.msra.mxu1 %v666_v15  ;;  %1444 = vmatprep.mubr.msk.bf16.mxu1 %vm1573_vm0, %v1572_v1 }
 0x156   : > { %1454 = vmatprep.subr.bf16.mxu1 %v1572_v1 }
 0x157   : > { %v879_v21 = vpop.permute.xlu0 %878 }
 0x15c   : > { %1445 = vmatmul.mubr.msk.bf16.vlgmr.msra.gmra.mxu1 %vm550_vm2, %v659_v14 }
 0x15d   : > { %1455 = vmatpush3.bf16.xpose.msra.mxu1 %v776_v17  ;;  %1456 = vmatprep.mubr.msk.bf16.mxu1 %vm1573_vm0, %v1572_v1 }
 0x15e   : > { %1466 = vmatprep.subr.bf16.mxu1 %v1572_v1 }
 0x164   : > { %1457 = vmatmul.mubr.msk.bf16.vlgmr.msra.gmra.mxu1 %vm550_vm2, %v769_v19 }
 0x165   : > { %1467 = vmatpush3.bf16.xpose.msra.mxu1 %v886_v20  ;;  %1468 = vmatprep.mubr.msk.bf16.mxu1 %vm1573_vm0, %v1572_v1 }
 0x166   : > { %1478 = vmatprep.subr.bf16.mxu1 %v1572_v1 }
 0x16c   : > { %1469 = vmatmul.mubr.msk.bf16.vlgmr.msra.gmra.mxu1 %vm550_vm2, %v879_v21 }
 0x16d   : > { %1482 = vmatprep.mubr.msk.bf16.mxu1 %vm1573_vm0, %v1572_v1 }
 0x214   : > { %v591_v23 = vpop.f32.mrf.mxu1 }
 0x215   : > { %v592_v24 = vadd.f32 %v1363_v22, %v591_v23 }
 0x216   : > { %v1434_v25 = vpop.f32.mrf.mxu1 }
 0x217   : > { %v597_v26 = vsel %vm550_vm2, %v592_v24, -inf }
 0x218   : > { %598 = vmax.xlane.f32.xlu1 %v597_v26  ;;  %v594_v27 = vpop.f32.mrf.mxu1 }
 0x21a   : > { %v1435_v28 = vpop.f32.mrf.mxu1 }
 0x21c   : > { %v702_v29 = vpop.f32.mrf.mxu1 }
 0x21d   : > { %v703_v30 = vadd.f32 %v1363_v22, %v702_v29 }
 0x21e   : > { %v1446_v31 = vpop.f32.mrf.mxu1 }
 0x21f   : > { %v708_v32 = vsel %vm550_vm2, %v703_v30, -inf }
 0x220   : > { %709 = vmax.xlane.f32.xlu0 %v708_v32  ;;  %v705_v33 = vpop.f32.mrf.mxu1 }
 0x222   : > { %v1447_v34 = vpop.f32.mrf.mxu1 }
 0x224   : > { %v812_v35 = vpop.f32.mrf.mxu1 }
 0x225   : > { %v813_v36 = vadd.f32 %v1363_v22, %v812_v35 }
 0x226   : > { %v1458_v37 = vpop.f32.mrf.mxu1 }
 0x227   : > { %v818_v38 = vsel %vm550_vm2, %v813_v36, -inf  ;;  %v1532_v37 = vld [vmem:[%s1845_s4 + $0x8] sm:$0xff]  }
 0x228   : > { %819 = vmax.xlane.f32.xlu0 %v818_v38  ;;  %v815_v39 = vpop.f32.mrf.mxu1  ;;  %1479 = vmatpush3.bf16.msra.mxu1 %v1532_v37  ;;  %v1533_v38 = vld [vmem:[%s1845_s4] sm:$0xff]  }
 0x229   : > { %1480 = vmatprep.subr.bf16.mxu1 %v1572_v1 }
 0x22a   : > { %v1459_v40 = vpop.f32.mrf.mxu1 }
 0x22c   : > { %v922_v41 = vpop.f32.mrf.mxu1  ;;  %1481 = vmatpush3.bf16.msra.mxu1 %v1533_v38 }
 0x22d   : > { %v923_v42 = vadd.f32 %v1363_v22, %v922_v41  ;;  %1494 = vmatprep.subr.bf16.mxu1 %v1572_v1 }
 0x22e   : > { %v1470_v43 = vpop.f32.mrf.mxu1 }
 0x22f   : > { %v928_v44 = vsel %vm550_vm2, %v923_v42, -inf }
 0x230   : > { %929 = vmax.xlane.f32.xlu1 %v928_v44  ;;  %v925_v45 = vpop.f32.mrf.mxu1 }
 0x232   : > { %v1471_v46 = vpop.f32.mrf.mxu1 }
 0x2a1   : > { %v599_v47 = vpop.xlane.xlu1 %598 }
 0x2a2   : > { %v600_v48 = vsub.f32 %v592_v24, %v599_v47 }
 0x2a4   : > { %v601_v49 = vmul.f32 1.442695, %v600_v48 }
 0x2a6   : > { %1540 = vpow2.f32 %v601_v49 }
 0x2a9   : > { %v710_v50 = vpop.xlane.xlu0 %709 }
 0x2aa   : > { %v711_v51 = vsub.f32 %v703_v30, %v710_v50 }
 0x2ac   : > { %v712_v52 = vmul.f32 1.442695, %v711_v51 }
 0x2ae   : > { %1542 = vpow2.f32 %v712_v52 }
 0x2b1   : > { %v820_v53 = vpop.xlane.xlu0 %819 }
 0x2b2   : > { %v821_v54 = vsub.f32 %v813_v36, %v820_v53 }
 0x2b3   : > { %v1541_v55 = vpop.eup %1540 }
 0x2b4   : > { %v822_v56 = vmul.f32 1.442695, %v821_v54  ;;  %v603_v57 = vsel %vm550_vm2, %v1541_v55, 0.0  ;;  %v1372_v54 = vld [vmem:[%s1846_s5] ss:$0 sm:$0xff] }
 0x2b5   : > { %604 = vadd.xlane.f32.xlu0 %v603_v57 }
 0x2b6   : > { %1544 = vpow2.f32 %v822_v56 }
 0x2b9   : > { %v930_v62 = vpop.xlane.xlu1 %929 }
 0x2ba   : > { %v931_v63 = vsub.f32 %v923_v42, %v930_v62 }
 0x2bb   : > { %v1543_v58 = vpop.eup %1542 }
 0x2bc   : > { %v714_v59 = vsel %vm550_vm2, %v1543_v58, 0.0  ;;  %v932_v0 = vmul.f32 1.442695, %v931_v63 }
 0x2bd   : > { %715 = vadd.xlane.f32.xlu1 %v714_v59 }
 0x2be   : > { %1546 = vpow2.f32 %v932_v0 }
 0x2c3   : > { %v1545_v60 = vpop.eup %1544 }
 0x2c4   : > { %v824_v61 = vsel %vm550_vm2, %v1545_v60, 0.0 }
 0x2c5   : > { %825 = vadd.xlane.f32.xlu0 %v824_v61 }
 0x2cb   : > { %v1547_v2 = vpop.eup %1546 }
 0x2cc   : > { %v934_v4 = vsel %vm550_vm2, %v1547_v2, 0.0 }
 0x2ce   : > { %720 = vrot.lane.b32.xlu1 %v1706_v8, %s1581_s30  ;;  %s462_s30 = scalar_lea.vmem %s1855_s14, %s1357_s20 }
 0x2db   : > { %609 = vrot.lane.b32.xlu0 %v1706_v8, %s1582_s24 }
 0x2df   : > { %940 = vrot.lane.b32.xlu0 %v1706_v8, %s1583_s25 }
 0x2f2   : > { %935 = vadd.xlane.f32.xlu1 %v934_v4 }
 0x303   : > { %830 = vrot.lane.b32.xlu1 %v1706_v8, %s1584_s26 }
 0x33e   : > { %v605_v5 = vpop.xlane.xlu0 %604 }
 0x33f   : > { %1548 = vrcp.f32 %v605_v5 }
 0x346   : > { %v716_v6 = vpop.xlane.xlu1 %715 }
 0x347   : > { %1550 = vrcp.f32 %v716_v6  ;;  %v1535_v6 = vld [vmem:[%s1849_s8] sm:$0xff]  }
 0x34a   : > { %v721_v13 = vpop.permute.xlu1 %720 }
 0x34b   : > { %v726_v16 = vsel %vm614_vm3, %v721_v13, 0 }
 0x34c   : > { %v1549_v7 = vpop.eup %1548 }
 0x34d   : > { %v607_v10 = vmul.f32 %v1549_v7, %v1541_v55  ;;  %v465_v55 = vunpack.c.l.bf16 %v1697_v3  ;;  %v1534_v3 = vld [vmem:[%s1849_s8 + $0x8] sm:$0xff]   ;;  %v1536_v7 = vld [vmem:[%s1851_s10 + $0x18] sm:$0xff]  }
 0x34e   : > { %v826_v9 = vpop.xlane.xlu0 %825 }
 0x34f   : > { %v608_v14 = vpack.c.bf16 %v607_v10, %v607_v10  ;;  %1552 = vrcp.f32 %v826_v9  ;;  %v1537_v9 = vld [vmem:[%s1851_s10 + $0x10] sm:$0xff]  }
 0x352   : > { %v610_v11 = vpop.permute.xlu0 %609 }
 0x353   : > { %v616_v12 = vsel %vm614_vm3, %v610_v11, 0 }
 0x354   : > { %1437 = vmatpush3.bf16.msra.mxu0 %v616_v12  ;;  %v1551_v15 = vpop.eup %1550 }
 0x355   : > { %1448 = vmatprep.subr.bf16.mxu0 %v1572_v1  ;;  %v718_v8 = vmul.f32 %v1551_v15, %v1543_v58 }
 0x356   : > { %v941_v23 = vpop.permute.xlu0 %940 }
 0x357   : > { %1439 = vmatmul.mubr.msk.bf16.vlgmr.msra.gmra.mxu0 %vm550_vm2, %v608_v14  ;;  %v719_v17 = vpack.c.bf16 %v718_v8, %v718_v8  ;;  %v946_v25 = vsel %vm614_vm3, %v941_v23, 0 }
 0x358   : > { %1449 = vmatpush3.bf16.msra.mxu0 %v726_v16  ;;  %1450 = vmatprep.mubr.msk.bf16.mxu0 %vm1573_vm0, %v1572_v1 }
 0x359   : > { %1460 = vmatprep.subr.bf16.mxu0 %v1572_v1 }
 0x35c   : > { %v1553_v18 = vpop.eup %1552 }
 0x35d   : > { %v828_v20 = vmul.f32 %v1553_v18, %v1545_v60 }
 0x35f   : > { %1451 = vmatmul.mubr.msk.bf16.vlgmr.msra.gmra.mxu0 %vm550_vm2, %v719_v17  ;;  %v829_v24 = vpack.c.bf16 %v828_v20, %v828_v20  ;;  %v1376_v17 = vld [vmem:[%s1847_s6] ss:$0 sm:$0xff] }
 0x360   : > { %1462 = vmatprep.mubr.msk.bf16.mxu0 %vm1573_vm0, %v1572_v1  ;;  %v1377_v20 = vld [vmem:[%s1848_s7] ss:$0 sm:$0xff] }
 0x37b   : > { %v936_v19 = vpop.xlane.xlu1 %935 }
 0x37c   : > { %1554 = vrcp.f32 %v936_v19 }
 0x37f   : > { %v831_v21 = vpop.permute.xlu1 %830 }
 0x380   : > { %v836_v22 = vsel %vm614_vm3, %v831_v21, 0 }
 0x381   : > { %1461 = vmatpush3.bf16.msra.mxu0 %v836_v22 }
 0x382   : > { %1472 = vmatprep.subr.bf16.mxu0 %v1572_v1 }
 0x384   : > { %1463 = vmatmul.mubr.msk.bf16.vlgmr.msra.gmra.mxu0 %vm550_vm2, %v829_v24  ;;  %v1538_v24 = vld [vmem:[%s1851_s10 + $0x8] sm:$0xff]  }
 0x385   : > { %1473 = vmatpush3.bf16.msra.mxu0 %v946_v25  ;;  %1474 = vmatprep.mubr.msk.bf16.mxu0 %vm1573_vm0, %v1572_v1  ;;  %v1539_v25 = vld [vmem:[%s1851_s10] sm:$0xff]  }
 0x386   : > { %1486 = vmatprep.subr.bf16.mxu0 %v1572_v1 }
 0x389   : > { %v1555_v26 = vpop.eup %1554 }
 0x38a   : > { %v938_v27 = vmul.f32 %v1555_v26, %v1547_v2  ;;  %v1378_v26 = vld [vmem:[%s1850_s9] ss:$0 sm:$0xff] }
 0x38c   : > { %v939_v28 = vpack.c.bf16 %v938_v27, %v938_v27 }
 0x38e   : > { %1475 = vmatmul.mubr.msk.bf16.vlgmr.msra.gmra.mxu0 %vm550_vm2, %v939_v28 }
 0x38f   : > { %1490 = vmatprep.mubr.msk.bf16.mxu0 %vm1573_vm0, %v1572_v1  ;;  %1487 = vmatpush3.bf16.msra.mxu0 %v1534_v3 }
 0x390   : > { %1488 = vmatprep.subr.bf16.mxu0 %v1572_v1 }
 0x393   : > { %1489 = vmatpush3.bf16.msra.mxu0 %v1535_v6 }
 0x417   : > { %v652_v29 = vpop.f32.mrf.mxu0 }
 0x419   : > { %v1440_v30 = vpop.f32.mrf.mxu0 }
 0x41b   : > { %v655_v31 = vpop.f32.mrf.mxu0 }
 0x41d   : > { %v1441_v32 = vpop.f32.mrf.mxu0 }
 0x41f   : > { %v762_v33 = vpop.f32.mrf.mxu0 }
 0x420   : > { %989 = vrot.lane.b32.xlu1 %v762_v33, %s1585_s27 }
 0x421   : > { %v1452_v34 = vpop.f32.mrf.mxu0 }
 0x423   : > { %v765_v35 = vpop.f32.mrf.mxu0 }
 0x425   : > { %v1453_v36 = vpop.f32.mrf.mxu0 }
 0x444   : > { %v872_v39 = vpop.f32.mrf.mxu0 }
 0x445   : > { %993 = vrot.lane.b32.xlu0 %v872_v39, %s1586_s18 }
 0x446   : > { %v1464_v40 = vpop.f32.mrf.mxu0 }
 0x448   : > { %v875_v41 = vpop.f32.mrf.mxu0 }
 0x44a   : > { %v1465_v42 = vpop.f32.mrf.mxu0 }
 0x44e   : > { %v982_v43 = vpop.f32.mrf.mxu0 }
 0x44f   : > { %997 = vrot.lane.b32.xlu1 %v982_v43, %s1587_s21 }
 0x450   : > { %v1476_v44 = vpop.f32.mrf.mxu0 }
 0x452   : > { %v985_v45 = vpop.f32.mrf.mxu0 }
 0x454   : > { %v1477_v46 = vpop.f32.mrf.mxu0 }
 0x492   : > { %v990_v47 = vpop.permute.xlu1 %989 }
 0x493   : > { %v1000_v49 = vsel %vm550_vm2, %v652_v29, %v990_v47 }
 0x4b7   : > { %v994_v48 = vpop.permute.xlu0 %993 }
 0x4b8   : > { %v1002_v50 = vsel %vm1001_vm4, %v1000_v49, %v994_v48 }
 0x4c1   : > { %v998_v51 = vpop.permute.xlu1 %997 }
 0x4c2   : > { %v1004_v52 = vsel %vm1003_vm5, %v1002_v50, %v998_v51 }
 0x4c3   : > { %v1005_v53 = vpack.c.bf16 %v1004_v52, %v1004_v52 }
 0x4c5   : > { %1483 = vmatmul.mubr.msk.bf16.vlgmr.msra.gmra.mxu1 %vm491_vm1, %v1005_v53 }
 0x4c6   : > { %1502 = vmatprep.mubr.msk.bf16.mxu1 %vm1573_vm0, %v1572_v1  ;;  %1495 = vmatpush3.bf16.msra.mxu1 %v1536_v7 }
 0x4c7   : > { %1496 = vmatprep.subr.bf16.mxu1 %v1572_v1 }
 0x4ca   : > { %1497 = vmatpush3.bf16.msra.mxu1 %v1537_v9 }
 0x4cb   : > { %1498 = vmatprep.subr.bf16.mxu1 %v1572_v1 }
 0x4ce   : > { %1499 = vmatpush3.bf16.msra.mxu1 %v1538_v24 }
 0x4cf   : > { %1500 = vmatprep.subr.bf16.mxu1 %v1572_v1  ;;  %v1382_v1 = vld [vmem:[%s1852_s11] ss:$0 sm:$0xff] }
 0x4d2   : > { %1501 = vmatpush3.bf16.msra.mxu1 %v1539_v25 }
 0x585   : > { %v1061_v56 = vpop.f32.mrf.mxu1 }
 0x586   : > { %v1062_v57 = vadd.f32 %v1372_v54, %v1061_v56  ;;  %v1388_v54 = vld [vmem:[%s1853_s12] ss:$0 sm:$0xff] }
 0x587   : > { %v1484_v58 = vpop.f32.mrf.mxu1 }
 0x588   : > { %v1067_v59 = vadd.f32 %v1062_v57, %v465_v55  ;;  %v1389_v57 = vld [vmem:[%s1854_s13] ss:$0 sm:$0xff] }
 0x589   : > { %v1064_v60 = vpop.f32.mrf.mxu1 }
 0x58a   : > { %v1070_v61 = vsel %vm491_vm1, %v1067_v59, 0.0 }
 0x58b   : > { %v1485_v62 = vpop.f32.mrf.mxu1  ;;  %1071 = vadd.xlane.f32.xlu0 %v1070_v61 }
 0x614   : > { %v1072_v63 = vpop.xlane.xlu0 %1071 }
 0x615   : > { %v1074_v0 = vmul.f32 0.03125, %v1072_v63 }
 0x617   : > { %v1075_v2 = vsub.f32 %v1067_v59, %v1074_v0 }
 0x619   : > { %v1076_v4 = vmul.f32 %v1075_v2, %v1075_v2  ;;  %v1088_v18 = vmul.f32 %v1376_v17, %v1075_v2 }
 0x61b   : > { %v1077_v5 = vsel %vm491_vm1, %v1076_v4, 0.0 }
 0x61c   : > { %1078 = vadd.xlane.f32.xlu1 %v1077_v5 }
 0x6a5   : > { %v1079_v10 = vpop.xlane.xlu1 %1078 }
 0x6a6   : > { %v1081_v11 = vmul.f32 0.032258064, %v1079_v10 }
 0x6a8   : > { %1556 = vrsqrt.f32 %v1081_v11  ;;  %vm1091_vm6 = vcmp.eq.f32.partialorder %v1081_v11, inf  ;;  %v1094_v14 = vand.u32 2147483648, %v1081_v11  ;;  %vm1093_vm7 = vcmp.eq.f32.partialorder %v1081_v11, 0.0 }
 0x6b5   : > { %v1557_v12 = vpop.eup %1556 }
 0x6b6   : > { %v1090_v13 = vmul.f32 %v1557_v12, %v1081_v11 }
 0x6b8   : > { %v1092_v15 = vsel %vm1091_vm6, %v1081_v11, %v1090_v13 }
 0x6b9   : > { %v1095_v16 = vsel %vm1093_vm7, %v1094_v14, %v1092_v15 }
 0x6ba   : > { %v1096_v8 = vadd.f32 1e-06, %v1095_v16 }
 0x6bc   : > { %1558 = vrcp.f32 %v1096_v8 }
 0x6c9   : > { %v1559_v19 = vpop.eup %1558 }
 0x6ca   : > { %v1098_v21 = vmul.f32 %v1559_v19, %v1088_v18 }
 0x6cc   : > { %v1105_v22 = vadd.f32 %v1377_v20, %v1098_v21 }
 0x6ce   : > { %v1110_v23 = vpack.c.bf16 %v1105_v22, %v1105_v22 }
 0x6d0   : > { %1491 = vmatmul.mubr.msk.bf16.vlgmr.msra.gmra.mxu0 %vm491_vm1, %v1110_v23 }
 0x790   : > { %v1167_v27 = vpop.f32.mrf.mxu0 }
 0x791   : > { %v1168_v28 = vadd.f32 %v1378_v26, %v1167_v27 }
 0x792   : > { %v1492_v29 = vpop.f32.mrf.mxu0 }
 0x793   : > { %v1173_v30 = vmax.f32 %v1168_v28, 0.0 }
 0x794   : > { %v1170_v31 = vpop.f32.mrf.mxu0 }
 0x795   : > { %v1174_v32 = vpack.c.bf16 %v1173_v30, %v1173_v30 }
 0x796   : > { %v1493_v33 = vpop.f32.mrf.mxu0 }
 0x797   : > { %1503 = vmatmul.mubr.msk.bf16.vlgmr.msra.gmra.mxu1 %vm1214_vm8, %v1174_v32 }
 0x857   : > { %v1252_v34 = vpop.f32.mrf.mxu1 }
 0x858   : > { %v1253_v35 = vadd.f32 %v1382_v1, %v1252_v34 }
 0x859   : > { %v1504_v36 = vpop.f32.mrf.mxu1 }
 0x85a   : > { %v1258_v37 = vadd.f32 %v1253_v35, %v1105_v22 }
 0x85b   : > { %v1255_v38 = vpop.f32.mrf.mxu1 }
 0x85c   : > { %v1261_v39 = vsel %vm491_vm1, %v1258_v37, 0.0 }
 0x85d   : > { %1262 = vadd.xlane.f32.xlu0 %v1261_v39  ;;  %v1505_v40 = vpop.f32.mrf.mxu1 }
 0x8e6   : > { %v1263_v41 = vpop.xlane.xlu0 %1262 }
 0x8e7   : > { %v1264_v42 = vmul.f32 0.03125, %v1263_v41 }
 0x8e9   : > { %v1265_v43 = vsub.f32 %v1258_v37, %v1264_v42 }
 0x8eb   : > { %v1266_v44 = vmul.f32 %v1265_v43, %v1265_v43  ;;  %v1277_v55 = vmul.f32 %v1388_v54, %v1265_v43 }
 0x8ed   : > { %v1267_v45 = vsel %vm491_vm1, %v1266_v44, 0.0 }
 0x8ee   : > { %1268 = vadd.xlane.f32.xlu0 %v1267_v45 }
 0x977   : > { %v1269_v46 = vpop.xlane.xlu0 %1268 }
 0x978   : > { %v1270_v47 = vmul.f32 0.032258064, %v1269_v46 }
 0x97a   : > { %1560 = vrsqrt.f32 %v1270_v47  ;;  %vm1280_vm9 = vcmp.eq.f32.partialorder %v1270_v47, inf  ;;  %v1283_v50 = vand.u32 2147483648, %v1270_v47  ;;  %vm1282_vm10 = vcmp.eq.f32.partialorder %v1270_v47, 0.0 }
 0x987   : > { %v1561_v48 = vpop.eup %1560 }
 0x988   : > { %v1279_v49 = vmul.f32 %v1561_v48, %v1270_v47 }
 0x98a   : > { %v1281_v51 = vsel %vm1280_vm9, %v1270_v47, %v1279_v49 }
 0x98b   : > { %v1284_v52 = vsel %vm1282_vm10, %v1283_v50, %v1281_v51 }
 0x98c   : > { %v1285_v53 = vadd.f32 1e-06, %v1284_v52 }
 0x98e   : > { %1562 = vrcp.f32 %v1285_v53 }
 0x99b   : > { %v1563_v56 = vpop.eup %1562 }
 0x99c   : > { %v1287_v58 = vmul.f32 %v1563_v56, %v1277_v55 }
 0x99e   : > { %v1294_v59 = vadd.f32 %v1389_v57, %v1287_v58 }
 0x9a0   : > { %v1295_v60 = vpack.c.bf16 %v1294_v59, %v1294_v59 }
 0x9a2   : > { %1297 = vst.msk [vmem:[%s462_s30] sm:$0xf] %vm1296_vm11, %v1295_v60 }
 0x9a3 PF: > { %s24_s29 = sadd.s32 1, %s1570_s29  }
 0x9a4   : > { %p21_p4 = scmp.ge.s32.totalorder %s24_s29, 4  }
 0x9a6   :  { %23 = sbr.rel (!%p21_p4) target bundleno = 1 (0x1), region = 107 }

// kernel: _lambda_.7
= control target key start
LH: loop header
LB: loop body
LE: loop exit
PB: predicated region body
PF: predicated region fallthrough
CT: control target
= control target key end

     0   :  { %s1663_s29 = smov 0   ;;  %s1839_s0 = inlined_call_operand.vmem [shape: f32[2,8,32], index: 0, kind: input, shape index: {}]   ;;  %s1840_s1 = inlined_call_operand.vmem [shape: f32[2,1,8], index: 1, kind: input, shape index: {}]   ;;  %s1841_s2 = inlined_call_operand.vmem [shape: bf16[32,96], index: 2, kind: input, shape index: {}]   ;;  %s1842_s3 = inlined_call_operand.vmem [shape: f32[1,96], index: 3, kind: input, shape index: {}]   ;;  %s1843_s4 = inlined_call_operand.vmem [shape: bf16[32,32], index: 4, kind: input, shape index: {}]   ;;  %s1844_s5 = inlined_call_operand.vmem [shape: f32[1,32], index: 5, kind: input, shape index: {}]   ;;  %s1845_s6 = inlined_call_operand.vmem [shape: f32[1,32], index: 6, kind: input, shape index: {}]   ;;  %s1846_s7 = inlined_call_operand.vmem [shape: f32[1,32], index: 7, kind: input, shape index: {}]   ;;  %s1847_s8 = inlined_call_operand.vmem [shape: bf16[32,64], index: 8, kind: input, shape index: {}]   ;;  %s1848_s9 = inlined_call_operand.vmem [shape: f32[1,64], index: 9, kind: input, shape index: {}]   ;;  %s1849_s10 = inlined_call_operand.vmem [shape: bf16[64,32], index: 10, kind: input, shape index: {}]   ;;  %s1850_s11 = inlined_call_operand.vmem [shape: f32[1,32], index: 11, kind: input, shape index: {}]   ;;  %s1851_s12 = inlined_call_operand.vmem [shape: f32[1,32], index: 12, kind: input, shape index: {}]   ;;  %s1852_s13 = inlined_call_operand.vmem [shape: f32[1,32], index: 13, kind: input, shape index: {}]   ;;  %s1853_s14 = inlined_call_operand.vmem [shape: bf16[2,8,32], index: 14, kind: output, shape index: {}]  }
   0x1 LB: > { %s1669_s30 = sadd.s32 4294967295, %s1570_s29   ;;  %p1356_p0 = scmp.ge.s32.totalorder %s1570_s29, 1  ;;  %s1570_s29 = sphi %s1663_s29, %s24_s29  }
   0x2   : > { %p411_p1 = scmp.lt.s32.totalorder %s1570_s29, 3 }
   0x4   : > { %p412_p2 = pnand %p1356_p0, %p411_p1 }
   0x5   : > { %p455_p3 = scmp.lt.s32.totalorder (!%p412_p2), %s1669_s30, 1  ;;  %s1574_s26 = smov (!%p412_p2), 120  }
   0x6   : > { %415 = sbr.rel (%p412_p2) target bundleno = 2467 (0x9a3), region = 76  ;;  %s1575_s27 = smov (!%p412_p2), 96  }
   0x7   : > { %s1576_s28 = smov (!%p412_p2), 80   ;;  %s1577_s15 = smov (!%p412_p2), 88  }
   0x8   : > { %s1578_s16 = smov (!%p412_p2), 72   ;;  %s1579_s17 = smov (!%p412_p2), 112  }
   0x9   : > { %s1580_s18 = smov (!%p412_p2), 104   ;;  %s465_s22 = scalar_lea.vmem (!%p412_p2), %s1840_s1, %s1669_s30 }
   0xa   : > { %s1583_s24 = smov (!%p412_p2), 40   ;;  %s1584_s25 = smov (!%p412_p2), 48  }
   0xb   : > { %v1530_v0 = vld [vmem:[%s1841_s2 + $0x8] sm:$0xff]   ;;  %v1572_v1 = vmov 0.0   ;;  %v1531_v2 = vld [vmem:[%s1841_s2] sm:$0xff]   ;;  %vm1573_vm0 = vmmov 0   ;;  %s1688_s19 = scalar_select %p455_p3, %s1669_s30, 1  ;;  %vm491_vm1 = vcmask 261120  }
   0xc   : > { %1422 = vmatprep.subr.bf16.mxu0 %v1572_v1  ;;  %1430 = vmatprep.subr.bf16.mxu1 %v1572_v1  ;;  %v1359_v5 = vld [vmem:[%s1842_s3] ss:$0 sm:$0xff]  ;;  %vm550_vm2 = vcmask 64512   ;;  %s1581_s30 = smov 56   ;;  %vm614_vm3 = vcmask 1043456   ;;  %vm1001_vm4 = vcmask 130048  }
   0xd   : > { %1423 = vmatpush3.bf16.msra.mxu0 %v1530_v0  ;;  %1426 = vmatprep.mubr.msk.bf16.mxu0 %vm1573_vm0, %v1572_v1  ;;  %s1357_s20 = sshll.u32 %s1688_s19, 3  ;;  %v1363_v23 = vld [vmem:[%s465_s22] ss:$0 sm:$0xff]  ;;  %vm1003_vm5 = vcmask 195584   ;;  %vm1214_vm8 = vcmask 523264   ;;  %vm1296_vm11 = vcmask 257024  }
   0xe   : > { %1424 = vmatprep.subr.bf16.mxu0 %v1572_v1  ;;  %1432 = vmatprep.mubr.msk.bf16.mxu1 %vm1573_vm0, %v1572_v1  ;;  %s458_s23 = scalar_lea.vmem %s1839_s0, %s1357_s20 }
   0xf   : > { %v1695_v3 = vld [vmem:[%s458_s23] sm:$0xff]  ;;  %s1582_s23 = smov 64  }
  0x10   : > { %v471_v4 = vpack.c.bf16 %v1695_v3, %v1695_v3 }
  0x11   : > { %1425 = vmatpush3.bf16.msra.mxu0 %v1531_v2 }
  0x12   : > { %1436 = vmatprep.subr.bf16.mxu0 %v1572_v1 }
  0x14   : > { %1427 = vmatmul.mubr.msk.bf16.vlgmr.msra.gmra.mxu0 %vm491_vm1, %v471_v4 }
  0x15   : > { %1438 = vmatprep.mubr.msk.bf16.mxu0 %vm1573_vm0, %v1572_v1 }
  0xd4   : > { %v529_v6 = vpop.f32.mrf.mxu0 }
  0xd5   : > { %v530_v7 = vadd.f32 %v1359_v5, %v529_v6 }
  0xd6   : > { %v1428_v8 = vpop.f32.mrf.mxu0 }
  0xd7   : > { %v1705_v9 = vpack.c.bf16 %v530_v7, %v530_v7 }
  0xd8   : > { %v532_v10 = vpop.f32.mrf.mxu0 }
  0xd9   : > { %658 = vrot.lane.b32.xlu1 %v1705_v9, %s1574_s26  ;;  %548 = vrot.lane.b32.xlu0 %v1705_v9, %s1575_s27  ;;  %s1585_s26 = smov 8  }
  0xda   : > { %v1429_v11 = vpop.f32.mrf.mxu0 }
  0xdd   : > { %770 = vrot.lane.b32.xlu1 %v1705_v9, %s1576_s28  ;;  %660 = vrot.lane.b32.xlu0 %v1705_v9, %s1577_s15 }
  0xe1   : > { %880 = vrot.lane.b32.xlu1 %v1705_v9, %s1578_s16  ;;  %768 = vrot.lane.b32.xlu0 %v1705_v9, %s1579_s17  ;;  %s1586_s17 = smov 16  }
  0xe5   : > { %878 = vrot.lane.b32.xlu0 %v1705_v9, %s1580_s18  ;;  %s1587_s18 = smov 24  }
 0x14b   : > { %v549_v12 = vpop.permute.xlu0 %548  ;;  %v659_v15 = vpop.permute.xlu1 %658 }
 0x14c   : > { %v555_v13 = vsel %vm550_vm2, %v549_v12, 0 }
 0x14d   : > { %1431 = vmatpush3.bf16.xpose.msra.mxu1 %v555_v13 }
 0x14e   : > { %1442 = vmatprep.subr.bf16.mxu1 %v1572_v1 }
 0x14f   : > { %v661_v14 = vpop.permute.xlu0 %660  ;;  %v771_v17 = vpop.permute.xlu1 %770 }
 0x150   : > { %v666_v16 = vsel %vm550_vm2, %v661_v14, 0  ;;  %v776_v18 = vsel %vm550_vm2, %v771_v17, 0 }
 0x153   : > { %v881_v19 = vpop.permute.xlu1 %880  ;;  %v769_v20 = vpop.permute.xlu0 %768 }
 0x154   : > { %1433 = vmatmul.mubr.msk.bf16.vlgmr.msra.gmra.mxu1 %vm550_vm2, %v1705_v9  ;;  %v886_v21 = vsel %vm550_vm2, %v881_v19, 0 }
 0x155   : > { %1443 = vmatpush3.bf16.xpose.msra.mxu1 %v666_v16  ;;  %1444 = vmatprep.mubr.msk.bf16.mxu1 %vm1573_vm0, %v1572_v1 }
 0x156   : > { %1454 = vmatprep.subr.bf16.mxu1 %v1572_v1 }
 0x157   : > { %v879_v22 = vpop.permute.xlu0 %878 }
 0x15c   : > { %1445 = vmatmul.mubr.msk.bf16.vlgmr.msra.gmra.mxu1 %vm550_vm2, %v659_v15 }
 0x15d   : > { %1455 = vmatpush3.bf16.xpose.msra.mxu1 %v776_v18  ;;  %1456 = vmatprep.mubr.msk.bf16.mxu1 %vm1573_vm0, %v1572_v1 }
 0x15e   : > { %1466 = vmatprep.subr.bf16.mxu1 %v1572_v1 }
 0x164   : > { %1457 = vmatmul.mubr.msk.bf16.vlgmr.msra.gmra.mxu1 %vm550_vm2, %v769_v20 }
 0x165   : > { %1467 = vmatpush3.bf16.xpose.msra.mxu1 %v886_v21  ;;  %1468 = vmatprep.mubr.msk.bf16.mxu1 %vm1573_vm0, %v1572_v1 }
 0x166   : > { %1478 = vmatprep.subr.bf16.mxu1 %v1572_v1 }
 0x16c   : > { %1469 = vmatmul.mubr.msk.bf16.vlgmr.msra.gmra.mxu1 %vm550_vm2, %v879_v22 }
 0x16d   : > { %1482 = vmatprep.mubr.msk.bf16.mxu1 %vm1573_vm0, %v1572_v1 }
 0x214   : > { %v591_v24 = vpop.f32.mrf.mxu1 }
 0x215   : > { %v592_v25 = vadd.f32 %v1363_v23, %v591_v24 }
 0x216   : > { %v1434_v26 = vpop.f32.mrf.mxu1 }
 0x217   : > { %v597_v27 = vsel %vm550_vm2, %v592_v25, -inf }
 0x218   : > { %598 = vmax.xlane.f32.xlu1 %v597_v27  ;;  %v594_v28 = vpop.f32.mrf.mxu1 }
 0x21a   : > { %v1435_v29 = vpop.f32.mrf.mxu1 }
 0x21c   : > { %v702_v30 = vpop.f32.mrf.mxu1 }
 0x21d   : > { %v703_v31 = vadd.f32 %v1363_v23, %v702_v30 }
 0x21e   : > { %v1446_v32 = vpop.f32.mrf.mxu1 }
 0x21f   : > { %v708_v33 = vsel %vm550_vm2, %v703_v31, -inf }
 0x220   : > { %709 = vmax.xlane.f32.xlu0 %v708_v33  ;;  %v705_v34 = vpop.f32.mrf.mxu1 }
 0x222   : > { %v1447_v35 = vpop.f32.mrf.mxu1 }
 0x224   : > { %v812_v36 = vpop.f32.mrf.mxu1 }
 0x225   : > { %v813_v37 = vadd.f32 %v1363_v23, %v812_v36 }
 0x226   : > { %v1458_v38 = vpop.f32.mrf.mxu1 }
 0x227   : > { %v818_v39 = vsel %vm550_vm2, %v813_v37, -inf  ;;  %v1532_v38 = vld [vmem:[%s1843_s4 + $0x8] sm:$0xff]  }
 0x228   : > { %819 = vmax.xlane.f32.xlu0 %v818_v39  ;;  %v815_v40 = vpop.f32.mrf.mxu1  ;;  %1479 = vmatpush3.bf16.msra.mxu1 %v1532_v38  ;;  %v1533_v39 = vld [vmem:[%s1843_s4] sm:$0xff]  }
 0x229   : > { %1480 = vmatprep.subr.bf16.mxu1 %v1572_v1 }
 0x22a   : > { %v1459_v41 = vpop.f32.mrf.mxu1 }
 0x22c   : > { %v922_v42 = vpop.f32.mrf.mxu1  ;;  %1481 = vmatpush3.bf16.msra.mxu1 %v1533_v39 }
 0x22d   : > { %v923_v43 = vadd.f32 %v1363_v23, %v922_v42  ;;  %1494 = vmatprep.subr.bf16.mxu1 %v1572_v1 }
 0x22e   : > { %v1470_v44 = vpop.f32.mrf.mxu1 }
 0x22f   : > { %v928_v45 = vsel %vm550_vm2, %v923_v43, -inf }
 0x230   : > { %929 = vmax.xlane.f32.xlu1 %v928_v45  ;;  %v925_v46 = vpop.f32.mrf.mxu1 }
 0x232   : > { %v1471_v47 = vpop.f32.mrf.mxu1 }
 0x2a1   : > { %v599_v48 = vpop.xlane.xlu1 %598 }
 0x2a2   : > { %v600_v49 = vsub.f32 %v592_v25, %v599_v48 }
 0x2a4   : > { %v601_v50 = vmul.f32 1.442695, %v600_v49 }
 0x2a6   : > { %1540 = vpow2.f32 %v601_v50 }
 0x2a9   : > { %v710_v51 = vpop.xlane.xlu0 %709 }
 0x2aa   : > { %v711_v52 = vsub.f32 %v703_v31, %v710_v51 }
 0x2ac   : > { %v712_v53 = vmul.f32 1.442695, %v711_v52 }
 0x2ae   : > { %1542 = vpow2.f32 %v712_v53 }
 0x2b1   : > { %v820_v54 = vpop.xlane.xlu0 %819 }
 0x2b2   : > { %v821_v55 = vsub.f32 %v813_v37, %v820_v54 }
 0x2b3   : > { %v1541_v56 = vpop.eup %1540 }
 0x2b4   : > { %v822_v57 = vmul.f32 1.442695, %v821_v55  ;;  %v603_v58 = vsel %vm550_vm2, %v1541_v56, 0.0  ;;  %v1372_v55 = vld [vmem:[%s1844_s5] ss:$0 sm:$0xff] }
 0x2b5   : > { %604 = vadd.xlane.f32.xlu0 %v603_v58 }
 0x2b6   : > { %1544 = vpow2.f32 %v822_v57 }
 0x2b9   : > { %v930_v63 = vpop.xlane.xlu1 %929 }
 0x2ba   : > { %v931_v0 = vsub.f32 %v923_v43, %v930_v63 }
 0x2bb   : > { %v1543_v59 = vpop.eup %1542 }
 0x2bc   : > { %v714_v60 = vsel %vm550_vm2, %v1543_v59, 0.0  ;;  %v932_v2 = vmul.f32 1.442695, %v931_v0 }
 0x2bd   : > { %715 = vadd.xlane.f32.xlu1 %v714_v60 }
 0x2be   : > { %1546 = vpow2.f32 %v932_v2 }
 0x2c3   : > { %v1545_v61 = vpop.eup %1544 }
 0x2c4   : > { %v824_v62 = vsel %vm550_vm2, %v1545_v61, 0.0 }
 0x2c5   : > { %825 = vadd.xlane.f32.xlu0 %v824_v62 }
 0x2cb   : > { %v1547_v4 = vpop.eup %1546 }
 0x2cc   : > { %v934_v5 = vsel %vm550_vm2, %v1547_v4, 0.0 }
 0x2ce   : > { %720 = vrot.lane.b32.xlu1 %v1705_v9, %s1581_s30 }
 0x2db   : > { %609 = vrot.lane.b32.xlu0 %v1705_v9, %s1582_s23 }
 0x2df   : > { %940 = vrot.lane.b32.xlu0 %v1705_v9, %s1583_s24 }
 0x2f2   : > { %935 = vadd.xlane.f32.xlu1 %v934_v5 }
 0x303   : > { %830 = vrot.lane.b32.xlu1 %v1705_v9, %s1584_s25 }
 0x33e   : > { %v605_v6 = vpop.xlane.xlu0 %604 }
 0x33f   : > { %1548 = vrcp.f32 %v605_v6  ;;  %v1534_v6 = vld [vmem:[%s1847_s8 + $0x8] sm:$0xff]  }
 0x346   : > { %v716_v7 = vpop.xlane.xlu1 %715 }
 0x347   : > { %1550 = vrcp.f32 %v716_v7  ;;  %v1536_v7 = vld [vmem:[%s1849_s10 + $0x18] sm:$0xff]  }
 0x34a   : > { %v721_v14 = vpop.permute.xlu1 %720 }
 0x34b   : > { %v726_v17 = vsel %vm614_vm3, %v721_v14, 0 }
 0x34c   : > { %v1549_v8 = vpop.eup %1548 }
 0x34d   : > { %v607_v11 = vmul.f32 %v1549_v8, %v1541_v56  ;;  %v1537_v8 = vld [vmem:[%s1849_s10 + $0x10] sm:$0xff]  }
 0x34e   : > { %v826_v10 = vpop.xlane.xlu0 %825 }
 0x34f   : > { %v608_v15 = vpack.c.bf16 %v607_v11, %v607_v11  ;;  %1552 = vrcp.f32 %v826_v10 }
 0x352   : > { %v610_v12 = vpop.permute.xlu0 %609 }
 0x353   : > { %v616_v13 = vsel %vm614_vm3, %v610_v12, 0 }
 0x354   : > { %1437 = vmatpush3.bf16.msra.mxu0 %v616_v13  ;;  %v1551_v16 = vpop.eup %1550 }
 0x355   : > { %1448 = vmatprep.subr.bf16.mxu0 %v1572_v1  ;;  %v718_v9 = vmul.f32 %v1551_v16, %v1543_v59 }
 0x356   : > { %v941_v24 = vpop.permute.xlu0 %940 }
 0x357   : > { %1439 = vmatmul.mubr.msk.bf16.vlgmr.msra.gmra.mxu0 %vm550_vm2, %v608_v15  ;;  %v719_v18 = vpack.c.bf16 %v718_v9, %v718_v9  ;;  %v946_v26 = vsel %vm614_vm3, %v941_v24, 0  ;;  %v1376_v9 = vld [vmem:[%s1845_s6] ss:$0 sm:$0xff]  ;;  %v1538_v24 = vld [vmem:[%s1849_s10 + $0x8] sm:$0xff]  }
 0x358   : > { %1449 = vmatpush3.bf16.msra.mxu0 %v726_v17  ;;  %1450 = vmatprep.mubr.msk.bf16.mxu0 %vm1573_vm0, %v1572_v1 }
 0x359   : > { %1460 = vmatprep.subr.bf16.mxu0 %v1572_v1 }
 0x35c   : > { %v1553_v19 = vpop.eup %1552 }
 0x35d   : > { %v828_v21 = vmul.f32 %v1553_v19, %v1545_v61 }
 0x35f   : > { %1451 = vmatmul.mubr.msk.bf16.vlgmr.msra.gmra.mxu0 %vm550_vm2, %v719_v18  ;;  %v829_v25 = vpack.c.bf16 %v828_v21, %v828_v21 }
 0x360   : > { %1462 = vmatprep.mubr.msk.bf16.mxu0 %vm1573_vm0, %v1572_v1 }
 0x37b   : > { %v936_v20 = vpop.xlane.xlu1 %935 }
 0x37c   : > { %1554 = vrcp.f32 %v936_v20  ;;  %v1377_v20 = vld [vmem:[%s1846_s7] ss:$0 sm:$0xff] }
 0x37f   : > { %v831_v22 = vpop.permute.xlu1 %830 }
 0x380   : > { %v836_v23 = vsel %vm614_vm3, %v831_v22, 0 }
 0x381   : > { %1461 = vmatpush3.bf16.msra.mxu0 %v836_v23 }
 0x382   : > { %1472 = vmatprep.subr.bf16.mxu0 %v1572_v1 }
 0x384   : > { %1463 = vmatmul.mubr.msk.bf16.vlgmr.msra.gmra.mxu0 %vm550_vm2, %v829_v25  ;;  %v1539_v25 = vld [vmem:[%s1849_s10] sm:$0xff]  }
 0x385   : > { %1473 = vmatpush3.bf16.msra.mxu0 %v946_v26  ;;  %1474 = vmatprep.mubr.msk.bf16.mxu0 %vm1573_vm0, %v1572_v1  ;;  %v1378_v26 = vld [vmem:[%s1848_s9] ss:$0 sm:$0xff] }
 0x386   : > { %1486 = vmatprep.subr.bf16.mxu0 %v1572_v1 }
 0x389   : > { %v1555_v27 = vpop.eup %1554 }
 0x38a   : > { %v938_v28 = vmul.f32 %v1555_v27, %v1547_v4 }
 0x38c   : > { %v939_v29 = vpack.c.bf16 %v938_v28, %v938_v28 }
 0x38e   : > { %1475 = vmatmul.mubr.msk.bf16.vlgmr.msra.gmra.mxu0 %vm550_vm2, %v939_v29 }
 0x38f   : > { %1490 = vmatprep.mubr.msk.bf16.mxu0 %vm1573_vm0, %v1572_v1  ;;  %1487 = vmatpush3.bf16.msra.mxu0 %v1534_v6 }
 0x390   : > { %1488 = vmatprep.subr.bf16.mxu0 %v1572_v1 }
 0x417   : > { %v652_v30 = vpop.f32.mrf.mxu0 }
 0x419   : > { %v1440_v31 = vpop.f32.mrf.mxu0 }
 0x41b   : > { %v655_v32 = vpop.f32.mrf.mxu0 }
 0x41d   : > { %v1441_v33 = vpop.f32.mrf.mxu0 }
 0x41f   : > { %v762_v34 = vpop.f32.mrf.mxu0 }
 0x420   : > { %989 = vrot.lane.b32.xlu1 %v762_v34, %s1585_s26 }
 0x421   : > { %v1452_v35 = vpop.f32.mrf.mxu0 }
 0x423   : > { %v765_v36 = vpop.f32.mrf.mxu0 }
 0x425   : > { %v1453_v37 = vpop.f32.mrf.mxu0 }
 0x444   : > { %v872_v40 = vpop.f32.mrf.mxu0 }
 0x445   : > { %993 = vrot.lane.b32.xlu0 %v872_v40, %s1586_s17  ;;  %s1358_s17 = sshll.u32 %s1688_s19, 2 }
 0x446   : > { %v1464_v41 = vpop.f32.mrf.mxu0  ;;  %s462_s21 = scalar_lea.vmem %s1853_s14, %s1358_s17 }
 0x448   : > { %v875_v42 = vpop.f32.mrf.mxu0 }
 0x44a   : > { %v1465_v43 = vpop.f32.mrf.mxu0 }
 0x44e   : > { %v982_v44 = vpop.f32.mrf.mxu0 }
 0x44f   : > { %997 = vrot.lane.b32.xlu1 %v982_v44, %s1587_s18 }
 0x450   : > { %v1476_v45 = vpop.f32.mrf.mxu0 }
 0x452   : > { %v985_v46 = vpop.f32.mrf.mxu0 }
 0x454   : > { %v1477_v47 = vpop.f32.mrf.mxu0 }
 0x492   : > { %v990_v48 = vpop.permute.xlu1 %989 }
 0x493   : > { %v1000_v50 = vsel %vm550_vm2, %v652_v30, %v990_v48 }
 0x4b7   : > { %v994_v49 = vpop.permute.xlu0 %993 }
 0x4b8   : > { %v1002_v51 = vsel %vm1001_vm4, %v1000_v50, %v994_v49 }
 0x4c1   : > { %v998_v52 = vpop.permute.xlu1 %997 }
 0x4c2   : > { %v1004_v53 = vsel %vm1003_vm5, %v1002_v51, %v998_v52 }
 0x4c3   : > { %v1005_v54 = vpack.c.bf16 %v1004_v53, %v1004_v53 }
 0x4c5   : > { %1483 = vmatmul.mubr.msk.bf16.vlgmr.msra.gmra.mxu1 %vm491_vm1, %v1005_v54  ;;  %v1388_v54 = vld [vmem:[%s1851_s12] ss:$0 sm:$0xff] }
 0x4c6   : > { %1502 = vmatprep.mubr.msk.bf16.mxu1 %vm1573_vm0, %v1572_v1  ;;  %1495 = vmatpush3.bf16.msra.mxu1 %v1536_v7 }
 0x4c7   : > { %1496 = vmatprep.subr.bf16.mxu1 %v1572_v1 }
 0x4ca   : > { %1497 = vmatpush3.bf16.msra.mxu1 %v1537_v8 }
 0x4cb   : > { %1498 = vmatprep.subr.bf16.mxu1 %v1572_v1 }
 0x4ce   : > { %1499 = vmatpush3.bf16.msra.mxu1 %v1538_v24 }
 0x4cf   : > { %1500 = vmatprep.subr.bf16.mxu1 %v1572_v1  ;;  %v1382_v1 = vld [vmem:[%s1850_s11] ss:$0 sm:$0xff] }
 0x4d2   : > { %1501 = vmatpush3.bf16.msra.mxu1 %v1539_v25 }
 0x585   : > { %v1061_v56 = vpop.f32.mrf.mxu1 }
 0x586   : > { %v1062_v57 = vadd.f32 %v1372_v55, %v1061_v56 }
 0x587   : > { %v1484_v58 = vpop.f32.mrf.mxu1 }
 0x588   : > { %v1067_v59 = vadd.f32 %v1062_v57, %v1695_v3  ;;  %v1535_v3 = vld [vmem:[%s1847_s8] sm:$0xff]  }
 0x589   : > { %v1064_v60 = vpop.f32.mrf.mxu1  ;;  %1489 = vmatpush3.bf16.msra.mxu0 %v1535_v3  ;;  %v1389_v57 = vld [vmem:[%s1852_s13] ss:$0 sm:$0xff] }
 0x58a   : > { %v1070_v61 = vsel %vm491_vm1, %v1067_v59, 0.0 }
 0x58b   : > { %1071 = vadd.xlane.f32.xlu0 %v1070_v61  ;;  %v1485_v62 = vpop.f32.mrf.mxu1 }
 0x614   : > { %v1072_v63 = vpop.xlane.xlu0 %1071 }
 0x615   : > { %v1074_v0 = vmul.f32 0.03125, %v1072_v63 }
 0x617   : > { %v1075_v2 = vsub.f32 %v1067_v59, %v1074_v0 }
 0x619   : > { %v1076_v4 = vmul.f32 %v1075_v2, %v1075_v2  ;;  %v1088_v18 = vmul.f32 %v1376_v9, %v1075_v2 }
 0x61b   : > { %v1077_v5 = vsel %vm491_vm1, %v1076_v4, 0.0 }
 0x61c   : > { %1078 = vadd.xlane.f32.xlu1 %v1077_v5 }
 0x6a5   : > { %v1079_v10 = vpop.xlane.xlu1 %1078 }
 0x6a6   : > { %v1081_v11 = vmul.f32 0.032258064, %v1079_v10 }
 0x6a8   : > { %1556 = vrsqrt.f32 %v1081_v11  ;;  %vm1091_vm6 = vcmp.eq.f32.partialorder %v1081_v11, inf  ;;  %v1094_v14 = vand.u32 2147483648, %v1081_v11  ;;  %vm1093_vm7 = vcmp.eq.f32.partialorder %v1081_v11, 0.0 }
 0x6b5   : > { %v1557_v12 = vpop.eup %1556 }
 0x6b6   : > { %v1090_v13 = vmul.f32 %v1557_v12, %v1081_v11 }
 0x6b8   : > { %v1092_v15 = vsel %vm1091_vm6, %v1081_v11, %v1090_v13 }
 0x6b9   : > { %v1095_v16 = vsel %vm1093_vm7, %v1094_v14, %v1092_v15 }
 0x6ba   : > { %v1096_v17 = vadd.f32 1e-06, %v1095_v16 }
 0x6bc   : > { %1558 = vrcp.f32 %v1096_v17 }
 0x6c9   : > { %v1559_v19 = vpop.eup %1558 }
 0x6ca   : > { %v1098_v21 = vmul.f32 %v1559_v19, %v1088_v18 }
 0x6cc   : > { %v1105_v22 = vadd.f32 %v1377_v20, %v1098_v21 }
 0x6ce   : > { %v1110_v23 = vpack.c.bf16 %v1105_v22, %v1105_v22 }
 0x6d0   : > { %1491 = vmatmul.mubr.msk.bf16.vlgmr.msra.gmra.mxu0 %vm491_vm1, %v1110_v23 }
 0x790   : > { %v1167_v27 = vpop.f32.mrf.mxu0 }
 0x791   : > { %v1168_v28 = vadd.f32 %v1378_v26, %v1167_v27 }
 0x792   : > { %v1492_v29 = vpop.f32.mrf.mxu0 }
 0x793   : > { %v1173_v30 = vmax.f32 %v1168_v28, 0.0 }
 0x794   : > { %v1170_v31 = vpop.f32.mrf.mxu0 }
 0x795   : > { %v1174_v32 = vpack.c.bf16 %v1173_v30, %v1173_v30 }
 0x796   : > { %v1493_v33 = vpop.f32.mrf.mxu0 }
 0x797   : > { %1503 = vmatmul.mubr.msk.bf16.vlgmr.msra.gmra.mxu1 %vm1214_vm8, %v1174_v32 }
 0x857   : > { %v1252_v34 = vpop.f32.mrf.mxu1 }
 0x858   : > { %v1253_v35 = vadd.f32 %v1382_v1, %v1252_v34 }
 0x859   : > { %v1504_v36 = vpop.f32.mrf.mxu1 }
 0x85a   : > { %v1258_v37 = vadd.f32 %v1253_v35, %v1105_v22 }
 0x85b   : > { %v1255_v38 = vpop.f32.mrf.mxu1 }
 0x85c   : > { %v1261_v39 = vsel %vm491_vm1, %v1258_v37, 0.0 }
 0x85d   : > { %1262 = vadd.xlane.f32.xlu0 %v1261_v39  ;;  %v1505_v40 = vpop.f32.mrf.mxu1 }
 0x8e6   : > { %v1263_v41 = vpop.xlane.xlu0 %1262 }
 0x8e7   : > { %v1264_v42 = vmul.f32 0.03125, %v1263_v41 }
 0x8e9   : > { %v1265_v43 = vsub.f32 %v1258_v37, %v1264_v42 }
 0x8eb   : > { %v1266_v44 = vmul.f32 %v1265_v43, %v1265_v43  ;;  %v1277_v55 = vmul.f32 %v1388_v54, %v1265_v43 }
 0x8ed   : > { %v1267_v45 = vsel %vm491_vm1, %v1266_v44, 0.0 }
 0x8ee   : > { %1268 = vadd.xlane.f32.xlu0 %v1267_v45 }
 0x977   : > { %v1269_v46 = vpop.xlane.xlu0 %1268 }
 0x978   : > { %v1270_v47 = vmul.f32 0.032258064, %v1269_v46 }
 0x97a   : > { %1560 = vrsqrt.f32 %v1270_v47  ;;  %vm1280_vm9 = vcmp.eq.f32.partialorder %v1270_v47, inf  ;;  %v1283_v50 = vand.u32 2147483648, %v1270_v47  ;;  %vm1282_vm10 = vcmp.eq.f32.partialorder %v1270_v47, 0.0 }
 0x987   : > { %v1561_v48 = vpop.eup %1560 }
 0x988   : > { %v1279_v49 = vmul.f32 %v1561_v48, %v1270_v47 }
 0x98a   : > { %v1281_v51 = vsel %vm1280_vm9, %v1270_v47, %v1279_v49 }
 0x98b   : > { %v1284_v52 = vsel %vm1282_vm10, %v1283_v50, %v1281_v51 }
 0x98c   : > { %v1285_v53 = vadd.f32 1e-06, %v1284_v52 }
 0x98e   : > { %1562 = vrcp.f32 %v1285_v53 }
 0x99b   : > { %v1563_v56 = vpop.eup %1562 }
 0x99c   : > { %v1287_v58 = vmul.f32 %v1563_v56, %v1277_v55 }
 0x99e   : > { %v1294_v59 = vadd.f32 %v1389_v57, %v1287_v58 }
 0x9a0   : > { %v1295_v60 = vpack.c.bf16 %v1294_v59, %v1294_v59 }
 0x9a2   : > { %1297 = vst.msk [vmem:[%s462_s21] sm:$0xf] %vm1296_vm11, %v1295_v60 }
 0x9a3 PF: > { %s24_s29 = sadd.s32 1, %s1570_s29  }
 0x9a4   : > { %p21_p4 = scmp.ge.s32.totalorder %s24_s29, 4  }
 0x9a6   :  { %23 = sbr.rel (!%p21_p4) target bundleno = 1 (0x1), region = 107 }

// kernel: _lambda_.10
= control target key start
LH: loop header
LB: loop body
LE: loop exit
PB: predicated region body
PF: predicated region fallthrough
CT: control target
= control target key end

     0   :  { %s3269_s0 = inlined_call_operand.vmem [shape: bf16[2,8,32], index: 0, kind: input, shape index: {}]   ;;  %s3270_s1 = inlined_call_operand.vmem [shape: bf16[2,8,32], index: 1, kind: input, shape index: {}]   ;;  %s3271_s2 = inlined_call_operand.vmem [shape: f32[2,1,8], index: 2, kind: input, shape index: {}]   ;;  %s3272_s3 = inlined_call_operand.vmem [shape: f32[2,1,8], index: 3, kind: input, shape index: {}]   ;;  %s3273_s4 = inlined_call_operand.vmem [shape: bf16[32,96], index: 4, kind: input, shape index: {}]   ;;  %s3274_s5 = inlined_call_operand.vmem [shape: f32[1,96], index: 5, kind: input, shape index: {}]   ;;  %s3275_s6 = inlined_call_operand.vmem [shape: bf16[32,32], index: 6, kind: input, shape index: {}]   ;;  %s3276_s7 = inlined_call_operand.vmem [shape: f32[1,32], index: 7, kind: input, shape index: {}]   ;;  %s3277_s8 = inlined_call_operand.vmem [shape: f32[1,32], index: 8, kind: input, shape index: {}]   ;;  %s3278_s9 = inlined_call_operand.vmem [shape: f32[1,32], index: 9, kind: input, shape index: {}]   ;;  %s3279_s10 = inlined_call_operand.vmem [shape: bf16[32,32], index: 10, kind: input, shape index: {}]   ;;  %s3280_s11 = inlined_call_operand.vmem [shape: f32[1,32], index: 11, kind: input, shape index: {}]   ;;  %s3281_s12 = inlined_call_operand.vmem [shape: bf16[32,64], index: 12, kind: input, shape index: {}]   ;;  %s3282_s13 = inlined_call_operand.vmem [shape: f32[1,64], index: 13, kind: input, shape index: {}]   ;;  %s3283_s14 = inlined_call_operand.vmem [shape: bf16[32,32], index: 14, kind: input, shape index: {}]   ;;  %s3284_s15 = inlined_call_operand.vmem [shape: f32[1,32], index: 15, kind: input, shape index: {}]   ;;  %s3285_s16 = inlined_call_operand.vmem [shape: f32[1,32], index: 16, kind: input, shape index: {}]   ;;  %s3286_s17 = inlined_call_operand.vmem [shape: f32[1,32], index: 17, kind: input, shape index: {}]   ;;  %s3287_s18 = inlined_call_operand.vmem [shape: bf16[32,64], index: 18, kind: input, shape index: {}]   ;;  %s3288_s19 = inlined_call_operand.vmem [shape: f32[1,64], index: 19, kind: input, shape index: {}]   ;;  %s3289_s20 = inlined_call_operand.vmem [shape: bf16[64,32], index: 20, kind: input, shape index: {}]   ;;  %s3290_s21 = inlined_call_operand.vmem [shape: f32[1,32], index: 21, kind: input, shape index: {}]   ;;  %s3291_s22 = inlined_call_operand.vmem [shape: f32[1,32], index: 22, kind: input, shape index: {}]   ;;  %s3292_s23 = inlined_call_operand.hbm [shape: f32[1,32], index: 23, kind: input, shape index: {}]   ;;  %s3293_s24 = inlined_call_operand.vmem [shape: bf16[2,8,32], index: 24, kind: output, shape index: {}]  }
   0x1   :  { %3309 = sst [smem:[#allocation5_spill]] %s3269_s0 }
   0x2   :  { %3310 = sst [smem:[#allocation6_spill]] %s3270_s1 }
   0x3   :  { %3311 = sst [smem:[#allocation7_spill]] %s3271_s2 }
   0x4   :  { %3312 = sst [smem:[#allocation8_spill]] %s3272_s3 }
   0x5   :  { %3313 = sst [smem:[#allocation9_spill]] %s3273_s4 }
   0x6   :  { %3314 = sst [smem:[#allocation10_spill]] %s3274_s5 }
   0x7   :  { %3315 = sst [smem:[#allocation11_spill]] %s3275_s6 }
   0x8   :  { %3316 = sst [smem:[#allocation12_spill]] %s3276_s7 }
   0x9   :  { %3317 = sst [smem:[#allocation13_spill]] %s3277_s8 }
   0xa   :  { %29 = vsyncpa [#allocation3], 0  ;;  %s2930_s5 = smov 0  }
   0xb LB: > { %s2936_s26 = sadd.s32 4294967295, %s2786_s5   ;;  %p2380_p0 = scmp.ge.s32.totalorder %s2786_s5, 1  ;;  %s2786_s5 = sphi %s2930_s5, %s35_s5  }
   0xc   : > { %p580_p1 = scmp.lt.s32.totalorder %s2786_s5, 3  ;;  %p2663_p3 = scmp.eq.s32.totalorder %s2936_s26, 0 }
   0xd   : > { %s2788_s28 = smov [#allocation2]  }
   0xe   : > { %p2940_p2 = pnand %p2380_p0, %p580_p1  ;;  %s656_s6 = sshll.u32 %s2788_s28, 4  ;;  %s657_s6 = int_to_ptr.vmem [resolvable:$true] %s656_s6 }
   0xf   : > { %s2761_s2 = scalar_lea.vmem %s657_s6, 16  ;;  %s2768_s29 = scalar_lea.vmem %s657_s6, 32 }
  0x10   : > { %p2659_p4 = pneg %p2940_p2  ;;  %p2762_p7 = scmp.ne.s32.totalorder %s657_s6, %s2761_s2 }
  0x11   : > { %p2769_p10 = scmp.lt.s32.totalorder %s657_s6, %s657_s6  ;;  %p2770_p11 = scmp.lt.s32.totalorder %s2768_s29, %s2761_s2 }
  0x12   : > { %p2660_p5 = pnand %p2663_p3, %p2659_p4 }
  0x13   : > { %p2771_p12 = por %p2770_p11, %p2769_p10 }
  0x14   : > { %p2752_p6 = pneg %p2660_p5 }
  0x16   : > { %p2764_p8 = pnand %p2762_p7, %p2752_p6 }
  0x18   : > { %p2765_p9 = pneg %p2764_p8 }
  0x1a   : > { %p2772_p13 = pnand %p2771_p12, %p2765_p9 }
  0x1c   : > { %2775 = shalt.err (!%p2772_p13)
}
  0x1d   : > { %2662 = dma.hbm_to_vmem [thread:$0]  (!%p2660_p5), %s3292_s23, 16, %s657_s6, [#allocation3]  }
  0x1e   : > { %683 = sbr.rel (%p2940_p2) target bundleno = 4174 (0x104e), region = 116 }
  0x23   : > { %2781 = dma.done.wait (%p2663_p3), [#allocation3], 16  }
  0x24   : > { %2783 = vsyncadd (%p2663_p3), [#allocation3], 4294967280  ;;  %p751_p0 = scmp.lt.s32.totalorder %s2936_s26, 1  ;;  %v2789_v0 = vmov 0.0   ;;  %vm2790_vm0 = vmmov 0   ;;  %s3319_s4 = sld [smem:[#allocation9_spill]] }
  0x25   : > { %2499 = vmatprep.subr.bf16.mxu1 %v2789_v0  ;;  %2503 = vmatprep.mubr.msk.bf16.mxu1 %vm2790_vm0, %v2789_v0  ;;  %s3320_s28 = sld [smem:[#allocation5_spill]]  ;;  %vm794_vm1 = vcmask 261120   ;;  %s3307_s25 = smov 120   ;;  %vm853_vm2 = vcmask 64512   ;;  %vm917_vm3 = vcmask 1043456   ;;  %vm1304_vm4 = vcmask 130048  }
  0x26   : > { %s752_s30 = scalar_select %p751_p0, %s2936_s26, 1  ;;  %2513 = vmatprep.subr.bf16.mxu0 %v2789_v0  ;;  %2515 = vmatprep.mubr.msk.bf16.mxu0 %vm2790_vm0, %v2789_v0  ;;  %vm1306_vm5 = vcmask 195584   ;;  %vm2215_vm10 = vcmask 523264   ;;  %vm2297_vm13 = vcmask 257024  }
  0x27   : > { %s3302_s8 = smov 96   ;;  %s3298_s1 = smov 80  }
  0x28   : > { %s2966_s3 = sshll.u32 %s752_s30, 2  ;;  %s3321_s30 = sld [smem:[#allocation10_spill]] }
  0x29   : > { %s3296_s27 = smov 88   ;;  %s3303_s2 = smov 104  }
  0x2a   : > { %v2690_v1 = vld [vmem:[%s3319_s4 + $0x8] sm:$0xff]   ;;  %v2691_v2 = vld [vmem:[%s3319_s4] sm:$0xff]   ;;  %s3322_s7 = sld [smem:[#allocation7_spill]]  ;;  %s2798_s29 = smov 56  }
  0x2b   : > { %s754_s6 = scalar_lea.vmem %s3320_s28, %s2966_s3  ;;  %2500 = vmatpush3.bf16.msra.mxu1 %v2690_v1  ;;  %s3297_s28 = smov 72  }
  0x2c   : > { %2501 = vmatprep.subr.bf16.mxu1 %v2789_v0  ;;  %v2979_v3 = vld [vmem:[%s754_s6] sm:$0xf]  ;;  %s3305_s6 = smov 112   ;;  %s2799_s0 = smov 64  }
  0x2e   : > { %v2388_v4 = vld [vmem:[%s3321_s30] ss:$0 sm:$0xff] }
  0x2f   : > { %2502 = vmatpush3.bf16.msra.mxu1 %v2691_v2 }
  0x30   : > { %2507 = vmatprep.subr.bf16.mxu1 %v2789_v0  ;;  %s767_s30 = scalar_lea.vmem %s3322_s7, %s2936_s26  ;;  %s2800_s7 = smov 40  }
  0x31   : > { %v2392_v22 = vld [vmem:[%s767_s30] ss:$0 sm:$0xff]  ;;  %s2801_s30 = smov 48  }
  0x32   : > { %2504 = vmatmul.mubr.msk.bf16.vlgmr.msra.gmra.mxu1 %vm794_vm1, %v2979_v3 }
  0x33   : > { %2509 = vmatprep.mubr.msk.bf16.mxu1 %vm2790_vm0, %v2789_v0 }
  0xf2   : > { %v832_v5 = vpop.f32.mrf.mxu1 }
  0xf3   : > { %v833_v6 = vadd.f32 %v2388_v4, %v832_v5 }
  0xf4   : > { %v2505_v7 = vpop.f32.mrf.mxu1 }
  0xf5   : > { %v2989_v8 = vpack.c.bf16 %v833_v6, %v833_v6 }
  0xf6   : > { %v835_v9 = vpop.f32.mrf.mxu1 }
  0xf7   : > { %961 = vrot.lane.b32.xlu1 %v2989_v8, %s3307_s25  ;;  %851 = vrot.lane.b32.xlu0 %v2989_v8, %s3302_s8  ;;  %s3325_s8 = sld [smem:[#allocation6_spill]] }
  0xf8   : > { %v2506_v10 = vpop.f32.mrf.mxu1 }
  0xfb   : > { %1073 = vrot.lane.b32.xlu1 %v2989_v8, %s3298_s1  ;;  %963 = vrot.lane.b32.xlu0 %v2989_v8, %s3296_s27  ;;  %s3300_s1 = smov 16   ;;  %s3328_s27 = smov 112  }
  0xff   : > { %1183 = vrot.lane.b32.xlu1 %v2989_v8, %s3297_s28  ;;  %1071 = vrot.lane.b32.xlu0 %v2989_v8, %s3305_s6  ;;  %s3329_s28 = smov 104  }
 0x103   : > { %1181 = vrot.lane.b32.xlu0 %v2989_v8, %s3303_s2  ;;  %s758_s2 = scalar_lea.vmem %s3325_s8, %s2966_s3  ;;  %s3335_s8 = smov 8  }
 0x169   : > { %v852_v11 = vpop.permute.xlu0 %851  ;;  %v962_v14 = vpop.permute.xlu1 %961 }
 0x16a   : > { %v858_v12 = vsel %vm853_vm2, %v852_v11, 0 }
 0x16b   : > { %2508 = vmatpush3.bf16.xpose.msra.mxu1 %v858_v12 }
 0x16c   : > { %2519 = vmatprep.subr.bf16.mxu1 %v2789_v0 }
 0x16d   : > { %v964_v13 = vpop.permute.xlu0 %963  ;;  %v1074_v16 = vpop.permute.xlu1 %1073 }
 0x16e   : > { %v969_v15 = vsel %vm853_vm2, %v964_v13, 0  ;;  %v1079_v17 = vsel %vm853_vm2, %v1074_v16, 0 }
 0x171   : > { %v1184_v18 = vpop.permute.xlu1 %1183  ;;  %v1072_v19 = vpop.permute.xlu0 %1071 }
 0x172   : > { %2510 = vmatmul.mubr.msk.bf16.vlgmr.msra.gmra.mxu1 %vm853_vm2, %v2989_v8  ;;  %v1189_v20 = vsel %vm853_vm2, %v1184_v18, 0 }
 0x173   : > { %2520 = vmatpush3.bf16.xpose.msra.mxu1 %v969_v15  ;;  %2521 = vmatprep.mubr.msk.bf16.mxu1 %vm2790_vm0, %v2789_v0 }
 0x174   : > { %2531 = vmatprep.subr.bf16.mxu1 %v2789_v0 }
 0x175   : > { %v1182_v21 = vpop.permute.xlu0 %1181 }
 0x17a   : > { %2522 = vmatmul.mubr.msk.bf16.vlgmr.msra.gmra.mxu1 %vm853_vm2, %v962_v14 }
 0x17b   : > { %2532 = vmatpush3.bf16.xpose.msra.mxu1 %v1079_v17  ;;  %2533 = vmatprep.mubr.msk.bf16.mxu1 %vm2790_vm0, %v2789_v0 }
 0x17c   : > { %2543 = vmatprep.subr.bf16.mxu1 %v2789_v0 }
 0x182   : > { %2534 = vmatmul.mubr.msk.bf16.vlgmr.msra.gmra.mxu1 %vm853_vm2, %v1072_v19 }
 0x183   : > { %2544 = vmatpush3.bf16.xpose.msra.mxu1 %v1189_v20  ;;  %2545 = vmatprep.mubr.msk.bf16.mxu1 %vm2790_vm0, %v2789_v0 }
 0x184   : > { %2555 = vmatprep.subr.bf16.mxu1 %v2789_v0 }
 0x18a   : > { %2546 = vmatmul.mubr.msk.bf16.vlgmr.msra.gmra.mxu1 %vm853_vm2, %v1182_v21 }
 0x18b   : > { %2559 = vmatprep.mubr.msk.bf16.mxu1 %vm2790_vm0, %v2789_v0 }
 0x232   : > { %v894_v23 = vpop.f32.mrf.mxu1 }
 0x233   : > { %v895_v24 = vadd.f32 %v2392_v22, %v894_v23 }
 0x234   : > { %v2511_v25 = vpop.f32.mrf.mxu1 }
 0x235   : > { %v900_v26 = vsel %vm853_vm2, %v895_v24, -inf }
 0x236   : > { %901 = vmax.xlane.f32.xlu1 %v900_v26  ;;  %v897_v27 = vpop.f32.mrf.mxu1 }
 0x238   : > { %v2512_v28 = vpop.f32.mrf.mxu1 }
 0x23a   : > { %v1005_v29 = vpop.f32.mrf.mxu1 }
 0x23b   : > { %v1006_v30 = vadd.f32 %v2392_v22, %v1005_v29 }
 0x23c   : > { %v2523_v31 = vpop.f32.mrf.mxu1 }
 0x23d   : > { %v1011_v32 = vsel %vm853_vm2, %v1006_v30, -inf }
 0x23e   : > { %1012 = vmax.xlane.f32.xlu0 %v1011_v32  ;;  %v1008_v33 = vpop.f32.mrf.mxu1 }
 0x240   : > { %v2524_v34 = vpop.f32.mrf.mxu1 }
 0x242   : > { %v1115_v35 = vpop.f32.mrf.mxu1 }
 0x243   : > { %v1116_v36 = vadd.f32 %v2392_v22, %v1115_v35 }
 0x244   : > { %v2535_v37 = vpop.f32.mrf.mxu1 }
 0x245   : > { %v1121_v38 = vsel %vm853_vm2, %v1116_v36, -inf }
 0x246   : > { %1122 = vmax.xlane.f32.xlu0 %v1121_v38  ;;  %v1118_v39 = vpop.f32.mrf.mxu1 }
 0x248   : > { %v2536_v40 = vpop.f32.mrf.mxu1 }
 0x24a   : > { %v1225_v41 = vpop.f32.mrf.mxu1 }
 0x24b   : > { %v1226_v42 = vadd.f32 %v2392_v22, %v1225_v41 }
 0x24c   : > { %v2547_v43 = vpop.f32.mrf.mxu1 }
 0x24d   : > { %v1231_v44 = vsel %vm853_vm2, %v1226_v42, -inf }
 0x24e   : > { %1232 = vmax.xlane.f32.xlu1 %v1231_v44  ;;  %v1228_v45 = vpop.f32.mrf.mxu1 }
 0x250   : > { %v2548_v46 = vpop.f32.mrf.mxu1 }
 0x2bf   : > { %v902_v47 = vpop.xlane.xlu1 %901 }
 0x2c0   : > { %v903_v48 = vsub.f32 %v895_v24, %v902_v47 }
 0x2c2   : > { %v904_v49 = vmul.f32 1.442695, %v903_v48 }
 0x2c4   : > { %2706 = vpow2.f32 %v904_v49 }
 0x2c7   : > { %v1013_v50 = vpop.xlane.xlu0 %1012 }
 0x2c8   : > { %v1014_v51 = vsub.f32 %v1006_v30, %v1013_v50 }
 0x2ca   : > { %v1015_v52 = vmul.f32 1.442695, %v1014_v51 }
 0x2cc   : > { %2708 = vpow2.f32 %v1015_v52 }
 0x2cf   : > { %v1123_v53 = vpop.xlane.xlu0 %1122 }
 0x2d0   : > { %v1124_v54 = vsub.f32 %v1116_v36, %v1123_v53 }
 0x2d1   : > { %v2707_v55 = vpop.eup %2706 }
 0x2d2   : > { %v1125_v56 = vmul.f32 1.442695, %v1124_v54  ;;  %v906_v57 = vsel %vm853_vm2, %v2707_v55, 0.0 }
 0x2d3   : > { %907 = vadd.xlane.f32.xlu0 %v906_v57 }
 0x2d4   : > { %2710 = vpow2.f32 %v1125_v56 }
 0x2d7   : > { %v1233_v62 = vpop.xlane.xlu1 %1232 }
 0x2d8   : > { %v1234_v63 = vsub.f32 %v1226_v42, %v1233_v62 }
 0x2d9   : > { %v2709_v58 = vpop.eup %2708 }
 0x2da   : > { %v1017_v59 = vsel %vm853_vm2, %v2709_v58, 0.0  ;;  %v1235_v1 = vmul.f32 1.442695, %v1234_v63 }
 0x2db   : > { %1018 = vadd.xlane.f32.xlu1 %v1017_v59 }
 0x2dc   : > { %2712 = vpow2.f32 %v1235_v1 }
 0x2e1   : > { %v2711_v60 = vpop.eup %2710 }
 0x2e2   : > { %v1127_v61 = vsel %vm853_vm2, %v2711_v60, 0.0 }
 0x2e3   : > { %1128 = vadd.xlane.f32.xlu0 %v1127_v61 }
 0x2e9   : > { %v2713_v2 = vpop.eup %2712 }
 0x2ea   : > { %v1237_v4 = vsel %vm853_vm2, %v2713_v2, 0.0 }
 0x2ec   : > { %1023 = vrot.lane.b32.xlu1 %v2989_v8, %s2798_s29  ;;  %s3301_s29 = smov 8  }
 0x2f9   : > { %912 = vrot.lane.b32.xlu0 %v2989_v8, %s2799_s0  ;;  %s3299_s0 = smov 24  }
 0x2fd   : > { %1243 = vrot.lane.b32.xlu0 %v2989_v8, %s2800_s7  ;;  %s3324_s7 = sld [smem:[#allocation12_spill]] }
 0x303   : > { %v2401_v54 = vld [vmem:[%s3324_s7] ss:$0 sm:$0xff]  ;;  %s3327_s7 = smov 120  }
 0x310   : > { %1238 = vadd.xlane.f32.xlu1 %v1237_v4 }
 0x321   : > { %1133 = vrot.lane.b32.xlu1 %v2989_v8, %s2801_s30  ;;  %s3323_s30 = sld [smem:[#allocation11_spill]] }
 0x327   : > { %v2692_v37 = vld [vmem:[%s3323_s30 + $0x8] sm:$0xff]   ;;  %v2693_v38 = vld [vmem:[%s3323_s30] sm:$0xff]  }
 0x328   : > { %2556 = vmatpush3.bf16.msra.mxu1 %v2692_v37 }
 0x329   : > { %2557 = vmatprep.subr.bf16.mxu1 %v2789_v0 }
 0x32c   : > { %2558 = vmatpush3.bf16.msra.mxu1 %v2693_v38 }
 0x32d   : > { %2571 = vmatprep.subr.bf16.mxu1 %v2789_v0 }
 0x35c   : > { %v908_v5 = vpop.xlane.xlu0 %907 }
 0x35d   : > { %2714 = vrcp.f32 %v908_v5 }
 0x364   : > { %v1019_v6 = vpop.xlane.xlu1 %1018 }
 0x365   : > { %2716 = vrcp.f32 %v1019_v6  ;;  %v2695_v6 = vld [vmem:[%s3281_s12] sm:$0xff]  }
 0x368   : > { %v1024_v13 = vpop.permute.xlu1 %1023 }
 0x369   : > { %v1029_v16 = vsel %vm917_vm3, %v1024_v13, 0 }
 0x36a   : > { %v2715_v7 = vpop.eup %2714 }
 0x36b   : > { %v910_v10 = vmul.f32 %v2715_v7, %v2707_v55  ;;  %v766_v55 = vunpack.c.l.bf16 %v2979_v3  ;;  %v2694_v3 = vld [vmem:[%s3281_s12 + $0x8] sm:$0xff]  }
 0x36c   : > { %v1129_v9 = vpop.xlane.xlu0 %1128  ;;  %v2696_v7 = vld [vmem:[%s3279_s10 + $0x8] sm:$0xff]  }
 0x36d   : > { %v911_v14 = vpack.c.bf16 %v910_v10, %v910_v10  ;;  %2718 = vrcp.f32 %v1129_v9  ;;  %v765_v9 = vld [vmem:[%s758_s2] sm:$0xf]  ;;  %s3330_s2 = sld [smem:[#allocation8_spill]] }
 0x36e   : > { %v2697_v10 = vld [vmem:[%s3279_s10] sm:$0xff]  }
 0x370   : > { %v913_v11 = vpop.permute.xlu0 %912 }
 0x371   : > { %v919_v12 = vsel %vm917_vm3, %v913_v11, 0 }
 0x372   : > { %2514 = vmatpush3.bf16.msra.mxu0 %v919_v12  ;;  %v2717_v15 = vpop.eup %2716 }
 0x373   : > { %2525 = vmatprep.subr.bf16.mxu0 %v2789_v0  ;;  %v1021_v8 = vmul.f32 %v2717_v15, %v2709_v58 }
 0x374   : > { %v1244_v23 = vpop.permute.xlu0 %1243 }
 0x375   : > { %2516 = vmatmul.mubr.msk.bf16.vlgmr.msra.gmra.mxu0 %vm853_vm2, %v911_v14  ;;  %v1022_v17 = vpack.c.bf16 %v1021_v8, %v1021_v8  ;;  %v1249_v25 = vsel %vm917_vm3, %v1244_v23, 0 }
 0x376   : > { %2526 = vmatpush3.bf16.msra.mxu0 %v1029_v16  ;;  %2527 = vmatprep.mubr.msk.bf16.mxu0 %vm2790_vm0, %v2789_v0 }
 0x377   : > { %2537 = vmatprep.subr.bf16.mxu0 %v2789_v0 }
 0x37a   : > { %v2719_v18 = vpop.eup %2718 }
 0x37b   : > { %v1131_v20 = vmul.f32 %v2719_v18, %v2711_v60 }
 0x37d   : > { %2528 = vmatmul.mubr.msk.bf16.vlgmr.msra.gmra.mxu0 %vm853_vm2, %v1022_v17  ;;  %v1132_v24 = vpack.c.bf16 %v1131_v20, %v1131_v20 }
 0x37e   : > { %2539 = vmatprep.mubr.msk.bf16.mxu0 %vm2790_vm0, %v2789_v0 }
 0x399   : > { %v1239_v19 = vpop.xlane.xlu1 %1238 }
 0x39a   : > { %2720 = vrcp.f32 %v1239_v19 }
 0x39d   : > { %v1134_v21 = vpop.permute.xlu1 %1133 }
 0x39e   : > { %v1139_v22 = vsel %vm917_vm3, %v1134_v21, 0  ;;  %v2406_v21 = vld [vmem:[%s3278_s9] ss:$0 sm:$0xff] }
 0x39f   : > { %2538 = vmatpush3.bf16.msra.mxu0 %v1139_v22 }
 0x3a0   : > { %2549 = vmatprep.subr.bf16.mxu0 %v2789_v0 }
 0x3a2   : > { %2540 = vmatmul.mubr.msk.bf16.vlgmr.msra.gmra.mxu0 %vm853_vm2, %v1132_v24 }
 0x3a3   : > { %2550 = vmatpush3.bf16.msra.mxu0 %v1249_v25  ;;  %2551 = vmatprep.mubr.msk.bf16.mxu0 %vm2790_vm0, %v2789_v0  ;;  %v2411_v25 = vld [vmem:[%s3282_s13] ss:$0 sm:$0xff] }
 0x3a4   : > { %2563 = vmatprep.subr.bf16.mxu0 %v2789_v0 }
 0x3a7   : > { %v2721_v26 = vpop.eup %2720 }
 0x3a8   : > { %v1241_v27 = vmul.f32 %v2721_v26, %v2713_v2 }
 0x3aa   : > { %v1242_v28 = vpack.c.bf16 %v1241_v27, %v1241_v27 }
 0x3ac   : > { %2552 = vmatmul.mubr.msk.bf16.vlgmr.msra.gmra.mxu0 %vm853_vm2, %v1242_v28 }
 0x3ad   : > { %2567 = vmatprep.mubr.msk.bf16.mxu0 %vm2790_vm0, %v2789_v0  ;;  %2564 = vmatpush3.bf16.msra.mxu0 %v2696_v7 }
 0x3ae   : > { %2565 = vmatprep.subr.bf16.mxu0 %v2789_v0 }
 0x3b1   : > { %2566 = vmatpush3.bf16.msra.mxu0 %v2697_v10 }
 0x3b2   : > { %2579 = vmatprep.subr.bf16.mxu0 %v2789_v0 }
 0x435   : > { %v955_v29 = vpop.f32.mrf.mxu0 }
 0x437   : > { %v2517_v30 = vpop.f32.mrf.mxu0 }
 0x439   : > { %v958_v31 = vpop.f32.mrf.mxu0 }
 0x43b   : > { %v2518_v32 = vpop.f32.mrf.mxu0 }
 0x43d   : > { %v1065_v33 = vpop.f32.mrf.mxu0 }
 0x43e   : > { %1292 = vrot.lane.b32.xlu1 %v1065_v33, %s3301_s29  ;;  %v2407_v33 = vld [vmem:[%s3280_s11] ss:$0 sm:$0xff]  ;;  %s769_s29 = scalar_lea.vmem %s3330_s2, %s2936_s26  ;;  %s3331_s26 = smov 96  }
 0x43f   : > { %v2529_v34 = vpop.f32.mrf.mxu0  ;;  %s3336_s2 = smov 16  }
 0x441   : > { %v1068_v35 = vpop.f32.mrf.mxu0 }
 0x443   : > { %v2530_v36 = vpop.f32.mrf.mxu0 }
 0x462   : > { %v1175_v39 = vpop.f32.mrf.mxu0 }
 0x463   : > { %1296 = vrot.lane.b32.xlu0 %v1175_v39, %s3300_s1  ;;  %s3326_s1 = sld [smem:[#allocation13_spill]] }
 0x464   : > { %v2541_v40 = vpop.f32.mrf.mxu0 }
 0x466   : > { %v1178_v41 = vpop.f32.mrf.mxu0 }
 0x468   : > { %v2542_v42 = vpop.f32.mrf.mxu0 }
 0x469   : > { %v2405_v18 = vld [vmem:[%s3326_s1] ss:$0 sm:$0xff] }
 0x46c   : > { %v1285_v43 = vpop.f32.mrf.mxu0 }
 0x46d   : > { %1300 = vrot.lane.b32.xlu1 %v1285_v43, %s3299_s0  ;;  %s3332_s0 = smov 80  }
 0x46e   : > { %v2553_v44 = vpop.f32.mrf.mxu0 }
 0x470   : > { %v1288_v45 = vpop.f32.mrf.mxu0 }
 0x472   : > { %v2554_v46 = vpop.f32.mrf.mxu0 }
 0x4b0   : > { %v1293_v47 = vpop.permute.xlu1 %1292 }
 0x4b1   : > { %v1303_v49 = vsel %vm853_vm2, %v955_v29, %v1293_v47 }
 0x4d5   : > { %v1297_v48 = vpop.permute.xlu0 %1296 }
 0x4d6   : > { %v1305_v50 = vsel %vm1304_vm4, %v1303_v49, %v1297_v48  ;;  %v2415_v49 = vld [vmem:[%s769_s29] ss:$0 sm:$0xff]  ;;  %s3337_s29 = smov 24  }
 0x4df   : > { %v1301_v51 = vpop.permute.xlu1 %1300 }
 0x4e0   : > { %v1307_v52 = vsel %vm1306_vm5, %v1305_v50, %v1301_v51 }
 0x4e1   : > { %v1308_v53 = vpack.c.bf16 %v1307_v52, %v1307_v52 }
 0x4e3   : > { %2560 = vmatmul.mubr.msk.bf16.vlgmr.msra.gmra.mxu1 %vm794_vm1, %v1308_v53 }
 0x4e4   : > { %2575 = vmatprep.mubr.msk.bf16.mxu1 %vm2790_vm0, %v2789_v0  ;;  %2572 = vmatpush3.bf16.msra.mxu1 %v2694_v3 }
 0x4e5   : > { %2573 = vmatprep.subr.bf16.mxu1 %v2789_v0 }
 0x4e8   : > { %2574 = vmatpush3.bf16.msra.mxu1 %v2695_v6 }
 0x4e9   : > { %2585 = vmatprep.subr.bf16.mxu1 %v2789_v0 }
 0x4eb   : > { %2576 = vmatmul.mubr.msk.bf16.vlgmr.msra.gmra.mxu1 %vm794_vm1, %v765_v9 }
 0x4ec   : > { %2587 = vmatprep.mubr.msk.bf16.mxu1 %vm2790_vm0, %v2789_v0 }
 0x5a3   : > { %v1364_v56 = vpop.f32.mrf.mxu1 }
 0x5a4   : > { %v1365_v57 = vadd.f32 %v2401_v54, %v1364_v56 }
 0x5a5   : > { %v2561_v58 = vpop.f32.mrf.mxu1 }
 0x5a6   : > { %v1370_v59 = vadd.f32 %v1365_v57, %v766_v55 }
 0x5a7   : > { %v1367_v60 = vpop.f32.mrf.mxu1 }
 0x5a8   : > { %v1373_v61 = vsel %vm794_vm1, %v1370_v59, 0.0 }
 0x5a9   : > { %v2562_v62 = vpop.f32.mrf.mxu1  ;;  %1374 = vadd.xlane.f32.xlu0 %v1373_v61 }
 0x5ab   : > { %v1537_v26 = vpop.f32.mrf.mxu1 }
 0x5ac   : > { %v1538_v27 = vadd.f32 %v2411_v25, %v1537_v26 }
 0x5ad   : > { %v2577_v28 = vpop.f32.mrf.mxu1 }
 0x5ae   : > { %v3124_v29 = vpack.c.bf16 %v1538_v27, %v1538_v27 }
 0x5af   : > { %v1540_v30 = vpop.f32.mrf.mxu1 }
 0x5b0   : > { %v1559_v31 = vsel %vm853_vm2, %v3124_v29, 0 }
 0x5b1   : > { %v2578_v32 = vpop.f32.mrf.mxu1 }
 0x5bf   : > { %1665 = vrot.lane.b32.xlu0 %v3124_v29, %s3327_s7 }
 0x5c3   : > { %1775 = vrot.lane.b32.xlu0 %v3124_v29, %s3328_s27 }
 0x5c7   : > { %1885 = vrot.lane.b32.xlu0 %v3124_v29, %s3329_s28 }
 0x632   : > { %v1375_v63 = vpop.xlane.xlu0 %1374 }
 0x633   : > { %v1377_v1 = vmul.f32 0.03125, %v1375_v63 }
 0x635   : > { %v1378_v2 = vsub.f32 %v1370_v59, %v1377_v1 }
 0x636   : > { %v1666_v37 = vpop.permute.xlu0 %1665 }
 0x637   : > { %v1379_v4 = vmul.f32 %v1378_v2, %v1378_v2  ;;  %v1391_v19 = vmul.f32 %v2405_v18, %v1378_v2  ;;  %v1671_v39 = vsel %vm853_vm2, %v1666_v37, 0 }
 0x639   : > { %v1380_v5 = vsel %vm794_vm1, %v1379_v4, 0.0 }
 0x63a   : > { %1381 = vadd.xlane.f32.xlu1 %v1380_v5  ;;  %v1776_v42 = vpop.permute.xlu0 %1775 }
 0x63b   : > { %v1781_v44 = vsel %vm853_vm2, %v1776_v42, 0 }
 0x63e   : > { %v1886_v45 = vpop.permute.xlu0 %1885 }
 0x63f   : > { %v1891_v47 = vsel %vm853_vm2, %v1886_v45, 0 }
 0x6c3   : > { %v1382_v11 = vpop.xlane.xlu1 %1381 }
 0x6c4   : > { %v1384_v12 = vmul.f32 0.032258064, %v1382_v11 }
 0x6c6   : > { %2722 = vrsqrt.f32 %v1384_v12  ;;  %vm1394_vm6 = vcmp.eq.f32.partialorder %v1384_v12, inf  ;;  %v1397_v15 = vand.u32 2147483648, %v1384_v12  ;;  %vm1396_vm7 = vcmp.eq.f32.partialorder %v1384_v12, 0.0 }
 0x6d3   : > { %v2723_v13 = vpop.eup %2722 }
 0x6d4   : > { %v1393_v14 = vmul.f32 %v2723_v13, %v1384_v12 }
 0x6d6   : > { %v1395_v16 = vsel %vm1394_vm6, %v1384_v12, %v1393_v14 }
 0x6d7   : > { %v1398_v8 = vsel %vm1396_vm7, %v1397_v15, %v1395_v16 }
 0x6d8   : > { %v1399_v17 = vadd.f32 1e-06, %v1398_v8 }
 0x6da   : > { %2724 = vrcp.f32 %v1399_v17 }
 0x6e7   : > { %v2725_v20 = vpop.eup %2724 }
 0x6e8   : > { %v1401_v22 = vmul.f32 %v2725_v20, %v1391_v19 }
 0x6ea   : > { %v3114_v23 = vadd.f32 %v2406_v21, %v1401_v22 }
 0x6ec   : > { %v1413_v24 = vpack.c.bf16 %v3114_v23, %v3114_v23 }
 0x6ee   : > { %2568 = vmatmul.mubr.msk.bf16.vlgmr.msra.gmra.mxu0 %vm794_vm1, %v1413_v24 }
 0x6ef   : > { %2581 = vmatprep.mubr.msk.bf16.mxu0 %vm2790_vm0, %v2789_v0  ;;  %2580 = vmatpush3.bf16.xpose.msra.mxu0 %v1559_v31 }
 0x6f0   : > { %2591 = vmatprep.subr.bf16.mxu0 %v2789_v0 }
 0x7ae   : > { %v1470_v34 = vpop.f32.mrf.mxu0 }
 0x7af   : > { %v1471_v35 = vadd.f32 %v2407_v33, %v1470_v34 }
 0x7b0   : > { %v2569_v36 = vpop.f32.mrf.mxu0 }
 0x7b1   : > { %v1476_v38 = vpack.c.bf16 %v1471_v35, %v1471_v35 }
 0x7b2   : > { %v1473_v40 = vpop.f32.mrf.mxu0 }
 0x7b3   : > { %1663 = vrot.lane.b32.xlu1 %v1476_v38, %s3327_s7  ;;  %2582 = vmatmul.mubr.msk.bf16.vlgmr.msra.gmra.mxu0 %vm853_vm2, %v1476_v38  ;;  %s3333_s7 = smov 72  }
 0x7b4   : > { %v2570_v41 = vpop.f32.mrf.mxu0  ;;  %2592 = vmatpush3.bf16.xpose.msra.mxu0 %v1671_v39  ;;  %2593 = vmatprep.mubr.msk.bf16.mxu0 %vm2790_vm0, %v2789_v0 }
 0x7b5   : > { %2603 = vmatprep.subr.bf16.mxu0 %v2789_v0 }
 0x7b7   : > { %1773 = vrot.lane.b32.xlu1 %v1476_v38, %s3328_s27  ;;  %s3334_s27 = smov 88  }
 0x7bb   : > { %1883 = vrot.lane.b32.xlu1 %v1476_v38, %s3329_s28  ;;  %s762_s28 = scalar_lea.vmem %s3293_s24, %s2966_s3 }
 0x825   : > { %v1664_v43 = vpop.permute.xlu1 %1663 }
 0x826   : > { %2594 = vmatmul.mubr.msk.bf16.vlgmr.msra.gmra.mxu0 %vm853_vm2, %v1664_v43 }
 0x827   : > { %2604 = vmatpush3.bf16.xpose.msra.mxu0 %v1781_v44  ;;  %2605 = vmatprep.mubr.msk.bf16.mxu0 %vm2790_vm0, %v2789_v0 }
 0x828   : > { %2615 = vmatprep.subr.bf16.mxu0 %v2789_v0 }
 0x829   : > { %v1774_v46 = vpop.permute.xlu1 %1773 }
 0x82d   : > { %v1884_v48 = vpop.permute.xlu1 %1883 }
 0x82e   : > { %2606 = vmatmul.mubr.msk.bf16.vlgmr.msra.gmra.mxu0 %vm853_vm2, %v1774_v46 }
 0x82f   : > { %2616 = vmatpush3.bf16.xpose.msra.mxu0 %v1891_v47  ;;  %2617 = vmatprep.mubr.msk.bf16.mxu0 %vm2790_vm0, %v2789_v0 }
 0x830   : > { %2627 = vmatprep.subr.bf16.mxu0 %v2789_v0 }
 0x836   : > { %2618 = vmatmul.mubr.msk.bf16.vlgmr.msra.gmra.mxu0 %vm853_vm2, %v1884_v48 }
 0x837   : > { %2631 = vmatprep.mubr.msk.bf16.mxu0 %vm2790_vm0, %v2789_v0 }
 0x873   : > { %v1595_v50 = vpop.f32.mrf.mxu0 }
 0x874   : > { %v1596_v51 = vadd.f32 %v2415_v49, %v1595_v50 }
 0x875   : > { %v2583_v52 = vpop.f32.mrf.mxu0 }
 0x876   : > { %v1601_v53 = vsel %vm853_vm2, %v1596_v51, -inf }
 0x877   : > { %1602 = vmax.xlane.f32.xlu0 %v1601_v53  ;;  %v1598_v54 = vpop.f32.mrf.mxu0 }
 0x879   : > { %v2584_v55 = vpop.f32.mrf.mxu0 }
 0x8e6   : > { %v1707_v56 = vpop.f32.mrf.mxu0 }
 0x8e7   : > { %v1708_v57 = vadd.f32 %v2415_v49, %v1707_v56 }
 0x8e8   : > { %v2595_v58 = vpop.f32.mrf.mxu0 }
 0x8e9   : > { %v1713_v59 = vsel %vm853_vm2, %v1708_v57, -inf }
 0x8ea   : > { %1714 = vmax.xlane.f32.xlu1 %v1713_v59  ;;  %v1710_v60 = vpop.f32.mrf.mxu0 }
 0x8eb   : > { %v2698_v60 = vld [vmem:[%s3283_s14 + $0x8] sm:$0xff]  }
 0x8ec   : > { %v2596_v61 = vpop.f32.mrf.mxu0  ;;  %2628 = vmatpush3.bf16.msra.mxu0 %v2698_v60 }
 0x8ed   : > { %2629 = vmatprep.subr.bf16.mxu0 %v2789_v0 }
 0x8ee   : > { %v1817_v62 = vpop.f32.mrf.mxu0 }
 0x8ef   : > { %v1818_v63 = vadd.f32 %v2415_v49, %v1817_v62 }
 0x8f0   : > { %v2607_v1 = vpop.f32.mrf.mxu0 }
 0x8f1   : > { %v1823_v2 = vsel %vm853_vm2, %v1818_v63, -inf }
 0x8f2   : > { %1824 = vmax.xlane.f32.xlu0 %v1823_v2  ;;  %v1820_v4 = vpop.f32.mrf.mxu0 }
 0x8f4   : > { %v2608_v5 = vpop.f32.mrf.mxu0 }
 0x8f6   : > { %v1927_v3 = vpop.f32.mrf.mxu0 }
 0x8f7   : > { %v1928_v6 = vadd.f32 %v2415_v49, %v1927_v3 }
 0x8f8   : > { %v2619_v7 = vpop.f32.mrf.mxu0 }
 0x8f9   : > { %v1933_v9 = vsel %vm853_vm2, %v1928_v6, -inf }
 0x8fa   : > { %1934 = vmax.xlane.f32.xlu0 %v1933_v9  ;;  %v1930_v10 = vpop.f32.mrf.mxu0 }
 0x8fc   : > { %v2620_v11 = vpop.f32.mrf.mxu0 }
 0x900   : > { %v1603_v12 = vpop.xlane.xlu0 %1602 }
 0x901   : > { %v1604_v13 = vsub.f32 %v1596_v51, %v1603_v12 }
 0x903   : > { %v1605_v14 = vmul.f32 1.442695, %v1604_v13 }
 0x905   : > { %2726 = vpow2.f32 %v1605_v14 }
 0x912   : > { %v2727_v15 = vpop.eup %2726 }
 0x913   : > { %v1607_v16 = vsel %vm853_vm2, %v2727_v15, 0.0 }
 0x914   : > { %1608 = vadd.xlane.f32.xlu1 %v1607_v16 }
 0x925   : > { %1614 = vrot.lane.b32.xlu1 %v3124_v29, %s3331_s26 }
 0x973   : > { %v1715_v8 = vpop.xlane.xlu1 %1714 }
 0x974   : > { %v1716_v17 = vsub.f32 %v1708_v57, %v1715_v8 }
 0x976   : > { %v1717_v18 = vmul.f32 1.442695, %v1716_v17 }
 0x978   : > { %2728 = vpow2.f32 %v1717_v18  ;;  %v2424_v18 = vld [vmem:[%s3284_s15] ss:$0 sm:$0xff] }
 0x97b   : > { %v1825_v19 = vpop.xlane.xlu0 %1824 }
 0x97c   : > { %v1826_v20 = vsub.f32 %v1818_v63, %v1825_v19  ;;  %v2699_v63 = vld [vmem:[%s3283_s14] sm:$0xff]  }
 0x97d   : > { %2630 = vmatpush3.bf16.msra.mxu0 %v2699_v63 }
 0x97e   : > { %v1827_v21 = vmul.f32 1.442695, %v1826_v20  ;;  %2643 = vmatprep.subr.bf16.mxu0 %v2789_v0 }
 0x980   : > { %2730 = vpow2.f32 %v1827_v21 }
 0x983   : > { %v1935_v22 = vpop.xlane.xlu0 %1934 }
 0x984   : > { %v1936_v24 = vsub.f32 %v1928_v6, %v1935_v22 }
 0x985   : > { %v2729_v25 = vpop.eup %2728 }
 0x986   : > { %v1937_v26 = vmul.f32 1.442695, %v1936_v24  ;;  %v1719_v27 = vsel %vm853_vm2, %v2729_v25, 0.0 }
 0x987   : > { %1720 = vadd.xlane.f32.xlu0 %v1719_v27 }
 0x988   : > { %2732 = vpow2.f32 %v1937_v26 }
 0x98d   : > { %v2731_v28 = vpop.eup %2730 }
 0x98e   : > { %v1829_v30 = vsel %vm853_vm2, %v2731_v28, 0.0 }
 0x98f   : > { %1830 = vadd.xlane.f32.xlu1 %v1829_v30 }
 0x995   : > { %v2733_v31 = vpop.eup %2732 }
 0x996   : > { %v1939_v32 = vsel %vm853_vm2, %v2733_v31, 0.0 }
 0x997   : > { %1940 = vadd.xlane.f32.xlu0 %v1939_v32 }
 0x99d   : > { %v1609_v33 = vpop.xlane.xlu1 %1608 }
 0x99e   : > { %2734 = vrcp.f32 %v1609_v33  ;;  %v2700_v33 = vld [vmem:[%s3287_s18 + $0x8] sm:$0xff]  }
 0x9a0   : > { %1835 = vrot.lane.b32.xlu1 %v3124_v29, %s3332_s0 }
 0x9a1   : > { %v1615_v34 = vpop.permute.xlu1 %1614 }
 0x9a2   : > { %v1620_v35 = vsel %vm917_vm3, %v1615_v34, 0  ;;  %v2702_v34 = vld [vmem:[%s3289_s20 + $0x18] sm:$0xff]  }
 0x9a3   : > { %2586 = vmatpush3.bf16.msra.mxu1 %v1620_v35  ;;  %v2703_v35 = vld [vmem:[%s3289_s20 + $0x10] sm:$0xff]  }
 0x9a4   : > { %1945 = vrot.lane.b32.xlu1 %v3124_v29, %s3333_s7  ;;  %2597 = vmatprep.subr.bf16.mxu1 %v2789_v0 }
 0x9ab   : > { %v2735_v36 = vpop.eup %2734 }
 0x9ac   : > { %v1611_v37 = vmul.f32 %v2735_v36, %v2727_v15 }
 0x9ad   : > { %1725 = vrot.lane.b32.xlu0 %v3124_v29, %s3334_s27 }
 0x9ae   : > { %v1612_v38 = vpack.c.bf16 %v1611_v37, %v1611_v37 }
 0x9b0   : > { %2588 = vmatmul.mubr.msk.bf16.vlgmr.msra.gmra.mxu1 %vm853_vm2, %v1612_v38 }
 0x9b1   : > { %2599 = vmatprep.mubr.msk.bf16.mxu1 %vm2790_vm0, %v2789_v0 }
 0xa10   : > { %v1721_v39 = vpop.xlane.xlu0 %1720 }
 0xa11   : > { %2736 = vrcp.f32 %v1721_v39 }
 0xa18   : > { %v1831_v40 = vpop.xlane.xlu1 %1830 }
 0xa19   : > { %2738 = vrcp.f32 %v1831_v40 }
 0xa1c   : > { %v1836_v46 = vpop.permute.xlu1 %1835 }
 0xa1d   : > { %v1841_v48 = vsel %vm917_vm3, %v1836_v46, 0 }
 0xa1e   : > { %v2737_v41 = vpop.eup %2736 }
 0xa1f   : > { %v1723_v43 = vmul.f32 %v2737_v41, %v2729_v25 }
 0xa20   : > { %v1941_v42 = vpop.xlane.xlu0 %1940  ;;  %v1946_v50 = vpop.permute.xlu1 %1945 }
 0xa21   : > { %2740 = vrcp.f32 %v1941_v42  ;;  %v1724_v29 = vpack.c.bf16 %v1723_v43, %v1723_v43  ;;  %v1951_v53 = vsel %vm917_vm3, %v1946_v50, 0  ;;  %v2704_v50 = vld [vmem:[%s3289_s20 + $0x8] sm:$0xff]  }
 0xa24   : > { %v1726_v44 = vpop.permute.xlu0 %1725 }
 0xa25   : > { %v1731_v45 = vsel %vm917_vm3, %v1726_v44, 0  ;;  %v2428_v44 = vld [vmem:[%s3285_s16] ss:$0 sm:$0xff] }
 0xa26   : > { %2598 = vmatpush3.bf16.msra.mxu1 %v1731_v45  ;;  %v2739_v47 = vpop.eup %2738 }
 0xa27   : > { %2609 = vmatprep.subr.bf16.mxu1 %v2789_v0  ;;  %v1833_v49 = vmul.f32 %v2739_v47, %v2731_v28 }
 0xa29   : > { %2600 = vmatmul.mubr.msk.bf16.vlgmr.msra.gmra.mxu1 %vm853_vm2, %v1724_v29  ;;  %v1834_v51 = vpack.c.bf16 %v1833_v49, %v1833_v49  ;;  %v2429_v29 = vld [vmem:[%s3286_s17] ss:$0 sm:$0xff] }
 0xa2a   : > { %2610 = vmatpush3.bf16.msra.mxu1 %v1841_v48  ;;  %2611 = vmatprep.mubr.msk.bf16.mxu1 %vm2790_vm0, %v2789_v0 }
 0xa2b   : > { %2621 = vmatprep.subr.bf16.mxu1 %v2789_v0 }
 0xa2e   : > { %v2741_v52 = vpop.eup %2740 }
 0xa2f   : > { %v1943_v54 = vmul.f32 %v2741_v52, %v2733_v31  ;;  %v2430_v52 = vld [vmem:[%s3288_s19] ss:$0 sm:$0xff] }
 0xa31   : > { %2612 = vmatmul.mubr.msk.bf16.vlgmr.msra.gmra.mxu1 %vm853_vm2, %v1834_v51  ;;  %v1944_v55 = vpack.c.bf16 %v1943_v54, %v1943_v54  ;;  %v2705_v51 = vld [vmem:[%s3289_s20] sm:$0xff]  }
 0xa32   : > { %2622 = vmatpush3.bf16.msra.mxu1 %v1951_v53  ;;  %2623 = vmatprep.mubr.msk.bf16.mxu1 %vm2790_vm0, %v2789_v0 }
 0xa33   : > { %2635 = vmatprep.subr.bf16.mxu1 %v2789_v0 }
 0xa39   : > { %2624 = vmatmul.mubr.msk.bf16.vlgmr.msra.gmra.mxu1 %vm853_vm2, %v1944_v55 }
 0xa3a   : > { %2639 = vmatprep.mubr.msk.bf16.mxu1 %vm2790_vm0, %v2789_v0  ;;  %2636 = vmatpush3.bf16.msra.mxu1 %v2700_v33 }
 0xa3b   : > { %2637 = vmatprep.subr.bf16.mxu1 %v2789_v0 }
 0xa70   : > { %v1656_v56 = vpop.f32.mrf.mxu1 }
 0xa72   : > { %v2589_v57 = vpop.f32.mrf.mxu1 }
 0xa74   : > { %v1659_v58 = vpop.f32.mrf.mxu1 }
 0xa76   : > { %v2590_v59 = vpop.f32.mrf.mxu1 }
 0xae9   : > { %v1767_v61 = vpop.f32.mrf.mxu1 }
 0xaea   : > { %1994 = vrot.lane.b32.xlu0 %v1767_v61, %s3335_s8 }
 0xaeb   : > { %v2601_v62 = vpop.f32.mrf.mxu1 }
 0xaed   : > { %v1770_v1 = vpop.f32.mrf.mxu1 }
 0xaef   : > { %v2602_v2 = vpop.f32.mrf.mxu1 }
 0xaf1   : > { %v1877_v4 = vpop.f32.mrf.mxu1 }
 0xaf2   : > { %1998 = vrot.lane.b32.xlu1 %v1877_v4, %s3336_s2 }
 0xaf3   : > { %v2613_v5 = vpop.f32.mrf.mxu1 }
 0xaf5   : > { %v1880_v3 = vpop.f32.mrf.mxu1 }
 0xaf7   : > { %v2614_v6 = vpop.f32.mrf.mxu1 }
 0xaf9   : > { %v1987_v7 = vpop.f32.mrf.mxu1 }
 0xafa   : > { %2002 = vrot.lane.b32.xlu0 %v1987_v7, %s3337_s29 }
 0xafb   : > { %v2625_v9 = vpop.f32.mrf.mxu1 }
 0xafd   : > { %v1990_v10 = vpop.f32.mrf.mxu1 }
 0xaff   : > { %v2626_v11 = vpop.f32.mrf.mxu1 }
 0xb5c   : > { %v1995_v12 = vpop.permute.xlu0 %1994 }
 0xb5d   : > { %v2005_v14 = vsel %vm853_vm2, %v1656_v56, %v1995_v12 }
 0xb64   : > { %v1999_v13 = vpop.permute.xlu1 %1998 }
 0xb65   : > { %v2006_v15 = vsel %vm1304_vm4, %v2005_v14, %v1999_v13 }
 0xb6c   : > { %v2003_v16 = vpop.permute.xlu0 %2002 }
 0xb6d   : > { %v2007_v8 = vsel %vm1306_vm5, %v2006_v15, %v2003_v16 }
 0xb6e   : > { %v2008_v17 = vpack.c.bf16 %v2007_v8, %v2007_v8 }
 0xb70   : > { %2632 = vmatmul.mubr.msk.bf16.vlgmr.msra.gmra.mxu0 %vm794_vm1, %v2008_v17  ;;  %v2440_v17 = vld [vmem:[%s3291_s22] ss:$0 sm:$0xff] }
 0xb71   : > { %2651 = vmatprep.mubr.msk.bf16.mxu0 %vm2790_vm0, %v2789_v0  ;;  %2644 = vmatpush3.bf16.msra.mxu0 %v2702_v34 }
 0xb72   : > { %2645 = vmatprep.subr.bf16.mxu0 %v2789_v0 }
 0xb75   : > { %2646 = vmatpush3.bf16.msra.mxu0 %v2703_v35 }
 0xb76   : > { %2647 = vmatprep.subr.bf16.mxu0 %v2789_v0 }
 0xb79   : > { %2648 = vmatpush3.bf16.msra.mxu0 %v2704_v50 }
 0xb7a   : > { %2649 = vmatprep.subr.bf16.mxu0 %v2789_v0  ;;  %v2434_v0 = vld [vmem:[%s3290_s21] ss:$0 sm:$0xff] }
 0xb7d   : > { %2650 = vmatpush3.bf16.msra.mxu0 %v2705_v51 }
 0xc30   : > { %v2064_v19 = vpop.f32.mrf.mxu0 }
 0xc31   : > { %v2065_v20 = vadd.f32 %v2424_v18, %v2064_v19 }
 0xc32   : > { %v2633_v21 = vpop.f32.mrf.mxu0 }
 0xc33   : > { %v2070_v22 = vadd.f32 %v2065_v20, %v3114_v23  ;;  %v2701_v23 = vld [vmem:[%s3287_s18] sm:$0xff]  }
 0xc34   : > { %v2067_v24 = vpop.f32.mrf.mxu0  ;;  %2638 = vmatpush3.bf16.msra.mxu1 %v2701_v23  ;;  %v2441_v20 = vld [vmem:[#allocation2] ss:$0 sm:$0xff] }
 0xc35   : > { %v2073_v25 = vsel %vm794_vm1, %v2070_v22, 0.0 }
 0xc36   : > { %2074 = vadd.xlane.f32.xlu1 %v2073_v25  ;;  %v2634_v26 = vpop.f32.mrf.mxu0 }
 0xcbf   : > { %v2075_v27 = vpop.xlane.xlu1 %2074 }
 0xcc0   : > { %v2076_v28 = vmul.f32 0.03125, %v2075_v27 }
 0xcc2   : > { %v2077_v30 = vsub.f32 %v2070_v22, %v2076_v28 }
 0xcc4   : > { %v2078_v31 = vmul.f32 %v2077_v30, %v2077_v30  ;;  %v2089_v45 = vmul.f32 %v2428_v44, %v2077_v30 }
 0xcc6   : > { %v2079_v32 = vsel %vm794_vm1, %v2078_v31, 0.0 }
 0xcc7   : > { %2080 = vadd.xlane.f32.xlu0 %v2079_v32 }
 0xd50   : > { %v2081_v36 = vpop.xlane.xlu0 %2080 }
 0xd51   : > { %v2082_v37 = vmul.f32 0.032258064, %v2081_v36 }
 0xd53   : > { %2742 = vrsqrt.f32 %v2082_v37  ;;  %vm2092_vm8 = vcmp.eq.f32.partialorder %v2082_v37, inf  ;;  %v2095_v40 = vand.u32 2147483648, %v2082_v37  ;;  %vm2094_vm9 = vcmp.eq.f32.partialorder %v2082_v37, 0.0 }
 0xd60   : > { %v2743_v38 = vpop.eup %2742 }
 0xd61   : > { %v2091_v39 = vmul.f32 %v2743_v38, %v2082_v37 }
 0xd63   : > { %v2093_v41 = vsel %vm2092_vm8, %v2082_v37, %v2091_v39 }
 0xd64   : > { %v2096_v42 = vsel %vm2094_vm9, %v2095_v40, %v2093_v41 }
 0xd65   : > { %v2097_v43 = vadd.f32 1e-06, %v2096_v42 }
 0xd67   : > { %2744 = vrcp.f32 %v2097_v43 }
 0xd74   : > { %v2745_v46 = vpop.eup %2744 }
 0xd75   : > { %v2099_v47 = vmul.f32 %v2745_v46, %v2089_v45 }
 0xd77   : > { %v2106_v48 = vadd.f32 %v2429_v29, %v2099_v47 }
 0xd79   : > { %v2111_v49 = vpack.c.bf16 %v2106_v48, %v2106_v48 }
 0xd7b   : > { %2640 = vmatmul.mubr.msk.bf16.vlgmr.msra.gmra.mxu1 %vm794_vm1, %v2111_v49 }
 0xe3b   : > { %v2168_v53 = vpop.f32.mrf.mxu1 }
 0xe3c   : > { %v2169_v54 = vadd.f32 %v2430_v52, %v2168_v53 }
 0xe3d   : > { %v2641_v55 = vpop.f32.mrf.mxu1 }
 0xe3e   : > { %v2174_v56 = vmax.f32 %v2169_v54, 0.0 }
 0xe3f   : > { %v2171_v57 = vpop.f32.mrf.mxu1 }
 0xe40   : > { %v2175_v58 = vpack.c.bf16 %v2174_v56, %v2174_v56 }
 0xe41   : > { %v2642_v59 = vpop.f32.mrf.mxu1 }
 0xe42   : > { %2652 = vmatmul.mubr.msk.bf16.vlgmr.msra.gmra.mxu0 %vm2215_vm10, %v2175_v58 }
 0xf02   : > { %v2253_v60 = vpop.f32.mrf.mxu0 }
 0xf03   : > { %v2254_v61 = vadd.f32 %v2434_v0, %v2253_v60 }
 0xf04   : > { %v2653_v62 = vpop.f32.mrf.mxu0 }
 0xf05   : > { %v2259_v63 = vadd.f32 %v2254_v61, %v2106_v48 }
 0xf06   : > { %v2256_v1 = vpop.f32.mrf.mxu0 }
 0xf07   : > { %v2262_v2 = vsel %vm794_vm1, %v2259_v63, 0.0 }
 0xf08   : > { %2263 = vadd.xlane.f32.xlu0 %v2262_v2  ;;  %v2654_v4 = vpop.f32.mrf.mxu0 }
 0xf91   : > { %v2264_v5 = vpop.xlane.xlu0 %2263 }
 0xf92   : > { %v2265_v3 = vmul.f32 0.03125, %v2264_v5 }
 0xf94   : > { %v2266_v6 = vsub.f32 %v2259_v63, %v2265_v3 }
 0xf96   : > { %v2267_v7 = vmul.f32 %v2266_v6, %v2266_v6  ;;  %v2278_v18 = vmul.f32 %v2440_v17, %v2266_v6 }
 0xf98   : > { %v2268_v9 = vsel %vm794_vm1, %v2267_v7, 0.0 }
 0xf99   : > { %2269 = vadd.xlane.f32.xlu1 %v2268_v9 }
0x1022   : > { %v2270_v10 = vpop.xlane.xlu1 %2269 }
0x1023   : > { %v2271_v11 = vmul.f32 0.032258064, %v2270_v10 }
0x1025   : > { %2746 = vrsqrt.f32 %v2271_v11  ;;  %vm2281_vm11 = vcmp.eq.f32.partialorder %v2271_v11, inf  ;;  %v2284_v14 = vand.u32 2147483648, %v2271_v11  ;;  %vm2283_vm12 = vcmp.eq.f32.partialorder %v2271_v11, 0.0 }
0x1032   : > { %v2747_v12 = vpop.eup %2746 }
0x1033   : > { %v2280_v13 = vmul.f32 %v2747_v12, %v2271_v11 }
0x1035   : > { %v2282_v15 = vsel %vm2281_vm11, %v2271_v11, %v2280_v13 }
0x1036   : > { %v2285_v16 = vsel %vm2283_vm12, %v2284_v14, %v2282_v15 }
0x1037   : > { %v2286_v8 = vadd.f32 1e-06, %v2285_v16 }
0x1039   : > { %2748 = vrcp.f32 %v2286_v8 }
0x1046   : > { %v2749_v19 = vpop.eup %2748 }
0x1047   : > { %v2288_v21 = vmul.f32 %v2749_v19, %v2278_v18 }
0x1049   : > { %v2295_v22 = vadd.f32 %v2441_v20, %v2288_v21 }
0x104b   : > { %v2296_v24 = vpack.c.bf16 %v2295_v22, %v2295_v22 }
0x104d   : > { %2298 = vst.msk [vmem:[%s762_s28] sm:$0xf] %vm2297_vm13, %v2296_v24 }
0x104e PF: > { %s35_s5 = sadd.s32 1, %s2786_s5  }
0x104f   : > { %p32_p1 = scmp.ge.s32.totalorder %s35_s5, 4  }
0x1051   :  { %34 = sbr.rel (!%p32_p1) target bundleno = 11 (0xb), region = 156 }
0x1056   :  { %2318 = vsyncpa [#allocation3], 1 }
0x1057   :  { %2320 = vsyncpa [#allocation3 + $0x1], 1 }

// kernel: _lambda_.9
= control target key start
LH: loop header
LB: loop body
LE: loop exit
PB: predicated region body
PF: predicated region fallthrough
CT: control target
= control target key end

     0   :  { %s3189_s0 = inlined_call_operand.vmem [shape: f32[2,8,32], index: 0, kind: input, shape index: {}]   ;;  %s3190_s1 = inlined_call_operand.vmem [shape: bf16[2,8,32], index: 1, kind: input, shape index: {}]   ;;  %s3191_s2 = inlined_call_operand.vmem [shape: f32[2,1,8], index: 2, kind: input, shape index: {}]   ;;  %s3192_s3 = inlined_call_operand.vmem [shape: f32[2,1,8], index: 3, kind: input, shape index: {}]   ;;  %s3193_s4 = inlined_call_operand.vmem [shape: bf16[32,96], index: 4, kind: input, shape index: {}]   ;;  %s3194_s5 = inlined_call_operand.vmem [shape: f32[1,96], index: 5, kind: input, shape index: {}]   ;;  %s3195_s6 = inlined_call_operand.vmem [shape: bf16[32,32], index: 6, kind: input, shape index: {}]   ;;  %s3196_s7 = inlined_call_operand.vmem [shape: f32[1,32], index: 7, kind: input, shape index: {}]   ;;  %s3197_s8 = inlined_call_operand.vmem [shape: f32[1,32], index: 8, kind: input, shape index: {}]   ;;  %s3198_s9 = inlined_call_operand.vmem [shape: f32[1,32], index: 9, kind: input, shape index: {}]   ;;  %s3199_s10 = inlined_call_operand.vmem [shape: bf16[32,32], index: 10, kind: input, shape index: {}]   ;;  %s3200_s11 = inlined_call_operand.vmem [shape: f32[1,32], index: 11, kind: input, shape index: {}]   ;;  %s3201_s12 = inlined_call_operand.vmem [shape: bf16[32,64], index: 12, kind: input, shape index: {}]   ;;  %s3202_s13 = inlined_call_operand.vmem [shape: f32[1,64], index: 13, kind: input, shape index: {}]   ;;  %s3203_s14 = inlined_call_operand.vmem [shape: bf16[32,32], index: 14, kind: input, shape index: {}]   ;;  %s3204_s15 = inlined_call_operand.vmem [shape: f32[1,32], index: 15, kind: input, shape index: {}]   ;;  %s3205_s16 = inlined_call_operand.vmem [shape: f32[1,32], index: 16, kind: input, shape index: {}]   ;;  %s3206_s17 = inlined_call_operand.vmem [shape: f32[1,32], index: 17, kind: input, shape index: {}]   ;;  %s3207_s18 = inlined_call_operand.vmem [shape: bf16[32,64], index: 18, kind: input, shape index: {}]   ;;  %s3208_s19 = inlined_call_operand.vmem [shape: f32[1,64], index: 19, kind: input, shape index: {}]   ;;  %s3209_s20 = inlined_call_operand.vmem [shape: bf16[64,32], index: 20, kind: input, shape index: {}]   ;;  %s3210_s21 = inlined_call_operand.vmem [shape: f32[1,32], index: 21, kind: input, shape index: {}]   ;;  %s3211_s22 = inlined_call_operand.vmem [shape: f32[1,32], index: 22, kind: input, shape index: {}]   ;;  %s3212_s23 = inlined_call_operand.vmem [shape: f32[1,32], index: 23, kind: input, shape index: {}]   ;;  %s3213_s24 = inlined_call_operand.vmem [shape: bf16[2,8,32], index: 24, kind: output, shape index: {}]  }
   0x1   :  { %3230 = sst [smem:[#allocation2_spill]] %s3189_s0 }
   0x2   :  { %3231 = sst [smem:[#allocation3_spill]] %s3190_s1 }
   0x3   :  { %3232 = sst [smem:[#allocation4_spill]] %s3191_s2 }
   0x4   :  { %3233 = sst [smem:[#allocation5_spill]] %s3192_s3 }
   0x5   :  { %3234 = sst [smem:[#allocation6_spill]] %s3193_s4 }
   0x6   :  { %3235 = sst [smem:[#allocation7_spill]] %s3194_s5  ;;  %s2861_s5 = smov 0  }
   0x7   :  { %3236 = sst [smem:[#allocation8_spill]] %s3195_s6 }
   0x8   :  { %3237 = sst [smem:[#allocation9_spill]] %s3196_s7 }
   0x9   :  { %3238 = sst [smem:[#allocation10_spill]] %s3197_s8 }
   0xa LB: > { %s2867_s26 = sadd.s32 4294967295, %s2718_s5   ;;  %p2357_p0 = scmp.ge.s32.totalorder %s2718_s5, 1  ;;  %s2718_s5 = sphi %s2861_s5, %s34_s5  }
   0xb   : > { %p670_p1 = scmp.lt.s32.totalorder %s2718_s5, 3 }
   0xd   : > { %p671_p2 = pnand %p2357_p0, %p670_p1 }
   0xe   : > { %s3239_s6 = sld [smem:[#allocation6_spill]] (!%p671_p2)  ;;  %p738_p3 = scmp.lt.s32.totalorder (!%p671_p2), %s2867_s26, 1 }
   0xf   : > { %674 = sbr.rel (%p671_p2) target bundleno = 4153 (0x1039), region = 116  ;;  %s3240_s25 = sld [smem:[#allocation2_spill]] (!%p671_p2) }
  0x10   : > { %s3241_s27 = sld [smem:[#allocation7_spill]] (!%p671_p2)  ;;  %s3227_s28 = smov (!%p671_p2), 120  }
  0x11   : > { %s3222_s2 = smov (!%p671_p2), 96   ;;  %s3218_s29 = smov (!%p671_p2), 80  }
  0x12   : > { %s3217_s30 = smov (!%p671_p2), 72   ;;  %s3225_s3 = smov (!%p671_p2), 112  }
  0x13   : > { %s3242_s1 = sld [smem:[#allocation4_spill]] (!%p671_p2)  ;;  %s2730_s4 = smov (!%p671_p2), 64  }
  0x14   : > { %v2652_v0 = vld [vmem:[%s3239_s6 + $0x8] sm:$0xff]   ;;  %v2720_v1 = vmov 0.0   ;;  %v2653_v2 = vld [vmem:[%s3239_s6] sm:$0xff]   ;;  %vm2721_vm0 = vmmov 0   ;;  %s2886_s0 = scalar_select %p738_p3, %s2867_s26, 1  ;;  %vm781_vm1 = vcmask 261120  }
  0x15   : > { %2472 = vmatprep.subr.bf16.mxu1 %v2720_v1  ;;  %2486 = vmatprep.subr.bf16.mxu0 %v2720_v1  ;;  %vm840_vm2 = vcmask 64512   ;;  %vm904_vm3 = vcmask 1043456   ;;  %vm1291_vm4 = vcmask 130048   ;;  %vm1293_vm5 = vcmask 195584  }
  0x16   : > { %2473 = vmatpush3.bf16.msra.mxu1 %v2652_v0  ;;  %2476 = vmatprep.mubr.msk.bf16.mxu1 %vm2721_vm0, %v2720_v1  ;;  %s2358_s7 = sshll.u32 %s2886_s0, 3  ;;  %v2361_v5 = vld [vmem:[%s3241_s27] ss:$0 sm:$0xff]  ;;  %vm2202_vm10 = vcmask 523264   ;;  %vm2284_vm13 = vcmask 257024  }
  0x17   : > { %2474 = vmatprep.subr.bf16.mxu1 %v2720_v1  ;;  %2488 = vmatprep.mubr.msk.bf16.mxu0 %vm2721_vm0, %v2720_v1  ;;  %s741_s8 = scalar_lea.vmem %s3240_s25, %s2358_s7  ;;  %s3216_s7 = smov 88  }
  0x18   : > { %v2893_v3 = vld [vmem:[%s741_s8] sm:$0xff]  ;;  %s3223_s25 = smov 104   ;;  %s2729_s8 = smov 56  }
  0x19   : > { %v761_v4 = vpack.c.bf16 %v2893_v3, %v2893_v3  ;;  %s753_s27 = scalar_lea.vmem %s3242_s1, %s2867_s26  ;;  %s2731_s1 = smov 40  }
  0x1a   : > { %2475 = vmatpush3.bf16.msra.mxu1 %v2653_v2  ;;  %v2365_v23 = vld [vmem:[%s753_s27] ss:$0 sm:$0xff]  ;;  %s2732_s27 = smov 48  }
  0x1b   : > { %2480 = vmatprep.subr.bf16.mxu1 %v2720_v1 }
  0x1d   : > { %2477 = vmatmul.mubr.msk.bf16.vlgmr.msra.gmra.mxu1 %vm781_vm1, %v761_v4 }
  0x1e   : > { %2482 = vmatprep.mubr.msk.bf16.mxu1 %vm2721_vm0, %v2720_v1 }
  0xdd   : > { %v819_v6 = vpop.f32.mrf.mxu1 }
  0xde   : > { %v820_v7 = vadd.f32 %v2361_v5, %v819_v6 }
  0xdf   : > { %v2478_v8 = vpop.f32.mrf.mxu1 }
  0xe0   : > { %v2903_v9 = vpack.c.bf16 %v820_v7, %v820_v7 }
  0xe1   : > { %v822_v10 = vpop.f32.mrf.mxu1 }
  0xe2   : > { %948 = vrot.lane.b32.xlu1 %v2903_v9, %s3227_s28  ;;  %838 = vrot.lane.b32.xlu0 %v2903_v9, %s3222_s2  ;;  %s3245_s28 = sld [smem:[#allocation3_spill]] }
  0xe3   : > { %v2479_v11 = vpop.f32.mrf.mxu1  ;;  %s3246_s2 = sld [smem:[#allocation10_spill]] }
  0xe6   : > { %1060 = vrot.lane.b32.xlu1 %v2903_v9, %s3218_s29  ;;  %950 = vrot.lane.b32.xlu0 %v2903_v9, %s3216_s7  ;;  %s3220_s29 = smov 16   ;;  %s3248_s7 = smov 112  }
  0xea   : > { %1170 = vrot.lane.b32.xlu1 %v2903_v9, %s3217_s30  ;;  %1058 = vrot.lane.b32.xlu0 %v2903_v9, %s3225_s3  ;;  %s3249_s30 = smov 104  }
  0xee   : > { %1168 = vrot.lane.b32.xlu0 %v2903_v9, %s3223_s25  ;;  %s3250_s25 = sld [smem:[#allocation5_spill]] }
 0x154   : > { %v839_v12 = vpop.permute.xlu0 %838  ;;  %v949_v15 = vpop.permute.xlu1 %948 }
 0x155   : > { %v845_v13 = vsel %vm840_vm2, %v839_v12, 0 }
 0x156   : > { %2481 = vmatpush3.bf16.xpose.msra.mxu1 %v845_v13 }
 0x157   : > { %2492 = vmatprep.subr.bf16.mxu1 %v2720_v1 }
 0x158   : > { %v951_v14 = vpop.permute.xlu0 %950  ;;  %v1061_v17 = vpop.permute.xlu1 %1060 }
 0x159   : > { %v956_v16 = vsel %vm840_vm2, %v951_v14, 0  ;;  %v1066_v18 = vsel %vm840_vm2, %v1061_v17, 0 }
 0x15c   : > { %v1171_v19 = vpop.permute.xlu1 %1170  ;;  %v1059_v20 = vpop.permute.xlu0 %1058 }
 0x15d   : > { %2483 = vmatmul.mubr.msk.bf16.vlgmr.msra.gmra.mxu1 %vm840_vm2, %v2903_v9  ;;  %v1176_v21 = vsel %vm840_vm2, %v1171_v19, 0 }
 0x15e   : > { %2493 = vmatpush3.bf16.xpose.msra.mxu1 %v956_v16  ;;  %2494 = vmatprep.mubr.msk.bf16.mxu1 %vm2721_vm0, %v2720_v1 }
 0x15f   : > { %2504 = vmatprep.subr.bf16.mxu1 %v2720_v1 }
 0x160   : > { %v1169_v22 = vpop.permute.xlu0 %1168 }
 0x165   : > { %2495 = vmatmul.mubr.msk.bf16.vlgmr.msra.gmra.mxu1 %vm840_vm2, %v949_v15 }
 0x166   : > { %2505 = vmatpush3.bf16.xpose.msra.mxu1 %v1066_v18  ;;  %2506 = vmatprep.mubr.msk.bf16.mxu1 %vm2721_vm0, %v2720_v1 }
 0x167   : > { %2516 = vmatprep.subr.bf16.mxu1 %v2720_v1 }
 0x16d   : > { %2507 = vmatmul.mubr.msk.bf16.vlgmr.msra.gmra.mxu1 %vm840_vm2, %v1059_v20 }
 0x16e   : > { %2517 = vmatpush3.bf16.xpose.msra.mxu1 %v1176_v21  ;;  %2518 = vmatprep.mubr.msk.bf16.mxu1 %vm2721_vm0, %v2720_v1 }
 0x16f   : > { %2528 = vmatprep.subr.bf16.mxu1 %v2720_v1 }
 0x175   : > { %2519 = vmatmul.mubr.msk.bf16.vlgmr.msra.gmra.mxu1 %vm840_vm2, %v1169_v22 }
 0x176   : > { %2532 = vmatprep.mubr.msk.bf16.mxu1 %vm2721_vm0, %v2720_v1 }
 0x21d   : > { %v881_v24 = vpop.f32.mrf.mxu1 }
 0x21e   : > { %v882_v25 = vadd.f32 %v2365_v23, %v881_v24 }
 0x21f   : > { %v2484_v26 = vpop.f32.mrf.mxu1 }
 0x220   : > { %v887_v27 = vsel %vm840_vm2, %v882_v25, -inf }
 0x221   : > { %888 = vmax.xlane.f32.xlu1 %v887_v27  ;;  %v884_v28 = vpop.f32.mrf.mxu1 }
 0x223   : > { %v2485_v29 = vpop.f32.mrf.mxu1 }
 0x225   : > { %v992_v30 = vpop.f32.mrf.mxu1 }
 0x226   : > { %v993_v31 = vadd.f32 %v2365_v23, %v992_v30 }
 0x227   : > { %v2496_v32 = vpop.f32.mrf.mxu1 }
 0x228   : > { %v998_v33 = vsel %vm840_vm2, %v993_v31, -inf }
 0x229   : > { %999 = vmax.xlane.f32.xlu0 %v998_v33  ;;  %v995_v34 = vpop.f32.mrf.mxu1 }
 0x22b   : > { %v2497_v35 = vpop.f32.mrf.mxu1 }
 0x22d   : > { %v1102_v36 = vpop.f32.mrf.mxu1 }
 0x22e   : > { %v1103_v37 = vadd.f32 %v2365_v23, %v1102_v36 }
 0x22f   : > { %v2508_v38 = vpop.f32.mrf.mxu1 }
 0x230   : > { %v1108_v39 = vsel %vm840_vm2, %v1103_v37, -inf }
 0x231   : > { %1109 = vmax.xlane.f32.xlu0 %v1108_v39  ;;  %v1105_v40 = vpop.f32.mrf.mxu1 }
 0x233   : > { %v2509_v41 = vpop.f32.mrf.mxu1 }
 0x235   : > { %v1212_v42 = vpop.f32.mrf.mxu1 }
 0x236   : > { %v1213_v43 = vadd.f32 %v2365_v23, %v1212_v42 }
 0x237   : > { %v2520_v44 = vpop.f32.mrf.mxu1 }
 0x238   : > { %v1218_v45 = vsel %vm840_vm2, %v1213_v43, -inf }
 0x239   : > { %1219 = vmax.xlane.f32.xlu1 %v1218_v45  ;;  %v1215_v46 = vpop.f32.mrf.mxu1 }
 0x23b   : > { %v2521_v47 = vpop.f32.mrf.mxu1 }
 0x2aa   : > { %v889_v48 = vpop.xlane.xlu1 %888 }
 0x2ab   : > { %v890_v49 = vsub.f32 %v882_v25, %v889_v48 }
 0x2ad   : > { %v891_v50 = vmul.f32 1.442695, %v890_v49 }
 0x2af   : > { %2668 = vpow2.f32 %v891_v50 }
 0x2b2   : > { %v1000_v51 = vpop.xlane.xlu0 %999 }
 0x2b3   : > { %v1001_v52 = vsub.f32 %v993_v31, %v1000_v51 }
 0x2b5   : > { %v1002_v53 = vmul.f32 1.442695, %v1001_v52 }
 0x2b7   : > { %2670 = vpow2.f32 %v1002_v53 }
 0x2ba   : > { %v1110_v54 = vpop.xlane.xlu0 %1109 }
 0x2bb   : > { %v1111_v55 = vsub.f32 %v1103_v37, %v1110_v54 }
 0x2bc   : > { %v2669_v56 = vpop.eup %2668 }
 0x2bd   : > { %v1112_v57 = vmul.f32 1.442695, %v1111_v55  ;;  %v893_v58 = vsel %vm840_vm2, %v2669_v56, 0.0 }
 0x2be   : > { %894 = vadd.xlane.f32.xlu0 %v893_v58 }
 0x2bf   : > { %2672 = vpow2.f32 %v1112_v57 }
 0x2c2   : > { %v1220_v63 = vpop.xlane.xlu1 %1219 }
 0x2c3   : > { %v1221_v0 = vsub.f32 %v1213_v43, %v1220_v63 }
 0x2c4   : > { %v2671_v59 = vpop.eup %2670 }
 0x2c5   : > { %v1004_v60 = vsel %vm840_vm2, %v2671_v59, 0.0  ;;  %v1222_v2 = vmul.f32 1.442695, %v1221_v0 }
 0x2c6   : > { %1005 = vadd.xlane.f32.xlu1 %v1004_v60 }
 0x2c7   : > { %2674 = vpow2.f32 %v1222_v2 }
 0x2cc   : > { %v2673_v61 = vpop.eup %2672 }
 0x2cd   : > { %v1114_v62 = vsel %vm840_vm2, %v2673_v61, 0.0 }
 0x2ce   : > { %1115 = vadd.xlane.f32.xlu0 %v1114_v62 }
 0x2d4   : > { %v2675_v4 = vpop.eup %2674 }
 0x2d5   : > { %v1224_v5 = vsel %vm840_vm2, %v2675_v4, 0.0 }
 0x2d7   : > { %1010 = vrot.lane.b32.xlu1 %v2903_v9, %s2729_s8  ;;  %s3221_s8 = smov 8  }
 0x2e4   : > { %899 = vrot.lane.b32.xlu0 %v2903_v9, %s2730_s4  ;;  %s3219_s4 = smov 24  }
 0x2e8   : > { %1230 = vrot.lane.b32.xlu0 %v2903_v9, %s2731_s1  ;;  %s3244_s1 = sld [smem:[#allocation9_spill]] }
 0x2ee   : > { %v2374_v55 = vld [vmem:[%s3244_s1] ss:$0 sm:$0xff]  ;;  %s3247_s1 = smov 120  }
 0x2fb   : > { %1225 = vadd.xlane.f32.xlu1 %v1224_v5 }
 0x30c   : > { %1120 = vrot.lane.b32.xlu1 %v2903_v9, %s2732_s27  ;;  %s3243_s27 = sld [smem:[#allocation8_spill]] }
 0x312   : > { %v2654_v38 = vld [vmem:[%s3243_s27 + $0x8] sm:$0xff]   ;;  %v2655_v39 = vld [vmem:[%s3243_s27] sm:$0xff]  }
 0x313   : > { %2529 = vmatpush3.bf16.msra.mxu1 %v2654_v38 }
 0x314   : > { %2530 = vmatprep.subr.bf16.mxu1 %v2720_v1 }
 0x317   : > { %2531 = vmatpush3.bf16.msra.mxu1 %v2655_v39 }
 0x318   : > { %2544 = vmatprep.subr.bf16.mxu1 %v2720_v1 }
 0x347   : > { %v895_v6 = vpop.xlane.xlu0 %894 }
 0x348   : > { %2676 = vrcp.f32 %v895_v6  ;;  %v2656_v6 = vld [vmem:[%s3201_s12 + $0x8] sm:$0xff]  }
 0x34f   : > { %v1006_v7 = vpop.xlane.xlu1 %1005 }
 0x350   : > { %2678 = vrcp.f32 %v1006_v7  ;;  %v2658_v7 = vld [vmem:[%s3199_s10 + $0x8] sm:$0xff]  }
 0x353   : > { %v1011_v14 = vpop.permute.xlu1 %1010 }
 0x354   : > { %v1016_v17 = vsel %vm904_vm3, %v1011_v14, 0 }
 0x355   : > { %v2677_v8 = vpop.eup %2676 }
 0x356   : > { %v897_v11 = vmul.f32 %v2677_v8, %v2669_v56 }
 0x357   : > { %v1116_v10 = vpop.xlane.xlu0 %1115 }
 0x358   : > { %v898_v15 = vpack.c.bf16 %v897_v11, %v897_v11  ;;  %2680 = vrcp.f32 %v1116_v10  ;;  %v2659_v10 = vld [vmem:[%s3199_s10] sm:$0xff]  }
 0x35b   : > { %v900_v12 = vpop.permute.xlu0 %899 }
 0x35c   : > { %v906_v13 = vsel %vm904_vm3, %v900_v12, 0 }
 0x35d   : > { %2487 = vmatpush3.bf16.msra.mxu0 %v906_v13  ;;  %v2679_v16 = vpop.eup %2678 }
 0x35e   : > { %2498 = vmatprep.subr.bf16.mxu0 %v2720_v1  ;;  %v1008_v9 = vmul.f32 %v2679_v16, %v2671_v59 }
 0x35f   : > { %v1231_v24 = vpop.permute.xlu0 %1230 }
 0x360   : > { %2489 = vmatmul.mubr.msk.bf16.vlgmr.msra.gmra.mxu0 %vm840_vm2, %v898_v15  ;;  %v1009_v18 = vpack.c.bf16 %v1008_v9, %v1008_v9  ;;  %v1236_v26 = vsel %vm904_vm3, %v1231_v24, 0 }
 0x361   : > { %2499 = vmatpush3.bf16.msra.mxu0 %v1016_v17  ;;  %2500 = vmatprep.mubr.msk.bf16.mxu0 %vm2721_vm0, %v2720_v1 }
 0x362   : > { %2510 = vmatprep.subr.bf16.mxu0 %v2720_v1 }
 0x365   : > { %v2681_v19 = vpop.eup %2680 }
 0x366   : > { %v1118_v21 = vmul.f32 %v2681_v19, %v2673_v61 }
 0x368   : > { %2501 = vmatmul.mubr.msk.bf16.vlgmr.msra.gmra.mxu0 %vm840_vm2, %v1009_v18  ;;  %v1119_v25 = vpack.c.bf16 %v1118_v21, %v1118_v21  ;;  %v2378_v18 = vld [vmem:[%s3246_s2] ss:$0 sm:$0xff] }
 0x369   : > { %2512 = vmatprep.mubr.msk.bf16.mxu0 %vm2721_vm0, %v2720_v1  ;;  %v2379_v21 = vld [vmem:[%s3198_s9] ss:$0 sm:$0xff] }
 0x384   : > { %v1226_v20 = vpop.xlane.xlu1 %1225 }
 0x385   : > { %2682 = vrcp.f32 %v1226_v20 }
 0x388   : > { %v1121_v22 = vpop.permute.xlu1 %1120 }
 0x389   : > { %v1126_v23 = vsel %vm904_vm3, %v1121_v22, 0 }
 0x38a   : > { %2511 = vmatpush3.bf16.msra.mxu0 %v1126_v23 }
 0x38b   : > { %2522 = vmatprep.subr.bf16.mxu0 %v2720_v1 }
 0x38d   : > { %2513 = vmatmul.mubr.msk.bf16.vlgmr.msra.gmra.mxu0 %vm840_vm2, %v1119_v25  ;;  %v2384_v25 = vld [vmem:[%s3202_s13] ss:$0 sm:$0xff] }
 0x38e   : > { %2523 = vmatpush3.bf16.msra.mxu0 %v1236_v26  ;;  %2524 = vmatprep.mubr.msk.bf16.mxu0 %vm2721_vm0, %v2720_v1 }
 0x38f   : > { %2536 = vmatprep.subr.bf16.mxu0 %v2720_v1 }
 0x392   : > { %v2683_v27 = vpop.eup %2682 }
 0x393   : > { %v1228_v28 = vmul.f32 %v2683_v27, %v2675_v4 }
 0x395   : > { %v1229_v29 = vpack.c.bf16 %v1228_v28, %v1228_v28 }
 0x397   : > { %2525 = vmatmul.mubr.msk.bf16.vlgmr.msra.gmra.mxu0 %vm840_vm2, %v1229_v29 }
 0x398   : > { %2540 = vmatprep.mubr.msk.bf16.mxu0 %vm2721_vm0, %v2720_v1  ;;  %2537 = vmatpush3.bf16.msra.mxu0 %v2658_v7 }
 0x399   : > { %2538 = vmatprep.subr.bf16.mxu0 %v2720_v1 }
 0x39c   : > { %2539 = vmatpush3.bf16.msra.mxu0 %v2659_v10 }
 0x39d   : > { %2552 = vmatprep.subr.bf16.mxu0 %v2720_v1 }
 0x420   : > { %v942_v30 = vpop.f32.mrf.mxu0 }
 0x422   : > { %v2490_v31 = vpop.f32.mrf.mxu0 }
 0x424   : > { %v945_v32 = vpop.f32.mrf.mxu0 }
 0x426   : > { %v2491_v33 = vpop.f32.mrf.mxu0 }
 0x427   : > { %v2380_v33 = vld [vmem:[%s3200_s11] ss:$0 sm:$0xff] }
 0x428   : > { %v1052_v34 = vpop.f32.mrf.mxu0 }
 0x429   : > { %1279 = vrot.lane.b32.xlu1 %v1052_v34, %s3221_s8  ;;  %s755_s8 = scalar_lea.vmem %s3250_s25, %s2867_s26  ;;  %s3251_s26 = smov 96  }
 0x42a   : > { %v2502_v35 = vpop.f32.mrf.mxu0  ;;  %s3256_s25 = smov 16  }
 0x42c   : > { %v1055_v36 = vpop.f32.mrf.mxu0 }
 0x42e   : > { %v2503_v37 = vpop.f32.mrf.mxu0 }
 0x44d   : > { %v1162_v40 = vpop.f32.mrf.mxu0 }
 0x44e   : > { %1283 = vrot.lane.b32.xlu0 %v1162_v40, %s3220_s29  ;;  %s2359_s29 = sshll.u32 %s2886_s0, 2 }
 0x44f   : > { %v2514_v41 = vpop.f32.mrf.mxu0  ;;  %s745_s6 = scalar_lea.vmem %s3245_s28, %s2359_s29  ;;  %s3255_s28 = smov 8  }
 0x450   : > { %v752_v8 = vld [vmem:[%s745_s6] sm:$0xf] }
 0x451   : > { %v1165_v42 = vpop.f32.mrf.mxu0 }
 0x453   : > { %v2515_v43 = vpop.f32.mrf.mxu0 }
 0x457   : > { %v1272_v44 = vpop.f32.mrf.mxu0 }
 0x458   : > { %1287 = vrot.lane.b32.xlu1 %v1272_v44, %s3219_s4  ;;  %s3252_s4 = smov 80  }
 0x459   : > { %v2526_v45 = vpop.f32.mrf.mxu0 }
 0x45b   : > { %v1275_v46 = vpop.f32.mrf.mxu0 }
 0x45d   : > { %v2527_v47 = vpop.f32.mrf.mxu0 }
 0x49b   : > { %v1280_v48 = vpop.permute.xlu1 %1279 }
 0x49c   : > { %v1290_v50 = vsel %vm840_vm2, %v942_v30, %v1280_v48 }
 0x4c0   : > { %v1284_v49 = vpop.permute.xlu0 %1283 }
 0x4c1   : > { %v1292_v51 = vsel %vm1291_vm4, %v1290_v50, %v1284_v49  ;;  %v2388_v49 = vld [vmem:[%s755_s8] ss:$0 sm:$0xff]  ;;  %s3257_s8 = smov 24  }
 0x4ca   : > { %v1288_v52 = vpop.permute.xlu1 %1287 }
 0x4cb   : > { %v1294_v53 = vsel %vm1293_vm5, %v1292_v51, %v1288_v52 }
 0x4cc   : > { %v1295_v54 = vpack.c.bf16 %v1294_v53, %v1294_v53 }
 0x4ce   : > { %2533 = vmatmul.mubr.msk.bf16.vlgmr.msra.gmra.mxu1 %vm781_vm1, %v1295_v54 }
 0x4cf   : > { %2548 = vmatprep.mubr.msk.bf16.mxu1 %vm2721_vm0, %v2720_v1  ;;  %2545 = vmatpush3.bf16.msra.mxu1 %v2656_v6 }
 0x4d0   : > { %2546 = vmatprep.subr.bf16.mxu1 %v2720_v1 }
 0x58e   : > { %v1351_v56 = vpop.f32.mrf.mxu1 }
 0x58f   : > { %v1352_v57 = vadd.f32 %v2374_v55, %v1351_v56 }
 0x590   : > { %v2534_v58 = vpop.f32.mrf.mxu1 }
 0x591   : > { %v1357_v59 = vadd.f32 %v1352_v57, %v2893_v3  ;;  %v2657_v3 = vld [vmem:[%s3201_s12] sm:$0xff]  }
 0x592   : > { %v1354_v60 = vpop.f32.mrf.mxu1  ;;  %2547 = vmatpush3.bf16.msra.mxu1 %v2657_v3 }
 0x593   : > { %v1360_v61 = vsel %vm781_vm1, %v1357_v59, 0.0  ;;  %2558 = vmatprep.subr.bf16.mxu1 %v2720_v1 }
 0x594   : > { %1361 = vadd.xlane.f32.xlu0 %v1360_v61  ;;  %v2535_v62 = vpop.f32.mrf.mxu1 }
 0x595   : > { %2549 = vmatmul.mubr.msk.bf16.vlgmr.msra.gmra.mxu1 %vm781_vm1, %v752_v8 }
 0x596   : > { %2560 = vmatprep.mubr.msk.bf16.mxu1 %vm2721_vm0, %v2720_v1 }
 0x61d   : > { %v1362_v63 = vpop.xlane.xlu0 %1361 }
 0x61e   : > { %v1364_v0 = vmul.f32 0.03125, %v1362_v63 }
 0x620   : > { %v1365_v2 = vsub.f32 %v1357_v59, %v1364_v0 }
 0x622   : > { %v1366_v4 = vmul.f32 %v1365_v2, %v1365_v2  ;;  %v1378_v19 = vmul.f32 %v2378_v18, %v1365_v2 }
 0x624   : > { %v1367_v5 = vsel %vm781_vm1, %v1366_v4, 0.0 }
 0x625   : > { %1368 = vadd.xlane.f32.xlu1 %v1367_v5 }
 0x655   : > { %v1524_v26 = vpop.f32.mrf.mxu1 }
 0x656   : > { %v1525_v27 = vadd.f32 %v2384_v25, %v1524_v26 }
 0x657   : > { %v2550_v28 = vpop.f32.mrf.mxu1 }
 0x658   : > { %v3040_v29 = vpack.c.bf16 %v1525_v27, %v1525_v27 }
 0x659   : > { %v1527_v30 = vpop.f32.mrf.mxu1 }
 0x65a   : > { %1652 = vrot.lane.b32.xlu0 %v3040_v29, %s3247_s1  ;;  %v1546_v31 = vsel %vm840_vm2, %v3040_v29, 0 }
 0x65b   : > { %v2551_v32 = vpop.f32.mrf.mxu1 }
 0x65e   : > { %1762 = vrot.lane.b32.xlu0 %v3040_v29, %s3248_s7 }
 0x662   : > { %1872 = vrot.lane.b32.xlu0 %v3040_v29, %s3249_s30 }
 0x6ae   : > { %v1369_v11 = vpop.xlane.xlu1 %1368 }
 0x6af   : > { %v1371_v12 = vmul.f32 0.032258064, %v1369_v11 }
 0x6b1   : > { %2684 = vrsqrt.f32 %v1371_v12  ;;  %vm1381_vm6 = vcmp.eq.f32.partialorder %v1371_v12, inf  ;;  %v1384_v15 = vand.u32 2147483648, %v1371_v12  ;;  %vm1383_vm7 = vcmp.eq.f32.partialorder %v1371_v12, 0.0 }
 0x6be   : > { %v2685_v13 = vpop.eup %2684 }
 0x6bf   : > { %v1380_v14 = vmul.f32 %v2685_v13, %v1371_v12 }
 0x6c1   : > { %v1382_v16 = vsel %vm1381_vm6, %v1371_v12, %v1380_v14 }
 0x6c2   : > { %v1385_v17 = vsel %vm1383_vm7, %v1384_v15, %v1382_v16 }
 0x6c3   : > { %v1386_v9 = vadd.f32 1e-06, %v1385_v17 }
 0x6c5   : > { %2686 = vrcp.f32 %v1386_v9 }
 0x6cc   : > { %v1653_v37 = vpop.permute.xlu0 %1652 }
 0x6cd   : > { %v1658_v39 = vsel %vm840_vm2, %v1653_v37, 0 }
 0x6d0   : > { %v1763_v42 = vpop.permute.xlu0 %1762 }
 0x6d1   : > { %v1768_v44 = vsel %vm840_vm2, %v1763_v42, 0 }
 0x6d2   : > { %v2687_v20 = vpop.eup %2686 }
 0x6d3   : > { %v1388_v22 = vmul.f32 %v2687_v20, %v1378_v19 }
 0x6d4   : > { %v1873_v45 = vpop.permute.xlu0 %1872 }
 0x6d5   : > { %v3030_v23 = vadd.f32 %v2379_v21, %v1388_v22  ;;  %v1878_v47 = vsel %vm840_vm2, %v1873_v45, 0 }
 0x6d7   : > { %v1400_v24 = vpack.c.bf16 %v3030_v23, %v3030_v23 }
 0x6d9   : > { %2541 = vmatmul.mubr.msk.bf16.vlgmr.msra.gmra.mxu0 %vm781_vm1, %v1400_v24 }
 0x6da   : > { %2554 = vmatprep.mubr.msk.bf16.mxu0 %vm2721_vm0, %v2720_v1  ;;  %2553 = vmatpush3.bf16.xpose.msra.mxu0 %v1546_v31 }
 0x6db   : > { %2564 = vmatprep.subr.bf16.mxu0 %v2720_v1 }
 0x799   : > { %v1457_v34 = vpop.f32.mrf.mxu0 }
 0x79a   : > { %v1458_v35 = vadd.f32 %v2380_v33, %v1457_v34 }
 0x79b   : > { %v2542_v36 = vpop.f32.mrf.mxu0 }
 0x79c   : > { %v1463_v38 = vpack.c.bf16 %v1458_v35, %v1458_v35 }
 0x79d   : > { %v1460_v40 = vpop.f32.mrf.mxu0 }
 0x79e   : > { %1650 = vrot.lane.b32.xlu1 %v1463_v38, %s3247_s1  ;;  %2555 = vmatmul.mubr.msk.bf16.vlgmr.msra.gmra.mxu0 %vm840_vm2, %v1463_v38  ;;  %s3253_s1 = smov 72  }
 0x79f   : > { %v2543_v41 = vpop.f32.mrf.mxu0  ;;  %2565 = vmatpush3.bf16.xpose.msra.mxu0 %v1658_v39  ;;  %2566 = vmatprep.mubr.msk.bf16.mxu0 %vm2721_vm0, %v2720_v1 }
 0x7a0   : > { %2576 = vmatprep.subr.bf16.mxu0 %v2720_v1 }
 0x7a2   : > { %1760 = vrot.lane.b32.xlu1 %v1463_v38, %s3248_s7  ;;  %s3254_s7 = smov 88  }
 0x7a6   : > { %1870 = vrot.lane.b32.xlu1 %v1463_v38, %s3249_s30 }
 0x810   : > { %v1651_v43 = vpop.permute.xlu1 %1650 }
 0x811   : > { %2567 = vmatmul.mubr.msk.bf16.vlgmr.msra.gmra.mxu0 %vm840_vm2, %v1651_v43 }
 0x812   : > { %2577 = vmatpush3.bf16.xpose.msra.mxu0 %v1768_v44  ;;  %2578 = vmatprep.mubr.msk.bf16.mxu0 %vm2721_vm0, %v2720_v1 }
 0x813   : > { %2588 = vmatprep.subr.bf16.mxu0 %v2720_v1 }
 0x814   : > { %v1761_v46 = vpop.permute.xlu1 %1760 }
 0x818   : > { %v1871_v48 = vpop.permute.xlu1 %1870 }
 0x819   : > { %2579 = vmatmul.mubr.msk.bf16.vlgmr.msra.gmra.mxu0 %vm840_vm2, %v1761_v46 }
 0x81a   : > { %2589 = vmatpush3.bf16.xpose.msra.mxu0 %v1878_v47  ;;  %2590 = vmatprep.mubr.msk.bf16.mxu0 %vm2721_vm0, %v2720_v1 }
 0x81b   : > { %2600 = vmatprep.subr.bf16.mxu0 %v2720_v1 }
 0x821   : > { %2591 = vmatmul.mubr.msk.bf16.vlgmr.msra.gmra.mxu0 %vm840_vm2, %v1871_v48 }
 0x822   : > { %2604 = vmatprep.mubr.msk.bf16.mxu0 %vm2721_vm0, %v2720_v1 }
 0x85e   : > { %v1582_v50 = vpop.f32.mrf.mxu0 }
 0x85f   : > { %v1583_v51 = vadd.f32 %v2388_v49, %v1582_v50 }
 0x860   : > { %v2556_v52 = vpop.f32.mrf.mxu0 }
 0x861   : > { %v1588_v53 = vsel %vm840_vm2, %v1583_v51, -inf }
 0x862   : > { %1589 = vmax.xlane.f32.xlu0 %v1588_v53  ;;  %v1585_v54 = vpop.f32.mrf.mxu0 }
 0x864   : > { %v2557_v55 = vpop.f32.mrf.mxu0 }
 0x8d1   : > { %v1694_v56 = vpop.f32.mrf.mxu0 }
 0x8d2   : > { %v1695_v57 = vadd.f32 %v2388_v49, %v1694_v56 }
 0x8d3   : > { %v2568_v58 = vpop.f32.mrf.mxu0 }
 0x8d4   : > { %v1700_v59 = vsel %vm840_vm2, %v1695_v57, -inf }
 0x8d5   : > { %1701 = vmax.xlane.f32.xlu1 %v1700_v59  ;;  %v1697_v60 = vpop.f32.mrf.mxu0 }
 0x8d6   : > { %v2660_v60 = vld [vmem:[%s3203_s14 + $0x8] sm:$0xff]  }
 0x8d7   : > { %v2569_v61 = vpop.f32.mrf.mxu0  ;;  %2601 = vmatpush3.bf16.msra.mxu0 %v2660_v60 }
 0x8d8   : > { %2602 = vmatprep.subr.bf16.mxu0 %v2720_v1 }
 0x8d9   : > { %v1804_v62 = vpop.f32.mrf.mxu0 }
 0x8da   : > { %v1805_v63 = vadd.f32 %v2388_v49, %v1804_v62 }
 0x8db   : > { %v2580_v0 = vpop.f32.mrf.mxu0 }
 0x8dc   : > { %v1810_v2 = vsel %vm840_vm2, %v1805_v63, -inf }
 0x8dd   : > { %1811 = vmax.xlane.f32.xlu0 %v1810_v2  ;;  %v1807_v4 = vpop.f32.mrf.mxu0 }
 0x8df   : > { %v2581_v5 = vpop.f32.mrf.mxu0 }
 0x8e1   : > { %v1914_v6 = vpop.f32.mrf.mxu0 }
 0x8e2   : > { %v1915_v3 = vadd.f32 %v2388_v49, %v1914_v6 }
 0x8e3   : > { %v2592_v7 = vpop.f32.mrf.mxu0 }
 0x8e4   : > { %v1920_v8 = vsel %vm840_vm2, %v1915_v3, -inf }
 0x8e5   : > { %1921 = vmax.xlane.f32.xlu0 %v1920_v8  ;;  %v1917_v10 = vpop.f32.mrf.mxu0 }
 0x8e7   : > { %v2593_v11 = vpop.f32.mrf.mxu0 }
 0x8eb   : > { %v1590_v12 = vpop.xlane.xlu0 %1589 }
 0x8ec   : > { %v1591_v13 = vsub.f32 %v1583_v51, %v1590_v12 }
 0x8ee   : > { %v1592_v14 = vmul.f32 1.442695, %v1591_v13 }
 0x8f0   : > { %2688 = vpow2.f32 %v1592_v14 }
 0x8fd   : > { %v2689_v15 = vpop.eup %2688 }
 0x8fe   : > { %v1594_v16 = vsel %vm840_vm2, %v2689_v15, 0.0 }
 0x8ff   : > { %1595 = vadd.xlane.f32.xlu1 %v1594_v16 }
 0x910   : > { %1601 = vrot.lane.b32.xlu1 %v3040_v29, %s3251_s26 }
 0x95e   : > { %v1702_v17 = vpop.xlane.xlu1 %1701 }
 0x95f   : > { %v1703_v9 = vsub.f32 %v1695_v57, %v1702_v17 }
 0x961   : > { %v1704_v18 = vmul.f32 1.442695, %v1703_v9 }
 0x963   : > { %2690 = vpow2.f32 %v1704_v18  ;;  %v2397_v18 = vld [vmem:[%s3204_s15] ss:$0 sm:$0xff] }
 0x966   : > { %v1812_v19 = vpop.xlane.xlu0 %1811 }
 0x967   : > { %v1813_v20 = vsub.f32 %v1805_v63, %v1812_v19  ;;  %v2661_v63 = vld [vmem:[%s3203_s14] sm:$0xff]  }
 0x968   : > { %2603 = vmatpush3.bf16.msra.mxu0 %v2661_v63 }
 0x969   : > { %v1814_v21 = vmul.f32 1.442695, %v1813_v20  ;;  %2616 = vmatprep.subr.bf16.mxu0 %v2720_v1 }
 0x96b   : > { %2692 = vpow2.f32 %v1814_v21 }
 0x96e   : > { %v1922_v22 = vpop.xlane.xlu0 %1921 }
 0x96f   : > { %v1923_v24 = vsub.f32 %v1915_v3, %v1922_v22 }
 0x970   : > { %v2691_v25 = vpop.eup %2690 }
 0x971   : > { %v1924_v26 = vmul.f32 1.442695, %v1923_v24  ;;  %v1706_v27 = vsel %vm840_vm2, %v2691_v25, 0.0 }
 0x972   : > { %1707 = vadd.xlane.f32.xlu0 %v1706_v27 }
 0x973   : > { %2694 = vpow2.f32 %v1924_v26 }
 0x978   : > { %v2693_v28 = vpop.eup %2692 }
 0x979   : > { %v1816_v30 = vsel %vm840_vm2, %v2693_v28, 0.0 }
 0x97a   : > { %1817 = vadd.xlane.f32.xlu1 %v1816_v30 }
 0x980   : > { %v2695_v31 = vpop.eup %2694 }
 0x981   : > { %v1926_v32 = vsel %vm840_vm2, %v2695_v31, 0.0 }
 0x982   : > { %1927 = vadd.xlane.f32.xlu0 %v1926_v32 }
 0x988   : > { %v1596_v33 = vpop.xlane.xlu1 %1595 }
 0x989   : > { %2696 = vrcp.f32 %v1596_v33  ;;  %v2662_v33 = vld [vmem:[%s3207_s18 + $0x8] sm:$0xff]  }
 0x98b   : > { %1822 = vrot.lane.b32.xlu1 %v3040_v29, %s3252_s4 }
 0x98c   : > { %v1602_v34 = vpop.permute.xlu1 %1601 }
 0x98d   : > { %v1607_v35 = vsel %vm904_vm3, %v1602_v34, 0  ;;  %v2664_v34 = vld [vmem:[%s3209_s20 + $0x18] sm:$0xff]  }
 0x98e   : > { %2559 = vmatpush3.bf16.msra.mxu1 %v1607_v35  ;;  %v2665_v35 = vld [vmem:[%s3209_s20 + $0x10] sm:$0xff]  }
 0x98f   : > { %1932 = vrot.lane.b32.xlu1 %v3040_v29, %s3253_s1  ;;  %2570 = vmatprep.subr.bf16.mxu1 %v2720_v1 }
 0x996   : > { %v2697_v36 = vpop.eup %2696 }
 0x997   : > { %v1598_v37 = vmul.f32 %v2697_v36, %v2689_v15 }
 0x998   : > { %1712 = vrot.lane.b32.xlu0 %v3040_v29, %s3254_s7 }
 0x999   : > { %v1599_v38 = vpack.c.bf16 %v1598_v37, %v1598_v37 }
 0x99b   : > { %2561 = vmatmul.mubr.msk.bf16.vlgmr.msra.gmra.mxu1 %vm840_vm2, %v1599_v38 }
 0x99c   : > { %2572 = vmatprep.mubr.msk.bf16.mxu1 %vm2721_vm0, %v2720_v1 }
 0x9fb   : > { %v1708_v39 = vpop.xlane.xlu0 %1707 }
 0x9fc   : > { %2698 = vrcp.f32 %v1708_v39 }
 0xa03   : > { %v1818_v40 = vpop.xlane.xlu1 %1817 }
 0xa04   : > { %2700 = vrcp.f32 %v1818_v40 }
 0xa07   : > { %v1823_v46 = vpop.permute.xlu1 %1822 }
 0xa08   : > { %v1828_v48 = vsel %vm904_vm3, %v1823_v46, 0 }
 0xa09   : > { %v2699_v41 = vpop.eup %2698 }
 0xa0a   : > { %v1710_v43 = vmul.f32 %v2699_v41, %v2691_v25 }
 0xa0b   : > { %v1928_v42 = vpop.xlane.xlu0 %1927  ;;  %v1933_v50 = vpop.permute.xlu1 %1932 }
 0xa0c   : > { %2702 = vrcp.f32 %v1928_v42  ;;  %v1711_v29 = vpack.c.bf16 %v1710_v43, %v1710_v43  ;;  %v1938_v53 = vsel %vm904_vm3, %v1933_v50, 0  ;;  %v2666_v50 = vld [vmem:[%s3209_s20 + $0x8] sm:$0xff]  }
 0xa0f   : > { %v1713_v44 = vpop.permute.xlu0 %1712 }
 0xa10   : > { %v1718_v45 = vsel %vm904_vm3, %v1713_v44, 0  ;;  %v2401_v44 = vld [vmem:[%s3205_s16] ss:$0 sm:$0xff] }
 0xa11   : > { %2571 = vmatpush3.bf16.msra.mxu1 %v1718_v45  ;;  %v2701_v47 = vpop.eup %2700 }
 0xa12   : > { %2582 = vmatprep.subr.bf16.mxu1 %v2720_v1  ;;  %v1820_v49 = vmul.f32 %v2701_v47, %v2693_v28 }
 0xa14   : > { %2573 = vmatmul.mubr.msk.bf16.vlgmr.msra.gmra.mxu1 %vm840_vm2, %v1711_v29  ;;  %v1821_v51 = vpack.c.bf16 %v1820_v49, %v1820_v49  ;;  %v2402_v29 = vld [vmem:[%s3206_s17] ss:$0 sm:$0xff] }
 0xa15   : > { %2583 = vmatpush3.bf16.msra.mxu1 %v1828_v48  ;;  %2584 = vmatprep.mubr.msk.bf16.mxu1 %vm2721_vm0, %v2720_v1 }
 0xa16   : > { %2594 = vmatprep.subr.bf16.mxu1 %v2720_v1 }
 0xa19   : > { %v2703_v52 = vpop.eup %2702 }
 0xa1a   : > { %v1930_v54 = vmul.f32 %v2703_v52, %v2695_v31  ;;  %v2403_v52 = vld [vmem:[%s3208_s19] ss:$0 sm:$0xff] }
 0xa1c   : > { %2585 = vmatmul.mubr.msk.bf16.vlgmr.msra.gmra.mxu1 %vm840_vm2, %v1821_v51  ;;  %v1931_v55 = vpack.c.bf16 %v1930_v54, %v1930_v54  ;;  %v2667_v51 = vld [vmem:[%s3209_s20] sm:$0xff]  }
 0xa1d   : > { %2595 = vmatpush3.bf16.msra.mxu1 %v1938_v53  ;;  %2596 = vmatprep.mubr.msk.bf16.mxu1 %vm2721_vm0, %v2720_v1 }
 0xa1e   : > { %2608 = vmatprep.subr.bf16.mxu1 %v2720_v1 }
 0xa24   : > { %2597 = vmatmul.mubr.msk.bf16.vlgmr.msra.gmra.mxu1 %vm840_vm2, %v1931_v55 }
 0xa25   : > { %2612 = vmatprep.mubr.msk.bf16.mxu1 %vm2721_vm0, %v2720_v1  ;;  %2609 = vmatpush3.bf16.msra.mxu1 %v2662_v33 }
 0xa26   : > { %2610 = vmatprep.subr.bf16.mxu1 %v2720_v1 }
 0xa5b   : > { %v1643_v56 = vpop.f32.mrf.mxu1 }
 0xa5d   : > { %v2562_v57 = vpop.f32.mrf.mxu1 }
 0xa5f   : > { %v1646_v58 = vpop.f32.mrf.mxu1 }
 0xa61   : > { %v2563_v59 = vpop.f32.mrf.mxu1 }
 0xad4   : > { %v1754_v61 = vpop.f32.mrf.mxu1 }
 0xad5   : > { %1981 = vrot.lane.b32.xlu0 %v1754_v61, %s3255_s28  ;;  %s749_s28 = scalar_lea.vmem %s3213_s24, %s2359_s29 }
 0xad6   : > { %v2574_v62 = vpop.f32.mrf.mxu1 }
 0xad8   : > { %v1757_v0 = vpop.f32.mrf.mxu1 }
 0xada   : > { %v2575_v2 = vpop.f32.mrf.mxu1 }
 0xadc   : > { %v1864_v4 = vpop.f32.mrf.mxu1 }
 0xadd   : > { %1985 = vrot.lane.b32.xlu1 %v1864_v4, %s3256_s25 }
 0xade   : > { %v2586_v5 = vpop.f32.mrf.mxu1 }
 0xae0   : > { %v1867_v6 = vpop.f32.mrf.mxu1 }
 0xae2   : > { %v2587_v3 = vpop.f32.mrf.mxu1 }
 0xae4   : > { %v1974_v7 = vpop.f32.mrf.mxu1 }
 0xae5   : > { %1989 = vrot.lane.b32.xlu0 %v1974_v7, %s3257_s8 }
 0xae6   : > { %v2598_v8 = vpop.f32.mrf.mxu1 }
 0xae8   : > { %v1977_v10 = vpop.f32.mrf.mxu1 }
 0xaea   : > { %v2599_v11 = vpop.f32.mrf.mxu1 }
 0xb47   : > { %v1982_v12 = vpop.permute.xlu0 %1981 }
 0xb48   : > { %v1992_v14 = vsel %vm840_vm2, %v1643_v56, %v1982_v12 }
 0xb4f   : > { %v1986_v13 = vpop.permute.xlu1 %1985 }
 0xb50   : > { %v1993_v15 = vsel %vm1291_vm4, %v1992_v14, %v1986_v13 }
 0xb57   : > { %v1990_v16 = vpop.permute.xlu0 %1989 }
 0xb58   : > { %v1994_v17 = vsel %vm1293_vm5, %v1993_v15, %v1990_v16 }
 0xb59   : > { %v1995_v9 = vpack.c.bf16 %v1994_v17, %v1994_v17 }
 0xb5b   : > { %2605 = vmatmul.mubr.msk.bf16.vlgmr.msra.gmra.mxu0 %vm781_vm1, %v1995_v9  ;;  %v2413_v9 = vld [vmem:[%s3211_s22] ss:$0 sm:$0xff] }
 0xb5c   : > { %2624 = vmatprep.mubr.msk.bf16.mxu0 %vm2721_vm0, %v2720_v1  ;;  %2617 = vmatpush3.bf16.msra.mxu0 %v2664_v34 }
 0xb5d   : > { %2618 = vmatprep.subr.bf16.mxu0 %v2720_v1 }
 0xb60   : > { %2619 = vmatpush3.bf16.msra.mxu0 %v2665_v35 }
 0xb61   : > { %2620 = vmatprep.subr.bf16.mxu0 %v2720_v1 }
 0xb64   : > { %2621 = vmatpush3.bf16.msra.mxu0 %v2666_v50 }
 0xb65   : > { %2622 = vmatprep.subr.bf16.mxu0 %v2720_v1  ;;  %v2407_v1 = vld [vmem:[%s3210_s21] ss:$0 sm:$0xff] }
 0xb68   : > { %2623 = vmatpush3.bf16.msra.mxu0 %v2667_v51 }
 0xc1b   : > { %v2051_v19 = vpop.f32.mrf.mxu0 }
 0xc1c   : > { %v2052_v20 = vadd.f32 %v2397_v18, %v2051_v19 }
 0xc1d   : > { %v2606_v21 = vpop.f32.mrf.mxu0 }
 0xc1e   : > { %v2057_v22 = vadd.f32 %v2052_v20, %v3030_v23  ;;  %v2663_v23 = vld [vmem:[%s3207_s18] sm:$0xff]  }
 0xc1f   : > { %v2054_v24 = vpop.f32.mrf.mxu0  ;;  %2611 = vmatpush3.bf16.msra.mxu1 %v2663_v23  ;;  %v2414_v20 = vld [vmem:[%s3212_s23] ss:$0 sm:$0xff] }
 0xc20   : > { %v2060_v25 = vsel %vm781_vm1, %v2057_v22, 0.0 }
 0xc21   : > { %2061 = vadd.xlane.f32.xlu1 %v2060_v25  ;;  %v2607_v26 = vpop.f32.mrf.mxu0 }
 0xcaa   : > { %v2062_v27 = vpop.xlane.xlu1 %2061 }
 0xcab   : > { %v2063_v28 = vmul.f32 0.03125, %v2062_v27 }
 0xcad   : > { %v2064_v30 = vsub.f32 %v2057_v22, %v2063_v28 }
 0xcaf   : > { %v2065_v31 = vmul.f32 %v2064_v30, %v2064_v30  ;;  %v2076_v45 = vmul.f32 %v2401_v44, %v2064_v30 }
 0xcb1   : > { %v2066_v32 = vsel %vm781_vm1, %v2065_v31, 0.0 }
 0xcb2   : > { %2067 = vadd.xlane.f32.xlu0 %v2066_v32 }
 0xd3b   : > { %v2068_v36 = vpop.xlane.xlu0 %2067 }
 0xd3c   : > { %v2069_v37 = vmul.f32 0.032258064, %v2068_v36 }
 0xd3e   : > { %2704 = vrsqrt.f32 %v2069_v37  ;;  %vm2079_vm8 = vcmp.eq.f32.partialorder %v2069_v37, inf  ;;  %v2082_v40 = vand.u32 2147483648, %v2069_v37  ;;  %vm2081_vm9 = vcmp.eq.f32.partialorder %v2069_v37, 0.0 }
 0xd4b   : > { %v2705_v38 = vpop.eup %2704 }
 0xd4c   : > { %v2078_v39 = vmul.f32 %v2705_v38, %v2069_v37 }
 0xd4e   : > { %v2080_v41 = vsel %vm2079_vm8, %v2069_v37, %v2078_v39 }
 0xd4f   : > { %v2083_v42 = vsel %vm2081_vm9, %v2082_v40, %v2080_v41 }
 0xd50   : > { %v2084_v43 = vadd.f32 1e-06, %v2083_v42 }
 0xd52   : > { %2706 = vrcp.f32 %v2084_v43 }
 0xd5f   : > { %v2707_v46 = vpop.eup %2706 }
 0xd60   : > { %v2086_v47 = vmul.f32 %v2707_v46, %v2076_v45 }
 0xd62   : > { %v2093_v48 = vadd.f32 %v2402_v29, %v2086_v47 }
 0xd64   : > { %v2098_v49 = vpack.c.bf16 %v2093_v48, %v2093_v48 }
 0xd66   : > { %2613 = vmatmul.mubr.msk.bf16.vlgmr.msra.gmra.mxu1 %vm781_vm1, %v2098_v49 }
 0xe26   : > { %v2155_v53 = vpop.f32.mrf.mxu1 }
 0xe27   : > { %v2156_v54 = vadd.f32 %v2403_v52, %v2155_v53 }
 0xe28   : > { %v2614_v55 = vpop.f32.mrf.mxu1 }
 0xe29   : > { %v2161_v56 = vmax.f32 %v2156_v54, 0.0 }
 0xe2a   : > { %v2158_v57 = vpop.f32.mrf.mxu1 }
 0xe2b   : > { %v2162_v58 = vpack.c.bf16 %v2161_v56, %v2161_v56 }
 0xe2c   : > { %v2615_v59 = vpop.f32.mrf.mxu1 }
 0xe2d   : > { %2625 = vmatmul.mubr.msk.bf16.vlgmr.msra.gmra.mxu0 %vm2202_vm10, %v2162_v58 }
 0xeed   : > { %v2240_v60 = vpop.f32.mrf.mxu0 }
 0xeee   : > { %v2241_v61 = vadd.f32 %v2407_v1, %v2240_v60 }
 0xeef   : > { %v2626_v62 = vpop.f32.mrf.mxu0 }
 0xef0   : > { %v2246_v63 = vadd.f32 %v2241_v61, %v2093_v48 }
 0xef1   : > { %v2243_v0 = vpop.f32.mrf.mxu0 }
 0xef2   : > { %v2249_v2 = vsel %vm781_vm1, %v2246_v63, 0.0 }
 0xef3   : > { %2250 = vadd.xlane.f32.xlu0 %v2249_v2  ;;  %v2627_v4 = vpop.f32.mrf.mxu0 }
 0xf7c   : > { %v2251_v5 = vpop.xlane.xlu0 %2250 }
 0xf7d   : > { %v2252_v6 = vmul.f32 0.03125, %v2251_v5 }
 0xf7f   : > { %v2253_v3 = vsub.f32 %v2246_v63, %v2252_v6 }
 0xf81   : > { %v2254_v7 = vmul.f32 %v2253_v3, %v2253_v3  ;;  %v2265_v18 = vmul.f32 %v2413_v9, %v2253_v3 }
 0xf83   : > { %v2255_v8 = vsel %vm781_vm1, %v2254_v7, 0.0 }
 0xf84   : > { %2256 = vadd.xlane.f32.xlu1 %v2255_v8 }
0x100d   : > { %v2257_v10 = vpop.xlane.xlu1 %2256 }
0x100e   : > { %v2258_v11 = vmul.f32 0.032258064, %v2257_v10 }
0x1010   : > { %2708 = vrsqrt.f32 %v2258_v11  ;;  %vm2268_vm11 = vcmp.eq.f32.partialorder %v2258_v11, inf  ;;  %v2271_v14 = vand.u32 2147483648, %v2258_v11  ;;  %vm2270_vm12 = vcmp.eq.f32.partialorder %v2258_v11, 0.0 }
0x101d   : > { %v2709_v12 = vpop.eup %2708 }
0x101e   : > { %v2267_v13 = vmul.f32 %v2709_v12, %v2258_v11 }
0x1020   : > { %v2269_v15 = vsel %vm2268_vm11, %v2258_v11, %v2267_v13 }
0x1021   : > { %v2272_v16 = vsel %vm2270_vm12, %v2271_v14, %v2269_v15 }
0x1022   : > { %v2273_v17 = vadd.f32 1e-06, %v2272_v16 }
0x1024   : > { %2710 = vrcp.f32 %v2273_v17 }
0x1031   : > { %v2711_v19 = vpop.eup %2710 }
0x1032   : > { %v2275_v21 = vmul.f32 %v2711_v19, %v2265_v18 }
0x1034   : > { %v2282_v22 = vadd.f32 %v2414_v20, %v2275_v21 }
0x1036   : > { %v2283_v24 = vpack.c.bf16 %v2282_v22, %v2282_v22 }
0x1038   : > { %2285 = vst.msk [vmem:[%s749_s28] sm:$0xf] %vm2284_vm13, %v2283_v24 }
0x1039 PF: > { %s34_s5 = sadd.s32 1, %s2718_s5  }
0x103a   : > { %p31_p4 = scmp.ge.s32.totalorder %s34_s5, 4  }
0x103c   :  { %33 = sbr.rel (!%p31_p4) target bundleno = 10 (0xa), region = 151 }

// kernel: _lambda_.13
= control target key start
LH: loop header
LB: loop body
LE: loop exit
PB: predicated region body
PF: predicated region fallthrough
CT: control target
= control target key end

     0   :  { %vm30_vm0 = vcmask 1041408   ;;  %s351_s0 = inlined_call_operand.vmem [shape: f32[2,128], index: 0, kind: input, shape index: {}]   ;;  %s352_s1 = inlined_call_operand.vmem [shape: f32[2,128], index: 1, kind: input, shape index: {}]   ;;  %s353_s2 = inlined_call_operand.vmem [shape: f32[1,128], index: 2, kind: input, shape index: {}]   ;;  %s354_s3 = inlined_call_operand.vmem [shape: f32[1,128], index: 3, kind: input, shape index: {}]   ;;  %s355_s4 = inlined_call_operand.vmem [shape: bf16[128,128], index: 4, kind: input, shape index: {}]   ;;  %s356_s5 = inlined_call_operand.vmem [shape: f32[1,128], index: 5, kind: input, shape index: {}]   ;;  %s357_s6 = inlined_call_operand.hbm [shape: f32[2,128], index: 6, kind: output, shape index: {}]  }
   0x1   :  { %v25_v0 = vld [vmem:[%s351_s0] sm:$0x3] }
   0x2   :  { %v26_v1 = vld [vmem:[%s352_s1] sm:$0x3] }
   0x3   :  { %v27_v2 = vadd.f32 %v26_v1, %v25_v0 }
   0x5   :  { %v31_v3 = vsel %vm30_vm0, %v27_v2, 0.0 }
   0x6   :  { %32 = vadd.xlane.f32.xlu0 %v31_v3 }
   0x7   :  { %11 = vsyncpa [#allocation3], 0  ;;  %v237_v9 = vld [vmem:[%s355_s4 + $0x38] sm:$0xff]   ;;  %v271_v10 = vmov 0.0   ;;  %v238_v11 = vld [vmem:[%s355_s4 + $0x30] sm:$0xff]   ;;  %vm272_vm1 = vmmov 0  }
   0x8   :  { %214 = vmatprep.subr.bf16.mxu0 %v271_v10  ;;  %v239_v12 = vld [vmem:[%s355_s4 + $0x28] sm:$0xff]   ;;  %v240_v13 = vld [vmem:[%s355_s4 + $0x20] sm:$0xff]   ;;  %230 = vmatprep.mubr.msk.bf16.mxu0 %vm272_vm1, %v271_v10  ;;  %v241_v14 = vld [vmem:[%s355_s4 + $0x18] sm:$0xff]   ;;  %s273_s20 = smov [#allocation2]  }
   0x9   :  { %215 = vmatpush3.bf16.msra.mxu0 %v237_v9  ;;  %v242_v15 = vld [vmem:[%s355_s4 + $0x10] sm:$0xff]   ;;  %v243_v16 = vld [vmem:[%s355_s4 + $0x8] sm:$0xff]   ;;  %v244_v17 = vld [vmem:[%s355_s4] sm:$0xff]   ;;  %s186_s21 = sshll.u32 %s273_s20, 4  ;;  %s187_s21 = int_to_ptr.vmem [resolvable:$true] %s186_s21 }
   0xa   :  { %216 = vmatprep.subr.bf16.mxu0 %v271_v10  ;;  %v194_v26 = vld [vmem:[%s353_s2] ss:$0 sm:$0xff]  ;;  %s249_s2 = scalar_lea.vmem %s187_s21, 32  ;;  %p254_p1 = scmp.lt.s32.totalorder %s187_s21, %s187_s21 }
   0xb   :  { %v195_v29 = vld [vmem:[%s354_s3] ss:$0 sm:$0xff]  ;;  %p250_p0 = scmp.ne.s32.totalorder %s187_s21, %s249_s2  ;;  %p255_p2 = scmp.lt.s32.totalorder %s249_s2, %s249_s2 }
   0xc   :  { %v196_v33 = vld [vmem:[%s356_s5] ss:$0 sm:$0xff] }
   0xd   :  { %217 = vmatpush3.bf16.msra.mxu0 %v238_v11  ;;  %p256_p3 = por %p255_p2, %p254_p1 }
   0xe   :  { %218 = vmatprep.subr.bf16.mxu0 %v271_v10 }
   0xf   :  { %p257_p4 = pnand %p256_p3, %p250_p0 }
  0x11   :  { %219 = vmatpush3.bf16.msra.mxu0 %v239_v12 }
  0x12   :  { %220 = vmatprep.subr.bf16.mxu0 %v271_v10 }
  0x15   :  { %221 = vmatpush3.bf16.msra.mxu0 %v240_v13 }
  0x16   :  { %222 = vmatprep.subr.bf16.mxu0 %v271_v10 }
  0x19   :  { %223 = vmatpush3.bf16.msra.mxu0 %v241_v14 }
  0x1a   :  { %224 = vmatprep.subr.bf16.mxu0 %v271_v10 }
  0x1d   :  { %225 = vmatpush3.bf16.msra.mxu0 %v242_v15 }
  0x1e   :  { %226 = vmatprep.subr.bf16.mxu0 %v271_v10 }
  0x21   :  { %227 = vmatpush3.bf16.msra.mxu0 %v243_v16 }
  0x22   :  { %228 = vmatprep.subr.bf16.mxu0 %v271_v10 }
  0x25   :  { %229 = vmatpush3.bf16.msra.mxu0 %v244_v17 }
  0x8f   :  { %v33_v4 = vpop.xlane.xlu0 %32 }
  0x90   :  { %v35_v5 = vmul.f32 0.0078125, %v33_v4 }
  0x92   :  { %v36_v6 = vsub.f32 %v27_v2, %v35_v5 }
  0x94   :  { %v37_v7 = vmul.f32 %v36_v6, %v36_v6  ;;  %v49_v27 = vmul.f32 %v194_v26, %v36_v6 }
  0x96   :  { %v38_v8 = vsel %vm30_vm0, %v37_v7, 0.0 }
  0x97   :  { %39 = vadd.xlane.f32.xlu0 %v38_v8 }
 0x120   :  { %v40_v18 = vpop.xlane.xlu0 %39 }
 0x121   :  { %v42_v19 = vmul.f32 0.007874016, %v40_v18 }
 0x123   :  { %245 = vrsqrt.f32 %v42_v19  ;;  %vm52_vm2 = vcmp.eq.f32.partialorder %v42_v19, inf  ;;  %v55_v22 = vand.u32 2147483648, %v42_v19  ;;  %vm54_vm3 = vcmp.eq.f32.partialorder %v42_v19, 0.0 }
 0x130   :  { %v246_v20 = vpop.eup %245 }
 0x131   :  { %v51_v21 = vmul.f32 %v246_v20, %v42_v19 }
 0x133   :  { %v53_v23 = vsel %vm52_vm2, %v42_v19, %v51_v21 }
 0x134   :  { %v56_v24 = vsel %vm54_vm3, %v55_v22, %v53_v23 }
 0x135   :  { %v57_v25 = vadd.f32 1e-06, %v56_v24 }
 0x137   :  { %247 = vrcp.f32 %v57_v25 }
 0x144   :  { %v248_v28 = vpop.eup %247 }
 0x145   :  { %v59_v30 = vmul.f32 %v248_v28, %v49_v27 }
 0x147   :  { %v66_v31 = vadd.f32 %v195_v29, %v59_v30 }
 0x149   :  { %v83_v32 = vpack.c.bf16 %v66_v31, %v66_v31 }
 0x14b   :  { %231 = vmatmul.mubr.bf16.vlgmr.msra.gmra.mxu0 %v83_v32 }
 0x20b   :  { %v173_v34 = vpop.f32.mrf.mxu0 }
 0x20c   :  { %v174_v35 = vadd.f32 %v196_v33, %v173_v34 }
 0x20d   :  { %v232_v36 = vpop.f32.mrf.mxu0 }
 0x20e   :  { %179 = vst [vmem:[#allocation2] sm:$0x3] %v174_v35 }
 0x20f   :  { %v176_v37 = vpop.f32.mrf.mxu0 }
 0x210   :  { %260 = shalt.err (!%p257_p4)
}
 0x211   :  { %189 = dma.vmem_to_hbm [thread:$0]  %s187_s21, 32, %s357_s6, [#allocation3]   ;;  %v233_v38 = vpop.f32.mrf.mxu0 }
 0x212   :  { %269 = dma.done.wait [#allocation3], 32  }
 0x213   :  { %270 = vsyncadd [#allocation3], 4294967264 }
 0x214   :  { %193 = vsyncpa [#allocation3], 1 }

// kernel: _lambda_.12
= control target key start
LH: loop header
LB: loop body
LE: loop exit
PB: predicated region body
PF: predicated region fallthrough
CT: control target
= control target key end

     0   :  { %s804_s29 = smov 0   ;;  %s873_s0 = inlined_call_operand.vmem [shape: bf16[2,8,32], index: 0, kind: input, shape index: {}]   ;;  %s874_s1 = inlined_call_operand.vmem [shape: f32[2,8,1], index: 1, kind: input, shape index: {}]   ;;  %s875_s2 = inlined_call_operand.vmem [shape: bf16[32,32], index: 2, kind: input, shape index: {}]   ;;  %s876_s3 = inlined_call_operand.vmem [shape: f32[1,32], index: 3, kind: input, shape index: {}]   ;;  %s877_s4 = inlined_call_operand.vmem [shape: bf16[32,1], index: 4, kind: input, shape index: {}]   ;;  %s878_s5 = inlined_call_operand.<no memory space> [shape: f32[1,1], index: 5, kind: input, shape index: {}]   ;;  %s879_s6 = inlined_call_operand.vmem [shape: bf16[32,128], index: 6, kind: input, shape index: {}]   ;;  %s880_s7 = inlined_call_operand.vmem [shape: f32[1,128], index: 7, kind: input, shape index: {}]   ;;  %s881_s8 = inlined_call_operand.vmem [shape: f32[2,1,128], index: 8, kind: output, shape index: {}]  }
   0x1   :  { %v13_v0 = vstv %s878_s5 }
   0x2   :  { %14 = vst [vmem:[#allocation2] sm:$0x1] %v13_v0 }
   0x3 LB: > { %s663_s30 = sadd.s32 4294967295, %s752_s29   ;;  %p667_p0 = scmp.ge.s32.totalorder %s752_s29, 1  ;;  %s752_s29 = sphi %s804_s29, %s20_s29  }
   0x4   : > { %p272_p1 = scmp.lt.s32.totalorder %s752_s29, 3 }
   0x6   : > { %p273_p2 = pnand %p667_p0, %p272_p1 }
   0x7   : > { %p307_p3 = scmp.lt.s32.totalorder (!%p273_p2), %s663_s30, 1 }
   0x8   : > { %276 = sbr.rel (%p273_p2) target bundleno = 973 (0x3cd), region = 52 }
   0xd   : > { %v736_v1 = vld [vmem:[%s875_s2 + $0x8] sm:$0xff]   ;;  %v754_v2 = vmov 0.0   ;;  %v737_v3 = vld [vmem:[%s875_s2] sm:$0xff]   ;;  %vm755_vm0 = vmmov 0   ;;  %s883_s30 = smov (!%p307_p3, %s663_s30), 1  ;;  %vm344_vm1 = vcmask 261120  }
   0xe   : > { %695 = vmatprep.subr.bf16.mxu0 %v754_v2  ;;  %703 = vmatprep.subr.bf16.mxu1 %v754_v2  ;;  %s668_s12 = sshll.u32 %s883_s30, 2  ;;  %v738_v5 = vld [vmem:[%s877_s4 + $0x8] sm:$0xff]   ;;  %v739_v6 = vld [vmem:[%s877_s4] sm:$0xff]   ;;  %vm499_vm2 = vcmask 1043456   ;;  %s669_s22 = sshll.u32 %s883_s30, 3  ;;  %vm458_vm3 = vcmask 7168  }
   0xf   : > { %696 = vmatpush3.bf16.msra.mxu0 %v736_v1  ;;  %699 = vmatprep.mubr.msk.bf16.mxu0 %vm755_vm0, %v754_v2  ;;  %s310_s15 = scalar_lea.vmem %s873_s0, %s668_s12  ;;  %v670_v7 = vld [vmem:[%s876_s3] ss:$0 sm:$0xff]  ;;  %s314_s25 = scalar_lea.vmem %s874_s1, %s669_s22  ;;  %v740_v37 = vld [vmem:[%s879_s6 + $0x8] sm:$0xff]   ;;  %vm495_vm4 = vcmask 64512  }
  0x10   : > { %697 = vmatprep.subr.bf16.mxu0 %v754_v2  ;;  %707 = vmatprep.mubr.msk.bf16.mxu1 %vm755_vm0, %v754_v2  ;;  %v319_v4 = vld [vmem:[%s310_s15] sm:$0xf]  ;;  %s317_s13 = scalar_lea.vmem %s881_s8, %s883_s30 }
  0x11   : > { %704 = vmatpush3.bf16.msra.mxu1 %v738_v5  ;;  %v500_v15 = vsel %vm499_vm2, %v319_v4, 0  ;;  %v320_v16 = vld [vmem:[%s314_s25] sm:$0xff] }
  0x12   : > { %705 = vmatprep.subr.bf16.mxu1 %v754_v2  ;;  %v674_v17 = vld [vmem:[#allocation2] ss:$0 sm:$0xff]  ;;  %v456_v18 = vmul.f32 -1e+09, %v320_v16 }
  0x13   : > { %698 = vmatpush3.bf16.msra.mxu0 %v737_v3  ;;  %v741_v39 = vld [vmem:[%s879_s6] sm:$0xff]  }
  0x14   : > { %711 = vmatprep.subr.bf16.mxu0 %v754_v2  ;;  %v547_v53 = vld [vmem:[%s880_s7] sm:$0x1] }
  0x15   : > { %706 = vmatpush3.bf16.msra.mxu1 %v739_v6 }
  0x16   : > { %700 = vmatmul.mubr.msk.bf16.vlgmr.msra.gmra.mxu0 %vm344_vm1, %v319_v4  ;;  %717 = vmatprep.subr.bf16.mxu1 %v754_v2 }
  0x17   : > { %713 = vmatprep.mubr.msk.bf16.mxu0 %vm755_vm0, %v754_v2  ;;  %712 = vmatpush3.bf16.msra.mxu0 %v500_v15 }
  0xd6   : > { %v382_v8 = vpop.f32.mrf.mxu0 }
  0xd7   : > { %v383_v9 = vadd.f32 %v670_v7, %v382_v8 }
  0xd8   : > { %v701_v10 = vpop.f32.mrf.mxu0 }
  0xd9   : > { %v388_v11 = vmax.f32 %v383_v9, 0.0 }
  0xda   : > { %v385_v12 = vpop.f32.mrf.mxu0 }
  0xdb   : > { %v389_v13 = vpack.c.bf16 %v388_v11, %v388_v11 }
  0xdc   : > { %v702_v14 = vpop.f32.mrf.mxu0 }
  0xdd   : > { %708 = vmatmul.mubr.msk.bf16.vlgmr.msra.gmra.mxu1 %vm344_vm1, %v389_v13 }
  0xde   : > { %721 = vmatprep.mubr.msk.bf16.mxu1 %vm755_vm0, %v754_v2  ;;  %718 = vmatpush3.bf16.msra.mxu1 %v740_v37 }
  0xdf   : > { %719 = vmatprep.subr.bf16.mxu1 %v754_v2 }
  0xe2   : > { %720 = vmatpush3.bf16.msra.mxu1 %v741_v39 }
 0x19d   : > { %v450_v19 = vpop.f32.mrf.mxu1 }
 0x19e   : > { %v451_v20 = vadd.f32 %v674_v17, %v450_v19 }
 0x19f   : > { %v709_v21 = vpop.f32.mrf.mxu1 }
 0x1a0   : > { %v457_v22 = vadd.f32 %v456_v18, %v451_v20 }
 0x1a1   : > { %v453_v23 = vpop.f32.mrf.mxu1 }
 0x1a2   : > { %v459_v24 = vsel %vm458_vm3, %v457_v22, -inf }
 0x1a3   : > { %v460_v25 = vrot.slane %v459_v24, 4  ;;  %v710_v26 = vpop.f32.mrf.mxu1 }
 0x1a5   : > { %v461_v27 = vmax.f32 %v459_v24, %v460_v25 }
 0x1a7   : > { %v462_v28 = vrot.slane %v461_v27, 2 }
 0x1a9   : > { %v463_v29 = vmax.f32 %v461_v27, %v462_v28 }
 0x1ab   : > { %v464_v30 = vrot.slane %v463_v29, 1 }
 0x1ad   : > { %v465_v31 = vmax.f32 %v463_v29, %v464_v30 }
 0x1af   : > { %v466_v32 = vsub.f32 %v457_v22, %v465_v31 }
 0x1b1   : > { %v467_v33 = vmul.f32 1.442695, %v466_v32 }
 0x1b3   : > { %742 = vpow2.f32 %v467_v33 }
 0x1c0   : > { %v743_v34 = vpop.eup %742 }
 0x1c1   : > { %v469_v35 = vsel %vm458_vm3, %v743_v34, 0.0 }
 0x1c2   : > { %v470_v36 = vrot.slane %v469_v35, 4 }
 0x1c4   : > { %v471_v38 = vadd.f32 %v470_v36, %v469_v35 }
 0x1c6   : > { %v472_v40 = vrot.slane %v471_v38, 2 }
 0x1c8   : > { %v473_v41 = vadd.f32 %v472_v40, %v471_v38 }
 0x1ca   : > { %v474_v42 = vrot.slane %v473_v41, 1 }
 0x1cc   : > { %v475_v43 = vadd.f32 %v474_v42, %v473_v41 }
 0x1ce   : > { %744 = vrcp.f32 %v475_v43 }
 0x1db   : > { %v745_v44 = vpop.eup %744 }
 0x1dc   : > { %v477_v45 = vmul.f32 %v745_v44, %v743_v34 }
 0x1de   : > { %v478_v46 = vpack.c.bf16 %v477_v45, %v477_v45 }
 0x1e0   : > { %479 = vxpose.xlu0.c.b16.start.end [1/1] (short) (narrow) %v478_v46, 16 }
 0x242   : > { %v487_v47 = vpop.trf.xlu0 }
 0x243   : > { %714 = vmatmul.mubr.msk.bf16.vlgmr.msra.gmra.mxu0 %vm495_vm4, %v487_v47 }
 0x303   : > { %v536_v48 = vpop.f32.mrf.mxu0 }
 0x304   : > { %v546_v49 = vpack.c.bf16 %v536_v48, %v536_v48 }
 0x305   : > { %v715_v50 = vpop.f32.mrf.mxu0 }
 0x306   : > { %722 = vmatmul.mubr.msk.bf16.vlgmr.msra.gmra.mxu1 %vm344_vm1, %v546_v49 }
 0x307   : > { %v539_v51 = vpop.f32.mrf.mxu0 }
 0x309   : > { %v716_v52 = vpop.f32.mrf.mxu0 }
 0x3c6   : > { %v597_v54 = vpop.f32.mrf.mxu1 }
 0x3c7   : > { %v598_v55 = vadd.f32 %v597_v54, %v547_v53 }
 0x3c8   : > { %v723_v56 = vpop.f32.mrf.mxu1 }
 0x3c9   : > { %603 = vst [vmem:[%s317_s13] sm:$0x1] %v598_v55 }
 0x3ca   : > { %v600_v57 = vpop.f32.mrf.mxu1 }
 0x3cc   : > { %v724_v58 = vpop.f32.mrf.mxu1 }
 0x3cd PF: > { %s20_s29 = sadd.s32 1, %s752_s29  }
 0x3ce   : > { %p17_p4 = scmp.ge.s32.totalorder %s20_s29, 4  }
 0x3d0   :  { %19 = sbr.rel (!%p17_p4) target bundleno = 3 (0x3), region = 85 }

</bundles_post_ra>
